<compile_context>
chip_gen: v7x
topology: tpu7x:2x2x1
jax: 0.10.0
libtpu: 0.0.40
codegen_flags: <defaults>
</compile_context>

<pallas_src>
import math

import jax
import jax.numpy as jnp
from jax.experimental import pallas as pl
from jax.experimental.pallas import tpu as pltpu

# ---- facebook/dinov2-small architecture constants (weights are synthetic) ----
HIDDEN = 384
NUM_HEADS = 6
HEAD_DIM = HIDDEN // NUM_HEADS        # 64
MLP_DIM = 4 * HIDDEN                  # 1536
NUM_LAYERS = 12
PATCH = 14
PROJ_DIM = 512
LN_EPS = 1e-6

IMG = 2 * PATCH                       # small synthetic image: 28x28 -> 2x2 patches
NUM_PATCHES = (IMG // PATCH) ** 2     # 4
SEQ = 1 + NUM_PATCHES                 # 5 (CLS + patches)

_INV_SQRT2 = 1.0 / math.sqrt(2.0)


# --------------------------- in-kernel math helpers -----------------------------
def _layernorm(x, g, b):
    """LayerNorm over last dim, eps=1e-6, all f32."""
    mean = jnp.mean(x, axis=-1, keepdims=True)
    xc = x - mean
    var = jnp.mean(xc * xc, axis=-1, keepdims=True)
    return xc * jax.lax.rsqrt(var + LN_EPS) * g + b


def _erf_approx(x):
    # Abramowitz & Stegun 7.1.26 rational approximation, |err| < 1.5e-7 (~f32 exact).
    # TODO(synk): uses exp-only polynomial instead of lax.erf so the GELU can live inside
    # the fused layer kernel without depending on an erf lowering in Mosaic.
    p = 0.3275911
    a1, a2, a3, a4, a5 = 0.254829592, -0.284496736, 1.421413741, -1.453152027, 1.061405429
    s = jnp.where(x >= 0.0, 1.0, -1.0)
    ax = x * s
    t = 1.0 / (1.0 + p * ax)
    poly = t * (a1 + t * (a2 + t * (a3 + t * (a4 + t * a5))))
    return s * (1.0 - poly * jnp.exp(-(ax * ax)))


def _gelu_exact(x):
    """Exact (erf) GELU, as HF 'gelu'."""
    return 0.5 * x * (1.0 + _erf_approx(x * _INV_SQRT2))


# ----------------------------- Pallas kernels ------------------------------------
def matmul_bias_kernel(x_ref, w_ref, b_ref, o_ref):
    """y = x @ W + b  (patch embedding)."""
    y = jnp.dot(x_ref[...], w_ref[...], preferred_element_type=jnp.float32)
    o_ref[...] = (y + b_ref[...]).astype(o_ref.dtype)


def make_layer_kernel(batch, s_pad, seq):
    """One full DINOv2 encoder layer; invoked once per grid step l in [0, NUM_LAYERS)."""
    scale = 1.0 / math.sqrt(HEAD_DIM)

    def layer_kernel(h_init_ref,
                     ln1_g_ref, ln1_b_ref, wqkv_ref, bqkv_ref, wo_ref, bo_ref, ls1_ref,
                     ln2_g_ref, ln2_b_ref, w1_ref, b1_ref, w2_ref, b2_ref, ls2_ref,
                     h_out_ref, h_ref, ctx_ref):
        # ---- init resident hidden state on the first layer ----
        @pl.when(pl.program_id(0) == 0)
        def _():
            h_ref[...] = h_init_ref[...]

        h = h_ref[...]                                            # (B*S_pad, D) f32

        # ---- self-attention block (pre-norm) ----
        x1 = _layernorm(h, ln1_g_ref[0], ln1_b_ref[0])
        qkv = (jnp.dot(x1.astype(jnp.bfloat16), wqkv_ref[0],
                       preferred_element_type=jnp.float32) + bqkv_ref[0])
        q = qkv[:, :HIDDEN]
        k = qkv[:, HIDDEN:2 * HIDDEN]
        v = qkv[:, 2 * HIDDEN:]

        # mask padded key positions (>= seq) so real tokens never attend to padding
        key_idx = jax.lax.broadcasted_iota(jnp.int32, (1, s_pad), 1)
        key_mask = jnp.where(key_idx < seq, 0.0, -1e30).astype(jnp.float32)

        for bb in range(batch):                                   # static, small B
            r0 = bb * s_pad
            for hh in range(NUM_HEADS):
                c0 = hh * HEAD_DIM
                qh = q[r0:r0 + s_pad, c0:c0 + HEAD_DIM]
                kh = k[r0:r0 + s_pad, c0:c0 + HEAD_DIM]
                vh = v[r0:r0 + s_pad, c0:c0 + HEAD_DIM]
                s = jax.lax.dot_general(qh, kh, (((1,), (1,)), ((), ())),
                                        preferred_element_type=jnp.float32) * scale
                s = s + key_mask
                s = s - jnp.max(s, axis=-1, keepdims=True)
                p = jnp.exp(s)
                p = p * pl.reciprocal(jnp.sum(p, axis=-1, keepdims=True), approx=True)
                ctx_ref[r0:r0 + s_pad, c0:c0 + HEAD_DIM] = jnp.dot(
                    p, vh, preferred_element_type=jnp.float32)

        ctx = ctx_ref[...]                                        # lane-dense (B*S_pad, D)
        attn = (jnp.dot(ctx.astype(jnp.bfloat16), wo_ref[0],
                        preferred_element_type=jnp.float32) + bo_ref[0]) * ls1_ref[0]
        h = h + attn                                              # LayerScale 1 + residual

        # ---- MLP block (pre-norm); exact GELU + LayerScale + residual fused ----
        x2 = _layernorm(h, ln2_g_ref[0], ln2_b_ref[0])
        m = (jnp.dot(x2.astype(jnp.bfloat16), w1_ref[0],
                     preferred_element_type=jnp.float32) + b1_ref[0])
        m = _gelu_exact(m)
        m = (jnp.dot(m.astype(jnp.bfloat16), w2_ref[0],
                     preferred_element_type=jnp.float32) + b2_ref[0]) * ls2_ref[0]
        h = h + m

        h_ref[...] = h

        # ---- flush to HBM after the last layer ----
        @pl.when(pl.program_id(0) == pl.num_programs(0) - 1)
        def _():
            h_out_ref[...] = h_ref[...]

    return layer_kernel


def make_final_kernel(batch, s_pad, seq):
    """Final backbone LayerNorm + mean over (real) tokens + Linear(384 -> 512)."""
    def final_kernel(h_ref, g_ref, b_ref, w_ref, bp_ref, o_ref):
        h = _layernorm(h_ref[...], g_ref[...], b_ref[...])        # (B*S_pad, D)
        bt = batch * s_pad
        # Pooling as a small matmul: pool[b, t] = 1/seq for real tokens of batch b.
        row = jax.lax.broadcasted_iota(jnp.int32, (batch, bt), 0)
        col = jax.lax.broadcasted_iota(jnp.int32, (batch, bt), 1)
        in_batch = (col >= row * s_pad) & (col < row * s_pad + seq)
        pool = jnp.where(in_batch, 1.0 / seq, 0.0).astype(jnp.float32)
        pooled = jnp.dot(pool, h, preferred_element_type=jnp.float32)   # (B, D)
        y = jnp.dot(pooled, w_ref[...], preferred_element_type=jnp.float32) + bp_ref[...]
        o_ref[...] = y.astype(o_ref.dtype)
    return final_kernel


# ----------------------------- kernel wrappers -----------------------------------
def linear(x, w, b):
    """x:(M,K) @ w:(K,N) + b:(1,N) -> (M,N).  Used for the (tiny) patch embedding."""
    M, K = x.shape
    _, N = w.shape
    return pl.pallas_call(
        matmul_bias_kernel,
        grid=(1,),
        in_specs=[pl.BlockSpec((M, K), lambda i: (0, 0)),
                  pl.BlockSpec((K, N), lambda i: (0, 0)),
                  pl.BlockSpec((1, N), lambda i: (0, 0))],
        out_specs=pl.BlockSpec((M, N), lambda i: (0, 0)),
        out_shape=jax.ShapeDtypeStruct((M, N), jnp.float32),
    )(x, w, b)


_LAYER_WEIGHT_NAMES = ("ln1_g", "ln1_b", "wqkv", "bqkv", "wo", "bo", "ls1",
                       "ln2_g", "ln2_b", "w1", "b1", "w2", "b2", "ls2")


def _stacked_spec(per_layer_shape):
    """BlockSpec for an [L, ...] stacked weight: select layer l along the grid axis."""
    n = len(per_layer_shape)
    return pl.BlockSpec((1,) + tuple(per_layer_shape),
                        lambda l, _n=n: (l,) + (0,) * _n)


def run_layers(h0, layer_params, batch, s_pad, seq):
    """All NUM_LAYERS encoder layers in one pipelined pallas_call."""
    bt, d = h0.shape
    weights = [layer_params[name] for name in _LAYER_WEIGHT_NAMES]
    in_specs = [pl.BlockSpec((bt, d), lambda l: (0, 0))]
    in_specs += [_stacked_spec(w.shape[1:]) for w in weights]
    return pl.pallas_call(
        make_layer_kernel(batch, s_pad, seq),
        grid=(NUM_LAYERS,),
        in_specs=in_specs,
        out_specs=pl.BlockSpec((bt, d), lambda l: (0, 0)),
        out_shape=jax.ShapeDtypeStruct((bt, d), jnp.float32),
        scratch_shapes=[pltpu.VMEM((bt, d), jnp.float32),   # resident hidden state
                        pltpu.VMEM((bt, d), jnp.float32)],  # attention context
        compiler_params=pltpu.CompilerParams(
            dimension_semantics=("arbitrary",)),            # layers are sequential
    )(h0, *weights)


def final_pool_proj(h, g, b, w, bp, batch, s_pad, seq):
    bt, d = h.shape
    p_dim = w.shape[1]
    return pl.pallas_call(
        make_final_kernel(batch, s_pad, seq),
        grid=(1,),
        in_specs=[pl.BlockSpec((bt, d), lambda i: (0, 0)),
                  pl.BlockSpec((1, d), lambda i: (0, 0)),
                  pl.BlockSpec((1, d), lambda i: (0, 0)),
                  pl.BlockSpec((d, p_dim), lambda i: (0, 0)),
                  pl.BlockSpec((1, p_dim), lambda i: (0, 0))],
        out_specs=pl.BlockSpec((batch, p_dim), lambda i: (0, 0)),
        out_shape=jax.ShapeDtypeStruct((batch, p_dim), jnp.float32),
    )(h, g, b, w, bp)


# ----------------------------- parameters ----------------------------------------
def init_params(key):
    """Deterministic synthetic weights matching DINOv2-small + Linear(384,512) shapes."""
    def nrm(k, shape, scale=0.02):
        return scale * jax.random.normal(k, shape, jnp.float32)

    keys = iter(jax.random.split(key, 16))
    L = NUM_LAYERS
    bf16 = jnp.bfloat16
    layers = {
        "ln1_g": jnp.ones((L, 1, HIDDEN), jnp.float32),
        "ln1_b": jnp.zeros((L, 1, HIDDEN), jnp.float32),
        # fused QKV: [wq | wk | wv] along the output dim -> one lane-dense matmul
        "wqkv": nrm(next(keys), (L, HIDDEN, 3 * HIDDEN)).astype(bf16),
        "bqkv": jnp.zeros((L, 1, 3 * HIDDEN), jnp.float32),
        "wo":   nrm(next(keys), (L, HIDDEN, HIDDEN)).astype(bf16),
        "bo":   jnp.zeros((L, 1, HIDDEN), jnp.float32),
        "ls1":  jnp.ones((L, 1, HIDDEN), jnp.float32),     # LayerScale 1
        "ln2_g": jnp.ones((L, 1, HIDDEN), jnp.float32),
        "ln2_b": jnp.zeros((L, 1, HIDDEN), jnp.float32),
        "w1":   nrm(next(keys), (L, HIDDEN, MLP_DIM)).astype(bf16),
        "b1":   jnp.zeros((L, 1, MLP_DIM), jnp.float32),
        "w2":   nrm(next(keys), (L, MLP_DIM, HIDDEN)).astype(bf16),
        "b2":   jnp.zeros((L, 1, HIDDEN), jnp.float32),
        "ls2":  jnp.ones((L, 1, HIDDEN), jnp.float32),     # LayerScale 2
    }
    return {
        # Conv2d(3, 384, k=14, s=14) realized as im2col matmul: weight [3*14*14, 384]
        "patch_w": nrm(next(keys), (3 * PATCH * PATCH, HIDDEN)),
        "patch_b": jnp.zeros((1, HIDDEN), jnp.float32),
        "cls": nrm(next(keys), (1, 1, HIDDEN)),
        "pos": nrm(next(keys), (1, SEQ, HIDDEN)),
        "final_ln_g": jnp.ones((1, HIDDEN), jnp.float32),
        "final_ln_b": jnp.zeros((1, HIDDEN), jnp.float32),
        "proj_w": nrm(next(keys), (HIDDEN, PROJ_DIM)),
        "proj_b": jnp.zeros((1, PROJ_DIM), jnp.float32),
        "layers": layers,
    }


# ----------------------------- forward --------------------------------------------
def forward(x, params):
    """x: NCHW float32 [B, 3, H, W] -> embeddings [B, PROJ_DIM]."""
    B, C, H, W = x.shape
    nh, nw = H // PATCH, W // PATCH
    seq = 1 + nh * nw
    s_pad = ((seq + 7) // 8) * 8        # pad token axis to a multiple of 8 sublanes

    # Patch embedding: Conv2d(k=s=14) == im2col (C, kh, kw ordering) + matmul.
    patches = x.reshape(B, C, nh, PATCH, nw, PATCH).transpose(0, 2, 4, 1, 3, 5)
    patches = patches.reshape(B * nh * nw, C * PATCH * PATCH)
    emb = linear(patches, params["patch_w"], params["patch_b"]).reshape(B, nh * nw, HIDDEN)

    # CLS token + position embeddings (dropout is a no-op in eval mode).
    # TODO(synk): bicubic pos-emb interpolation for non-native image sizes is omitted;
    # the synthetic pos-emb matches the input patch grid exactly.
    cls = jnp.broadcast_to(params["cls"], (B, 1, HIDDEN))
    tokens = jnp.concatenate([cls, emb], axis=1) + params["pos"]       # (B, seq, D)
    h0 = jnp.pad(tokens, ((0, 0), (0, s_pad - seq), (0, 0)))
    h0 = h0.reshape(B * s_pad, HIDDEN)

    # All 12 encoder layers in one pipelined pallas_call.
    h = run_layers(h0, params["layers"], B, s_pad, seq)

    # Final LN -> mean over real tokens (incl. CLS, as in `last_hidden_state.mean(dim=1)`)
    # -> Linear(384, 512), fused in one kernel.
    return final_pool_proj(h, params["final_ln_g"], params["final_ln_b"],
                           params["proj_w"], params["proj_b"], B, s_pad, seq)


# ----------------------------- main -------------------------------------------------
if __name__ == "__main__":
    key = jax.random.PRNGKey(0)
    pkey, xkey = jax.random.split(key)
    params = init_params(pkey)
    x = jax.random.normal(xkey, (2, 3, IMG, IMG), jnp.float32)   # NCHW, like PyTorch

    out = jax.jit(forward)(x, params)
    out = jax.block_until_ready(out)
    assert out.shape == (2, PROJ_DIM) and out.dtype == jnp.float32
    assert bool(jnp.all(jnp.isfinite(out)))
    print("KERNEL_OK")
</pallas_src>

<mosaic_0001>
module attributes {stable_mosaic.version = 11 : i64} {
  func.func @matmul_bias_kernel(%arg0: i32, %arg1: memref<8x588xf32, #tpu.memory_space<vmem>>, %arg2: memref<588x384xf32, #tpu.memory_space<vmem>>, %arg3: memref<1x384xf32, #tpu.memory_space<vmem>>, %arg4: memref<8x384xf32, #tpu.memory_space<vmem>>) attributes {dimension_semantics = [#tpu.dimension_semantics<arbitrary>], iteration_bounds = array<i64: 1>, scalar_prefetch = 0 : i64, scratch_operands = 0 : i64, tpu.core_type = #tpu.core_type<tc>, window_params = [{pipeline_mode = #tpu.pipeline_mode<synchronous>, transform_indices = @transform_0, window_bounds = array<i64: 8, 588>}, {pipeline_mode = #tpu.pipeline_mode<synchronous>, transform_indices = @transform_1, window_bounds = array<i64: 588, 384>}, {pipeline_mode = #tpu.pipeline_mode<synchronous>, transform_indices = @transform_2, window_bounds = array<i64: 1, 384>}, {pipeline_mode = #tpu.pipeline_mode<synchronous>, transform_indices = @transform_3, window_bounds = array<i64: 8, 384>}]} {
    %c0 = arith.constant 0 : index
    %c0_0 = arith.constant 0 : index
    %0 = vector.load %arg1[%c0, %c0_0] : memref<8x588xf32, #tpu.memory_space<vmem>>, vector<8x588xf32>
    %c0_1 = arith.constant 0 : index
    %c0_2 = arith.constant 0 : index
    %1 = vector.load %arg2[%c0_1, %c0_2] : memref<588x384xf32, #tpu.memory_space<vmem>>, vector<588x384xf32>
    %cst = arith.constant dense<0.000000e+00> : vector<8x384xf32>
    %2 = tpu.matmul %0, %1, %cst {dimension_numbers = #tpu.dot_dimension_numbers<[1], [0], [0], [1], [0, 0, 1, 1], [], []>} : vector<8x588xf32>, vector<588x384xf32>, vector<8x384xf32> -> vector<8x384xf32>
    %c0_3 = arith.constant 0 : index
    %c0_4 = arith.constant 0 : index
    %3 = vector.load %arg3[%c0_3, %c0_4] : memref<1x384xf32, #tpu.memory_space<vmem>>, vector<1x384xf32>
    %4 = vector.broadcast %3 : vector<1x384xf32> to vector<8x384xf32>
    %5 = arith.addf %2, %4 : vector<8x384xf32>
    %c0_5 = arith.constant 0 : index
    %c0_6 = arith.constant 0 : index
    %6 = vector.load %arg4[%c0_5, %c0_6] : memref<8x384xf32, #tpu.memory_space<vmem>>, vector<8x384xf32>
    tpu.vector_store %arg4[%c0_5, %c0_6], %5 {strides = array<i32>} : memref<8x384xf32, #tpu.memory_space<vmem>>, vector<8x384xf32>,
    return
  }
  func.func @transform_0(%arg0: i32) -> (i32, i32) {
    %c0_i32 = arith.constant 0 : i32
    %c0_i32_0 = arith.constant 0 : i32
    %c0_i32_1 = arith.constant 0 : i32
    return %c0_i32, %c0_i32_0 : i32, i32
  }
  func.func @transform_1(%arg0: i32) -> (i32, i32) {
    %c0_i32 = arith.constant 0 : i32
    %c0_i32_0 = arith.constant 0 : i32
    %c0_i32_1 = arith.constant 0 : i32
    return %c0_i32, %c0_i32_0 : i32, i32
  }
  func.func @transform_2(%arg0: i32) -> (i32, i32) {
    %c0_i32 = arith.constant 0 : i32
    %c0_i32_0 = arith.constant 0 : i32
    %c0_i32_1 = arith.constant 0 : i32
    return %c0_i32, %c0_i32_0 : i32, i32
  }
  func.func @transform_3(%arg0: i32) -> (i32, i32) {
    %c0_i32 = arith.constant 0 : i32
    %c0_i32_0 = arith.constant 0 : i32
    %c0_i32_1 = arith.constant 0 : i32
    return %c0_i32, %c0_i32_0 : i32, i32
  }
}

module attributes {stable_mosaic.version = 11 : i64} {
  func.func @final_kernel(%arg0: i32, %arg1: memref<16x384xf32, #tpu.memory_space<vmem>>, %arg2: memref<1x384xf32, #tpu.memory_space<vmem>>, %arg3: memref<1x384xf32, #tpu.memory_space<vmem>>, %arg4: memref<384x512xf32, #tpu.memory_space<vmem>>, %arg5: memref<1x512xf32, #tpu.memory_space<vmem>>, %arg6: memref<2x512xf32, #tpu.memory_space<vmem>>) attributes {dimension_semantics = [#tpu.dimension_semantics<arbitrary>], iteration_bounds = array<i64: 1>, scalar_prefetch = 0 : i64, scratch_operands = 0 : i64, tpu.core_type = #tpu.core_type<tc>, window_params = [{pipeline_mode = #tpu.pipeline_mode<synchronous>, transform_indices = @transform_0, window_bounds = array<i64: 16, 384>}, {pipeline_mode = #tpu.pipeline_mode<synchronous>, transform_indices = @transform_1, window_bounds = array<i64: 1, 384>}, {pipeline_mode = #tpu.pipeline_mode<synchronous>, transform_indices = @transform_2, window_bounds = array<i64: 1, 384>}, {pipeline_mode = #tpu.pipeline_mode<synchronous>, transform_indices = @transform_3, window_bounds = array<i64: 384, 512>}, {pipeline_mode = #tpu.pipeline_mode<synchronous>, transform_indices = @transform_4, window_bounds = array<i64: 1, 512>}, {pipeline_mode = #tpu.pipeline_mode<synchronous>, transform_indices = @transform_5, window_bounds = array<i64: 2, 512>}]} {
    %c0 = arith.constant 0 : index
    %c0_0 = arith.constant 0 : index
    %0 = vector.load %arg1[%c0, %c0_0] : memref<16x384xf32, #tpu.memory_space<vmem>>, vector<16x384xf32>
    %c0_1 = arith.constant 0 : index
    %c0_2 = arith.constant 0 : index
    %1 = vector.load %arg2[%c0_1, %c0_2] : memref<1x384xf32, #tpu.memory_space<vmem>>, vector<1x384xf32>
    %c0_3 = arith.constant 0 : index
    %c0_4 = arith.constant 0 : index
    %2 = vector.load %arg3[%c0_3, %c0_4] : memref<1x384xf32, #tpu.memory_space<vmem>>, vector<1x384xf32>
    %cst = arith.constant dense<0.000000e+00> : vector<16xf32>
    %3 = vector.multi_reduction <add>, %0, %cst [1] : vector<16x384xf32> to vector<16xf32>
    %4 = vector.shape_cast %3 : vector<16xf32> to vector<16x1xf32>
    %cst_5 = arith.constant 3.840000e+02 : f32
    %5 = vector.broadcast %cst_5 : f32 to vector<16x1xf32>
    %6 = arith.divf %4, %5 : vector<16x1xf32>
    %7 = vector.broadcast %6 : vector<16x1xf32> to vector<16x384xf32>
    %8 = arith.subf %0, %7 : vector<16x384xf32>
    %9 = arith.mulf %8, %8 : vector<16x384xf32>
    %cst_6 = arith.constant dense<0.000000e+00> : vector<16xf32>
    %10 = vector.multi_reduction <add>, %9, %cst_6 [1] : vector<16x384xf32> to vector<16xf32>
    %11 = vector.shape_cast %10 : vector<16xf32> to vector<16x1xf32>
    %cst_7 = arith.constant 3.840000e+02 : f32
    %12 = vector.broadcast %cst_7 : f32 to vector<16x1xf32>
    %13 = arith.divf %11, %12 : vector<16x1xf32>
    %cst_8 = arith.constant 9.99999997E-7 : f32
    %14 = vector.broadcast %cst_8 : f32 to vector<16x1xf32>
    %15 = arith.addf %13, %14 : vector<16x1xf32>
    %16 = math.rsqrt %15 : vector<16x1xf32>
    %17 = vector.broadcast %16 : vector<16x1xf32> to vector<16x384xf32>
    %18 = arith.mulf %8, %17 : vector<16x384xf32>
    %19 = vector.broadcast %1 : vector<1x384xf32> to vector<16x384xf32>
    %20 = arith.mulf %18, %19 : vector<16x384xf32>
    %21 = vector.broadcast %2 : vector<1x384xf32> to vector<16x384xf32>
    %22 = arith.addf %20, %21 : vector<16x384xf32>
    %23 = tpu.iota {dimensions = array<i32: 0>} : vector<2x16xi32>
    %24 = tpu.iota {dimensions = array<i32: 1>} : vector<2x16xi32>
    %c8_i32 = arith.constant 8 : i32
    %25 = vector.broadcast %c8_i32 : i32 to vector<2x16xi32>
    %26 = arith.muli %23, %25 : vector<2x16xi32>
    %27 = arith.cmpi sge, %24, %26 : vector<2x16xi32>
    %c8_i32_9 = arith.constant 8 : i32
    %28 = vector.broadcast %c8_i32_9 : i32 to vector<2x16xi32>
    %29 = arith.muli %23, %28 : vector<2x16xi32>
    %c5_i32 = arith.constant 5 : i32
    %30 = vector.broadcast %c5_i32 : i32 to vector<2x16xi32>
    %31 = arith.addi %29, %30 : vector<2x16xi32>
    %32 = arith.cmpi slt, %24, %31 : vector<2x16xi32>
    %33 = arith.andi %27, %32 : vector<2x16xi1>
    %cst_10 = arith.constant 2.000000e-01 : f32
    %cst_11 = arith.constant 0.000000e+00 : f32
    %34 = vector.broadcast %cst_10 : f32 to vector<2x16xf32>
    %35 = vector.broadcast %cst_11 : f32 to vector<2x16xf32>
    %36 = arith.select %33, %34, %35 : vector<2x16xi1>, vector<2x16xf32>
    %cst_12 = arith.constant dense<0.000000e+00> : vector<2x384xf32>
    %37 = tpu.matmul %36, %22, %cst_12 {dimension_numbers = #tpu.dot_dimension_numbers<[1], [0], [0], [1], [0, 0, 1, 1], [], []>} : vector<2x16xf32>, vector<16x384xf32>, vector<2x384xf32> -> vector<2x384xf32>
    %c0_13 = arith.constant 0 : index
    %c0_14 = arith.constant 0 : index
    %38 = vector.load %arg4[%c0_13, %c0_14] : memref<384x512xf32, #tpu.memory_space<vmem>>, vector<384x512xf32>
    %cst_15 = arith.constant dense<0.000000e+00> : vector<2x512xf32>
    %39 = tpu.matmul %37, %38, %cst_15 {dimension_numbers = #tpu.dot_dimension_numbers<[1], [0], [0], [1], [0, 0, 1, 1], [], []>} : vector<2x384xf32>, vector<384x512xf32>, vector<2x512xf32> -> vector<2x512xf32>
    %c0_16 = arith.constant 0 : index
    %c0_17 = arith.constant 0 : index
    %40 = vector.load %arg5[%c0_16, %c0_17] : memref<1x512xf32, #tpu.memory_space<vmem>>, vector<1x512xf32>
    %41 = vector.broadcast %40 : vector<1x512xf32> to vector<2x512xf32>
    %42 = arith.addf %39, %41 : vector<2x512xf32>
    %c0_18 = arith.constant 0 : index
    %c0_19 = arith.constant 0 : index
    %43 = vector.load %arg6[%c0_18, %c0_19] : memref<2x512xf32, #tpu.memory_space<vmem>>, vector<2x512xf32>
    tpu.vector_store %arg6[%c0_18, %c0_19], %42 {strides = array<i32>} : memref<2x512xf32, #tpu.memory_space<vmem>>, vector<2x512xf32>,
    return
  }
  func.func @transform_0(%arg0: i32) -> (i32, i32) {
    %c0_i32 = arith.constant 0 : i32
    %c0_i32_0 = arith.constant 0 : i32
    %c0_i32_1 = arith.constant 0 : i32
    return %c0_i32, %c0_i32_0 : i32, i32
  }
  func.func @transform_1(%arg0: i32) -> (i32, i32) {
    %c0_i32 = arith.constant 0 : i32
    %c0_i32_0 = arith.constant 0 : i32
    %c0_i32_1 = arith.constant 0 : i32
    return %c0_i32, %c0_i32_0 : i32, i32
  }
  func.func @transform_2(%arg0: i32) -> (i32, i32) {
    %c0_i32 = arith.constant 0 : i32
    %c0_i32_0 = arith.constant 0 : i32
    %c0_i32_1 = arith.constant 0 : i32
    return %c0_i32, %c0_i32_0 : i32, i32
  }
  func.func @transform_3(%arg0: i32) -> (i32, i32) {
    %c0_i32 = arith.constant 0 : i32
    %c0_i32_0 = arith.constant 0 : i32
    %c0_i32_1 = arith.constant 0 : i32
    return %c0_i32, %c0_i32_0 : i32, i32
  }
  func.func @transform_4(%arg0: i32) -> (i32, i32) {
    %c0_i32 = arith.constant 0 : i32
    %c0_i32_0 = arith.constant 0 : i32
    %c0_i32_1 = arith.constant 0 : i32
    return %c0_i32, %c0_i32_0 : i32, i32
  }
  func.func @transform_5(%arg0: i32) -> (i32, i32) {
    %c0_i32 = arith.constant 0 : i32
    %c0_i32_0 = arith.constant 0 : i32
    %c0_i32_1 = arith.constant 0 : i32
    return %c0_i32, %c0_i32_0 : i32, i32
  }
}

module attributes {stable_mosaic.version = 11 : i64} {
  func.func @layer_kernel(%arg0: i32, %arg1: memref<16x384xf32, #tpu.memory_space<vmem>>, %arg2: memref<1x1x384xf32, #tpu.memory_space<vmem>>, %arg3: memref<1x1x384xf32, #tpu.memory_space<vmem>>, %arg4: memref<1x384x1152xbf16, #tpu.memory_space<vmem>>, %arg5: memref<1x1x1152xf32, #tpu.memory_space<vmem>>, %arg6: memref<1x384x384xbf16, #tpu.memory_space<vmem>>, %arg7: memref<1x1x384xf32, #tpu.memory_space<vmem>>, %arg8: memref<1x1x384xf32, #tpu.memory_space<vmem>>, %arg9: memref<1x1x384xf32, #tpu.memory_space<vmem>>, %arg10: memref<1x1x384xf32, #tpu.memory_space<vmem>>, %arg11: memref<1x384x1536xbf16, #tpu.memory_space<vmem>>, %arg12: memref<1x1x1536xf32, #tpu.memory_space<vmem>>, %arg13: memref<1x1536x384xbf16, #tpu.memory_space<vmem>>, %arg14: memref<1x1x384xf32, #tpu.memory_space<vmem>>, %arg15: memref<1x1x384xf32, #tpu.memory_space<vmem>>, %arg16: memref<16x384xf32, #tpu.memory_space<vmem>>, %arg17: memref<16x384xf32, #tpu.memory_space<vmem>>, %arg18: memref<16x384xf32, #tpu.memory_space<vmem>>) attributes {dimension_semantics = [#tpu.dimension_semantics<arbitrary>], iteration_bounds = array<i64: 12>, scalar_prefetch = 0 : i64, scratch_operands = 2 : i64, tpu.core_type = #tpu.core_type<tc>, window_params = [{pipeline_mode = #tpu.pipeline_mode<synchronous>, transform_indices = @transform_0, window_bounds = array<i64: 16, 384>}, {transform_indices = @transform_1, window_bounds = array<i64: 1, 1, 384>}, {transform_indices = @transform_2, window_bounds = array<i64: 1, 1, 384>}, {transform_indices = @transform_3, window_bounds = array<i64: 1, 384, 1152>}, {transform_indices = @transform_4, window_bounds = array<i64: 1, 1, 1152>}, {transform_indices = @transform_5, window_bounds = array<i64: 1, 384, 384>}, {transform_indices = @transform_6, window_bounds = array<i64: 1, 1, 384>}, {transform_indices = @transform_7, window_bounds = array<i64: 1, 1, 384>}, {transform_indices = @transform_8, window_bounds = array<i64: 1, 1, 384>}, {transform_indices = @transform_9, window_bounds = array<i64: 1, 1, 384>}, {transform_indices = @transform_10, window_bounds = array<i64: 1, 384, 1536>}, {transform_indices = @transform_11, window_bounds = array<i64: 1, 1, 1536>}, {transform_indices = @transform_12, window_bounds = array<i64: 1, 1536, 384>}, {transform_indices = @transform_13, window_bounds = array<i64: 1, 1, 384>}, {transform_indices = @transform_14, window_bounds = array<i64: 1, 1, 384>}, {pipeline_mode = #tpu.pipeline_mode<synchronous>, transform_indices = @transform_15, window_bounds = array<i64: 16, 384>}]} {
    %c0_i32 = arith.constant 0 : i32
    %0 = arith.cmpi eq, %arg0, %c0_i32 : i32
    %1 = arith.extui %0 : i1 to i32
    %c0_i32_0 = arith.constant 0 : i32
    %2 = arith.cmpi ne, %1, %c0_i32_0 : i32
    scf.if %2 {
      %c0_158 = arith.constant 0 : index
      %c0_159 = arith.constant 0 : index
      %389 = vector.load %arg1[%c0_158, %c0_159] : memref<16x384xf32, #tpu.memory_space<vmem>>, vector<16x384xf32>
      %c0_160 = arith.constant 0 : index
      %c0_161 = arith.constant 0 : index
      %390 = vector.load %arg17[%c0_160, %c0_161] : memref<16x384xf32, #tpu.memory_space<vmem>>, vector<16x384xf32>
      tpu.vector_store %arg17[%c0_160, %c0_161], %389 {strides = array<i32>} : memref<16x384xf32, #tpu.memory_space<vmem>>, vector<16x384xf32>,
    } else {
    }
    %c0 = arith.constant 0 : index
    %c0_1 = arith.constant 0 : index
    %3 = vector.load %arg17[%c0, %c0_1] : memref<16x384xf32, #tpu.memory_space<vmem>>, vector<16x384xf32>
    %c0_2 = arith.constant 0 : index
    %c0_3 = arith.constant 0 : index
    %c0_4 = arith.constant 0 : index
    %4 = vector.load %arg2[%c0_2, %c0_3, %c0_4] : memref<1x1x384xf32, #tpu.memory_space<vmem>>, vector<1x1x384xf32>
    %5 = vector.shape_cast %4 : vector<1x1x384xf32> to vector<1x384xf32>
    %c0_5 = arith.constant 0 : index
    %c0_6 = arith.constant 0 : index
    %c0_7 = arith.constant 0 : index
    %6 = vector.load %arg3[%c0_5, %c0_6, %c0_7] : memref<1x1x384xf32, #tpu.memory_space<vmem>>, vector<1x1x384xf32>
    %7 = vector.shape_cast %6 : vector<1x1x384xf32> to vector<1x384xf32>
    %cst = arith.constant dense<0.000000e+00> : vector<16xf32>
    %8 = vector.multi_reduction <add>, %3, %cst [1] : vector<16x384xf32> to vector<16xf32>
    %9 = vector.shape_cast %8 : vector<16xf32> to vector<16x1xf32>
    %cst_8 = arith.constant 3.840000e+02 : f32
    %10 = vector.broadcast %cst_8 : f32 to vector<16x1xf32>
    %11 = arith.divf %9, %10 : vector<16x1xf32>
    %12 = vector.broadcast %11 : vector<16x1xf32> to vector<16x384xf32>
    %13 = arith.subf %3, %12 : vector<16x384xf32>
    %14 = arith.mulf %13, %13 : vector<16x384xf32>
    %cst_9 = arith.constant dense<0.000000e+00> : vector<16xf32>
    %15 = vector.multi_reduction <add>, %14, %cst_9 [1] : vector<16x384xf32> to vector<16xf32>
    %16 = vector.shape_cast %15 : vector<16xf32> to vector<16x1xf32>
    %cst_10 = arith.constant 3.840000e+02 : f32
    %17 = vector.broadcast %cst_10 : f32 to vector<16x1xf32>
    %18 = arith.divf %16, %17 : vector<16x1xf32>
    %cst_11 = arith.constant 9.99999997E-7 : f32
    %19 = vector.broadcast %cst_11 : f32 to vector<16x1xf32>
    %20 = arith.addf %18, %19 : vector<16x1xf32>
    %21 = math.rsqrt %20 : vector<16x1xf32>
    %22 = vector.broadcast %21 : vector<16x1xf32> to vector<16x384xf32>
    %23 = arith.mulf %13, %22 : vector<16x384xf32>
    %24 = vector.broadcast %5 : vector<1x384xf32> to vector<16x384xf32>
    %25 = arith.mulf %23, %24 : vector<16x384xf32>
    %26 = vector.broadcast %7 : vector<1x384xf32> to vector<16x384xf32>
    %27 = arith.addf %25, %26 : vector<16x384xf32>
    %28 = arith.truncf %27 : vector<16x384xf32> to vector<16x384xbf16>
    %c0_12 = arith.constant 0 : index
    %c0_13 = arith.constant 0 : index
    %c0_14 = arith.constant 0 : index
    %29 = vector.load %arg4[%c0_12, %c0_13, %c0_14] : memref<1x384x1152xbf16, #tpu.memory_space<vmem>>, vector<1x384x1152xbf16>
    %30 = vector.shape_cast %29 : vector<1x384x1152xbf16> to vector<384x1152xbf16>
    %cst_15 = arith.constant dense<0.000000e+00> : vector<16x1152xf32>
    %31 = tpu.matmul %28, %30, %cst_15 {dimension_numbers = #tpu.dot_dimension_numbers<[1], [0], [0], [1], [0, 0, 1, 1], [], []>} : vector<16x384xbf16>, vector<384x1152xbf16>, vector<16x1152xf32> -> vector<16x1152xf32>
    %c0_16 = arith.constant 0 : index
    %c0_17 = arith.constant 0 : index
    %c0_18 = arith.constant 0 : index
    %32 = vector.load %arg5[%c0_16, %c0_17, %c0_18] : memref<1x1x1152xf32, #tpu.memory_space<vmem>>, vector<1x1x1152xf32>
    %33 = vector.shape_cast %32 : vector<1x1x1152xf32> to vector<1x1152xf32>
    %34 = vector.broadcast %33 : vector<1x1152xf32> to vector<16x1152xf32>
    %35 = arith.addf %31, %34 : vector<16x1152xf32>
    %36 = vector.extract_strided_slice %35 {offsets = [0, 0], sizes = [16, 384], strides = [1, 1]} : vector<16x1152xf32> to vector<16x384xf32>
    %37 = vector.extract_strided_slice %35 {offsets = [0, 384], sizes = [16, 384], strides = [1, 1]} : vector<16x1152xf32> to vector<16x384xf32>
    %38 = vector.extract_strided_slice %35 {offsets = [0, 768], sizes = [16, 384], strides = [1, 1]} : vector<16x1152xf32> to vector<16x384xf32>
    %39 = tpu.iota {dimensions = array<i32: 1>} : vector<1x8xi32>
    %c5_i32 = arith.constant 5 : i32
    %40 = vector.broadcast %c5_i32 : i32 to vector<1x8xi32>
    %41 = arith.cmpi slt, %39, %40 : vector<1x8xi32>
    %cst_19 = arith.constant 0.000000e+00 : f32
    %cst_20 = arith.constant -1.000000e+30 : f32
    %42 = vector.broadcast %cst_19 : f32 to vector<1x8xf32>
    %43 = vector.broadcast %cst_20 : f32 to vector<1x8xf32>
    %44 = arith.select %41, %42, %43 : vector<1x8xi1>, vector<1x8xf32>
    %45 = vector.extract_strided_slice %36 {offsets = [0, 0], sizes = [8, 64], strides = [1, 1]} : vector<16x384xf32> to vector<8x64xf32>
    %46 = vector.extract_strided_slice %37 {offsets = [0, 0], sizes = [8, 64], strides = [1, 1]} : vector<16x384xf32> to vector<8x64xf32>
    %47 = vector.extract_strided_slice %38 {offsets = [0, 0], sizes = [8, 64], strides = [1, 1]} : vector<16x384xf32> to vector<8x64xf32>
    %cst_21 = arith.constant dense<0.000000e+00> : vector<8x8xf32>
    %48 = tpu.matmul %45, %46, %cst_21 {dimension_numbers = #tpu.dot_dimension_numbers<[1], [1], [0], [0], [0, 0, 1, 0], [], []>} : vector<8x64xf32>, vector<8x64xf32>, vector<8x8xf32> -> vector<8x8xf32>
    %cst_22 = arith.constant 1.250000e-01 : f32
    %49 = vector.broadcast %cst_22 : f32 to vector<8x8xf32>
    %50 = arith.mulf %48, %49 : vector<8x8xf32>
    %51 = vector.broadcast %44 : vector<1x8xf32> to vector<8x8xf32>
    %52 = arith.addf %50, %51 : vector<8x8xf32>
    %cst_23 = arith.constant dense<0xFF800000> : vector<8xf32>
    %53 = vector.multi_reduction <maximumf>, %52, %cst_23 [1] : vector<8x8xf32> to vector<8xf32>
    %54 = vector.shape_cast %53 : vector<8xf32> to vector<8x1xf32>
    %55 = vector.broadcast %54 : vector<8x1xf32> to vector<8x8xf32>
    %56 = arith.subf %52, %55 : vector<8x8xf32>
    %57 = math.exp %56 : vector<8x8xf32>
    %cst_24 = arith.constant dense<0.000000e+00> : vector<8xf32>
    %58 = vector.multi_reduction <add>, %57, %cst_24 [1] : vector<8x8xf32> to vector<8xf32>
    %59 = vector.shape_cast %58 : vector<8xf32> to vector<8x1xf32>
    %60 = tpu.reciprocal %59 {approx = true} : vector<8x1xf32> -> vector<8x1xf32>
    %61 = vector.broadcast %60 : vector<8x1xf32> to vector<8x8xf32>
    %62 = arith.mulf %57, %61 : vector<8x8xf32>
    %cst_25 = arith.constant dense<0.000000e+00> : vector<8x64xf32>
    %63 = tpu.matmul %62, %47, %cst_25 {dimension_numbers = #tpu.dot_dimension_numbers<[1], [0], [0], [1], [0, 0, 1, 1], [], []>} : vector<8x8xf32>, vector<8x64xf32>, vector<8x64xf32> -> vector<8x64xf32>
    %c0_26 = arith.constant 0 : index
    %c0_27 = arith.constant 0 : index
    %64 = vector.load %arg18[%c0_26, %c0_27] : memref<16x384xf32, #tpu.memory_space<vmem>>, vector<8x64xf32>
    tpu.vector_store %arg18[%c0_26, %c0_27], %63 {strides = array<i32>} : memref<16x384xf32, #tpu.memory_space<vmem>>, vector<8x64xf32>,
    %65 = vector.extract_strided_slice %36 {offsets = [0, 64], sizes = [8, 64], strides = [1, 1]} : vector<16x384xf32> to vector<8x64xf32>
    %66 = vector.extract_strided_slice %37 {offsets = [0, 64], sizes = [8, 64], strides = [1, 1]} : vector<16x384xf32> to vector<8x64xf32>
    %67 = vector.extract_strided_slice %38 {offsets = [0, 64], sizes = [8, 64], strides = [1, 1]} : vector<16x384xf32> to vector<8x64xf32>
    %cst_28 = arith.constant dense<0.000000e+00> : vector<8x8xf32>
    %68 = tpu.matmul %65, %66, %cst_28 {dimension_numbers = #tpu.dot_dimension_numbers<[1], [1], [0], [0], [0, 0, 1, 0], [], []>} : vector<8x64xf32>, vector<8x64xf32>, vector<8x8xf32> -> vector<8x8xf32>
    %cst_29 = arith.constant 1.250000e-01 : f32
    %69 = vector.broadcast %cst_29 : f32 to vector<8x8xf32>
    %70 = arith.mulf %68, %69 : vector<8x8xf32>
    %71 = vector.broadcast %44 : vector<1x8xf32> to vector<8x8xf32>
    %72 = arith.addf %70, %71 : vector<8x8xf32>
    %cst_30 = arith.constant dense<0xFF800000> : vector<8xf32>
    %73 = vector.multi_reduction <maximumf>, %72, %cst_30 [1] : vector<8x8xf32> to vector<8xf32>
    %74 = vector.shape_cast %73 : vector<8xf32> to vector<8x1xf32>
    %75 = vector.broadcast %74 : vector<8x1xf32> to vector<8x8xf32>
    %76 = arith.subf %72, %75 : vector<8x8xf32>
    %77 = math.exp %76 : vector<8x8xf32>
    %cst_31 = arith.constant dense<0.000000e+00> : vector<8xf32>
    %78 = vector.multi_reduction <add>, %77, %cst_31 [1] : vector<8x8xf32> to vector<8xf32>
    %79 = vector.shape_cast %78 : vector<8xf32> to vector<8x1xf32>
    %80 = tpu.reciprocal %79 {approx = true} : vector<8x1xf32> -> vector<8x1xf32>
    %81 = vector.broadcast %80 : vector<8x1xf32> to vector<8x8xf32>
    %82 = arith.mulf %77, %81 : vector<8x8xf32>
    %cst_32 = arith.constant dense<0.000000e+00> : vector<8x64xf32>
    %83 = tpu.matmul %82, %67, %cst_32 {dimension_numbers = #tpu.dot_dimension_numbers<[1], [0], [0], [1], [0, 0, 1, 1], [], []>} : vector<8x8xf32>, vector<8x64xf32>, vector<8x64xf32> -> vector<8x64xf32>
    %c0_33 = arith.constant 0 : index
    %c64 = arith.constant 64 : index
    %84 = vector.load %arg18[%c0_33, %c64] : memref<16x384xf32, #tpu.memory_space<vmem>>, vector<8x64xf32>
    tpu.vector_store %arg18[%c0_33, %c64], %83 {strides = array<i32>} : memref<16x384xf32, #tpu.memory_space<vmem>>, vector<8x64xf32>,
    %85 = vector.extract_strided_slice %36 {offsets = [0, 128], sizes = [8, 64], strides = [1, 1]} : vector<16x384xf32> to vector<8x64xf32>
    %86 = vector.extract_strided_slice %37 {offsets = [0, 128], sizes = [8, 64], strides = [1, 1]} : vector<16x384xf32> to vector<8x64xf32>
    %87 = vector.extract_strided_slice %38 {offsets = [0, 128], sizes = [8, 64], strides = [1, 1]} : vector<16x384xf32> to vector<8x64xf32>
    %cst_34 = arith.constant dense<0.000000e+00> : vector<8x8xf32>
    %88 = tpu.matmul %85, %86, %cst_34 {dimension_numbers = #tpu.dot_dimension_numbers<[1], [1], [0], [0], [0, 0, 1, 0], [], []>} : vector<8x64xf32>, vector<8x64xf32>, vector<8x8xf32> -> vector<8x8xf32>
    %cst_35 = arith.constant 1.250000e-01 : f32
    %89 = vector.broadcast %cst_35 : f32 to vector<8x8xf32>
    %90 = arith.mulf %88, %89 : vector<8x8xf32>
    %91 = vector.broadcast %44 : vector<1x8xf32> to vector<8x8xf32>
    %92 = arith.addf %90, %91 : vector<8x8xf32>
    %cst_36 = arith.constant dense<0xFF800000> : vector<8xf32>
    %93 = vector.multi_reduction <maximumf>, %92, %cst_36 [1] : vector<8x8xf32> to vector<8xf32>
    %94 = vector.shape_cast %93 : vector<8xf32> to vector<8x1xf32>
    %95 = vector.broadcast %94 : vector<8x1xf32> to vector<8x8xf32>
    %96 = arith.subf %92, %95 : vector<8x8xf32>
    %97 = math.exp %96 : vector<8x8xf32>
    %cst_37 = arith.constant dense<0.000000e+00> : vector<8xf32>
    %98 = vector.multi_reduction <add>, %97, %cst_37 [1] : vector<8x8xf32> to vector<8xf32>
    %99 = vector.shape_cast %98 : vector<8xf32> to vector<8x1xf32>
    %100 = tpu.reciprocal %99 {approx = true} : vector<8x1xf32> -> vector<8x1xf32>
    %101 = vector.broadcast %100 : vector<8x1xf32> to vector<8x8xf32>
    %102 = arith.mulf %97, %101 : vector<8x8xf32>
    %cst_38 = arith.constant dense<0.000000e+00> : vector<8x64xf32>
    %103 = tpu.matmul %102, %87, %cst_38 {dimension_numbers = #tpu.dot_dimension_numbers<[1], [0], [0], [1], [0, 0, 1, 1], [], []>} : vector<8x8xf32>, vector<8x64xf32>, vector<8x64xf32> -> vector<8x64xf32>
    %c0_39 = arith.constant 0 : index
    %c128 = arith.constant 128 : index
    %104 = vector.load %arg18[%c0_39, %c128] : memref<16x384xf32, #tpu.memory_space<vmem>>, vector<8x64xf32>
    tpu.vector_store %arg18[%c0_39, %c128], %103 {strides = array<i32>} : memref<16x384xf32, #tpu.memory_space<vmem>>, vector<8x64xf32>,
    %105 = vector.extract_strided_slice %36 {offsets = [0, 192], sizes = [8, 64], strides = [1, 1]} : vector<16x384xf32> to vector<8x64xf32>
    %106 = vector.extract_strided_slice %37 {offsets = [0, 192], sizes = [8, 64], strides = [1, 1]} : vector<16x384xf32> to vector<8x64xf32>
    %107 = vector.extract_strided_slice %38 {offsets = [0, 192], sizes = [8, 64], strides = [1, 1]} : vector<16x384xf32> to vector<8x64xf32>
    %cst_40 = arith.constant dense<0.000000e+00> : vector<8x8xf32>
    %108 = tpu.matmul %105, %106, %cst_40 {dimension_numbers = #tpu.dot_dimension_numbers<[1], [1], [0], [0], [0, 0, 1, 0], [], []>} : vector<8x64xf32>, vector<8x64xf32>, vector<8x8xf32> -> vector<8x8xf32>
    %cst_41 = arith.constant 1.250000e-01 : f32
    %109 = vector.broadcast %cst_41 : f32 to vector<8x8xf32>
    %110 = arith.mulf %108, %109 : vector<8x8xf32>
    %111 = vector.broadcast %44 : vector<1x8xf32> to vector<8x8xf32>
    %112 = arith.addf %110, %111 : vector<8x8xf32>
    %cst_42 = arith.constant dense<0xFF800000> : vector<8xf32>
    %113 = vector.multi_reduction <maximumf>, %112, %cst_42 [1] : vector<8x8xf32> to vector<8xf32>
    %114 = vector.shape_cast %113 : vector<8xf32> to vector<8x1xf32>
    %115 = vector.broadcast %114 : vector<8x1xf32> to vector<8x8xf32>
    %116 = arith.subf %112, %115 : vector<8x8xf32>
    %117 = math.exp %116 : vector<8x8xf32>
    %cst_43 = arith.constant dense<0.000000e+00> : vector<8xf32>
    %118 = vector.multi_reduction <add>, %117, %cst_43 [1] : vector<8x8xf32> to vector<8xf32>
    %119 = vector.shape_cast %118 : vector<8xf32> to vector<8x1xf32>
    %120 = tpu.reciprocal %119 {approx = true} : vector<8x1xf32> -> vector<8x1xf32>
    %121 = vector.broadcast %120 : vector<8x1xf32> to vector<8x8xf32>
    %122 = arith.mulf %117, %121 : vector<8x8xf32>
    %cst_44 = arith.constant dense<0.000000e+00> : vector<8x64xf32>
    %123 = tpu.matmul %122, %107, %cst_44 {dimension_numbers = #tpu.dot_dimension_numbers<[1], [0], [0], [1], [0, 0, 1, 1], [], []>} : vector<8x8xf32>, vector<8x64xf32>, vector<8x64xf32> -> vector<8x64xf32>
    %c0_45 = arith.constant 0 : index
    %c192 = arith.constant 192 : index
    %124 = vector.load %arg18[%c0_45, %c192] : memref<16x384xf32, #tpu.memory_space<vmem>>, vector<8x64xf32>
    tpu.vector_store %arg18[%c0_45, %c192], %123 {strides = array<i32>} : memref<16x384xf32, #tpu.memory_space<vmem>>, vector<8x64xf32>,
    %125 = vector.extract_strided_slice %36 {offsets = [0, 256], sizes = [8, 64], strides = [1, 1]} : vector<16x384xf32> to vector<8x64xf32>
    %126 = vector.extract_strided_slice %37 {offsets = [0, 256], sizes = [8, 64], strides = [1, 1]} : vector<16x384xf32> to vector<8x64xf32>
    %127 = vector.extract_strided_slice %38 {offsets = [0, 256], sizes = [8, 64], strides = [1, 1]} : vector<16x384xf32> to vector<8x64xf32>
    %cst_46 = arith.constant dense<0.000000e+00> : vector<8x8xf32>
    %128 = tpu.matmul %125, %126, %cst_46 {dimension_numbers = #tpu.dot_dimension_numbers<[1], [1], [0], [0], [0, 0, 1, 0], [], []>} : vector<8x64xf32>, vector<8x64xf32>, vector<8x8xf32> -> vector<8x8xf32>
    %cst_47 = arith.constant 1.250000e-01 : f32
    %129 = vector.broadcast %cst_47 : f32 to vector<8x8xf32>
    %130 = arith.mulf %128, %129 : vector<8x8xf32>
    %131 = vector.broadcast %44 : vector<1x8xf32> to vector<8x8xf32>
    %132 = arith.addf %130, %131 : vector<8x8xf32>
    %cst_48 = arith.constant dense<0xFF800000> : vector<8xf32>
    %133 = vector.multi_reduction <maximumf>, %132, %cst_48 [1] : vector<8x8xf32> to vector<8xf32>
    %134 = vector.shape_cast %133 : vector<8xf32> to vector<8x1xf32>
    %135 = vector.broadcast %134 : vector<8x1xf32> to vector<8x8xf32>
    %136 = arith.subf %132, %135 : vector<8x8xf32>
    %137 = math.exp %136 : vector<8x8xf32>
    %cst_49 = arith.constant dense<0.000000e+00> : vector<8xf32>
    %138 = vector.multi_reduction <add>, %137, %cst_49 [1] : vector<8x8xf32> to vector<8xf32>
    %139 = vector.shape_cast %138 : vector<8xf32> to vector<8x1xf32>
    %140 = tpu.reciprocal %139 {approx = true} : vector<8x1xf32> -> vector<8x1xf32>
    %141 = vector.broadcast %140 : vector<8x1xf32> to vector<8x8xf32>
    %142 = arith.mulf %137, %141 : vector<8x8xf32>
    %cst_50 = arith.constant dense<0.000000e+00> : vector<8x64xf32>
    %143 = tpu.matmul %142, %127, %cst_50 {dimension_numbers = #tpu.dot_dimension_numbers<[1], [0], [0], [1], [0, 0, 1, 1], [], []>} : vector<8x8xf32>, vector<8x64xf32>, vector<8x64xf32> -> vector<8x64xf32>
    %c0_51 = arith.constant 0 : index
    %c256 = arith.constant 256 : index
    %144 = vector.load %arg18[%c0_51, %c256] : memref<16x384xf32, #tpu.memory_space<vmem>>, vector<8x64xf32>
    tpu.vector_store %arg18[%c0_51, %c256], %143 {strides = array<i32>} : memref<16x384xf32, #tpu.memory_space<vmem>>, vector<8x64xf32>,
    %145 = vector.extract_strided_slice %36 {offsets = [0, 320], sizes = [8, 64], strides = [1, 1]} : vector<16x384xf32> to vector<8x64xf32>
    %146 = vector.extract_strided_slice %37 {offsets = [0, 320], sizes = [8, 64], strides = [1, 1]} : vector<16x384xf32> to vector<8x64xf32>
    %147 = vector.extract_strided_slice %38 {offsets = [0, 320], sizes = [8, 64], strides = [1, 1]} : vector<16x384xf32> to vector<8x64xf32>
    %cst_52 = arith.constant dense<0.000000e+00> : vector<8x8xf32>
    %148 = tpu.matmul %145, %146, %cst_52 {dimension_numbers = #tpu.dot_dimension_numbers<[1], [1], [0], [0], [0, 0, 1, 0], [], []>} : vector<8x64xf32>, vector<8x64xf32>, vector<8x8xf32> -> vector<8x8xf32>
    %cst_53 = arith.constant 1.250000e-01 : f32
    %149 = vector.broadcast %cst_53 : f32 to vector<8x8xf32>
    %150 = arith.mulf %148, %149 : vector<8x8xf32>
    %151 = vector.broadcast %44 : vector<1x8xf32> to vector<8x8xf32>
    %152 = arith.addf %150, %151 : vector<8x8xf32>
    %cst_54 = arith.constant dense<0xFF800000> : vector<8xf32>
    %153 = vector.multi_reduction <maximumf>, %152, %cst_54 [1] : vector<8x8xf32> to vector<8xf32>
    %154 = vector.shape_cast %153 : vector<8xf32> to vector<8x1xf32>
    %155 = vector.broadcast %154 : vector<8x1xf32> to vector<8x8xf32>
    %156 = arith.subf %152, %155 : vector<8x8xf32>
    %157 = math.exp %156 : vector<8x8xf32>
    %cst_55 = arith.constant dense<0.000000e+00> : vector<8xf32>
    %158 = vector.multi_reduction <add>, %157, %cst_55 [1] : vector<8x8xf32> to vector<8xf32>
    %159 = vector.shape_cast %158 : vector<8xf32> to vector<8x1xf32>
    %160 = tpu.reciprocal %159 {approx = true} : vector<8x1xf32> -> vector<8x1xf32>
    %161 = vector.broadcast %160 : vector<8x1xf32> to vector<8x8xf32>
    %162 = arith.mulf %157, %161 : vector<8x8xf32>
    %cst_56 = arith.constant dense<0.000000e+00> : vector<8x64xf32>
    %163 = tpu.matmul %162, %147, %cst_56 {dimension_numbers = #tpu.dot_dimension_numbers<[1], [0], [0], [1], [0, 0, 1, 1], [], []>} : vector<8x8xf32>, vector<8x64xf32>, vector<8x64xf32> -> vector<8x64xf32>
    %c0_57 = arith.constant 0 : index
    %c320 = arith.constant 320 : index
    %164 = vector.load %arg18[%c0_57, %c320] : memref<16x384xf32, #tpu.memory_space<vmem>>, vector<8x64xf32>
    tpu.vector_store %arg18[%c0_57, %c320], %163 {strides = array<i32>} : memref<16x384xf32, #tpu.memory_space<vmem>>, vector<8x64xf32>,
    %165 = vector.extract_strided_slice %36 {offsets = [8, 0], sizes = [8, 64], strides = [1, 1]} : vector<16x384xf32> to vector<8x64xf32>
    %166 = vector.extract_strided_slice %37 {offsets = [8, 0], sizes = [8, 64], strides = [1, 1]} : vector<16x384xf32> to vector<8x64xf32>
    %167 = vector.extract_strided_slice %38 {offsets = [8, 0], sizes = [8, 64], strides = [1, 1]} : vector<16x384xf32> to vector<8x64xf32>
    %cst_58 = arith.constant dense<0.000000e+00> : vector<8x8xf32>
    %168 = tpu.matmul %165, %166, %cst_58 {dimension_numbers = #tpu.dot_dimension_numbers<[1], [1], [0], [0], [0, 0, 1, 0], [], []>} : vector<8x64xf32>, vector<8x64xf32>, vector<8x8xf32> -> vector<8x8xf32>
    %cst_59 = arith.constant 1.250000e-01 : f32
    %169 = vector.broadcast %cst_59 : f32 to vector<8x8xf32>
    %170 = arith.mulf %168, %169 : vector<8x8xf32>
    %171 = vector.broadcast %44 : vector<1x8xf32> to vector<8x8xf32>
    %172 = arith.addf %170, %171 : vector<8x8xf32>
    %cst_60 = arith.constant dense<0xFF800000> : vector<8xf32>
    %173 = vector.multi_reduction <maximumf>, %172, %cst_60 [1] : vector<8x8xf32> to vector<8xf32>
    %174 = vector.shape_cast %173 : vector<8xf32> to vector<8x1xf32>
    %175 = vector.broadcast %174 : vector<8x1xf32> to vector<8x8xf32>
    %176 = arith.subf %172, %175 : vector<8x8xf32>
    %177 = math.exp %176 : vector<8x8xf32>
    %cst_61 = arith.constant dense<0.000000e+00> : vector<8xf32>
    %178 = vector.multi_reduction <add>, %177, %cst_61 [1] : vector<8x8xf32> to vector<8xf32>
    %179 = vector.shape_cast %178 : vector<8xf32> to vector<8x1xf32>
    %180 = tpu.reciprocal %179 {approx = true} : vector<8x1xf32> -> vector<8x1xf32>
    %181 = vector.broadcast %180 : vector<8x1xf32> to vector<8x8xf32>
    %182 = arith.mulf %177, %181 : vector<8x8xf32>
    %cst_62 = arith.constant dense<0.000000e+00> : vector<8x64xf32>
    %183 = tpu.matmul %182, %167, %cst_62 {dimension_numbers = #tpu.dot_dimension_numbers<[1], [0], [0], [1], [0, 0, 1, 1], [], []>} : vector<8x8xf32>, vector<8x64xf32>, vector<8x64xf32> -> vector<8x64xf32>
    %c8 = arith.constant 8 : index
    %c0_63 = arith.constant 0 : index
    %184 = vector.load %arg18[%c8, %c0_63] : memref<16x384xf32, #tpu.memory_space<vmem>>, vector<8x64xf32>
    tpu.vector_store %arg18[%c8, %c0_63], %183 {strides = array<i32>} : memref<16x384xf32, #tpu.memory_space<vmem>>, vector<8x64xf32>,
    %185 = vector.extract_strided_slice %36 {offsets = [8, 64], sizes = [8, 64], strides = [1, 1]} : vector<16x384xf32> to vector<8x64xf32>
    %186 = vector.extract_strided_slice %37 {offsets = [8, 64], sizes = [8, 64], strides = [1, 1]} : vector<16x384xf32> to vector<8x64xf32>
    %187 = vector.extract_strided_slice %38 {offsets = [8, 64], sizes = [8, 64], strides = [1, 1]} : vector<16x384xf32> to vector<8x64xf32>
    %cst_64 = arith.constant dense<0.000000e+00> : vector<8x8xf32>
    %188 = tpu.matmul %185, %186, %cst_64 {dimension_numbers = #tpu.dot_dimension_numbers<[1], [1], [0], [0], [0, 0, 1, 0], [], []>} : vector<8x64xf32>, vector<8x64xf32>, vector<8x8xf32> -> vector<8x8xf32>
    %cst_65 = arith.constant 1.250000e-01 : f32
    %189 = vector.broadcast %cst_65 : f32 to vector<8x8xf32>
    %190 = arith.mulf %188, %189 : vector<8x8xf32>
    %191 = vector.broadcast %44 : vector<1x8xf32> to vector<8x8xf32>
    %192 = arith.addf %190, %191 : vector<8x8xf32>
    %cst_66 = arith.constant dense<0xFF800000> : vector<8xf32>
    %193 = vector.multi_reduction <maximumf>, %192, %cst_66 [1] : vector<8x8xf32> to vector<8xf32>
    %194 = vector.shape_cast %193 : vector<8xf32> to vector<8x1xf32>
    %195 = vector.broadcast %194 : vector<8x1xf32> to vector<8x8xf32>
    %196 = arith.subf %192, %195 : vector<8x8xf32>
    %197 = math.exp %196 : vector<8x8xf32>
    %cst_67 = arith.constant dense<0.000000e+00> : vector<8xf32>
    %198 = vector.multi_reduction <add>, %197, %cst_67 [1] : vector<8x8xf32> to vector<8xf32>
    %199 = vector.shape_cast %198 : vector<8xf32> to vector<8x1xf32>
    %200 = tpu.reciprocal %199 {approx = true} : vector<8x1xf32> -> vector<8x1xf32>
    %201 = vector.broadcast %200 : vector<8x1xf32> to vector<8x8xf32>
    %202 = arith.mulf %197, %201 : vector<8x8xf32>
    %cst_68 = arith.constant dense<0.000000e+00> : vector<8x64xf32>
    %203 = tpu.matmul %202, %187, %cst_68 {dimension_numbers = #tpu.dot_dimension_numbers<[1], [0], [0], [1], [0, 0, 1, 1], [], []>} : vector<8x8xf32>, vector<8x64xf32>, vector<8x64xf32> -> vector<8x64xf32>
    %c8_69 = arith.constant 8 : index
    %c64_70 = arith.constant 64 : index
    %204 = vector.load %arg18[%c8_69, %c64_70] : memref<16x384xf32, #tpu.memory_space<vmem>>, vector<8x64xf32>
    tpu.vector_store %arg18[%c8_69, %c64_70], %203 {strides = array<i32>} : memref<16x384xf32, #tpu.memory_space<vmem>>, vector<8x64xf32>,
    %205 = vector.extract_strided_slice %36 {offsets = [8, 128], sizes = [8, 64], strides = [1, 1]} : vector<16x384xf32> to vector<8x64xf32>
    %206 = vector.extract_strided_slice %37 {offsets = [8, 128], sizes = [8, 64], strides = [1, 1]} : vector<16x384xf32> to vector<8x64xf32>
    %207 = vector.extract_strided_slice %38 {offsets = [8, 128], sizes = [8, 64], strides = [1, 1]} : vector<16x384xf32> to vector<8x64xf32>
    %cst_71 = arith.constant dense<0.000000e+00> : vector<8x8xf32>
    %208 = tpu.matmul %205, %206, %cst_71 {dimension_numbers = #tpu.dot_dimension_numbers<[1], [1], [0], [0], [0, 0, 1, 0], [], []>} : vector<8x64xf32>, vector<8x64xf32>, vector<8x8xf32> -> vector<8x8xf32>
    %cst_72 = arith.constant 1.250000e-01 : f32
    %209 = vector.broadcast %cst_72 : f32 to vector<8x8xf32>
    %210 = arith.mulf %208, %209 : vector<8x8xf32>
    %211 = vector.broadcast %44 : vector<1x8xf32> to vector<8x8xf32>
    %212 = arith.addf %210, %211 : vector<8x8xf32>
    %cst_73 = arith.constant dense<0xFF800000> : vector<8xf32>
    %213 = vector.multi_reduction <maximumf>, %212, %cst_73 [1] : vector<8x8xf32> to vector<8xf32>
    %214 = vector.shape_cast %213 : vector<8xf32> to vector<8x1xf32>
    %215 = vector.broadcast %214 : vector<8x1xf32> to vector<8x8xf32>
    %216 = arith.subf %212, %215 : vector<8x8xf32>
    %217 = math.exp %216 : vector<8x8xf32>
    %cst_74 = arith.constant dense<0.000000e+00> : vector<8xf32>
    %218 = vector.multi_reduction <add>, %217, %cst_74 [1] : vector<8x8xf32> to vector<8xf32>
    %219 = vector.shape_cast %218 : vector<8xf32> to vector<8x1xf32>
    %220 = tpu.reciprocal %219 {approx = true} : vector<8x1xf32> -> vector<8x1xf32>
    %221 = vector.broadcast %220 : vector<8x1xf32> to vector<8x8xf32>
    %222 = arith.mulf %217, %221 : vector<8x8xf32>
    %cst_75 = arith.constant dense<0.000000e+00> : vector<8x64xf32>
    %223 = tpu.matmul %222, %207, %cst_75 {dimension_numbers = #tpu.dot_dimension_numbers<[1], [0], [0], [1], [0, 0, 1, 1], [], []>} : vector<8x8xf32>, vector<8x64xf32>, vector<8x64xf32> -> vector<8x64xf32>
    %c8_76 = arith.constant 8 : index
    %c128_77 = arith.constant 128 : index
    %224 = vector.load %arg18[%c8_76, %c128_77] : memref<16x384xf32, #tpu.memory_space<vmem>>, vector<8x64xf32>
    tpu.vector_store %arg18[%c8_76, %c128_77], %223 {strides = array<i32>} : memref<16x384xf32, #tpu.memory_space<vmem>>, vector<8x64xf32>,
    %225 = vector.extract_strided_slice %36 {offsets = [8, 192], sizes = [8, 64], strides = [1, 1]} : vector<16x384xf32> to vector<8x64xf32>
    %226 = vector.extract_strided_slice %37 {offsets = [8, 192], sizes = [8, 64], strides = [1, 1]} : vector<16x384xf32> to vector<8x64xf32>
    %227 = vector.extract_strided_slice %38 {offsets = [8, 192], sizes = [8, 64], strides = [1, 1]} : vector<16x384xf32> to vector<8x64xf32>
    %cst_78 = arith.constant dense<0.000000e+00> : vector<8x8xf32>
    %228 = tpu.matmul %225, %226, %cst_78 {dimension_numbers = #tpu.dot_dimension_numbers<[1], [1], [0], [0], [0, 0, 1, 0], [], []>} : vector<8x64xf32>, vector<8x64xf32>, vector<8x8xf32> -> vector<8x8xf32>
    %cst_79 = arith.constant 1.250000e-01 : f32
    %229 = vector.broadcast %cst_79 : f32 to vector<8x8xf32>
    %230 = arith.mulf %228, %229 : vector<8x8xf32>
    %231 = vector.broadcast %44 : vector<1x8xf32> to vector<8x8xf32>
    %232 = arith.addf %230, %231 : vector<8x8xf32>
    %cst_80 = arith.constant dense<0xFF800000> : vector<8xf32>
    %233 = vector.multi_reduction <maximumf>, %232, %cst_80 [1] : vector<8x8xf32> to vector<8xf32>
    %234 = vector.shape_cast %233 : vector<8xf32> to vector<8x1xf32>
    %235 = vector.broadcast %234 : vector<8x1xf32> to vector<8x8xf32>
    %236 = arith.subf %232, %235 : vector<8x8xf32>
    %237 = math.exp %236 : vector<8x8xf32>
    %cst_81 = arith.constant dense<0.000000e+00> : vector<8xf32>
    %238 = vector.multi_reduction <add>, %237, %cst_81 [1] : vector<8x8xf32> to vector<8xf32>
    %239 = vector.shape_cast %238 : vector<8xf32> to vector<8x1xf32>
    %240 = tpu.reciprocal %239 {approx = true} : vector<8x1xf32> -> vector<8x1xf32>
    %241 = vector.broadcast %240 : vector<8x1xf32> to vector<8x8xf32>
    %242 = arith.mulf %237, %241 : vector<8x8xf32>
    %cst_82 = arith.constant dense<0.000000e+00> : vector<8x64xf32>
    %243 = tpu.matmul %242, %227, %cst_82 {dimension_numbers = #tpu.dot_dimension_numbers<[1], [0], [0], [1], [0, 0, 1, 1], [], []>} : vector<8x8xf32>, vector<8x64xf32>, vector<8x64xf32> -> vector<8x64xf32>
    %c8_83 = arith.constant 8 : index
    %c192_84 = arith.constant 192 : index
    %244 = vector.load %arg18[%c8_83, %c192_84] : memref<16x384xf32, #tpu.memory_space<vmem>>, vector<8x64xf32>
    tpu.vector_store %arg18[%c8_83, %c192_84], %243 {strides = array<i32>} : memref<16x384xf32, #tpu.memory_space<vmem>>, vector<8x64xf32>,
    %245 = vector.extract_strided_slice %36 {offsets = [8, 256], sizes = [8, 64], strides = [1, 1]} : vector<16x384xf32> to vector<8x64xf32>
    %246 = vector.extract_strided_slice %37 {offsets = [8, 256], sizes = [8, 64], strides = [1, 1]} : vector<16x384xf32> to vector<8x64xf32>
    %247 = vector.extract_strided_slice %38 {offsets = [8, 256], sizes = [8, 64], strides = [1, 1]} : vector<16x384xf32> to vector<8x64xf32>
    %cst_85 = arith.constant dense<0.000000e+00> : vector<8x8xf32>
    %248 = tpu.matmul %245, %246, %cst_85 {dimension_numbers = #tpu.dot_dimension_numbers<[1], [1], [0], [0], [0, 0, 1, 0], [], []>} : vector<8x64xf32>, vector<8x64xf32>, vector<8x8xf32> -> vector<8x8xf32>
    %cst_86 = arith.constant 1.250000e-01 : f32
    %249 = vector.broadcast %cst_86 : f32 to vector<8x8xf32>
    %250 = arith.mulf %248, %249 : vector<8x8xf32>
    %251 = vector.broadcast %44 : vector<1x8xf32> to vector<8x8xf32>
    %252 = arith.addf %250, %251 : vector<8x8xf32>
    %cst_87 = arith.constant dense<0xFF800000> : vector<8xf32>
    %253 = vector.multi_reduction <maximumf>, %252, %cst_87 [1] : vector<8x8xf32> to vector<8xf32>
    %254 = vector.shape_cast %253 : vector<8xf32> to vector<8x1xf32>
    %255 = vector.broadcast %254 : vector<8x1xf32> to vector<8x8xf32>
    %256 = arith.subf %252, %255 : vector<8x8xf32>
    %257 = math.exp %256 : vector<8x8xf32>
    %cst_88 = arith.constant dense<0.000000e+00> : vector<8xf32>
    %258 = vector.multi_reduction <add>, %257, %cst_88 [1] : vector<8x8xf32> to vector<8xf32>
    %259 = vector.shape_cast %258 : vector<8xf32> to vector<8x1xf32>
    %260 = tpu.reciprocal %259 {approx = true} : vector<8x1xf32> -> vector<8x1xf32>
    %261 = vector.broadcast %260 : vector<8x1xf32> to vector<8x8xf32>
    %262 = arith.mulf %257, %261 : vector<8x8xf32>
    %cst_89 = arith.constant dense<0.000000e+00> : vector<8x64xf32>
    %263 = tpu.matmul %262, %247, %cst_89 {dimension_numbers = #tpu.dot_dimension_numbers<[1], [0], [0], [1], [0, 0, 1, 1], [], []>} : vector<8x8xf32>, vector<8x64xf32>, vector<8x64xf32> -> vector<8x64xf32>
    %c8_90 = arith.constant 8 : index
    %c256_91 = arith.constant 256 : index
    %264 = vector.load %arg18[%c8_90, %c256_91] : memref<16x384xf32, #tpu.memory_space<vmem>>, vector<8x64xf32>
    tpu.vector_store %arg18[%c8_90, %c256_91], %263 {strides = array<i32>} : memref<16x384xf32, #tpu.memory_space<vmem>>, vector<8x64xf32>,
    %265 = vector.extract_strided_slice %36 {offsets = [8, 320], sizes = [8, 64], strides = [1, 1]} : vector<16x384xf32> to vector<8x64xf32>
    %266 = vector.extract_strided_slice %37 {offsets = [8, 320], sizes = [8, 64], strides = [1, 1]} : vector<16x384xf32> to vector<8x64xf32>
    %267 = vector.extract_strided_slice %38 {offsets = [8, 320], sizes = [8, 64], strides = [1, 1]} : vector<16x384xf32> to vector<8x64xf32>
    %cst_92 = arith.constant dense<0.000000e+00> : vector<8x8xf32>
    %268 = tpu.matmul %265, %266, %cst_92 {dimension_numbers = #tpu.dot_dimension_numbers<[1], [1], [0], [0], [0, 0, 1, 0], [], []>} : vector<8x64xf32>, vector<8x64xf32>, vector<8x8xf32> -> vector<8x8xf32>
    %cst_93 = arith.constant 1.250000e-01 : f32
    %269 = vector.broadcast %cst_93 : f32 to vector<8x8xf32>
    %270 = arith.mulf %268, %269 : vector<8x8xf32>
    %271 = vector.broadcast %44 : vector<1x8xf32> to vector<8x8xf32>
    %272 = arith.addf %270, %271 : vector<8x8xf32>
    %cst_94 = arith.constant dense<0xFF800000> : vector<8xf32>
    %273 = vector.multi_reduction <maximumf>, %272, %cst_94 [1] : vector<8x8xf32> to vector<8xf32>
    %274 = vector.shape_cast %273 : vector<8xf32> to vector<8x1xf32>
    %275 = vector.broadcast %274 : vector<8x1xf32> to vector<8x8xf32>
    %276 = arith.subf %272, %275 : vector<8x8xf32>
    %277 = math.exp %276 : vector<8x8xf32>
    %cst_95 = arith.constant dense<0.000000e+00> : vector<8xf32>
    %278 = vector.multi_reduction <add>, %277, %cst_95 [1] : vector<8x8xf32> to vector<8xf32>
    %279 = vector.shape_cast %278 : vector<8xf32> to vector<8x1xf32>
    %280 = tpu.reciprocal %279 {approx = true} : vector<8x1xf32> -> vector<8x1xf32>
    %281 = vector.broadcast %280 : vector<8x1xf32> to vector<8x8xf32>
    %282 = arith.mulf %277, %281 : vector<8x8xf32>
    %cst_96 = arith.constant dense<0.000000e+00> : vector<8x64xf32>
    %283 = tpu.matmul %282, %267, %cst_96 {dimension_numbers = #tpu.dot_dimension_numbers<[1], [0], [0], [1], [0, 0, 1, 1], [], []>} : vector<8x8xf32>, vector<8x64xf32>, vector<8x64xf32> -> vector<8x64xf32>
    %c8_97 = arith.constant 8 : index
    %c320_98 = arith.constant 320 : index
    %284 = vector.load %arg18[%c8_97, %c320_98] : memref<16x384xf32, #tpu.memory_space<vmem>>, vector<8x64xf32>
    tpu.vector_store %arg18[%c8_97, %c320_98], %283 {strides = array<i32>} : memref<16x384xf32, #tpu.memory_space<vmem>>, vector<8x64xf32>,
    %c0_99 = arith.constant 0 : index
    %c0_100 = arith.constant 0 : index
    %285 = vector.load %arg18[%c0_99, %c0_100] : memref<16x384xf32, #tpu.memory_space<vmem>>, vector<16x384xf32>
    %286 = arith.truncf %285 : vector<16x384xf32> to vector<16x384xbf16>
    %c0_101 = arith.constant 0 : index
    %c0_102 = arith.constant 0 : index
    %c0_103 = arith.constant 0 : index
    %287 = vector.load %arg6[%c0_101, %c0_102, %c0_103] : memref<1x384x384xbf16, #tpu.memory_space<vmem>>, vector<1x384x384xbf16>
    %288 = vector.shape_cast %287 : vector<1x384x384xbf16> to vector<384x384xbf16>
    %cst_104 = arith.constant dense<0.000000e+00> : vector<16x384xf32>
    %289 = tpu.matmul %286, %288, %cst_104 {dimension_numbers = #tpu.dot_dimension_numbers<[1], [0], [0], [1], [0, 0, 1, 1], [], []>} : vector<16x384xbf16>, vector<384x384xbf16>, vector<16x384xf32> -> vector<16x384xf32>
    %c0_105 = arith.constant 0 : index
    %c0_106 = arith.constant 0 : index
    %c0_107 = arith.constant 0 : index
    %290 = vector.load %arg7[%c0_105, %c0_106, %c0_107] : memref<1x1x384xf32, #tpu.memory_space<vmem>>, vector<1x1x384xf32>
    %291 = vector.shape_cast %290 : vector<1x1x384xf32> to vector<1x384xf32>
    %292 = vector.broadcast %291 : vector<1x384xf32> to vector<16x384xf32>
    %293 = arith.addf %289, %292 : vector<16x384xf32>
    %c0_108 = arith.constant 0 : index
    %c0_109 = arith.constant 0 : index
    %c0_110 = arith.constant 0 : index
    %294 = vector.load %arg8[%c0_108, %c0_109, %c0_110] : memref<1x1x384xf32, #tpu.memory_space<vmem>>, vector<1x1x384xf32>
    %295 = vector.shape_cast %294 : vector<1x1x384xf32> to vector<1x384xf32>
    %296 = vector.broadcast %295 : vector<1x384xf32> to vector<16x384xf32>
    %297 = arith.mulf %293, %296 : vector<16x384xf32>
    %298 = arith.addf %3, %297 : vector<16x384xf32>
    %c0_111 = arith.constant 0 : index
    %c0_112 = arith.constant 0 : index
    %c0_113 = arith.constant 0 : index
    %299 = vector.load %arg9[%c0_111, %c0_112, %c0_113] : memref<1x1x384xf32, #tpu.memory_space<vmem>>, vector<1x1x384xf32>
    %300 = vector.shape_cast %299 : vector<1x1x384xf32> to vector<1x384xf32>
    %c0_114 = arith.constant 0 : index
    %c0_115 = arith.constant 0 : index
    %c0_116 = arith.constant 0 : index
    %301 = vector.load %arg10[%c0_114, %c0_115, %c0_116] : memref<1x1x384xf32, #tpu.memory_space<vmem>>, vector<1x1x384xf32>
    %302 = vector.shape_cast %301 : vector<1x1x384xf32> to vector<1x384xf32>
    %cst_117 = arith.constant dense<0.000000e+00> : vector<16xf32>
    %303 = vector.multi_reduction <add>, %298, %cst_117 [1] : vector<16x384xf32> to vector<16xf32>
    %304 = vector.shape_cast %303 : vector<16xf32> to vector<16x1xf32>
    %cst_118 = arith.constant 3.840000e+02 : f32
    %305 = vector.broadcast %cst_118 : f32 to vector<16x1xf32>
    %306 = arith.divf %304, %305 : vector<16x1xf32>
    %307 = vector.broadcast %306 : vector<16x1xf32> to vector<16x384xf32>
    %308 = arith.subf %298, %307 : vector<16x384xf32>
    %309 = arith.mulf %308, %308 : vector<16x384xf32>
    %cst_119 = arith.constant dense<0.000000e+00> : vector<16xf32>
    %310 = vector.multi_reduction <add>, %309, %cst_119 [1] : vector<16x384xf32> to vector<16xf32>
    %311 = vector.shape_cast %310 : vector<16xf32> to vector<16x1xf32>
    %cst_120 = arith.constant 3.840000e+02 : f32
    %312 = vector.broadcast %cst_120 : f32 to vector<16x1xf32>
    %313 = arith.divf %311, %312 : vector<16x1xf32>
    %cst_121 = arith.constant 9.99999997E-7 : f32
    %314 = vector.broadcast %cst_121 : f32 to vector<16x1xf32>
    %315 = arith.addf %313, %314 : vector<16x1xf32>
    %316 = math.rsqrt %315 : vector<16x1xf32>
    %317 = vector.broadcast %316 : vector<16x1xf32> to vector<16x384xf32>
    %318 = arith.mulf %308, %317 : vector<16x384xf32>
    %319 = vector.broadcast %300 : vector<1x384xf32> to vector<16x384xf32>
    %320 = arith.mulf %318, %319 : vector<16x384xf32>
    %321 = vector.broadcast %302 : vector<1x384xf32> to vector<16x384xf32>
    %322 = arith.addf %320, %321 : vector<16x384xf32>
    %323 = arith.truncf %322 : vector<16x384xf32> to vector<16x384xbf16>
    %c0_122 = arith.constant 0 : index
    %c0_123 = arith.constant 0 : index
    %c0_124 = arith.constant 0 : index
    %324 = vector.load %arg11[%c0_122, %c0_123, %c0_124] : memref<1x384x1536xbf16, #tpu.memory_space<vmem>>, vector<1x384x1536xbf16>
    %325 = vector.shape_cast %324 : vector<1x384x1536xbf16> to vector<384x1536xbf16>
    %cst_125 = arith.constant dense<0.000000e+00> : vector<16x1536xf32>
    %326 = tpu.matmul %323, %325, %cst_125 {dimension_numbers = #tpu.dot_dimension_numbers<[1], [0], [0], [1], [0, 0, 1, 1], [], []>} : vector<16x384xbf16>, vector<384x1536xbf16>, vector<16x1536xf32> -> vector<16x1536xf32>
    %c0_126 = arith.constant 0 : index
    %c0_127 = arith.constant 0 : index
    %c0_128 = arith.constant 0 : index
    %327 = vector.load %arg12[%c0_126, %c0_127, %c0_128] : memref<1x1x1536xf32, #tpu.memory_space<vmem>>, vector<1x1x1536xf32>
    %328 = vector.shape_cast %327 : vector<1x1x1536xf32> to vector<1x1536xf32>
    %329 = vector.broadcast %328 : vector<1x1536xf32> to vector<16x1536xf32>
    %330 = arith.addf %326, %329 : vector<16x1536xf32>
    %cst_129 = arith.constant 5.000000e-01 : f32
    %331 = vector.broadcast %cst_129 : f32 to vector<16x1536xf32>
    %332 = arith.mulf %331, %330 : vector<16x1536xf32>
    %cst_130 = arith.constant 0.707106769 : f32
    %333 = vector.broadcast %cst_130 : f32 to vector<16x1536xf32>
    %334 = arith.mulf %330, %333 : vector<16x1536xf32>
    %cst_131 = arith.constant 0.000000e+00 : f32
    %335 = vector.broadcast %cst_131 : f32 to vector<16x1536xf32>
    %336 = arith.cmpf oge, %334, %335 : vector<16x1536xf32>
    %cst_132 = arith.constant 1.000000e+00 : f32
    %cst_133 = arith.constant -1.000000e+00 : f32
    %337 = vector.broadcast %cst_132 : f32 to vector<16x1536xf32>
    %338 = vector.broadcast %cst_133 : f32 to vector<16x1536xf32>
    %339 = arith.select %336, %337, %338 : vector<16x1536xi1>, vector<16x1536xf32>
    %340 = arith.mulf %334, %339 : vector<16x1536xf32>
    %cst_134 = arith.constant 0.327591091 : f32
    %341 = vector.broadcast %cst_134 : f32 to vector<16x1536xf32>
    %342 = arith.mulf %341, %340 : vector<16x1536xf32>
    %cst_135 = arith.constant 1.000000e+00 : f32
    %343 = vector.broadcast %cst_135 : f32 to vector<16x1536xf32>
    %344 = arith.addf %343, %342 : vector<16x1536xf32>
    %cst_136 = arith.constant 1.000000e+00 : f32
    %345 = vector.broadcast %cst_136 : f32 to vector<16x1536xf32>
    %346 = arith.divf %345, %344 : vector<16x1536xf32>
    %cst_137 = arith.constant 1.06140542 : f32
    %347 = vector.broadcast %cst_137 : f32 to vector<16x1536xf32>
    %348 = arith.mulf %346, %347 : vector<16x1536xf32>
    %cst_138 = arith.constant -1.45315206 : f32
    %349 = vector.broadcast %cst_138 : f32 to vector<16x1536xf32>
    %350 = arith.addf %349, %348 : vector<16x1536xf32>
    %351 = arith.mulf %346, %350 : vector<16x1536xf32>
    %cst_139 = arith.constant 1.42141378 : f32
    %352 = vector.broadcast %cst_139 : f32 to vector<16x1536xf32>
    %353 = arith.addf %352, %351 : vector<16x1536xf32>
    %354 = arith.mulf %346, %353 : vector<16x1536xf32>
    %cst_140 = arith.constant -0.284496725 : f32
    %355 = vector.broadcast %cst_140 : f32 to vector<16x1536xf32>
    %356 = arith.addf %355, %354 : vector<16x1536xf32>
    %357 = arith.mulf %346, %356 : vector<16x1536xf32>
    %cst_141 = arith.constant 0.254829586 : f32
    %358 = vector.broadcast %cst_141 : f32 to vector<16x1536xf32>
    %359 = arith.addf %358, %357 : vector<16x1536xf32>
    %360 = arith.mulf %346, %359 : vector<16x1536xf32>
    %361 = arith.mulf %340, %340 : vector<16x1536xf32>
    %cst_142 = arith.constant 0.000000e+00 : f32
    %362 = vector.broadcast %cst_142 : f32 to vector<16x1536xf32>
    %363 = arith.subf %362, %361 : vector<16x1536xf32>
    %364 = math.exp %363 : vector<16x1536xf32>
    %365 = arith.mulf %360, %364 : vector<16x1536xf32>
    %cst_143 = arith.constant 1.000000e+00 : f32
    %366 = vector.broadcast %cst_143 : f32 to vector<16x1536xf32>
    %367 = arith.subf %366, %365 : vector<16x1536xf32>
    %368 = arith.mulf %339, %367 : vector<16x1536xf32>
    %cst_144 = arith.constant 1.000000e+00 : f32
    %369 = vector.broadcast %cst_144 : f32 to vector<16x1536xf32>
    %370 = arith.addf %369, %368 : vector<16x1536xf32>
    %371 = arith.mulf %332, %370 : vector<16x1536xf32>
    %372 = arith.truncf %371 : vector<16x1536xf32> to vector<16x1536xbf16>
    %c0_145 = arith.constant 0 : index
    %c0_146 = arith.constant 0 : index
    %c0_147 = arith.constant 0 : index
    %373 = vector.load %arg13[%c0_145, %c0_146, %c0_147] : memref<1x1536x384xbf16, #tpu.memory_space<vmem>>, vector<1x1536x384xbf16>
    %374 = vector.shape_cast %373 : vector<1x1536x384xbf16> to vector<1536x384xbf16>
    %cst_148 = arith.constant dense<0.000000e+00> : vector<16x384xf32>
    %375 = tpu.matmul %372, %374, %cst_148 {dimension_numbers = #tpu.dot_dimension_numbers<[1], [0], [0], [1], [0, 0, 1, 1], [], []>} : vector<16x1536xbf16>, vector<1536x384xbf16>, vector<16x384xf32> -> vector<16x384xf32>
    %c0_149 = arith.constant 0 : index
    %c0_150 = arith.constant 0 : index
    %c0_151 = arith.constant 0 : index
    %376 = vector.load %arg14[%c0_149, %c0_150, %c0_151] : memref<1x1x384xf32, #tpu.memory_space<vmem>>, vector<1x1x384xf32>
    %377 = vector.shape_cast %376 : vector<1x1x384xf32> to vector<1x384xf32>
    %378 = vector.broadcast %377 : vector<1x384xf32> to vector<16x384xf32>
    %379 = arith.addf %375, %378 : vector<16x384xf32>
    %c0_152 = arith.constant 0 : index
    %c0_153 = arith.constant 0 : index
    %c0_154 = arith.constant 0 : index
    %380 = vector.load %arg15[%c0_152, %c0_153, %c0_154] : memref<1x1x384xf32, #tpu.memory_space<vmem>>, vector<1x1x384xf32>
    %381 = vector.shape_cast %380 : vector<1x1x384xf32> to vector<1x384xf32>
    %382 = vector.broadcast %381 : vector<1x384xf32> to vector<16x384xf32>
    %383 = arith.mulf %379, %382 : vector<16x384xf32>
    %384 = arith.addf %298, %383 : vector<16x384xf32>
    %c0_155 = arith.constant 0 : index
    %c0_156 = arith.constant 0 : index
    %385 = vector.load %arg17[%c0_155, %c0_156] : memref<16x384xf32, #tpu.memory_space<vmem>>, vector<16x384xf32>
    tpu.vector_store %arg17[%c0_155, %c0_156], %384 {strides = array<i32>} : memref<16x384xf32, #tpu.memory_space<vmem>>, vector<16x384xf32>,
    %c11_i32 = arith.constant 11 : i32
    %386 = arith.cmpi eq, %arg0, %c11_i32 : i32
    %387 = arith.extui %386 : i1 to i32
    %c0_i32_157 = arith.constant 0 : i32
    %388 = arith.cmpi ne, %387, %c0_i32_157 : i32
    scf.if %388 {
      %c0_158 = arith.constant 0 : index
      %c0_159 = arith.constant 0 : index
      %389 = vector.load %arg17[%c0_158, %c0_159] : memref<16x384xf32, #tpu.memory_space<vmem>>, vector<16x384xf32>
      %c0_160 = arith.constant 0 : index
      %c0_161 = arith.constant 0 : index
      %390 = vector.load %arg16[%c0_160, %c0_161] : memref<16x384xf32, #tpu.memory_space<vmem>>, vector<16x384xf32>
      tpu.vector_store %arg16[%c0_160, %c0_161], %389 {strides = array<i32>} : memref<16x384xf32, #tpu.memory_space<vmem>>, vector<16x384xf32>,
    } else {
    }
    return
  }
  func.func @transform_0(%arg0: i32) -> (i32, i32) {
    %c0_i32 = arith.constant 0 : i32
    %c0_i32_0 = arith.constant 0 : i32
    %c0_i32_1 = arith.constant 0 : i32
    return %c0_i32, %c0_i32_0 : i32, i32
  }
  func.func @transform_1(%arg0: i32) -> (i32, i32, i32) {
    %c0_i32 = arith.constant 0 : i32
    %c0_i32_0 = arith.constant 0 : i32
    %c0_i32_1 = arith.constant 0 : i32
    return %arg0, %c0_i32, %c0_i32_0 : i32, i32, i32
  }
  func.func @transform_2(%arg0: i32) -> (i32, i32, i32) {
    %c0_i32 = arith.constant 0 : i32
    %c0_i32_0 = arith.constant 0 : i32
    %c0_i32_1 = arith.constant 0 : i32
    return %arg0, %c0_i32, %c0_i32_0 : i32, i32, i32
  }
  func.func @transform_3(%arg0: i32) -> (i32, i32, i32) {
    %c0_i32 = arith.constant 0 : i32
    %c0_i32_0 = arith.constant 0 : i32
    %c0_i32_1 = arith.constant 0 : i32
    return %arg0, %c0_i32, %c0_i32_0 : i32, i32, i32
  }
  func.func @transform_4(%arg0: i32) -> (i32, i32, i32) {
    %c0_i32 = arith.constant 0 : i32
    %c0_i32_0 = arith.constant 0 : i32
    %c0_i32_1 = arith.constant 0 : i32
    return %arg0, %c0_i32, %c0_i32_0 : i32, i32, i32
  }
  func.func @transform_5(%arg0: i32) -> (i32, i32, i32) {
    %c0_i32 = arith.constant 0 : i32
    %c0_i32_0 = arith.constant 0 : i32
    %c0_i32_1 = arith.constant 0 : i32
    return %arg0, %c0_i32, %c0_i32_0 : i32, i32, i32
  }
  func.func @transform_6(%arg0: i32) -> (i32, i32, i32) {
    %c0_i32 = arith.constant 0 : i32
    %c0_i32_0 = arith.constant 0 : i32
    %c0_i32_1 = arith.constant 0 : i32
    return %arg0, %c0_i32, %c0_i32_0 : i32, i32, i32
  }
  func.func @transform_7(%arg0: i32) -> (i32, i32, i32) {
    %c0_i32 = arith.constant 0 : i32
    %c0_i32_0 = arith.constant 0 : i32
    %c0_i32_1 = arith.constant 0 : i32
    return %arg0, %c0_i32, %c0_i32_0 : i32, i32, i32
  }
  func.func @transform_8(%arg0: i32) -> (i32, i32, i32) {
    %c0_i32 = arith.constant 0 : i32
    %c0_i32_0 = arith.constant 0 : i32
    %c0_i32_1 = arith.constant 0 : i32
    return %arg0, %c0_i32, %c0_i32_0 : i32, i32, i32
  }
  func.func @transform_9(%arg0: i32) -> (i32, i32, i32) {
    %c0_i32 = arith.constant 0 : i32
    %c0_i32_0 = arith.constant 0 : i32
    %c0_i32_1 = arith.constant 0 : i32
    return %arg0, %c0_i32, %c0_i32_0 : i32, i32, i32
  }
  func.func @transform_10(%arg0: i32) -> (i32, i32, i32) {
    %c0_i32 = arith.constant 0 : i32
    %c0_i32_0 = arith.constant 0 : i32
    %c0_i32_1 = arith.constant 0 : i32
    return %arg0, %c0_i32, %c0_i32_0 : i32, i32, i32
  }
  func.func @transform_11(%arg0: i32) -> (i32, i32, i32) {
    %c0_i32 = arith.constant 0 : i32
    %c0_i32_0 = arith.constant 0 : i32
    %c0_i32_1 = arith.constant 0 : i32
    return %arg0, %c0_i32, %c0_i32_0 : i32, i32, i32
  }
  func.func @transform_12(%arg0: i32) -> (i32, i32, i32) {
    %c0_i32 = arith.constant 0 : i32
    %c0_i32_0 = arith.constant 0 : i32
    %c0_i32_1 = arith.constant 0 : i32
    return %arg0, %c0_i32, %c0_i32_0 : i32, i32, i32
  }
  func.func @transform_13(%arg0: i32) -> (i32, i32, i32) {
    %c0_i32 = arith.constant 0 : i32
    %c0_i32_0 = arith.constant 0 : i32
    %c0_i32_1 = arith.constant 0 : i32
    return %arg0, %c0_i32, %c0_i32_0 : i32, i32, i32
  }
  func.func @transform_14(%arg0: i32) -> (i32, i32, i32) {
    %c0_i32 = arith.constant 0 : i32
    %c0_i32_0 = arith.constant 0 : i32
    %c0_i32_1 = arith.constant 0 : i32
    return %arg0, %c0_i32, %c0_i32_0 : i32, i32, i32
  }
  func.func @transform_15(%arg0: i32) -> (i32, i32) {
    %c0_i32 = arith.constant 0 : i32
    %c0_i32_0 = arith.constant 0 : i32
    %c0_i32_1 = arith.constant 0 : i32
    return %c0_i32, %c0_i32_0 : i32, i32
  }
}

</mosaic_0001>

<bundles_post_ra>
// kernel: forward.3
= control target key start
LH: loop header
LB: loop body
LE: loop exit
PB: predicated region body
PF: predicated region fallthrough
CT: control target
= control target key end

     0   :  { %8 = vsyncpa [#allocation3], 0  ;;  %s1233_s0 = inlined_call_operand.vmem [shape: f32[8,588], index: 0, kind: input, shape index: {}]   ;;  %s1234_s1 = inlined_call_operand.hbm [shape: f32[588,384], index: 1, kind: input, shape index: {}]   ;;  %s1235_s2 = inlined_call_operand.hbm [shape: f32[1,384], index: 2, kind: input, shape index: {}]   ;;  %s1236_s3 = inlined_call_operand.vmem [shape: f32[8,384], index: 3, kind: output, shape index: {}]  }
   0x1   :  { %9 = vsyncpa [#allocation5], 0  ;;  %s1131_s12 = smov [#allocation2]   ;;  %s1083_s16 = scalar_lea.hbm %s1234_s1, 28416 }
   0x2   :  { %s17_s13 = sshll.u32 %s1131_s12, 4  ;;  %p1084_p0 = scmp.ne.s32.totalorder %s1234_s1, %s1083_s16  ;;  %s18_s13 = int_to_ptr.vmem [resolvable:$true] %s17_s13 }
   0x3   :  { %p1087_p1 = scmp.lt.u32.totalorder %s1083_s16, %s1234_s1 }
   0x5   :  { %p1089_p2 = pnand %p1087_p1, %p1084_p0 }
   0x7   :  { %1092 = shalt.err (!%p1089_p2)
}
   0x8   :  { %s1093_s21 = scalar_lea.vmem %s18_s13, 28416  ;;  %p1098_p4 = scmp.lt.s32.totalorder %s18_s13, %s18_s13 }
   0x9   :  { %p1094_p3 = scmp.ne.s32.totalorder %s18_s13, %s1093_s21  ;;  %p1099_p5 = scmp.lt.s32.totalorder %s1093_s21, %s1093_s21 }
   0xb   :  { %p1100_p6 = por %p1099_p5, %p1098_p4 }
   0xd   :  { %p1101_p7 = pnand %p1100_p6, %p1094_p3 }
   0xf   :  { %1104 = shalt.err (!%p1101_p7)
}
  0x10   :  { %s1132_s22 = smov 384   ;;  %s1133_s23 = smov 24  }
  0x11   :  { %23 = dma.hbm_to_vmem [thread:$0]  %s1234_s1, 28416, %s18_s13, [#allocation3], %s1132_s22, %s1132_s22, %s1133_s23  }
  0x12   :  { %s1134_s26 = smov [#allocation4]   ;;  %s1105_s30 = scalar_lea.hbm %s1235_s2, 48 }
  0x13   :  { %s30_s27 = sshll.u32 %s1134_s26, 4  ;;  %p1106_p8 = scmp.ne.s32.totalorder %s1235_s2, %s1105_s30  ;;  %s31_s27 = int_to_ptr.vmem [resolvable:$true] %s30_s27 }
  0x14   :  { %p1109_p9 = scmp.lt.u32.totalorder %s1105_s30, %s1235_s2 }
  0x16   :  { %p1111_p10 = pnand %p1109_p9, %p1106_p8 }
  0x18   :  { %1114 = shalt.err (!%p1111_p10)
}
  0x19   :  { %s1115_s8 = scalar_lea.vmem %s31_s27, 48  ;;  %s1119_s1 = scalar_lea.vmem %s31_s27, 64 }
  0x1a   :  { %p1116_p11 = scmp.ne.s32.totalorder %s31_s27, %s1115_s8  ;;  %p1120_p12 = scmp.lt.s32.totalorder %s31_s27, %s31_s27 }
  0x1b   :  { %p1121_p13 = scmp.lt.s32.totalorder %s1119_s1, %s1115_s8 }
  0x1d   :  { %p1122_p0 = por %p1121_p13, %p1120_p12 }
  0x1f   :  { %p1123_p1 = pnand %p1122_p0, %p1116_p11 }
  0x21   :  { %1126 = shalt.err (!%p1123_p1)
}
  0x22   :  { %33 = dma.hbm_to_vmem [thread:$0]  %s1235_s2, 48, %s31_s27, [#allocation5]  }
  0x23   :  { %1127 = dma.done.wait [#allocation3], 28416  }
  0x24   :  { %1128 = vsyncadd [#allocation3], 4294938880 }
  0x25   :  { %1129 = dma.done.wait [#allocation5], 48  }
  0x26   :  { %1130 = vsyncadd [#allocation5], 4294967248  ;;  %v1135_v0 = vmov 0.0   ;;  %v46_v1 = vld [vmem:[#allocation2 + $0x8] sm:$0xff]  ;;  %v49_v2 = vld [vmem:[#allocation2 + $0x20] sm:$0xff]  ;;  %vm288_vm0 = vcmask 1043456  }
  0x27   :  { %504 = vmatprep.mubr.f32.mxu1 %v1135_v0  ;;  %v238_v3 = vld [vmem:[#allocation2 + $0x608] sm:$0xff]  ;;  %v839_v4 = vpack.c.bf16 %v49_v2, %v46_v1  ;;  %v241_v5 = vld [vmem:[#allocation2 + $0x620] sm:$0xff]  ;;  %v48_v7 = vld [vmem:[#allocation2 + $0x18] sm:$0xff]  ;;  %vm1136_vm1 = vmmov 1   ;;  %vm284_vm3 = vcmask 621568   ;;  %vm1138_vm4 = vmmov 0  }
  0x28   :  { %v45_v6 = vld [vmem:[#allocation2] sm:$0xff]  ;;  %v967_v8 = vpack.c.bf16 %v241_v5, %v238_v3  ;;  %v240_v11 = vld [vmem:[#allocation2 + $0x618] sm:$0xff]  ;;  %v55_v14 = vld [vmem:[#allocation2 + $0x50] sm:$0xff] }
  0x29   :  { %v841_v9 = vpack.c.bf16 %v48_v7, %v45_v6  ;;  %v237_v10 = vld [vmem:[#allocation2 + $0x600] sm:$0xff]  ;;  %v52_v12 = vld [vmem:[#allocation2 + $0x38] sm:$0xff]  ;;  %840 = vmatprep.subr.bf16.mxu0 %v839_v4  ;;  %v247_v16 = vld [vmem:[#allocation2 + $0x650] sm:$0xff] }
  0x2a   :  { %v969_v13 = vpack.c.bf16 %v240_v11, %v237_v10  ;;  %v244_v15 = vld [vmem:[#allocation2 + $0x638] sm:$0xff]  ;;  %968 = vmatprep.subr.bf16.mxu1 %v967_v8  ;;  %v843_v17 = vpack.c.bf16 %v55_v14, %v52_v12  ;;  %v51_v19 = vld [vmem:[#allocation2 + $0x30] sm:$0xff]  ;;  %v54_v20 = vld [vmem:[#allocation2 + $0x48] sm:$0xff] }
  0x2b   :  { %842 = vmatpush1.bf16.msra.mxu0 %v841_v9  ;;  %v971_v18 = vpack.c.bf16 %v247_v16, %v244_v15  ;;  %v243_v21 = vld [vmem:[#allocation2 + $0x630] sm:$0xff]  ;;  %v845_v22 = vpack.c.bf16 %v54_v20, %v51_v19  ;;  %v246_v23 = vld [vmem:[#allocation2 + $0x648] sm:$0xff]  ;;  %v61_v25 = vld [vmem:[#allocation2 + $0x80] sm:$0xff] }
  0x2c   :  { %970 = vmatpush1.bf16.msra.mxu1 %v969_v13  ;;  %v58_v24 = vld [vmem:[#allocation2 + $0x68] sm:$0xff]  ;;  %844 = vmatprep.subr.bf16.mxu0 %v843_v17  ;;  %v973_v26 = vpack.c.bf16 %v246_v23, %v243_v21  ;;  %v253_v29 = vld [vmem:[#allocation2 + $0x680] sm:$0xff]  ;;  %v60_v32 = vld [vmem:[#allocation2 + $0x78] sm:$0xff] }
  0x2d   :  { %972 = vmatprep.subr.bf16.mxu1 %v971_v18  ;;  %v847_v27 = vpack.c.bf16 %v61_v25, %v58_v24  ;;  %v250_v28 = vld [vmem:[#allocation2 + $0x668] sm:$0xff]  ;;  %v57_v30 = vld [vmem:[#allocation2 + $0x60] sm:$0xff]  ;;  %v252_v34 = vld [vmem:[#allocation2 + $0x678] sm:$0xff] }
  0x2e   :  { %v975_v31 = vpack.c.bf16 %v253_v29, %v250_v28  ;;  %v249_v33 = vld [vmem:[#allocation2 + $0x660] sm:$0xff]  ;;  %v849_v35 = vpack.c.bf16 %v60_v32, %v57_v30  ;;  %v64_v36 = vld [vmem:[#allocation2 + $0x98] sm:$0xff]  ;;  %v67_v37 = vld [vmem:[#allocation2 + $0xb0] sm:$0xff] }
  0x2f   :  { %846 = vmatpush1.bf16.msra.mxu0 %v845_v22  ;;  %v256_v38 = vld [vmem:[#allocation2 + $0x698] sm:$0xff]  ;;  %v977_v39 = vpack.c.bf16 %v252_v34, %v249_v33  ;;  %v851_v40 = vpack.c.bf16 %v67_v37, %v64_v36  ;;  %v259_v41 = vld [vmem:[#allocation2 + $0x6b0] sm:$0xff]  ;;  %v66_v43 = vld [vmem:[#allocation2 + $0xa8] sm:$0xff] }
  0x30   :  { %974 = vmatpush1.bf16.msra.mxu1 %v973_v26  ;;  %848 = vmatprep.subr.bf16.mxu0 %v847_v27  ;;  %v63_v42 = vld [vmem:[#allocation2 + $0x90] sm:$0xff]  ;;  %v979_v44 = vpack.c.bf16 %v259_v41, %v256_v38  ;;  %v258_v46 = vld [vmem:[#allocation2 + $0x6a8] sm:$0xff]  ;;  %v73_v48 = vld [vmem:[#allocation2 + $0xe0] sm:$0xff] }
  0x31   :  { %976 = vmatprep.subr.bf16.mxu1 %v975_v31  ;;  %v255_v45 = vld [vmem:[#allocation2 + $0x690] sm:$0xff]  ;;  %v70_v47 = vld [vmem:[#allocation2 + $0xc8] sm:$0xff]  ;;  %v265_v50 = vld [vmem:[#allocation2 + $0x6e0] sm:$0xf]  ;;  %v853_v51 = vpack.c.bf16 %v66_v43, %v63_v42 }
  0x32   :  { %v262_v49 = vld [vmem:[#allocation2 + $0x6c8] sm:$0xff]  ;;  %v981_v52 = vpack.c.bf16 %v258_v46, %v255_v45  ;;  %v855_v53 = vpack.c.bf16 %v73_v48, %v70_v47  ;;  %v69_v54 = vld [vmem:[#allocation2 + $0xc0] sm:$0xff]  ;;  %v72_v55 = vld [vmem:[#allocation2 + $0xd8] sm:$0xff] }
  0x33   :  { %850 = vmatpush1.bf16.msra.mxu0 %v849_v35  ;;  %v261_v56 = vld [vmem:[#allocation2 + $0x6c0] sm:$0xff]  ;;  %v983_v57 = vpack.c.bf16 %v265_v50, %v262_v49  ;;  %v264_v58 = vld [vmem:[#allocation2 + $0x6d8] sm:$0xf]  ;;  %v79_v60 = vld [vmem:[#allocation2 + $0x110] sm:$0xff]  ;;  %v857_v1 = vpack.c.bf16 %v72_v55, %v69_v54 }
  0x34   :  { %978 = vmatpush1.bf16.msra.mxu1 %v977_v39  ;;  %852 = vmatprep.subr.bf16.mxu0 %v851_v40  ;;  %v76_v59 = vld [vmem:[#allocation2 + $0xf8] sm:$0xff]  ;;  %vm1184_vm2 = vmpackc.low %vm288_vm0, %vm1136_vm1  ;;  %v95_v62 = vld [vmem:[#allocation2 + $0x190] sm:$0xff]  ;;  %v986_v2 = vpack.c.bf16 %v264_v58, %v261_v56 }
  0x35   :  { %980 = vmatprep.subr.bf16.mxu1 %v979_v44  ;;  %v98_v63 = vld [vmem:[#allocation2 + $0x1a8] sm:$0xff]  ;;  %v859_v3 = vpack.c.bf16 %v79_v60, %v76_v59  ;;  %v75_v4 = vld [vmem:[#allocation2 + $0xf0] sm:$0xff]  ;;  %v85_v10 = vld [vmem:[#allocation2 + $0x140] sm:$0xff] }
  0x36   :  { %v78_v5 = vld [vmem:[#allocation2 + $0x108] sm:$0xff]  ;;  %v47_v6 = vld [vmem:[#allocation2 + $0x10] sm:$0xff]  ;;  %v989_v7 = vpack.c.bf16 %v98_v63, %v95_v62  ;;  %v101_v11 = vld [vmem:[#allocation2 + $0x1c0] sm:$0xff] }
  0x37   :  { %854 = vmatpush1.bf16.msra.mxu0 %v853_v51  ;;  %v50_v8 = vld [vmem:[#allocation2 + $0x28] sm:$0xff]  ;;  %v104_v12 = vld [vmem:[#allocation2 + $0x1d8] sm:$0xff]  ;;  %v861_v13 = vpack.c.bf16 %v78_v5, %v75_v4  ;;  %v1193_v14 = vld [vmem:[%s1233_s0 + $0x20] sm:$0xff] }
  0x38   :  { %982 = vmatpush1.bf16.msra.mxu1 %v981_v52  ;;  %856 = vmatprep.subr.bf16.mxu0 %v855_v53  ;;  %v82_v9 = vld [vmem:[#allocation2 + $0x128] sm:$0xff]  ;;  %v991_v15 = vpack.c.bf16 %v50_v8, %v47_v6  ;;  %v81_v17 = vld [vmem:[#allocation2 + $0x120] sm:$0xff]  ;;  %v84_v18 = vld [vmem:[#allocation2 + $0x138] sm:$0xff]  ;;  %v993_v20 = vpack.c.bf16 %v104_v12, %v101_v11 }
  0x39   :  { %985 = vmatprep.subr.msk.bf16.mxu1 %vm1184_vm2, %v983_v57  ;;  %v863_v16 = vpack.c.bf16 %v85_v10, %v82_v9  ;;  %v53_v19 = vld [vmem:[#allocation2 + $0x40] sm:$0xff]  ;;  %v56_v21 = vld [vmem:[#allocation2 + $0x58] sm:$0xff]  ;;  %v91_v23 = vld [vmem:[#allocation2 + $0x170] sm:$0xff]  ;;  %v865_v26 = vpack.c.bf16 %v84_v18, %v81_v17 }
  0x3a   :  { %v88_v22 = vld [vmem:[#allocation2 + $0x158] sm:$0xff]  ;;  %v107_v24 = vld [vmem:[#allocation2 + $0x1f0] sm:$0xff]  ;;  %v110_v25 = vld [vmem:[#allocation2 + $0x208] sm:$0xff]  ;;  %v995_v27 = vpack.c.bf16 %v56_v21, %v53_v19 }
  0x3b   :  { %858 = vmatpush1.bf16.msra.mxu0 %v857_v1  ;;  %v867_v28 = vpack.c.bf16 %v91_v23, %v88_v22  ;;  %v87_v29 = vld [vmem:[#allocation2 + $0x150] sm:$0xff]  ;;  %v90_v30 = vld [vmem:[#allocation2 + $0x168] sm:$0xff]  ;;  %v997_v32 = vpack.c.bf16 %v110_v25, %v107_v24  ;;  %v97_v35 = vld [vmem:[#allocation2 + $0x1a0] sm:$0xff] }
  0x3c   :  { %988 = vmatpush1.bf16.msk.msra.mxu1 %vm1184_vm2, %v986_v2  ;;  %860 = vmatprep.subr.bf16.mxu0 %v859_v3  ;;  %v59_v31 = vld [vmem:[#allocation2 + $0x70] sm:$0xff]  ;;  %v62_v33 = vld [vmem:[#allocation2 + $0x88] sm:$0xff]  ;;  %v113_v36 = vld [vmem:[#allocation2 + $0x220] sm:$0xff]  ;;  %v869_v38 = vpack.c.bf16 %v90_v30, %v87_v29 }
  0x3d   :  { %990 = vmatprep.subr.bf16.mxu1 %v989_v7  ;;  %v94_v34 = vld [vmem:[#allocation2 + $0x188] sm:$0xff]  ;;  %v116_v37 = vld [vmem:[#allocation2 + $0x238] sm:$0xff]  ;;  %v999_v39 = vpack.c.bf16 %v62_v33, %v59_v31  ;;  %v93_v41 = vld [vmem:[#allocation2 + $0x180] sm:$0xff] }
  0x3e   :  { %v871_v40 = vpack.c.bf16 %v97_v35, %v94_v34  ;;  %v96_v42 = vld [vmem:[#allocation2 + $0x198] sm:$0xff]  ;;  %v65_v43 = vld [vmem:[#allocation2 + $0xa0] sm:$0xff]  ;;  %v1001_v44 = vpack.c.bf16 %v116_v37, %v113_v36  ;;  %v103_v47 = vld [vmem:[#allocation2 + $0x1d0] sm:$0xff] }
  0x3f   :  { %862 = vmatpush1.bf16.msra.mxu0 %v861_v13  ;;  %732 = vmatmul.mubr.msk.f32.vlgmr.msra.gmra.mrb[0].mxu1 %vm284_vm3, %v1193_v14  ;;  %v68_v45 = vld [vmem:[#allocation2 + $0xb8] sm:$0xff]  ;;  %v119_v48 = vld [vmem:[#allocation2 + $0x250] sm:$0xff]  ;;  %v122_v49 = vld [vmem:[#allocation2 + $0x268] sm:$0xff]  ;;  %v873_v50 = vpack.c.bf16 %v96_v42, %v93_v41 }
  0x40   :  { %992 = vmatpush3.bf16.msra.mxu1 %v991_v15  ;;  %864 = vmatprep.subr.bf16.mxu0 %v863_v16  ;;  %v100_v46 = vld [vmem:[#allocation2 + $0x1b8] sm:$0xff]  ;;  %v1003_v51 = vpack.c.bf16 %v68_v45, %v65_v43  ;;  %v99_v53 = vld [vmem:[#allocation2 + $0x1b0] sm:$0xff]  ;;  %v102_v54 = vld [vmem:[#allocation2 + $0x1c8] sm:$0xff]  ;;  %v1005_v56 = vpack.c.bf16 %v122_v49, %v119_v48 }
  0x41   :  { %994 = vmatprep.subr.bf16.mxu1 %v993_v20  ;;  %v875_v52 = vpack.c.bf16 %v103_v47, %v100_v46  ;;  %v71_v55 = vld [vmem:[#allocation2 + $0xd0] sm:$0xff]  ;;  %v74_v57 = vld [vmem:[#allocation2 + $0xe8] sm:$0xff]  ;;  %v109_v59 = vld [vmem:[#allocation2 + $0x200] sm:$0xff]  ;;  %v877_v1 = vpack.c.bf16 %v102_v54, %v99_v53 }
  0x42   :  { %v106_v58 = vld [vmem:[#allocation2 + $0x1e8] sm:$0xff]  ;;  %v125_v60 = vld [vmem:[#allocation2 + $0x280] sm:$0xff]  ;;  %v128_v62 = vld [vmem:[#allocation2 + $0x298] sm:$0xff]  ;;  %v1007_v2 = vpack.c.bf16 %v74_v57, %v71_v55 }
  0x43   :  { %866 = vmatpush1.bf16.msra.mxu0 %v865_v26  ;;  %v41_v63 = vld [vmem:[%s1233_s0 + $0x8] sm:$0xff]  ;;  %v879_v3 = vpack.c.bf16 %v109_v59, %v106_v58  ;;  %v105_v4 = vld [vmem:[#allocation2 + $0x1e0] sm:$0xff]  ;;  %v108_v5 = vld [vmem:[#allocation2 + $0x1f8] sm:$0xff]  ;;  %v1009_v7 = vpack.c.bf16 %v128_v62, %v125_v60 }
  0x44   :  { %996 = vmatpush3.bf16.msra.mxu1 %v995_v27  ;;  %868 = vmatprep.subr.bf16.mxu0 %v867_v28  ;;  %v77_v6 = vld [vmem:[#allocation2 + $0x100] sm:$0xff]  ;;  %v80_v8 = vld [vmem:[#allocation2 + $0x118] sm:$0xff]  ;;  %v115_v10 = vld [vmem:[#allocation2 + $0x230] sm:$0xff]  ;;  %v881_v13 = vpack.c.bf16 %v108_v5, %v105_v4 }
  0x45   :  { %998 = vmatprep.subr.bf16.mxu1 %v997_v32  ;;  %575 = vmatprep.mubr.f32.mxu1 %v41_v63  ;;  %v112_v9 = vld [vmem:[#allocation2 + $0x218] sm:$0xff]  ;;  %v131_v11 = vld [vmem:[#allocation2 + $0x2b0] sm:$0xff]  ;;  %v134_v12 = vld [vmem:[#allocation2 + $0x2c8] sm:$0xff]  ;;  %v1011_v15 = vpack.c.bf16 %v80_v8, %v77_v6 }
  0x46   :  { %362 = vmatprep.mubr.f32.mxu0 %v41_v63  ;;  %v883_v16 = vpack.c.bf16 %v115_v10, %v112_v9  ;;  %v111_v17 = vld [vmem:[#allocation2 + $0x210] sm:$0xff]  ;;  %v114_v18 = vld [vmem:[#allocation2 + $0x228] sm:$0xff]  ;;  %v1013_v20 = vpack.c.bf16 %v134_v12, %v131_v11  ;;  %v121_v23 = vld [vmem:[#allocation2 + $0x260] sm:$0xff] }
  0x47   :  { %870 = vmatpush1.bf16.msra.mxu0 %v869_v38  ;;  %v83_v19 = vld [vmem:[#allocation2 + $0x130] sm:$0xff]  ;;  %v86_v21 = vld [vmem:[#allocation2 + $0x148] sm:$0xff]  ;;  %v137_v24 = vld [vmem:[#allocation2 + $0x2e0] sm:$0xff]  ;;  %v885_v26 = vpack.c.bf16 %v114_v18, %v111_v17 }
  0x48   :  { %1000 = vmatpush3.bf16.msra.mxu1 %v999_v39  ;;  %872 = vmatprep.subr.bf16.mxu0 %v871_v40  ;;  %v118_v22 = vld [vmem:[#allocation2 + $0x248] sm:$0xff]  ;;  %v140_v25 = vld [vmem:[#allocation2 + $0x2f8] sm:$0xff]  ;;  %v1015_v27 = vpack.c.bf16 %v86_v21, %v83_v19  ;;  %v117_v29 = vld [vmem:[#allocation2 + $0x240] sm:$0xff] }
  0x49   :  { %1002 = vmatprep.subr.bf16.mxu1 %v1001_v44  ;;  %v887_v28 = vpack.c.bf16 %v121_v23, %v118_v22  ;;  %v120_v30 = vld [vmem:[#allocation2 + $0x258] sm:$0xff]  ;;  %v89_v31 = vld [vmem:[#allocation2 + $0x160] sm:$0xff]  ;;  %v1017_v32 = vpack.c.bf16 %v140_v25, %v137_v24  ;;  %v127_v35 = vld [vmem:[#allocation2 + $0x290] sm:$0xff] }
  0x4a   :  { %v92_v33 = vld [vmem:[#allocation2 + $0x178] sm:$0xff]  ;;  %v191_v36 = vld [vmem:[#allocation2 + $0x490] sm:$0xff]  ;;  %v194_v37 = vld [vmem:[#allocation2 + $0x4a8] sm:$0xff]  ;;  %v889_v38 = vpack.c.bf16 %v120_v30, %v117_v29 }
  0x4b   :  { %874 = vmatpush1.bf16.msra.mxu0 %v873_v50  ;;  %v124_v34 = vld [vmem:[#allocation2 + $0x278] sm:$0xff]  ;;  %v1019_v39 = vpack.c.bf16 %v92_v33, %v89_v31  ;;  %v123_v41 = vld [vmem:[#allocation2 + $0x270] sm:$0xff]  ;;  %v126_v42 = vld [vmem:[#allocation2 + $0x288] sm:$0xff]  ;;  %v1021_v44 = vpack.c.bf16 %v194_v37, %v191_v36 }
  0x4c   :  { %1004 = vmatpush3.bf16.msra.mxu1 %v1003_v51  ;;  %876 = vmatprep.subr.bf16.mxu0 %v875_v52  ;;  %v891_v40 = vpack.c.bf16 %v127_v35, %v124_v34  ;;  %v143_v43 = vld [vmem:[#allocation2 + $0x310] sm:$0xff]  ;;  %v146_v45 = vld [vmem:[#allocation2 + $0x328] sm:$0xff]  ;;  %v133_v47 = vld [vmem:[#allocation2 + $0x2c0] sm:$0xff]  ;;  %v893_v50 = vpack.c.bf16 %v126_v42, %v123_v41 }
  0x4d   :  { %1006 = vmatprep.subr.bf16.mxu1 %v1005_v56  ;;  %v130_v46 = vld [vmem:[#allocation2 + $0x2a8] sm:$0xff]  ;;  %v197_v48 = vld [vmem:[#allocation2 + $0x4c0] sm:$0xff]  ;;  %v200_v49 = vld [vmem:[#allocation2 + $0x4d8] sm:$0xff]  ;;  %v1023_v52 = vpack.c.bf16 %v146_v45, %v143_v43 }
  0x4e   :  { %v1205_v51 = vld [vmem:[%s1233_s0] sm:$0xff]  ;;  %v895_v53 = vpack.c.bf16 %v133_v47, %v130_v46  ;;  %v132_v55 = vld [vmem:[#allocation2 + $0x2b8] sm:$0xff]  ;;  %v1025_v57 = vpack.c.bf16 %v200_v49, %v197_v48  ;;  %v139_v60 = vld [vmem:[#allocation2 + $0x2f0] sm:$0xff] }
  0x4f   :  { %878 = vmatpush1.bf16.msra.mxu0 %v877_v1  ;;  %v129_v54 = vld [vmem:[#allocation2 + $0x2a0] sm:$0xff]  ;;  %v152_v58 = vld [vmem:[#allocation2 + $0x358] sm:$0xff]  ;;  %v203_v62 = vld [vmem:[#allocation2 + $0x4f0] sm:$0xff] }
  0x50   :  { %1008 = vmatpush3.bf16.msra.mxu1 %v1007_v2  ;;  %880 = vmatprep.subr.bf16.mxu0 %v879_v3  ;;  %v149_v56 = vld [vmem:[#allocation2 + $0x340] sm:$0xff]  ;;  %v136_v59 = vld [vmem:[#allocation2 + $0x2d8] sm:$0xff]  ;;  %v206_v63 = vld [vmem:[#allocation2 + $0x508] sm:$0xff]  ;;  %v897_v1 = vpack.c.bf16 %v132_v55, %v129_v54 }
  0x51   :  { %1010 = vmatprep.subr.bf16.mxu1 %v1009_v7  ;;  %v135_v2 = vld [vmem:[#allocation2 + $0x2d0] sm:$0xff]  ;;  %v1027_v3 = vpack.c.bf16 %v152_v58, %v149_v56  ;;  %v899_v4 = vpack.c.bf16 %v139_v60, %v136_v59  ;;  %v138_v5 = vld [vmem:[#allocation2 + $0x2e8] sm:$0xff]  ;;  %v43_v7 = vld [vmem:[%s1233_s0 + $0x18] sm:$0xff]  ;;  %v1029_v8 = vpack.c.bf16 %v206_v63, %v203_v62 }
  0x52   :  { %v155_v6 = vld [vmem:[#allocation2 + $0x370] sm:$0xff]  ;;  %v158_v9 = vld [vmem:[#allocation2 + $0x388] sm:$0xff]  ;;  %v145_v11 = vld [vmem:[#allocation2 + $0x320] sm:$0xff] }
  0x53   :  { %882 = vmatpush1.bf16.msra.mxu0 %v881_v13  ;;  %v142_v10 = vld [vmem:[#allocation2 + $0x308] sm:$0xff]  ;;  %v209_v12 = vld [vmem:[#allocation2 + $0x520] sm:$0xff]  ;;  %v212_v13 = vld [vmem:[#allocation2 + $0x538] sm:$0xff] }
  0x54   :  { %1012 = vmatpush3.bf16.msra.mxu1 %v1011_v15  ;;  %884 = vmatprep.subr.bf16.mxu0 %v883_v16  ;;  %v901_v15 = vpack.c.bf16 %v138_v5, %v135_v2  ;;  %v1031_v16 = vpack.c.bf16 %v158_v9, %v155_v6  ;;  %v903_v17 = vpack.c.bf16 %v145_v11, %v142_v10  ;;  %v141_v18 = vld [vmem:[#allocation2 + $0x300] sm:$0xff]  ;;  %v144_v19 = vld [vmem:[#allocation2 + $0x318] sm:$0xff]  ;;  %v151_v24 = vld [vmem:[#allocation2 + $0x350] sm:$0xff] }
  0x55   :  { %1014 = vmatprep.subr.bf16.mxu1 %v1013_v20  ;;  %v161_v20 = vld [vmem:[#allocation2 + $0x3a0] sm:$0xff]  ;;  %v1033_v21 = vpack.c.bf16 %v212_v13, %v209_v12  ;;  %v164_v22 = vld [vmem:[#allocation2 + $0x3b8] sm:$0xff]  ;;  %v215_v25 = vld [vmem:[#allocation2 + $0x550] sm:$0xff] }
  0x56   :  { %v148_v23 = vld [vmem:[#allocation2 + $0x338] sm:$0xff]  ;;  %v147_v30 = vld [vmem:[#allocation2 + $0x330] sm:$0xff]  ;;  %v150_v31 = vld [vmem:[#allocation2 + $0x348] sm:$0xff] }
  0x57   :  { %886 = vmatpush1.bf16.msra.mxu0 %v885_v26  ;;  %v218_v26 = vld [vmem:[#allocation2 + $0x568] sm:$0xff]  ;;  %v907_v29 = vpack.c.bf16 %v151_v24, %v148_v23  ;;  %v157_v36 = vld [vmem:[#allocation2 + $0x380] sm:$0xff]  ;;  %v156_v43 = vld [vmem:[#allocation2 + $0x378] sm:$0xff] }
  0x58   :  { %1016 = vmatpush3.bf16.msra.mxu1 %v1015_v27  ;;  %888 = vmatprep.subr.bf16.mxu0 %v887_v28  ;;  %v905_v27 = vpack.c.bf16 %v144_v19, %v141_v18  ;;  %v1035_v28 = vpack.c.bf16 %v164_v22, %v161_v20  ;;  %v1037_v33 = vpack.c.bf16 %v218_v26, %v215_v25  ;;  %v170_v34 = vld [vmem:[#allocation2 + $0x3e8] sm:$0xff]  ;;  %v221_v37 = vld [vmem:[#allocation2 + $0x580] sm:$0xff]  ;;  %v176_v46 = vld [vmem:[#allocation2 + $0x418] sm:$0xff] }
  0x59   :  { %1018 = vmatprep.subr.bf16.mxu1 %v1017_v32  ;;  %v167_v32 = vld [vmem:[#allocation2 + $0x3d0] sm:$0xff]  ;;  %v154_v35 = vld [vmem:[#allocation2 + $0x368] sm:$0xff]  ;;  %v153_v42 = vld [vmem:[#allocation2 + $0x360] sm:$0xff] }
  0x5a   :  { %v911_v41 = vpack.c.bf16 %v157_v36, %v154_v35  ;;  %v160_v47 = vld [vmem:[#allocation2 + $0x398] sm:$0xff]  ;;  %v163_v48 = vld [vmem:[#allocation2 + $0x3b0] sm:$0xff]  ;;  %v162_v55 = vld [vmem:[#allocation2 + $0x3a8] sm:$0xff] }
  0x5b   :  { %890 = vmatpush1.bf16.msra.mxu0 %v889_v38  ;;  %v224_v38 = vld [vmem:[#allocation2 + $0x598] sm:$0xff]  ;;  %v227_v49 = vld [vmem:[#allocation2 + $0x5b0] sm:$0xff]  ;;  %v182_v58 = vld [vmem:[#allocation2 + $0x448] sm:$0xff] }
  0x5c   :  { %1020 = vmatpush3.bf16.msra.mxu1 %v1019_v39  ;;  %892 = vmatprep.subr.bf16.mxu0 %v891_v40  ;;  %v909_v39 = vpack.c.bf16 %v150_v31, %v147_v30  ;;  %v1039_v40 = vpack.c.bf16 %v170_v34, %v167_v32  ;;  %v1041_v45 = vpack.c.bf16 %v224_v38, %v221_v37  ;;  %v159_v54 = vld [vmem:[#allocation2 + $0x390] sm:$0xff]  ;;  %v166_v59 = vld [vmem:[#allocation2 + $0x3c8] sm:$0xff]  ;;  %v169_v60 = vld [vmem:[#allocation2 + $0x3e0] sm:$0xff] }
  0x5d   :  { %1022 = vmatprep.subr.bf16.mxu1 %v1021_v44  ;;  %v173_v44 = vld [vmem:[#allocation2 + $0x400] sm:$0xff]  ;;  %v179_v56 = vld [vmem:[#allocation2 + $0x430] sm:$0xff]  ;;  %v236_v63 = vld [vmem:[#allocation2 + $0x5f8] sm:$0xff] }
  0x5e   :  { %v233_v62 = vld [vmem:[#allocation2 + $0x5e0] sm:$0xff]  ;;  %v1047_v2 = vpack.c.bf16 %v182_v58, %v179_v56  ;;  %v168_v5 = vld [vmem:[#allocation2 + $0x3d8] sm:$0xff]  ;;  %v175_v10 = vld [vmem:[#allocation2 + $0x410] sm:$0xff] }
  0x5f   :  { %894 = vmatpush1.bf16.msra.mxu0 %v893_v50  ;;  %576 = vmatmul.mubr.f32.vlgmr.msra.gmra.mrb[2].mxu1 %v1205_v51  ;;  %v230_v50 = vld [vmem:[#allocation2 + $0x5c8] sm:$0xff]  ;;  %v185_v6 = vld [vmem:[#allocation2 + $0x460] sm:$0xff]  ;;  %v172_v9 = vld [vmem:[#allocation2 + $0x3f8] sm:$0xff] }
  0x60   :  { %1024 = vmatpush3.bf16.msra.mxu1 %v1023_v52  ;;  %896 = vmatprep.subr.bf16.mxu0 %v895_v53  ;;  %v1043_v52 = vpack.c.bf16 %v176_v46, %v173_v44  ;;  %v915_v53 = vpack.c.bf16 %v163_v48, %v160_v47  ;;  %v923_v13 = vpack.c.bf16 %v175_v10, %v172_v9  ;;  %v242_v18 = vld [vmem:[#allocation2 + $0x628] sm:$0xff]  ;;  %v181_v20 = vld [vmem:[#allocation2 + $0x440] sm:$0xff]  ;;  %v180_v26 = vld [vmem:[#allocation2 + $0x438] sm:$0xff] }
  0x61   :  { %1026 = vmatprep.subr.bf16.mxu1 %v1025_v57  ;;  %645 = vmatprep.mubr.f32.mxu1 %v43_v7  ;;  %v1045_v57 = vpack.c.bf16 %v230_v50, %v227_v49  ;;  %v178_v19 = vld [vmem:[#allocation2 + $0x428] sm:$0xff]  ;;  %v177_v25 = vld [vmem:[#allocation2 + $0x420] sm:$0xff]  ;;  %v184_v30 = vld [vmem:[#allocation2 + $0x458] sm:$0xff] }
  0x62   :  { %v927_v24 = vpack.c.bf16 %v181_v20, %v178_v19  ;;  %v187_v31 = vld [vmem:[#allocation2 + $0x470] sm:$0xff]  ;;  %v929_v32 = vpack.c.bf16 %v180_v26, %v177_v25  ;;  %v186_v36 = vld [vmem:[#allocation2 + $0x468] sm:$0xff]  ;;  %v189_v44 = vld [vmem:[#allocation2 + $0x480] sm:$0xff] }
  0x63   :  { %898 = vmatpush1.bf16.msra.mxu0 %v897_v1  ;;  %v917_v1 = vpack.c.bf16 %v162_v55, %v159_v54  ;;  %v931_v34 = vpack.c.bf16 %v187_v31, %v184_v30  ;;  %v183_v35 = vld [vmem:[#allocation2 + $0x450] sm:$0xff]  ;;  %v254_v38 = vld [vmem:[#allocation2 + $0x688] sm:$0xff]  ;;  %v257_v46 = vld [vmem:[#allocation2 + $0x6a0] sm:$0xff] }
  0x64   :  { %1028 = vmatpush3.bf16.msra.mxu1 %v1027_v3  ;;  %900 = vmatprep.subr.bf16.mxu0 %v899_v4  ;;  %v919_v3 = vpack.c.bf16 %v169_v60, %v166_v59  ;;  %v165_v4 = vld [vmem:[#allocation2 + $0x3c0] sm:$0xff]  ;;  %v251_v37 = vld [vmem:[#allocation2 + $0x670] sm:$0xff]  ;;  %v260_v47 = vld [vmem:[#allocation2 + $0x6b8] sm:$0xff] }
  0x65   :  { %1030 = vmatprep.subr.bf16.mxu1 %v1029_v8  ;;  %v188_v8 = vld [vmem:[#allocation2 + $0x478] sm:$0xff]  ;;  %v921_v11 = vpack.c.bf16 %v168_v5, %v165_v4  ;;  %v199_v49 = vld [vmem:[#allocation2 + $0x4d0] sm:$0xff]  ;;  %v266_v55 = vld [vmem:[#allocation2 + $0x6e8] sm:$0xf] }
  0x66   :  { %v1051_v12 = vpack.c.bf16 %v188_v8, %v185_v6  ;;  %v196_v48 = vld [vmem:[#allocation2 + $0x4b8] sm:$0xff]  ;;  %v263_v54 = vld [vmem:[#allocation2 + $0x6d0] sm:$0xff]  ;;  %v202_v56 = vld [vmem:[#allocation2 + $0x4e8] sm:$0xff] }
  0x67   :  { %902 = vmatpush1.bf16.msra.mxu0 %v901_v15  ;;  %v171_v15 = vld [vmem:[#allocation2 + $0x3f0] sm:$0xff]  ;;  %v1066_v59 = vpack.c.bf16 %v266_v55, %v263_v54  ;;  %v210_v6 = vld [vmem:[#allocation2 + $0x528] sm:$0xff]  ;;  %v217_v8 = vld [vmem:[#allocation2 + $0x560] sm:$0xff] }
  0x68   :  { %1032 = vmatpush3.bf16.msra.mxu1 %v1031_v16  ;;  %904 = vmatprep.subr.bf16.mxu0 %v903_v17  ;;  %v174_v16 = vld [vmem:[#allocation2 + $0x408] sm:$0xff]  ;;  %v239_v17 = vld [vmem:[#allocation2 + $0x610] sm:$0xff]  ;;  %v229_v20 = vld [vmem:[#allocation2 + $0x5c0] sm:$0xff] }
  0x69   :  { %1034 = vmatprep.subr.bf16.mxu1 %v1033_v21  ;;  %v1215_v21 = vld [vmem:[%s1233_s0 + $0x10] sm:$0xff]  ;;  %v925_v22 = vpack.c.bf16 %v174_v16, %v171_v15  ;;  %v1054_v23 = vpack.c.bf16 %v242_v18, %v239_v17  ;;  %v222_v18 = vld [vmem:[#allocation2 + $0x588] sm:$0xff]  ;;  %v232_v25 = vld [vmem:[#allocation2 + $0x5d8] sm:$0xff] }
  0x6a   :  { %363 = vmatmul.mubr.f32.vlgmr.msra.gmra.mrb[0].mxu0 %v1205_v51  ;;  %v913_v51 = vpack.c.bf16 %v156_v43, %v153_v42  ;;  %v1060_v42 = vpack.c.bf16 %v254_v38, %v251_v37  ;;  %v207_v5 = vld [vmem:[#allocation2 + $0x510] sm:$0xff]  ;;  %v226_v19 = vld [vmem:[#allocation2 + $0x5a8] sm:$0xff]  ;;  %v269_v37 = vlaneseq }
  0x6b   :  { %906 = vmatpush1.bf16.msra.mxu0 %v905_v27  ;;  %433 = vmatprep.mubr.f32.mxu0 %v43_v7  ;;  %v1049_v7 = vpack.c.bf16 %v236_v63, %v233_v62  ;;  %v245_v27 = vld [vmem:[#allocation2 + $0x640] sm:$0xff]  ;;  %v204_v63 = vld [vmem:[#allocation2 + $0x4f8] sm:$0xff]  ;;  %v949_v9 = vpack.c.bf16 %v210_v6, %v207_v5  ;;  %v223_v15 = vld [vmem:[#allocation2 + $0x590] sm:$0xff] }
  0x6c   :  { %1036 = vmatpush3.bf16.msra.mxu1 %v1035_v28  ;;  %908 = vmatprep.subr.bf16.mxu0 %v907_v29  ;;  %v1137_v28 = vmov 0.0|0.0   ;;  %v248_v29 = vld [vmem:[#allocation2 + $0x658] sm:$0xff]  ;;  %v201_v62 = vld [vmem:[#allocation2 + $0x4e0] sm:$0xff]  ;;  %v219_v17 = vld [vmem:[#allocation2 + $0x570] sm:$0xff]  ;;  %v270_v38 = vshrl.u32 %v269_v37, 7 }
  0x6d   :  { %1038 = vmatprep.subr.bf16.mxu1 %v1037_v33  ;;  %v1057_v33 = vpack.c.bf16 %v248_v29, %v245_v27  ;;  %v235_v26 = vld [vmem:[#allocation2 + $0x5f0] sm:$0xff]  ;;  %v234_v30 = vld [vmem:[#allocation2 + $0x5e8] sm:$0xff] }
  0x6e   :  { %v231_v29 = vld [vmem:[#allocation2 + $0x5d0] sm:$0xff] }
  0x6f   :  { %910 = vmatpush1.bf16.msra.mxu0 %v909_v39  ;;  %v190_v39 = vld [vmem:[#allocation2 + $0x488] sm:$0xff]  ;;  %v965_v31 = vpack.c.bf16 %v234_v30, %v231_v29 }
  0x70   :  { %1040 = vmatpush3.bf16.msra.mxu1 %v1039_v40  ;;  %912 = vmatprep.subr.bf16.mxu0 %v911_v41  ;;  %v193_v40 = vld [vmem:[#allocation2 + $0x4a0] sm:$0xff]  ;;  %v933_v41 = vpack.c.bf16 %v186_v36, %v183_v35 }
  0x71   :  { %1042 = vmatprep.subr.bf16.mxu1 %v1041_v45  ;;  %v935_v43 = vpack.c.bf16 %v193_v40, %v190_v39  ;;  %v192_v45 = vld [vmem:[#allocation2 + $0x498] sm:$0xff]  ;;  %v279_v39 = vsub.s32 2, %v270_v38  ;;  %v267_v40 = vld [vmem:[#allocation4] sm:$0x7] }
  0x72   :  { %v937_v50 = vpack.c.bf16 %v192_v45, %v189_v44 }
  0x73   :  { %914 = vmatpush1.bf16.msra.mxu0 %v913_v51  ;;  %v1063_v51 = vpack.c.bf16 %v260_v47, %v257_v46 }
  0x74   :  { %1044 = vmatpush3.bf16.msra.mxu1 %v1043_v52  ;;  %916 = vmatprep.subr.bf16.mxu0 %v915_v53  ;;  %v939_v52 = vpack.c.bf16 %v199_v49, %v196_v48  ;;  %v198_v53 = vld [vmem:[#allocation2 + $0x4c8] sm:$0xff] }
  0x75   :  { %1046 = vmatprep.subr.bf16.mxu1 %v1045_v57  ;;  %v205_v57 = vld [vmem:[#allocation2 + $0x500] sm:$0xff] }
  0x76   :  { %v943_v60 = vpack.c.bf16 %v205_v57, %v202_v56 }
  0x77   :  { %918 = vmatpush1.bf16.msra.mxu0 %v917_v1  ;;  %v208_v1 = vld [vmem:[#allocation2 + $0x518] sm:$0xff] }
  0x78   :  { %1048 = vmatpush3.bf16.msra.mxu1 %v1047_v2  ;;  %920 = vmatprep.subr.bf16.mxu0 %v919_v3  ;;  %v211_v2 = vld [vmem:[#allocation2 + $0x530] sm:$0xff]  ;;  %v945_v3 = vpack.c.bf16 %v204_v63, %v201_v62 }
  0x79   :  { %1050 = vmatprep.subr.bf16.mxu1 %v1049_v7  ;;  %v947_v4 = vpack.c.bf16 %v211_v2, %v208_v1  ;;  %v214_v7 = vld [vmem:[#allocation2 + $0x548] sm:$0xff] }
  0x7a   :  { %v951_v10 = vpack.c.bf16 %v217_v8, %v214_v7 }
  0x7b   :  { %922 = vmatpush1.bf16.msra.mxu0 %v921_v11  ;;  %v213_v11 = vld [vmem:[#allocation2 + $0x540] sm:$0xff] }
  0x7c   :  { %1052 = vmatpush3.bf16.msra.mxu1 %v1051_v12  ;;  %924 = vmatprep.subr.bf16.mxu0 %v923_v13  ;;  %v216_v12 = vld [vmem:[#allocation2 + $0x558] sm:$0xff] }
  0x7d   :  { %1053 = vmatprep.subr.bf16.mxu1 %v1137_v28  ;;  %v220_v13 = vld [vmem:[#allocation2 + $0x578] sm:$0xff]  ;;  %v953_v61 = vpack.c.bf16 %v216_v12, %v213_v11 }
  0x7e   :  { %v955_v16 = vpack.c.bf16 %v223_v15, %v220_v13 }
  0x7f   :  { %646 = vmatmul.mubr.f32.vlgmr.msra.gmra.mrb[4].mxu1 %v1215_v21  ;;  %926 = vmatpush1.bf16.msra.mxu0 %v925_v22  ;;  %v957_v22 = vpack.c.bf16 %v222_v18, %v219_v17 }
  0x80   :  { %1055 = vmatpush3.bf16.msra.mxu1 %v1054_v23  ;;  %928 = vmatprep.subr.bf16.mxu0 %v927_v24  ;;  %v225_v23 = vld [vmem:[#allocation2 + $0x5a0] sm:$0xff]  ;;  %v228_v24 = vld [vmem:[#allocation2 + $0x5b8] sm:$0xff] }
  0x81   :  { %1056 = vmatprep.subr.bf16.mxu1 %v1137_v28  ;;  %836 = vmatprep.mubr.msk.f32.mxu1 %vm1138_vm4, %v1135_v0  ;;  %v195_v0 = vld [vmem:[#allocation2 + $0x4b0] sm:$0xff]  ;;  %v961_v27 = vpack.c.bf16 %v228_v24, %v225_v23 }
  0x82   :  { %v941_v58 = vpack.c.bf16 %v198_v53, %v195_v0 }
  0x83   :  { %930 = vmatpush1.bf16.msra.mxu0 %v929_v32 }
  0x84   :  { %1058 = vmatpush3.bf16.msra.mxu1 %v1057_v33  ;;  %932 = vmatprep.subr.bf16.mxu0 %v931_v34 }
  0x85   :  { %1059 = vmatprep.subr.bf16.mxu1 %v1137_v28 }
  0x87   :  { %934 = vmatpush1.bf16.msra.mxu0 %v933_v41  ;;  %v280_v41 = vrot.slane %v267_v40, %v279_v39 }
  0x88   :  { %1061 = vmatpush3.bf16.msra.mxu1 %v1060_v42  ;;  %936 = vmatprep.subr.bf16.mxu0 %v935_v43 }
  0x89   :  { %1062 = vmatprep.subr.bf16.mxu1 %v1137_v28 }
  0x8b   :  { %938 = vmatpush1.bf16.msra.mxu0 %v937_v50  ;;  %v275_v50 = vsub.s32 1, %v270_v38 }
  0x8c   :  { %1064 = vmatpush3.bf16.msra.mxu1 %v1063_v51  ;;  %940 = vmatprep.subr.bf16.mxu0 %v939_v52 }
  0x8d   :  { %1065 = vmatprep.subr.bf16.mxu1 %v1137_v28  ;;  %v963_v28 = vpack.c.bf16 %v235_v26, %v232_v25  ;;  %v276_v52 = vrot.slane %v267_v40, %v275_v50 }
  0x8f   :  { %942 = vmatpush1.bf16.msra.mxu0 %v941_v58 }
  0x90   :  { %1068 = vmatpush3.bf16.msk.msra.mxu1 %vm1184_vm2, %v1066_v59  ;;  %944 = vmatprep.subr.bf16.mxu0 %v943_v60 }
  0x93   :  { %837 = vmatmul.mubr.msk.f32.vlgmr.msra.gmra.mrb[6].mxu1 %vm284_vm3, %v1193_v14  ;;  %946 = vmatpush1.bf16.msra.mxu0 %v945_v3  ;;  %v959_v14 = vpack.c.bf16 %v229_v20, %v226_v19 }
  0x94   :  { %948 = vmatprep.subr.bf16.mxu0 %v947_v4 }
  0x97   :  { %950 = vmatpush1.bf16.msra.mxu0 %v949_v9 }
  0x98   :  { %952 = vmatprep.subr.bf16.mxu0 %v951_v10 }
  0x9b   :  { %954 = vmatpush1.bf16.msra.mxu0 %v953_v61 }
  0x9c   :  { %956 = vmatprep.subr.bf16.mxu0 %v955_v16 }
  0x9f   :  { %958 = vmatpush1.bf16.msra.mxu0 %v957_v22 }
  0xa0   :  { %960 = vmatprep.subr.bf16.mxu0 %v959_v14 }
  0xa3   :  { %962 = vmatpush1.bf16.msra.mxu0 %v961_v27 }
  0xa4   :  { %964 = vmatprep.subr.bf16.mxu0 %v963_v28 }
  0xa7   :  { %966 = vmatpush1.bf16.msra.mxu0 %v965_v31 }
  0xaa   :  { %434 = vmatmul.mubr.f32.vlgmr.msra.gmra.mrb[0].mxu0 %v1215_v21  ;;  %v271_v21 = vsub.s32 0, %v270_v38 }
  0xac   :  { %v272_v51 = vrot.slane %v267_v40, %v271_v21 }
 0x112   :  { %v506_v32 = vpop.f32.mrb[0].mxu1 }
 0x113   :  { %v508_v33 = vpop.f32.mrb[1].mxu1 }
 0x132   :  { %v767_v34 = vpop.f32.mrb[2].mxu1 }
 0x133   :  { %v768_v35 = vpop.f32.mrb[3].mxu1 }
 0x134   :  { %v769_v36 = vadd.f32 %v768_v35, %v767_v34 }
 0x136   :  { %v578_v44 = vadd.f32 %v769_v36, %v280_v41 }
 0x152   :  { %v802_v42 = vpop.f32.mrb[4].mxu1 }
 0x153   :  { %v803_v43 = vpop.f32.mrb[5].mxu1 }
 0x154   :  { %v804_v45 = vadd.f32 %v803_v43, %v802_v42 }
 0x156   :  { %v648_v46 = vadd.f32 %v804_v45, %v578_v44 }
 0x166   :  { %v717_v47 = vpop.f32.mrb[6].mxu1 }
 0x167   :  { %v718_v48 = vadd.f32 %v717_v47, %v648_v46  ;;  %v838_v49 = vpop.f32.mrb[7].mxu1 }
 0x169   :  { %723 = vst [vmem:[%s1236_s3 + $0x10] sm:$0xff] %v718_v48 }
 0x17d   :  { %v435_v0 = vpop.f32.mrb[0].mxu0 }
 0x17e   :  { %v1069_v53 = vadd.f32 %v435_v0, %v272_v51  ;;  %v437_v54 = vpop.f32.mrb[1].mxu0 }
 0x17f   :  { %v1071_v55 = vadd.f32 %v437_v54, %v276_v52 }
 0x180   :  { %v1070_v56 = vadd.f32 %v1069_v53, %v506_v32 }
 0x181   :  { %v1072_v57 = vadd.f32 %v1071_v55, %v508_v33 }
 0x182   :  { %721 = vst [vmem:[%s1236_s3] sm:$0xff] %v1070_v56 }
 0x183   :  { %722 = vst [vmem:[%s1236_s3 + $0x8] sm:$0xff] %v1072_v57 }
 0x184   :  { %728 = vsyncpa [#allocation3], 1 }
 0x185   :  { %729 = vsyncpa [#allocation5], 1 }

// kernel: forward.5
= control target key start
LH: loop header
LB: loop body
LE: loop exit
PB: predicated region body
PF: predicated region fallthrough
CT: control target
= control target key end

     0   :  { %s1746_s0 = inlined_call_operand.vmem [shape: f32[16,384], index: 0, kind: input, shape index: {}]   ;;  %s1747_s1 = inlined_call_operand.vmem [shape: f32[1,384], index: 1, kind: input, shape index: {}]   ;;  %s1748_s2 = inlined_call_operand.vmem [shape: f32[1,384], index: 2, kind: input, shape index: {}]   ;;  %s1749_s3 = inlined_call_operand.vmem [shape: f32[384,512], index: 3, kind: input, shape index: {}]   ;;  %s1750_s4 = inlined_call_operand.vmem [shape: f32[1,512], index: 4, kind: input, shape index: {}]   ;;  %s1751_s5 = inlined_call_operand.hbm [shape: f32[2,512], index: 5, kind: output, shape index: {}]  }
   0x1   :  { %v21_v0 = vld [vmem:[%s1746_s0] sm:$0xff]  ;;  %v22_v1 = vld [vmem:[%s1746_s0 + $0x8] sm:$0xff]  ;;  %v23_v2 = vld [vmem:[%s1746_s0 + $0x10] sm:$0xff] }
   0x2   :  { %v29_v3 = vadd.f32 %v22_v1, %v21_v0  ;;  %v24_v4 = vld [vmem:[%s1746_s0 + $0x18] sm:$0xff]  ;;  %v25_v5 = vld [vmem:[%s1746_s0 + $0x20] sm:$0xff]  ;;  %v26_v6 = vld [vmem:[%s1746_s0 + $0x28] sm:$0xff] }
   0x3   :  { %v33_v7 = vadd.f32 %v25_v5, %v24_v4 }
   0x4   :  { %10 = vsyncpa [#allocation3], 0  ;;  %v30_v8 = vadd.f32 %v29_v3, %v23_v2  ;;  %v1058_v30 = vmov 0.0|0.0   ;;  %v1059_v31 = vmov 0.0   ;;  %vm1060_vm0 = vmmov 0   ;;  %v274_v3 = vld [vmem:[%s1749_s3 + $0x18] sm:$0xff] }
   0x5   :  { %v34_v9 = vadd.f32 %v33_v7, %v26_v6  ;;  %822 = vmatprep.subr.bf16.mxu1 %v1058_v30  ;;  %194 = vmatprep.mubr.f32.mxu0 %v1059_v31  ;;  %v73_v36 = vlaneseq  ;;  %v27_v42 = vld [vmem:[%s1747_s1] sm:$0x7]  ;;  %v276_v7 = vld [vmem:[%s1749_s3 + $0x28] sm:$0xff]  ;;  %vm126_vm4 = vcmask 130048  }
   0x6   :  { %31 = vadd.xlane.f32.xlu0 %v30_v8  ;;  %815 = vmatprep.mubr.msk.f32.mxu1 %vm1060_vm0, %v1059_v31  ;;  %v28_v46 = vld [vmem:[%s1748_s2] sm:$0x7] }
   0x7   :  { %v1113_v39 = vshrl.u32 %v73_v36, 7  ;;  %v119_v53 = vand.u32 127, %v73_v36 }
   0x9   :  { %v1116_v40 = vsub.s32 1, %v1113_v39  ;;  %v1119_v41 = vsub.s32 2, %v1113_v39  ;;  %v1125_v43 = vsub.s32 0, %v1113_v39  ;;  %v120_v44 = vmul.u32 8, %v1113_v39 }
   0xa   :  { %35 = vadd.xlane.f32.xlu0 %v34_v9 }
   0xb   :  { %v80_v48 = vrot.slane %v27_v42, %v1116_v40  ;;  %v84_v50 = vrot.slane %v27_v42, %v1119_v41  ;;  %v76_v52 = vrot.slane %v27_v42, %v1125_v43  ;;  %v122_v54 = vadd.s32 5, %v120_v44  ;;  %v294_v42 = vld [vmem:[%s1749_s3 + $0xb8] sm:$0xff] }
   0xc   :  { %v102_v56 = vrot.slane %v28_v46, %v1116_v40  ;;  %v106_v57 = vrot.slane %v28_v46, %v1119_v41  ;;  %v98_v58 = vrot.slane %v28_v46, %v1125_v43  ;;  %vm121_vm1 = vcmp.ge.s32.totalorder %v119_v53, %v120_v44  ;;  %v288_v44 = vld [vmem:[%s1749_s3 + $0x88] sm:$0xff] }
   0xd   :  { %vm123_vm2 = vcmp.lt.s32.totalorder %v119_v53, %v122_v54  ;;  %v291_v53 = vld [vmem:[%s1749_s3 + $0xa0] sm:$0xff]  ;;  %v298_v54 = vld [vmem:[%s1749_s3 + $0xd8] sm:$0xff] }
   0xe   :  { %vm1149_vm3 = vmand %vm121_vm1, %vm123_vm2 }
  0x93   :  { %v32_v10 = vpop.xlane.xlu0 %31 }
  0x94   :  { %v38_v11 = vmul.f32 0.0026041667, %v32_v10 }
  0x96   :  { %v40_v12 = vsub.f32 %v21_v0, %v38_v11  ;;  %v41_v13 = vsub.f32 %v22_v1, %v38_v11  ;;  %v42_v14 = vsub.f32 %v23_v2, %v38_v11 }
  0x97   :  { %v36_v15 = vpop.xlane.xlu0 %35 }
  0x98   :  { %v39_v16 = vmul.f32 0.0026041667, %v36_v15  ;;  %v46_v17 = vmul.f32 %v40_v12, %v40_v12  ;;  %v47_v18 = vmul.f32 %v41_v13, %v41_v13  ;;  %v48_v19 = vmul.f32 %v42_v14, %v42_v14 }
  0x9a   :  { %v43_v20 = vsub.f32 %v24_v4, %v39_v16  ;;  %v44_v21 = vsub.f32 %v25_v5, %v39_v16  ;;  %v45_v22 = vsub.f32 %v26_v6, %v39_v16  ;;  %v52_v23 = vadd.f32 %v47_v18, %v46_v17  ;;  %v278_v4 = vld [vmem:[%s1749_s3 + $0x38] sm:$0xff]  ;;  %v272_v6 = vld [vmem:[%s1749_s3 + $0x8] sm:$0xff]  ;;  %v271_v16 = vld [vmem:[%s1749_s3] sm:$0xff] }
  0x9b   :  { %v921_v15 = vpack.c.bf16 %v278_v4, %v274_v3  ;;  %v273_v17 = vld [vmem:[%s1749_s3 + $0x10] sm:$0xff]  ;;  %v310_v3 = vld [vmem:[%s1749_s3 + $0x138] sm:$0xff]  ;;  %v304_v4 = vld [vmem:[%s1749_s3 + $0x108] sm:$0xff] }
  0x9c   :  { %v53_v24 = vadd.f32 %v52_v23, %v48_v19  ;;  %v49_v25 = vmul.f32 %v43_v20, %v43_v20  ;;  %v50_v26 = vmul.f32 %v44_v21, %v44_v21  ;;  %v51_v27 = vmul.f32 %v45_v22, %v45_v22  ;;  %v277_v18 = vld [vmem:[%s1749_s3 + $0x30] sm:$0xff]  ;;  %v282_v23 = vld [vmem:[%s1749_s3 + $0x58] sm:$0xff] }
  0x9e   :  { %54 = vadd.xlane.f32.xlu1 %v53_v24  ;;  %v56_v28 = vadd.f32 %v50_v26, %v49_v25  ;;  %v286_v24 = vld [vmem:[%s1749_s3 + $0x78] sm:$0xff]  ;;  %v280_v26 = vld [vmem:[%s1749_s3 + $0x48] sm:$0xff] }
  0xa0   :  { %v57_v29 = vadd.f32 %v56_v28, %v51_v27  ;;  %v284_v27 = vld [vmem:[%s1749_s3 + $0x68] sm:$0xff]  ;;  %v923_v28 = vpack.c.bf16 %v277_v18, %v273_v17 }
  0xa1   :  { %v829_v36 = vpack.c.bf16 %v284_v27, %v280_v26  ;;  %v316_v17 = vld [vmem:[%s1749_s3 + $0x168] sm:$0xff]  ;;  %v322_v26 = vld [vmem:[%s1749_s3 + $0x198] sm:$0xff] }
  0xa2   :  { %58 = vadd.xlane.f32.xlu1 %v57_v29  ;;  %v125_v29 = vsel %vm1149_vm3, 0.2, %v1059_v31  ;;  %v326_v27 = vld [vmem:[%s1749_s3 + $0x1b8] sm:$0xff] }
 0x12b   :  { %v55_v32 = vpop.xlane.xlu1 %54 }
 0x12c   :  { %v60_v33 = vmul.f32 0.0026041667, %v55_v32  ;;  %v925_v32 = vpack.c.bf16 %v286_v24, %v282_v23  ;;  %v317_v23 = vld [vmem:[%s1749_s3 + $0x170] sm:$0xff] }
 0x12e   :  { %v62_v34 = vadd.f32 1e-06, %v60_v33  ;;  %v279_v33 = vld [vmem:[%s1749_s3 + $0x40] sm:$0xff] }
 0x12f   :  { %v59_v35 = vpop.xlane.xlu1 %58 }
 0x130   :  { %1030 = vrsqrt.f32 %v62_v34  ;;  %v61_v37 = vmul.f32 0.0026041667, %v59_v35  ;;  %v281_v34 = vld [vmem:[%s1749_s3 + $0x50] sm:$0xff] }
 0x131   :  { %v285_v35 = vld [vmem:[%s1749_s3 + $0x70] sm:$0xff] }
 0x132   :  { %v63_v38 = vadd.f32 1e-06, %v61_v37  ;;  %v283_v37 = vld [vmem:[%s1749_s3 + $0x60] sm:$0xff]  ;;  %v927_v46 = vpack.c.bf16 %v285_v35, %v281_v34  ;;  %v321_v35 = vld [vmem:[%s1749_s3 + $0x190] sm:$0xff] }
 0x133   :  { %v319_v34 = vld [vmem:[%s1749_s3 + $0x180] sm:$0xff] }
 0x134   :  { %1032 = vrsqrt.f32 %v63_v38  ;;  %v290_v38 = vld [vmem:[%s1749_s3 + $0x98] sm:$0xff] }
 0x13a   :  { %v1031_v45 = vpop.eup %1030 }
 0x13b   :  { %v67_v47 = vmul.f32 %v1031_v45, %v41_v13  ;;  %v68_v49 = vmul.f32 %v1031_v45, %v42_v14  ;;  %v66_v51 = vmul.f32 %v1031_v45, %v40_v12  ;;  %v292_v45 = vld [vmem:[%s1749_s3 + $0xa8] sm:$0xff] }
 0x13d   :  { %v89_v60 = vmul.f32 %v80_v48, %v67_v47  ;;  %v90_v62 = vmul.f32 %v84_v50, %v68_v49  ;;  %v88_v0 = vmul.f32 %v76_v52, %v66_v51  ;;  %v831_v47 = vpack.c.bf16 %v283_v37, %v279_v33  ;;  %v287_v49 = vld [vmem:[%s1749_s3 + $0x80] sm:$0xff]  ;;  %v293_v51 = vld [vmem:[%s1749_s3 + $0xb0] sm:$0xff] }
 0x13e   :  { %v1033_v55 = vpop.eup %1032  ;;  %v945_v33 = vpack.c.bf16 %v326_v27, %v322_v26  ;;  %v355_v26 = vld [vmem:[%s1749_s3 + $0x2a0] sm:$0xff]  ;;  %v362_v27 = vld [vmem:[%s1749_s3 + $0x2d8] sm:$0xff] }
 0x13f   :  { %v70_v59 = vmul.f32 %v1033_v55, %v44_v21  ;;  %v71_v61 = vmul.f32 %v1033_v55, %v45_v22  ;;  %v69_v63 = vmul.f32 %v1033_v55, %v43_v20  ;;  %v111_v8 = vadd.f32 %v102_v56, %v89_v60  ;;  %v275_v22 = vld [vmem:[%s1749_s3 + $0x20] sm:$0xff]  ;;  %v302_v55 = vld [vmem:[%s1749_s3 + $0xf8] sm:$0xff] }
 0x140   :  { %v112_v10 = vadd.f32 %v106_v57, %v90_v62  ;;  %v110_v13 = vadd.f32 %v98_v58, %v88_v0  ;;  %v825_v21 = vpack.c.bf16 %v276_v7, %v272_v6  ;;  %v827_v30 = vpack.c.bf16 %v275_v22, %v271_v16  ;;  %v297_v62 = vld [vmem:[%s1749_s3 + $0xd0] sm:$0xff]  ;;  %v312_v16 = vld [vmem:[%s1749_s3 + $0x148] sm:$0xff] }
 0x141   :  { %v92_v1 = vmul.f32 %v80_v48, %v70_v59  ;;  %v93_v2 = vmul.f32 %v84_v50, %v71_v61  ;;  %v91_v5 = vmul.f32 %v76_v52, %v69_v63  ;;  %v929_v48 = vpack.c.bf16 %v294_v42, %v290_v38  ;;  %v289_v50 = vld [vmem:[%s1749_s3 + $0x90] sm:$0xff]  ;;  %v295_v61 = vld [vmem:[%s1749_s3 + $0xc0] sm:$0xff]  ;;  %v330_v42 = vld [vmem:[%s1749_s3 + $0x1d8] sm:$0xff] }
 0x142   :  { %v833_v52 = vpack.c.bf16 %v292_v45, %v288_v44  ;;  %v835_v59 = vpack.c.bf16 %v291_v53, %v287_v49  ;;  %v933_v60 = vpack.c.bf16 %v302_v55, %v298_v54  ;;  %v301_v63 = vld [vmem:[%s1749_s3 + $0xf0] sm:$0xff]  ;;  %v845_v24 = vpack.c.bf16 %v316_v17, %v312_v16  ;;  %v323_v38 = vld [vmem:[%s1749_s3 + $0x1a0] sm:$0xff]  ;;  %v334_v44 = vld [vmem:[%s1749_s3 + $0x1f8] sm:$0xff] }
 0x143   :  { %v114_v9 = vadd.f32 %v102_v56, %v92_v1  ;;  %v115_v11 = vadd.f32 %v106_v57, %v93_v2  ;;  %v113_v14 = vadd.f32 %v98_v58, %v91_v5  ;;  %v296_v56 = vld [vmem:[%s1749_s3 + $0xc8] sm:$0xff]  ;;  %v931_v58 = vpack.c.bf16 %v293_v51, %v289_v50  ;;  %v299_v1 = vld [vmem:[%s1749_s3 + $0xe0] sm:$0xff]  ;;  %v306_v2 = vld [vmem:[%s1749_s3 + $0x118] sm:$0xff] }
 0x144   :  { %v300_v57 = vld [vmem:[%s1749_s3 + $0xe8] sm:$0xff]  ;;  %v935_v6 = vpack.c.bf16 %v301_v63, %v297_v62  ;;  %v839_v7 = vpack.c.bf16 %v299_v1, %v295_v61  ;;  %v313_v22 = vld [vmem:[%s1749_s3 + $0x150] sm:$0xff]  ;;  %v949_v49 = vpack.c.bf16 %v334_v44, %v330_v42  ;;  %v327_v50 = vld [vmem:[%s1749_s3 + $0x1c0] sm:$0xff] }
 0x145   :  { %v818_v19 = vpack.c.bf16 %v114_v9, %v111_v8  ;;  %v823_v20 = vpack.c.bf16 %v115_v11, %v112_v10  ;;  %v820_v25 = vpack.c.bf16 %v113_v14, %v110_v13  ;;  %v837_v0 = vpack.c.bf16 %v300_v57, %v296_v56  ;;  %v308_v5 = vld [vmem:[%s1749_s3 + $0x128] sm:$0xff]  ;;  %v303_v9 = vld [vmem:[%s1749_s3 + $0x100] sm:$0xff]  ;;  %v305_v10 = vld [vmem:[%s1749_s3 + $0x110] sm:$0xff] }
 0x146   :  { %v937_v8 = vpack.c.bf16 %v310_v3, %v306_v2  ;;  %v309_v11 = vld [vmem:[%s1749_s3 + $0x130] sm:$0xff]  ;;  %v841_v12 = vpack.c.bf16 %v308_v5, %v304_v4  ;;  %v307_v13 = vld [vmem:[%s1749_s3 + $0x120] sm:$0xff]  ;;  %v314_v14 = vld [vmem:[%s1749_s3 + $0x158] sm:$0xff] }
 0x147   :  { %819 = vmatprep.subr.bf16.mxu0 %v818_v19  ;;  %824 = vmatpush3.bf16.msra.mxu1 %v823_v20  ;;  %v939_v18 = vpack.c.bf16 %v309_v11, %v305_v10  ;;  %v843_v19 = vpack.c.bf16 %v307_v13, %v303_v9  ;;  %v328_v45 = vld [vmem:[%s1749_s3 + $0x1c8] sm:$0xff]  ;;  %v329_v51 = vld [vmem:[%s1749_s3 + $0x1d0] sm:$0xff]  ;;  %v331_v54 = vld [vmem:[%s1749_s3 + $0x1e0] sm:$0xff] }
 0x148   :  { %821 = vmatpush1.bf16.msra.mxu0 %v820_v25  ;;  %922 = vmatprep.subr.bf16.mxu1 %v921_v15  ;;  %v318_v15 = vld [vmem:[%s1749_s3 + $0x178] sm:$0xff]  ;;  %v315_v25 = vld [vmem:[%s1749_s3 + $0x160] sm:$0xff]  ;;  %v336_v57 = vld [vmem:[%s1749_s3 + $0x208] sm:$0xff] }
 0x149   :  { %826 = vmatprep.subr.bf16.mxu0 %v825_v21  ;;  %v941_v20 = vpack.c.bf16 %v318_v15, %v314_v14  ;;  %v311_v21 = vld [vmem:[%s1749_s3 + $0x140] sm:$0xff]  ;;  %v338_v55 = vld [vmem:[%s1749_s3 + $0x218] sm:$0xff]  ;;  %v337_v63 = vld [vmem:[%s1749_s3 + $0x210] sm:$0xff] }
 0x14a   :  { %816 = vmatmul.mubr.msk.f32.vlgmr.msra.gmra.mrb[0].mxu1 %vm126_vm4, %v125_v29  ;;  %v342_v56 = vld [vmem:[%s1749_s3 + $0x238] sm:$0xff]  ;;  %v335_v62 = vld [vmem:[%s1749_s3 + $0x200] sm:$0xff]  ;;  %v344_v5 = vld [vmem:[%s1749_s3 + $0x248] sm:$0xff] }
 0x14b   :  { %806 = vmatmul.mubr.msk.f32.vlgmr.msra.gmra.mrb[0].mxu0 %vm126_vm4, %v125_v29  ;;  %924 = vmatpush1.bf16.msra.mxu1 %v923_v28  ;;  %v320_v28 = vld [vmem:[%s1749_s3 + $0x188] sm:$0xff]  ;;  %v953_v61 = vpack.c.bf16 %v342_v56, %v338_v55  ;;  %v339_v2 = vld [vmem:[%s1749_s3 + $0x220] sm:$0xff]  ;;  %v346_v3 = vld [vmem:[%s1749_s3 + $0x258] sm:$0xff] }
 0x14c   :  { %828 = vmatpush1.bf16.msra.mxu0 %v827_v30  ;;  %926 = vmatprep.subr.bf16.mxu1 %v925_v32  ;;  %v324_v29 = vld [vmem:[%s1749_s3 + $0x1a8] sm:$0xff]  ;;  %v943_v30 = vpack.c.bf16 %v317_v23, %v313_v22  ;;  %v847_v32 = vpack.c.bf16 %v315_v25, %v311_v21  ;;  %v350_v4 = vld [vmem:[%s1749_s3 + $0x278] sm:$0xff]  ;;  %v343_v10 = vld [vmem:[%s1749_s3 + $0x240] sm:$0xff] }
 0x14d   :  { %830 = vmatprep.subr.bf16.mxu0 %v829_v36  ;;  %v325_v36 = vld [vmem:[%s1749_s3 + $0x1b0] sm:$0xff]  ;;  %v849_v37 = vpack.c.bf16 %v324_v29, %v320_v28  ;;  %v957_v9 = vpack.c.bf16 %v350_v4, %v346_v3  ;;  %v347_v14 = vld [vmem:[%s1749_s3 + $0x260] sm:$0xff]  ;;  %v354_v15 = vld [vmem:[%s1749_s3 + $0x298] sm:$0xff] }
 0x14e   :  { %v345_v11 = vld [vmem:[%s1749_s3 + $0x250] sm:$0xff]  ;;  %v358_v16 = vld [vmem:[%s1749_s3 + $0x2b8] sm:$0xff]  ;;  %v352_v17 = vld [vmem:[%s1749_s3 + $0x288] sm:$0xff] }
 0x14f   :  { %928 = vmatpush1.bf16.msra.mxu1 %v927_v46  ;;  %v332_v46 = vld [vmem:[%s1749_s3 + $0x1e8] sm:$0xff]  ;;  %v961_v21 = vpack.c.bf16 %v358_v16, %v354_v15  ;;  %v351_v22 = vld [vmem:[%s1749_s3 + $0x280] sm:$0xff]  ;;  %v353_v23 = vld [vmem:[%s1749_s3 + $0x290] sm:$0xff] }
 0x150   :  { %832 = vmatpush1.bf16.msra.mxu0 %v831_v47  ;;  %930 = vmatprep.subr.bf16.mxu1 %v929_v48  ;;  %v947_v47 = vpack.c.bf16 %v325_v36, %v321_v35  ;;  %v851_v48 = vpack.c.bf16 %v323_v38, %v319_v34  ;;  %v853_v53 = vpack.c.bf16 %v332_v46, %v328_v45  ;;  %v366_v28 = vld [vmem:[%s1749_s3 + $0x2f8] sm:$0xff]  ;;  %v360_v29 = vld [vmem:[%s1749_s3 + $0x2c8] sm:$0xff]  ;;  %v359_v35 = vld [vmem:[%s1749_s3 + $0x2c0] sm:$0xff] }
 0x151   :  { %834 = vmatprep.subr.bf16.mxu0 %v833_v52  ;;  %v333_v52 = vld [vmem:[%s1749_s3 + $0x1f0] sm:$0xff]  ;;  %v965_v34 = vpack.c.bf16 %v366_v28, %v362_v27  ;;  %v363_v42 = vld [vmem:[%s1749_s3 + $0x2e0] sm:$0xff]  ;;  %v370_v44 = vld [vmem:[%s1749_s3 + $0x318] sm:$0xff] }
 0x152   :  { %v361_v36 = vld [vmem:[%s1749_s3 + $0x2d0] sm:$0xff]  ;;  %v374_v45 = vld [vmem:[%s1749_s3 + $0x338] sm:$0xff]  ;;  %v368_v46 = vld [vmem:[%s1749_s3 + $0x308] sm:$0xff] }
 0x153   :  { %932 = vmatpush1.bf16.msra.mxu1 %v931_v58  ;;  %v340_v58 = vld [vmem:[%s1749_s3 + $0x228] sm:$0xff]  ;;  %v371_v55 = vld [vmem:[%s1749_s3 + $0x320] sm:$0xff]  ;;  %v378_v56 = vld [vmem:[%s1749_s3 + $0x358] sm:$0xff] }
 0x154   :  { %836 = vmatpush1.bf16.msra.mxu0 %v835_v59  ;;  %934 = vmatprep.subr.bf16.mxu1 %v933_v60  ;;  %v951_v59 = vpack.c.bf16 %v333_v52, %v329_v51  ;;  %v855_v60 = vpack.c.bf16 %v331_v54, %v327_v50  ;;  %v857_v1 = vpack.c.bf16 %v340_v58, %v336_v57  ;;  %v367_v51 = vld [vmem:[%s1749_s3 + $0x300] sm:$0xff]  ;;  %v369_v52 = vld [vmem:[%s1749_s3 + $0x310] sm:$0xff]  ;;  %v382_v57 = vld [vmem:[%s1749_s3 + $0x378] sm:$0xff] }
 0x155   :  { %838 = vmatprep.subr.bf16.mxu0 %v837_v0  ;;  %v341_v0 = vld [vmem:[%s1749_s3 + $0x230] sm:$0xff]  ;;  %v969_v50 = vpack.c.bf16 %v374_v45, %v370_v44  ;;  %v376_v58 = vld [vmem:[%s1749_s3 + $0x348] sm:$0xff]  ;;  %v379_v3 = vld [vmem:[%s1749_s3 + $0x360] sm:$0xff] }
 0x156   :  { %v386_v4 = vld [vmem:[%s1749_s3 + $0x398] sm:$0xff]  ;;  %v387_v15 = vld [vmem:[%s1749_s3 + $0x3a0] sm:$0xff]  ;;  %v405_v44 = vld [vmem:[%s1749_s3 + $0x430] sm:$0xff] }
 0x157   :  { %936 = vmatpush1.bf16.msra.mxu1 %v935_v6  ;;  %v348_v6 = vld [vmem:[%s1749_s3 + $0x268] sm:$0xff]  ;;  %v394_v16 = vld [vmem:[%s1749_s3 + $0x3d8] sm:$0xff]  ;;  %v395_v27 = vld [vmem:[%s1749_s3 + $0x3e0] sm:$0xff] }
 0x158   :  { %840 = vmatpush1.bf16.msra.mxu0 %v839_v7  ;;  %938 = vmatprep.subr.bf16.mxu1 %v937_v8  ;;  %v955_v7 = vpack.c.bf16 %v341_v0, %v337_v63  ;;  %v859_v8 = vpack.c.bf16 %v339_v2, %v335_v62  ;;  %v861_v13 = vpack.c.bf16 %v348_v6, %v344_v5  ;;  %v375_v63 = vld [vmem:[%s1749_s3 + $0x340] sm:$0xff]  ;;  %v377_v0 = vld [vmem:[%s1749_s3 + $0x350] sm:$0xff]  ;;  %v390_v5 = vld [vmem:[%s1749_s3 + $0x3b8] sm:$0xff] }
 0x159   :  { %842 = vmatprep.subr.bf16.mxu0 %v841_v12  ;;  %v349_v12 = vld [vmem:[%s1749_s3 + $0x270] sm:$0xff]  ;;  %v973_v62 = vpack.c.bf16 %v382_v57, %v378_v56  ;;  %v384_v6 = vld [vmem:[%s1749_s3 + $0x388] sm:$0xff] }
 0x15a   :  { %v408_v45 = vld [vmem:[%s1749_s3 + $0x448] sm:$0xff] }
 0x15b   :  { %940 = vmatpush1.bf16.msra.mxu1 %v939_v18  ;;  %v356_v18 = vld [vmem:[%s1749_s3 + $0x2a8] sm:$0xff] }
 0x15c   :  { %844 = vmatpush1.bf16.msra.mxu0 %v843_v19  ;;  %942 = vmatprep.subr.bf16.mxu1 %v941_v20  ;;  %v959_v19 = vpack.c.bf16 %v349_v12, %v345_v11  ;;  %v863_v20 = vpack.c.bf16 %v347_v14, %v343_v10  ;;  %v865_v25 = vpack.c.bf16 %v356_v18, %v352_v17  ;;  %v383_v11 = vld [vmem:[%s1749_s3 + $0x380] sm:$0xff]  ;;  %v385_v12 = vld [vmem:[%s1749_s3 + $0x390] sm:$0xff]  ;;  %v398_v17 = vld [vmem:[%s1749_s3 + $0x3f8] sm:$0xff] }
 0x15d   :  { %846 = vmatprep.subr.bf16.mxu0 %v845_v24  ;;  %v357_v24 = vld [vmem:[%s1749_s3 + $0x2b0] sm:$0xff]  ;;  %v977_v10 = vpack.c.bf16 %v390_v5, %v386_v4  ;;  %v392_v18 = vld [vmem:[%s1749_s3 + $0x3c8] sm:$0xff]  ;;  %v419_v4 = vld [vmem:[%s1749_s3 + $0x4a0] sm:$0xff] }
 0x15f   :  { %944 = vmatpush1.bf16.msra.mxu1 %v943_v30  ;;  %v364_v30 = vld [vmem:[%s1749_s3 + $0x2e8] sm:$0xff] }
 0x160   :  { %848 = vmatpush1.bf16.msra.mxu0 %v847_v32  ;;  %946 = vmatprep.subr.bf16.mxu1 %v945_v33  ;;  %v963_v32 = vpack.c.bf16 %v357_v24, %v353_v23  ;;  %v867_v33 = vpack.c.bf16 %v355_v26, %v351_v22  ;;  %v869_v38 = vpack.c.bf16 %v364_v30, %v360_v29  ;;  %v393_v23 = vld [vmem:[%s1749_s3 + $0x3d0] sm:$0xff]  ;;  %v391_v26 = vld [vmem:[%s1749_s3 + $0x3c0] sm:$0xff]  ;;  %v400_v30 = vld [vmem:[%s1749_s3 + $0x408] sm:$0xff] }
 0x161   :  { %850 = vmatprep.subr.bf16.mxu0 %v849_v37  ;;  %v365_v37 = vld [vmem:[%s1749_s3 + $0x2f0] sm:$0xff]  ;;  %v981_v22 = vpack.c.bf16 %v398_v17, %v394_v16  ;;  %v887_v29 = vpack.c.bf16 %v395_v27, %v391_v26  ;;  %v427_v16 = vld [vmem:[%s1749_s3 + $0x4e0] sm:$0xff] }
 0x162   :  { %v397_v24 = vld [vmem:[%s1749_s3 + $0x3f0] sm:$0xff]  ;;  %v431_v26 = vld [vmem:[%s1749_s3 + $0x500] sm:$0xff] }
 0x163   :  { %948 = vmatpush1.bf16.msra.mxu1 %v947_v47  ;;  %v372_v47 = vld [vmem:[%s1749_s3 + $0x328] sm:$0xff]  ;;  %v983_v28 = vpack.c.bf16 %v397_v24, %v393_v23  ;;  %v438_v23 = vld [vmem:[%s1749_s3 + $0x538] sm:$0xff]  ;;  %v435_v27 = vld [vmem:[%s1749_s3 + $0x520] sm:$0xff] }
 0x164   :  { %852 = vmatpush1.bf16.msra.mxu0 %v851_v48  ;;  %950 = vmatprep.subr.bf16.mxu1 %v949_v49  ;;  %v967_v48 = vpack.c.bf16 %v365_v37, %v361_v36  ;;  %v871_v49 = vpack.c.bf16 %v363_v42, %v359_v35  ;;  %v873_v54 = vpack.c.bf16 %v372_v47, %v368_v46  ;;  %v406_v35 = vld [vmem:[%s1749_s3 + $0x438] sm:$0xff]  ;;  %v399_v37 = vld [vmem:[%s1749_s3 + $0x400] sm:$0xff]  ;;  %v401_v42 = vld [vmem:[%s1749_s3 + $0x410] sm:$0xff] }
 0x165   :  { %854 = vmatprep.subr.bf16.mxu0 %v853_v53  ;;  %v373_v53 = vld [vmem:[%s1749_s3 + $0x330] sm:$0xff]  ;;  %v412_v46 = vld [vmem:[%s1749_s3 + $0x468] sm:$0xff]  ;;  %v410_v47 = vld [vmem:[%s1749_s3 + $0x458] sm:$0xff] }
 0x166   :  { %v893_v57 = vpack.c.bf16 %v412_v46, %v408_v45 }
 0x167   :  { %952 = vmatpush1.bf16.msra.mxu1 %v951_v59  ;;  %v380_v59 = vld [vmem:[%s1749_s3 + $0x368] sm:$0xff] }
 0x168   :  { %856 = vmatpush1.bf16.msra.mxu0 %v855_v60  ;;  %954 = vmatprep.subr.bf16.mxu1 %v953_v61  ;;  %v971_v60 = vpack.c.bf16 %v373_v53, %v369_v52  ;;  %v875_v61 = vpack.c.bf16 %v371_v55, %v367_v51  ;;  %v877_v2 = vpack.c.bf16 %v380_v59, %v376_v58  ;;  %v407_v53 = vld [vmem:[%s1749_s3 + $0x440] sm:$0xff]  ;;  %v409_v59 = vld [vmem:[%s1749_s3 + $0x450] sm:$0xff] }
 0x169   :  { %858 = vmatprep.subr.bf16.mxu0 %v857_v1  ;;  %v381_v1 = vld [vmem:[%s1749_s3 + $0x370] sm:$0xff]  ;;  %v987_v52 = vpack.c.bf16 %v405_v44, %v401_v42  ;;  %v439_v42 = vld [vmem:[%s1749_s3 + $0x540] sm:$0xff] }
 0x16a   :  { %v443_v44 = vld [vmem:[%s1749_s3 + $0x560] sm:$0xff] }
 0x16b   :  { %956 = vmatpush1.bf16.msra.mxu1 %v955_v7  ;;  %v388_v7 = vld [vmem:[%s1749_s3 + $0x3a8] sm:$0xff] }
 0x16c   :  { %860 = vmatpush1.bf16.msra.mxu0 %v859_v8  ;;  %958 = vmatprep.subr.bf16.mxu1 %v957_v9  ;;  %v975_v8 = vpack.c.bf16 %v381_v1, %v377_v0  ;;  %v879_v9 = vpack.c.bf16 %v379_v3, %v375_v63  ;;  %v881_v14 = vpack.c.bf16 %v388_v7, %v384_v6  ;;  %v418_v63 = vld [vmem:[%s1749_s3 + $0x498] sm:$0xff]  ;;  %v415_v3 = vld [vmem:[%s1749_s3 + $0x480] sm:$0xff]  ;;  %v417_v7 = vld [vmem:[%s1749_s3 + $0x490] sm:$0xff] }
 0x16d   :  { %862 = vmatprep.subr.bf16.mxu0 %v861_v13  ;;  %v389_v13 = vld [vmem:[%s1749_s3 + $0x3b0] sm:$0xff]  ;;  %v422_v0 = vld [vmem:[%s1749_s3 + $0x4b8] sm:$0xff] }
 0x16e   :  { %v993_v6 = vpack.c.bf16 %v422_v0, %v418_v63  ;;  %v460_v63 = vld [vmem:[%s1749_s3 + $0x5e8] sm:$0xff]  ;;  %v458_v0 = vld [vmem:[%s1749_s3 + $0x5d8] sm:$0xff] }
 0x16f   :  { %960 = vmatpush1.bf16.msra.mxu1 %v959_v19  ;;  %v396_v19 = vld [vmem:[%s1749_s3 + $0x3e8] sm:$0xff] }
 0x170   :  { %864 = vmatpush1.bf16.msra.mxu0 %v863_v20  ;;  %962 = vmatprep.subr.bf16.mxu1 %v961_v21  ;;  %v979_v20 = vpack.c.bf16 %v389_v13, %v385_v12  ;;  %v883_v21 = vpack.c.bf16 %v387_v15, %v383_v11  ;;  %v426_v11 = vld [vmem:[%s1749_s3 + $0x4d8] sm:$0xff]  ;;  %v899_v13 = vpack.c.bf16 %v419_v4, %v415_v3  ;;  %v423_v15 = vld [vmem:[%s1749_s3 + $0x4c0] sm:$0xff] }
 0x171   :  { %866 = vmatprep.subr.bf16.mxu0 %v865_v25  ;;  %v885_v25 = vpack.c.bf16 %v396_v19, %v392_v18  ;;  %v430_v12 = vld [vmem:[%s1749_s3 + $0x4f8] sm:$0xff]  ;;  %v429_v19 = vld [vmem:[%s1749_s3 + $0x4f0] sm:$0xff]  ;;  %v903_v24 = vpack.c.bf16 %v427_v16, %v423_v15  ;;  %v455_v4 = vld [vmem:[%s1749_s3 + $0x5c0] sm:$0xff] }
 0x172   :  { %v997_v18 = vpack.c.bf16 %v430_v12, %v426_v11  ;;  %v463_v12 = vld [vmem:[%s1750_s4] sm:$0xf] }
 0x173   :  { %964 = vmatpush1.bf16.msra.mxu1 %v963_v32  ;;  %v404_v32 = vld [vmem:[%s1749_s3 + $0x428] sm:$0xff]  ;;  %v468_v16 = vrot.slane %v463_v12, %v1125_v43 }
 0x174   :  { %868 = vmatpush1.bf16.msra.mxu0 %v867_v33  ;;  %966 = vmatprep.subr.bf16.mxu1 %v965_v34  ;;  %v402_v33 = vld [vmem:[%s1749_s3 + $0x418] sm:$0xff]  ;;  %v889_v34 = vpack.c.bf16 %v404_v32, %v400_v30  ;;  %v433_v30 = vld [vmem:[%s1749_s3 + $0x510] sm:$0xff] }
 0x175   :  { %870 = vmatprep.subr.bf16.mxu0 %v869_v38  ;;  %v985_v36 = vpack.c.bf16 %v406_v35, %v402_v33  ;;  %v403_v38 = vld [vmem:[%s1749_s3 + $0x420] sm:$0xff]  ;;  %v437_v32 = vld [vmem:[%s1749_s3 + $0x530] sm:$0xff]  ;;  %v440_v33 = vld [vmem:[%s1749_s3 + $0x548] sm:$0xff] }
 0x176   :  { %v891_v51 = vpack.c.bf16 %v403_v38, %v399_v37  ;;  %v442_v35 = vld [vmem:[%s1749_s3 + $0x558] sm:$0xff]  ;;  %v907_v37 = vpack.c.bf16 %v435_v27, %v431_v26  ;;  %v1003_v38 = vpack.c.bf16 %v437_v32, %v433_v30 }
 0x177   :  { %968 = vmatpush1.bf16.msra.mxu1 %v967_v48  ;;  %v414_v48 = vld [vmem:[%s1749_s3 + $0x478] sm:$0xff] }
 0x178   :  { %872 = vmatpush1.bf16.msra.mxu0 %v871_v49  ;;  %970 = vmatprep.subr.bf16.mxu1 %v969_v50  ;;  %v989_v58 = vpack.c.bf16 %v414_v48, %v410_v47  ;;  %v441_v47 = vld [vmem:[%s1749_s3 + $0x550] sm:$0xff] }
 0x179   :  { %874 = vmatprep.subr.bf16.mxu0 %v873_v54  ;;  %v411_v54 = vld [vmem:[%s1749_s3 + $0x460] sm:$0xff]  ;;  %v445_v48 = vld [vmem:[%s1749_s3 + $0x570] sm:$0xff] }
 0x17a   :  { %v895_v1 = vpack.c.bf16 %v411_v54, %v407_v53  ;;  %v454_v53 = vld [vmem:[%s1749_s3 + $0x5b8] sm:$0xff]  ;;  %v911_v54 = vpack.c.bf16 %v443_v44, %v439_v42 }
 0x17b   :  { %972 = vmatpush1.bf16.msra.mxu1 %v971_v60  ;;  %v413_v60 = vld [vmem:[%s1749_s3 + $0x470] sm:$0xff] }
 0x17c   :  { %876 = vmatpush1.bf16.msra.mxu0 %v875_v61  ;;  %974 = vmatprep.subr.bf16.mxu1 %v973_v62  ;;  %v416_v61 = vld [vmem:[%s1749_s3 + $0x488] sm:$0xff] }
 0x17d   :  { %878 = vmatprep.subr.bf16.mxu0 %v877_v2  ;;  %v420_v62 = vld [vmem:[%s1749_s3 + $0x4a8] sm:$0xff]  ;;  %v991_v2 = vpack.c.bf16 %v413_v60, %v409_v59  ;;  %v449_v60 = vld [vmem:[%s1749_s3 + $0x590] sm:$0xff] }
 0x17e   :  { %v897_v5 = vpack.c.bf16 %v420_v62, %v416_v61  ;;  %v453_v61 = vld [vmem:[%s1749_s3 + $0x5b0] sm:$0xff]  ;;  %v456_v62 = vld [vmem:[%s1749_s3 + $0x5c8] sm:$0xff] }
 0x17f   :  { %976 = vmatpush1.bf16.msra.mxu1 %v975_v8  ;;  %v421_v8 = vld [vmem:[%s1749_s3 + $0x4b0] sm:$0xff]  ;;  %v1011_v3 = vpack.c.bf16 %v453_v61, %v449_v60 }
 0x180   :  { %880 = vmatpush1.bf16.msra.mxu0 %v879_v9  ;;  %978 = vmatprep.subr.bf16.mxu1 %v977_v10  ;;  %v424_v9 = vld [vmem:[%s1749_s3 + $0x4c8] sm:$0xff] }
 0x181   :  { %882 = vmatprep.subr.bf16.mxu0 %v881_v14  ;;  %v428_v10 = vld [vmem:[%s1749_s3 + $0x4e8] sm:$0xff]  ;;  %v995_v14 = vpack.c.bf16 %v421_v8, %v417_v7  ;;  %v459_v7 = vld [vmem:[%s1749_s3 + $0x5e0] sm:$0xff]  ;;  %v457_v8 = vld [vmem:[%s1749_s3 + $0x5d0] sm:$0xff] }
 0x182   :  { %v901_v17 = vpack.c.bf16 %v428_v10, %v424_v9  ;;  %v461_v9 = vld [vmem:[%s1749_s3 + $0x5f0] sm:$0xff]  ;;  %v919_v10 = vpack.c.bf16 %v459_v7, %v455_v4 }
 0x183   :  { %980 = vmatpush1.bf16.msra.mxu1 %v979_v20  ;;  %v432_v20 = vld [vmem:[%s1749_s3 + $0x508] sm:$0xff]  ;;  %v1015_v11 = vpack.c.bf16 %v461_v9, %v457_v8 }
 0x184   :  { %884 = vmatpush1.bf16.msra.mxu0 %v883_v21  ;;  %982 = vmatprep.subr.bf16.mxu1 %v981_v22  ;;  %v436_v21 = vld [vmem:[%s1749_s3 + $0x528] sm:$0xff]  ;;  %v434_v22 = vld [vmem:[%s1749_s3 + $0x518] sm:$0xff] }
 0x185   :  { %886 = vmatprep.subr.bf16.mxu0 %v885_v25 }
 0x187   :  { %984 = vmatpush1.bf16.msra.mxu1 %v983_v28  ;;  %v905_v28 = vpack.c.bf16 %v436_v21, %v432_v20 }
 0x188   :  { %888 = vmatpush1.bf16.msra.mxu0 %v887_v29  ;;  %986 = vmatprep.subr.bf16.mxu1 %v985_v36  ;;  %v1001_v29 = vpack.c.bf16 %v438_v23, %v434_v22  ;;  %v446_v36 = vld [vmem:[%s1749_s3 + $0x578] sm:$0xff] }
 0x189   :  { %890 = vmatprep.subr.bf16.mxu0 %v889_v34  ;;  %v444_v34 = vld [vmem:[%s1749_s3 + $0x568] sm:$0xff]  ;;  %v1005_v46 = vpack.c.bf16 %v446_v36, %v442_v35 }
 0x18a   :  { %v909_v45 = vpack.c.bf16 %v444_v34, %v440_v33 }
 0x21d   :  { %v1564_v49 = vpop.f32.mrb[0].mxu1 }
 0x21e   :  { %v196_v50 = vpop.f32.mrb[0].mxu0  ;;  %v817_v55 = vpop.f32.mrb[1].mxu1 }
 0x21f   :  { %v198_v56 = vpop.f32.mrb[1].mxu0  ;;  %v1007_v55 = vpack.c.bf16 %v445_v48, %v441_v47 }
 0x220   :  { %549 = vmatprep.mubr.f32.mxu0 %v198_v56  ;;  %691 = vmatprep.mubr.f32.mxu1 %v198_v56  ;;  %v447_v56 = vld [vmem:[%s1749_s3 + $0x580] sm:$0xff] }
 0x221   :  { %550 = vmatmul.mubr.f32.vlgmr.msra.gmra.mrb[2].mxu0 %v196_v50  ;;  %692 = vmatmul.mubr.f32.vlgmr.msra.gmra.mrb[2].mxu1 %v196_v50  ;;  %v448_v50 = vld [vmem:[%s1749_s3 + $0x588] sm:$0xff] }
 0x222   :  { %892 = vmatpush1.bf16.msra.mxu0 %v891_v51  ;;  %988 = vmatpush1.bf16.msra.mxu1 %v987_v52  ;;  %v452_v51 = vld [vmem:[%s1749_s3 + $0x5a8] sm:$0xff]  ;;  %v450_v52 = vld [vmem:[%s1749_s3 + $0x598] sm:$0xff] }
 0x223   :  { %894 = vmatprep.subr.bf16.mxu0 %v893_v57  ;;  %990 = vmatprep.subr.bf16.mxu1 %v989_v58  ;;  %v451_v57 = vld [vmem:[%s1749_s3 + $0x5a0] sm:$0xff]  ;;  %v913_v58 = vpack.c.bf16 %v452_v51, %v448_v50  ;;  %v1009_v59 = vpack.c.bf16 %v454_v53, %v450_v52 }
 0x224   :  { %620 = vmatprep.mubr.f32.mxu0 %v1059_v31  ;;  %762 = vmatprep.mubr.f32.mxu1 %v1059_v31  ;;  %v425_v31 = vld [vmem:[%s1749_s3 + $0x4d0] sm:$0xff] }
 0x225   :  { %v999_v25 = vpack.c.bf16 %v429_v19, %v425_v31 }
 0x226   :  { %896 = vmatpush1.bf16.msra.mxu0 %v895_v1  ;;  %992 = vmatpush1.bf16.msra.mxu1 %v991_v2  ;;  %v462_v1 = vld [vmem:[%s1749_s3 + $0x5f8] sm:$0xff]  ;;  %v915_v2 = vpack.c.bf16 %v451_v57, %v447_v56  ;;  %s1062_s3 = smov [#allocation2]  }
 0x227   :  { %898 = vmatprep.subr.bf16.mxu0 %v897_v5  ;;  %994 = vmatprep.subr.bf16.mxu1 %v993_v6  ;;  %v917_v5 = vpack.c.bf16 %v460_v63, %v456_v62  ;;  %v1013_v6 = vpack.c.bf16 %v462_v1, %v458_v0  ;;  %s798_s4 = sshll.u32 %s1062_s3, 4  ;;  %s799_s4 = int_to_ptr.vmem [resolvable:$true] %s798_s4 }
 0x228   :  { %s1034_s28 = scalar_lea.vmem %s799_s4, 128  ;;  %p1039_p1 = scmp.lt.s32.totalorder %s799_s4, %s799_s4 }
 0x229   :  { %p1035_p0 = scmp.ne.s32.totalorder %s799_s4, %s1034_s28  ;;  %p1040_p2 = scmp.lt.s32.totalorder %s1034_s28, %s1034_s28 }
 0x22a   :  { %900 = vmatpush1.bf16.msra.mxu0 %v899_v13  ;;  %996 = vmatpush1.bf16.msra.mxu1 %v995_v14  ;;  %v479_v13 = vsub.s32 3, %v1113_v39  ;;  %v1061_v14 = vmov 1983009808  }
 0x22b   :  { %902 = vmatprep.subr.bf16.mxu0 %v901_v17  ;;  %998 = vmatprep.subr.bf16.mxu1 %v997_v18  ;;  %v776_v15 = vunpack.c.l.s4 %v1061_v14  ;;  %v476_v17 = vrot.slane %v463_v12, %v1119_v41  ;;  %v472_v18 = vrot.slane %v463_v12, %v1116_v40  ;;  %p1041_p3 = por %p1040_p2, %p1039_p1 }
 0x22c   :  { %v480_v31 = vrot.slane %v463_v12, %v479_v13 }
 0x22d   :  { %v777_v19 = vunpack.c.0.s8 %v776_v15  ;;  %p1042_p4 = pnand %p1041_p3, %p1035_p0 }
 0x22e   :  { %904 = vmatpush1.bf16.msra.mxu0 %v903_v24  ;;  %1000 = vmatpush1.bf16.msra.mxu1 %v999_v25 }
 0x22f   :  { %906 = vmatprep.subr.bf16.mxu0 %v905_v28  ;;  %1002 = vmatprep.subr.bf16.mxu1 %v1001_v29  ;;  %v780_v27 = vsub.s32 %v777_v19, %v1113_v39 }
 0x232   :  { %908 = vmatpush1.bf16.msra.mxu0 %v907_v37  ;;  %1004 = vmatpush1.bf16.msra.mxu1 %v1003_v38 }
 0x233   :  { %910 = vmatprep.subr.bf16.mxu0 %v909_v45  ;;  %1006 = vmatprep.subr.bf16.mxu1 %v1005_v46 }
 0x236   :  { %912 = vmatpush1.bf16.msra.mxu0 %v911_v54  ;;  %1008 = vmatpush1.bf16.msra.mxu1 %v1007_v55 }
 0x237   :  { %914 = vmatprep.subr.bf16.mxu0 %v913_v58  ;;  %1010 = vmatprep.subr.bf16.mxu1 %v1009_v59 }
 0x23a   :  { %916 = vmatpush1.bf16.msra.mxu0 %v915_v2  ;;  %1012 = vmatpush1.bf16.msra.mxu1 %v1011_v3 }
 0x23b   :  { %918 = vmatprep.subr.bf16.mxu0 %v917_v5  ;;  %1014 = vmatprep.subr.bf16.mxu1 %v1013_v6 }
 0x23e   :  { %920 = vmatpush1.bf16.msra.mxu0 %v919_v10  ;;  %1016 = vmatpush1.bf16.msra.mxu1 %v1015_v11 }
 0x241   :  { %621 = vmatmul.mubr.f32.vlgmr.msra.gmra.mrb[2].mxu0 %v1564_v49  ;;  %763 = vmatmul.mubr.f32.vlgmr.msra.gmra.mrb[2].mxu1 %v1564_v49 }
 0x314   :  { %v622_v20 = vpop.f32.mrb[2].mxu0  ;;  %v764_v21 = vpop.f32.mrb[2].mxu1 }
 0x315   :  { %v1017_v22 = vadd.f32 %v622_v20, %v468_v16  ;;  %v1019_v49 = vadd.f32 %v764_v21, %v476_v17  ;;  %v624_v23 = vpop.f32.mrb[3].mxu0  ;;  %v766_v24 = vpop.f32.mrb[3].mxu1 }
 0x316   :  { %v1018_v25 = vadd.f32 %v624_v23, %v472_v18  ;;  %v1020_v26 = vadd.f32 %v766_v24, %v480_v31 }
 0x318   :  { %v773_v28 = vcombine.low %v1017_v22, %v1018_v25  ;;  %v774_v29 = vcombine.low %v1019_v49, %v1020_v26 }
 0x31a   :  { %v781_v43 = vrot.slane %v773_v28, %v780_v27  ;;  %v788_v41 = vrot.slane %v774_v29, %v780_v27 }
 0x31c   :  { %v789_v30 = vcombine.low %v781_v43, %v788_v41 }
 0x31e   :  { %791 = vst [vmem:[#allocation2] sm:$0xff] %v789_v30 }
 0x31f   :  { %1045 = shalt.err (!%p1042_p4)
}
 0x320   :  { %s1046_s30 = scalar_lea.hbm %s1751_s5, 128 }
 0x321   :  { %p1047_p5 = scmp.ne.s32.totalorder %s1751_s5, %s1046_s30  ;;  %p1050_p6 = scmp.lt.u32.totalorder %s1046_s30, %s1751_s5 }
 0x323   :  { %p1052_p7 = pnand %p1050_p6, %p1047_p5 }
 0x325   :  { %1055 = shalt.err (!%p1052_p7)
}
 0x326   :  { %801 = dma.vmem_to_hbm [thread:$0]  %s799_s4, 128, %s1751_s5, [#allocation3]  }
 0x327   :  { %1056 = dma.done.wait [#allocation3], 128  }
 0x328   :  { %1057 = vsyncadd [#allocation3], 4294967168 }
 0x329   :  { %805 = vsyncpa [#allocation3], 1 }

// kernel: forward.4
= control target key start
LH: loop header
LB: loop body
LE: loop exit
PB: predicated region body
PF: predicated region fallthrough
CT: control target
= control target key end

     0   :  { %s17581_s0 = inlined_call_operand.vmem [shape: f32[16,384], index: 0, kind: input, shape index: {}]   ;;  %s17582_s1 = inlined_call_operand.hbm [shape: f32[12,1,384], index: 1, kind: input, shape index: {}]   ;;  %s17583_s2 = inlined_call_operand.hbm [shape: f32[12,1,384], index: 2, kind: input, shape index: {}]   ;;  %s17584_s3 = inlined_call_operand.hbm [shape: bf16[12,384,1152], index: 3, kind: input, shape index: {}]   ;;  %s17585_s4 = inlined_call_operand.hbm [shape: f32[12,1,1152], index: 4, kind: input, shape index: {}]   ;;  %s17586_s5 = inlined_call_operand.hbm [shape: bf16[12,384,384], index: 5, kind: input, shape index: {}]   ;;  %s17587_s6 = inlined_call_operand.hbm [shape: f32[12,1,384], index: 6, kind: input, shape index: {}]   ;;  %s17588_s7 = inlined_call_operand.hbm [shape: f32[12,1,384], index: 7, kind: input, shape index: {}]   ;;  %s17589_s8 = inlined_call_operand.hbm [shape: f32[12,1,384], index: 8, kind: input, shape index: {}]   ;;  %s17590_s9 = inlined_call_operand.hbm [shape: f32[12,1,384], index: 9, kind: input, shape index: {}]   ;;  %s17591_s10 = inlined_call_operand.hbm [shape: bf16[12,384,1536], index: 10, kind: input, shape index: {}]   ;;  %s17592_s11 = inlined_call_operand.hbm [shape: f32[12,1,1536], index: 11, kind: input, shape index: {}]   ;;  %s17593_s12 = inlined_call_operand.hbm [shape: bf16[12,1536,384], index: 12, kind: input, shape index: {}]   ;;  %s17594_s13 = inlined_call_operand.hbm [shape: f32[12,1,384], index: 13, kind: input, shape index: {}]   ;;  %s17595_s14 = inlined_call_operand.hbm [shape: f32[12,1,384], index: 14, kind: input, shape index: {}]   ;;  %s17596_s15 = inlined_call_operand.vmem [shape: f32[16,384], index: 15, kind: output, shape index: {}]  }
   0x1   :  { %17620 = sst [smem:[#allocation40_spill]] %s17581_s0 }
   0x2   :  { %17621 = sst [smem:[#allocation41_spill]] %s17582_s1 }
   0x3   :  { %17622 = sst [smem:[#allocation42_spill]] %s17583_s2 }
   0x4   :  { %17623 = sst [smem:[#allocation43_spill]] %s17584_s3 }
   0x5   :  { %17624 = sst [smem:[#allocation44_spill]] %s17585_s4 }
   0x6   :  { %17625 = sst [smem:[#allocation45_spill]] %s17595_s14 }
   0x7   :  { %17626 = sst [smem:[#allocation46_spill]] %s17596_s15 }
   0x8   :  { %20 = vsyncpa [#allocation5], 0 }
   0x9   :  { %22 = vsyncpa [#allocation5 + $0x1], 0 }
   0xa   :  { %23 = vsyncpa [#allocation7], 0 }
   0xb   :  { %25 = vsyncpa [#allocation7 + $0x1], 0 }
   0xc   :  { %26 = vsyncpa [#allocation10], 0 }
   0xd   :  { %28 = vsyncpa [#allocation10 + $0x1], 0 }
   0xe   :  { %29 = vsyncpa [#allocation13], 0 }
   0xf   :  { %31 = vsyncpa [#allocation13 + $0x1], 0 }
  0x10   :  { %32 = vsyncpa [#allocation16], 0 }
  0x11   :  { %34 = vsyncpa [#allocation16 + $0x1], 0 }
  0x12   :  { %35 = vsyncpa [#allocation19], 0 }
  0x13   :  { %37 = vsyncpa [#allocation19 + $0x1], 0 }
  0x14   :  { %38 = vsyncpa [#allocation22], 0 }
  0x15   :  { %40 = vsyncpa [#allocation22 + $0x1], 0 }
  0x16   :  { %41 = vsyncpa [#allocation25], 0 }
  0x17   :  { %43 = vsyncpa [#allocation25 + $0x1], 0  ;;  %s15000_s18 = smov 0   ;;  %s15002_s19 = smov 0  }
  0x18   :  { %s15004_s20 = smov 0   ;;  %s15006_s21 = smov 0  }
  0x19 LB: > { %17627 = sst [smem:[#allocation34_spill]] %s14884_s19  ;;  %s15019_s22 = sadd.s32 4294967295, %s14892_s21   ;;  %s14892_s21 = sphi %s15006_s21, %s17664_s21   ;;  %s14888_s20 = sphi %s15004_s20, %s17667_s20   ;;  %s14884_s19 = sphi %s15002_s19, %s17666_s19   ;;  %s14880_s18 = sphi %s15000_s18, %s17665_s18  }
  0x1a   : > { %17628 = sst [smem:[#allocation35_spill]] %s14888_s20  ;;  %s15022_s23 = sadd.s32 1, %s14892_s21  }
  0x1b   : > { %17629 = sst [smem:[#allocation36_spill]] %s15019_s22  ;;  %s74_s24 = ssub.s32 %s14892_s21, %s15022_s23 }
  0x1c   : > { %17630 = sst [smem:[#allocation37_spill]] %s15022_s23  ;;  %s77_s25 = sadd.s32 1, %s14888_s20 }
  0x1d   : > { %p75_p0 = scmp.eq.s32.totalorder %s74_s24, 0  ;;  %p84_p1 = scmp.ne.s32.totalorder %s14888_s20, %s14884_s19 }
  0x1e   : > { %p85_p2 = scmp.eq.s32.totalorder %s14892_s21, 0  ;;  %p90_p3 = scmp.ne.s32.totalorder %s14884_s19, %s14880_s18 }
  0x1f   : > { %s15032_s26 = scalar_select %p75_p0, %s14888_s20, %s77_s25  }
  0x20   : > { %p15034_p4 = por %p85_p2, %p84_p1  ;;  %p91_p5 = scmp.eq.s32.totalorder %s15019_s22, 0 }
  0x21   : > { %17631 = sst [smem:[#allocation38_spill]] %s15032_s26  ;;  %p11515_p7 = scmp.ge.s32.totalorder %s14892_s21, 12 }
  0x22   : > { %p15039_p6 = por %p91_p5, %p90_p3  ;;  %s15045_s29 = sand.u32 (!%p11515_p7), 1, %s14888_s20  }
  0x23   : > { %472 = sbr.rel (%p11515_p7) target bundleno = 396 (0x18c), region = 20  ;;  %s15054_s17 = sand.u32 (!%p11515_p7), 1, %s14892_s21  }
  0x24   : > { %s17633_s28 = scalar_select %p15039_p6, 1, 0 }
  0x25   : > { %s15048_s30 = smul.u32 (!%p11515_p7), 48, %s14892_s21  ;;  %s17635_s2 = sld [smem:[#allocation42_spill]] (!%p11515_p7) }
  0x26   : > { %17634 = sst [smem:[#allocation39_spill]] %s17633_s28  ;;  %s15051_s16 = smul.u32 (!%p11515_p7), 3, %s15045_s29 }
  0x27   : > { %s12956_s23 = smul.u32 (!%p11515_p7), 9, %s15045_s29  ;;  %s17608_s0 = scalar_lea.sflag (!%p11515_p7), [#allocation7], %s15054_s17 }
  0x28   : > { %s499_s26 = scalar_lea.vmem (!%p11515_p7), [#allocation6], %s15051_s16  ;;  %s12957_s15 = smul.u32 (!%p11515_p7), 144, %s14892_s21 }
  0x29   : > { %s507_s20 = sshll.u32 (!%p11515_p7), %s499_s26, 4  ;;  %s15064_s20 = int_to_ptr.vmem [resolvable:$true] %s507_s20 }
  0x2b   : > { %s15060_s25 = scalar_lea.hbm %s17635_s2, %s15048_s30  ;;  %s14442_s28 = scalar_lea.hbm %s17635_s2, 576 }
  0x2c   : > { %s14438_s22 = scalar_lea.hbm %s15060_s25, 48  ;;  %p14443_p11 = scmp.lt.u32.totalorder %s15060_s25, %s17635_s2 }
  0x2d   : > { %p14439_p8 = scmp.ne.s32.totalorder %s15060_s25, %s14438_s22  ;;  %p14444_p12 = scmp.lt.u32.totalorder %s14442_s28, %s14438_s22 }
  0x2e   : > { %p14446_p0 = scmp.lt.u32.totalorder %s14438_s22, %s15060_s25 }
  0x2f   : > { %p14440_p9 = pnand %p14439_p8, %p15034_p4  ;;  %p14445_p13 = por %p14444_p12, %p14443_p11 }
  0x31   : > { %p14441_p10 = pneg %p14440_p9  ;;  %p14447_p1 = por %p14446_p0, %p14445_p13 }
  0x33   : > { %p14448_p2 = pnand %p14447_p1, %p14441_p10 }
  0x35   : > { %14451 = shalt.err (!%p14448_p2)
}
  0x36   : > { %s14452_s26 = scalar_lea.vmem %s15064_s20, 48  ;;  %s14894_s18 = smov [#allocation6]  }
  0x37   : > { %p14453_p3 = scmp.ne.s32.totalorder %s15064_s20, %s14452_s26  ;;  %s14456_s24 = sshll.u32 %s14894_s18, 4  ;;  %s14457_s24 = int_to_ptr.vmem [resolvable:$false] %s14456_s24 }
  0x38   : > { %s14458_s14 = scalar_lea.vmem %s14457_s24, 96  ;;  %p14459_p8 = scmp.lt.s32.totalorder %s15064_s20, %s14457_s24 }
  0x39   : > { %p14454_p5 = pnand %p14453_p3, %p15034_p4  ;;  %p14460_p9 = scmp.lt.s32.totalorder %s14458_s14, %s14452_s26 }
  0x3b   : > { %p14455_p7 = pneg %p14454_p5  ;;  %p14461_p11 = por %p14460_p9, %p14459_p8 }
  0x3d   : > { %p14462_p12 = pnand %p14461_p11, %p14455_p7 }
  0x3f   : > { %14465 = shalt.err (!%p14462_p12)
}
  0x40   : > { %12985 = dma.hbm_to_vmem [thread:$0]  (%p15034_p4), %s15060_s25, 48, %s15064_s20, %s17608_s0  }
  0x41   : > { %s17636_s4 = sld [smem:[#allocation44_spill]]  ;;  %s539_s26 = scalar_lea.vmem [#allocation9], %s12956_s23 }
  0x42   : > { %s547_s18 = sshll.u32 %s539_s26, 4  ;;  %s17610_s24 = scalar_lea.sflag [#allocation10], %s15054_s17  ;;  %s548_s18 = int_to_ptr.vmem [resolvable:$true] %s547_s18 }
  0x47   : > { %s15096_s28 = scalar_lea.hbm %s17636_s4, %s12957_s15  ;;  %s14470_s19 = scalar_lea.hbm %s17636_s4, 1728 }
  0x48   : > { %s14466_s14 = scalar_lea.hbm %s15096_s28, 144  ;;  %p14471_p1 = scmp.lt.u32.totalorder %s15096_s28, %s17636_s4 }
  0x49   : > { %p14467_p10 = scmp.ne.s32.totalorder %s15096_s28, %s14466_s14  ;;  %p14472_p2 = scmp.lt.u32.totalorder %s14470_s19, %s14466_s14 }
  0x4a   : > { %p14474_p5 = scmp.lt.u32.totalorder %s14466_s14, %s15096_s28 }
  0x4b   : > { %p14468_p13 = pnand %p14467_p10, %p15034_p4  ;;  %p14473_p3 = por %p14472_p2, %p14471_p1 }
  0x4d   : > { %p14469_p0 = pneg %p14468_p13  ;;  %p14475_p7 = por %p14474_p5, %p14473_p3 }
  0x4f   : > { %p14476_p8 = pnand %p14475_p7, %p14469_p0 }
  0x51   : > { %14479 = shalt.err (!%p14476_p8)
}
  0x52   : > { %s14480_s23 = scalar_lea.vmem %s548_s18, 144  ;;  %s14895_s26 = smov [#allocation9]  }
  0x53   : > { %p14481_p9 = scmp.ne.s32.totalorder %s548_s18, %s14480_s23  ;;  %s14484_s0 = sshll.u32 %s14895_s26, 4  ;;  %s14485_s0 = int_to_ptr.vmem [resolvable:$false] %s14484_s0 }
  0x54   : > { %s14486_s20 = scalar_lea.vmem %s14485_s0, 288  ;;  %p14487_p10 = scmp.lt.s32.totalorder %s548_s18, %s14485_s0 }
  0x55   : > { %p14482_p11 = pnand %p14481_p9, %p15034_p4  ;;  %p14488_p13 = scmp.lt.s32.totalorder %s14486_s20, %s14480_s23 }
  0x57   : > { %p14483_p12 = pneg %p14482_p11  ;;  %p14489_p6 = por %p14488_p13, %p14487_p10 }
  0x59   : > { %p14490_p1 = pnand %p14489_p6, %p14483_p12 }
  0x5b   : > { %14493 = shalt.err (!%p14490_p1)
}
  0x5c   : > { %12987 = dma.hbm_to_vmem [thread:$0]  (%p15034_p4), %s15096_s28, 144, %s548_s18, %s17610_s24  }
  0x5d   : > { %s15124_s19 = scalar_lea.hbm %s17587_s6, %s15048_s30  ;;  %s579_s0 = scalar_lea.vmem [#allocation12], %s15051_s16 }
  0x5e   : > { %s587_s15 = sshll.u32 %s579_s0, 4  ;;  %s17611_s22 = scalar_lea.sflag [#allocation13], %s15054_s17  ;;  %s588_s15 = int_to_ptr.vmem [resolvable:$true] %s587_s15 }
  0x5f   : > { %s14494_s23 = scalar_lea.hbm %s15124_s19, 48  ;;  %s14498_s18 = scalar_lea.hbm %s17587_s6, 576 }
  0x60   : > { %p14495_p6 = scmp.ne.s32.totalorder %s15124_s19, %s14494_s23  ;;  %p14499_p3 = scmp.lt.u32.totalorder %s15124_s19, %s17587_s6 }
  0x61   : > { %p14500_p5 = scmp.lt.u32.totalorder %s14498_s18, %s14494_s23  ;;  %p14502_p8 = scmp.lt.u32.totalorder %s14494_s23, %s15124_s19 }
  0x62   : > { %p14496_p0 = pnand %p14495_p6, %p15034_p4 }
  0x63   : > { %p14501_p7 = por %p14500_p5, %p14499_p3 }
  0x64   : > { %p14497_p2 = pneg %p14496_p0 }
  0x65   : > { %p14503_p9 = por %p14502_p8, %p14501_p7 }
  0x67   : > { %p14504_p11 = pnand %p14503_p9, %p14497_p2 }
  0x69   : > { %14507 = shalt.err (!%p14504_p11)
}
  0x6a   : > { %s14508_s25 = scalar_lea.vmem %s588_s15, 48  ;;  %s14896_s0 = smov [#allocation12]  }
  0x6b   : > { %p14509_p12 = scmp.ne.s32.totalorder %s588_s15, %s14508_s25  ;;  %s14512_s24 = sshll.u32 %s14896_s0, 4  ;;  %s14513_s24 = int_to_ptr.vmem [resolvable:$false] %s14512_s24 }
  0x6c   : > { %s14514_s26 = scalar_lea.vmem %s14513_s24, 96  ;;  %p14515_p1 = scmp.lt.s32.totalorder %s588_s15, %s14513_s24 }
  0x6d   : > { %p14510_p10 = pnand %p14509_p12, %p15034_p4  ;;  %p14516_p6 = scmp.lt.s32.totalorder %s14514_s26, %s14508_s25 }
  0x6f   : > { %p14511_p13 = pneg %p14510_p10  ;;  %p14517_p0 = por %p14516_p6, %p14515_p1 }
  0x71   : > { %p14518_p3 = pnand %p14517_p0, %p14511_p13 }
  0x73   : > { %14521 = shalt.err (!%p14518_p3)
}
  0x74   : > { %12989 = dma.hbm_to_vmem [thread:$0]  (%p15034_p4), %s15124_s19, 48, %s588_s15, %s17611_s22  }
  0x75   : > { %s15151_s18 = scalar_lea.hbm %s17589_s8, %s15048_s30  ;;  %s617_s24 = scalar_lea.vmem [#allocation15], %s15051_s16 }
  0x76   : > { %s625_s20 = sshll.u32 %s617_s24, 4  ;;  %s12968_s14 = smul.u32 2304, %s15045_s29  ;;  %s15154_s20 = int_to_ptr.vmem [resolvable:$true] %s625_s20 }
  0x77   : > { %s17612_s25 = scalar_lea.sflag [#allocation16], %s15054_s17  ;;  %s14522_s0 = scalar_lea.hbm %s15151_s18, 48 }
  0x78   : > { %p14523_p2 = scmp.ne.s32.totalorder %s15151_s18, %s14522_s0  ;;  %s14526_s26 = scalar_lea.hbm %s17589_s8, 576 }
  0x79   : > { %p14527_p8 = scmp.lt.u32.totalorder %s15151_s18, %s17589_s8  ;;  %p14528_p9 = scmp.lt.u32.totalorder %s14526_s26, %s14522_s0 }
  0x7a   : > { %p14524_p5 = pnand %p14523_p2, %p15034_p4  ;;  %p14530_p12 = scmp.lt.u32.totalorder %s14522_s0, %s15151_s18 }
  0x7b   : > { %p14529_p11 = por %p14528_p9, %p14527_p8 }
  0x7c   : > { %p14525_p7 = pneg %p14524_p5 }
  0x7d   : > { %p14531_p10 = por %p14530_p12, %p14529_p11 }
  0x7f   : > { %p14532_p13 = pnand %p14531_p10, %p14525_p7 }
  0x81   : > { %14535 = shalt.err (!%p14532_p13)
}
  0x82   : > { %s14536_s24 = scalar_lea.vmem %s15154_s20, 48  ;;  %s14897_s19 = smov [#allocation15]  }
  0x83   : > { %p14537_p1 = scmp.ne.s32.totalorder %s15154_s20, %s14536_s24  ;;  %s14540_s15 = sshll.u32 %s14897_s19, 4  ;;  %s14541_s15 = int_to_ptr.vmem [resolvable:$false] %s14540_s15 }
  0x84   : > { %s14542_s23 = scalar_lea.vmem %s14541_s15, 96  ;;  %p14543_p3 = scmp.lt.s32.totalorder %s15154_s20, %s14541_s15 }
  0x85   : > { %p14538_p6 = pnand %p14537_p1, %p15034_p4  ;;  %p14544_p2 = scmp.lt.s32.totalorder %s14542_s23, %s14536_s24 }
  0x87   : > { %p14539_p0 = pneg %p14538_p6  ;;  %p14545_p5 = por %p14544_p2, %p14543_p3 }
  0x89   : > { %p14546_p8 = pnand %p14545_p5, %p14539_p0 }
  0x8b   : > { %14549 = shalt.err (!%p14546_p8)
}
  0x8c   : > { %12991 = dma.hbm_to_vmem [thread:$0]  (%p15034_p4), %s15151_s18, 48, %s15154_s20, %s17612_s25  }
  0x8d   : > { %s12969_s0 = smul.u32 36864, %s14892_s21  ;;  %s655_s26 = scalar_lea.vmem [#allocation18], %s12968_s14 }
  0x8e   : > { %s662_s28 = sshll.u32 %s655_s26, 4  ;;  %s17614_s23 = scalar_lea.sflag [#allocation19], %s15054_s17  ;;  %s15191_s28 = int_to_ptr.vmem [resolvable:$true] %s662_s28 }
  0x8f   : > { %s15189_s15 = scalar_lea.hbm %s17591_s10, %s12969_s0  ;;  %s14554_s26 = scalar_lea.hbm %s17591_s10, 442368 }
  0x90   : > { %s14550_s22 = scalar_lea.hbm %s15189_s15, 36864  ;;  %p14555_p12 = scmp.lt.u32.totalorder %s15189_s15, %s17591_s10 }
  0x91   : > { %p14551_p7 = scmp.ne.s32.totalorder %s15189_s15, %s14550_s22  ;;  %p14556_p10 = scmp.lt.u32.totalorder %s14554_s26, %s14550_s22 }
  0x92   : > { %p14558_p1 = scmp.lt.u32.totalorder %s14550_s22, %s15189_s15 }
  0x93   : > { %p14552_p9 = pnand %p14551_p7, %p15034_p4  ;;  %p14557_p13 = por %p14556_p10, %p14555_p12 }
  0x95   : > { %p14553_p11 = pneg %p14552_p9  ;;  %p14559_p6 = por %p14558_p1, %p14557_p13 }
  0x97   : > { %p14560_p0 = pnand %p14559_p6, %p14553_p11 }
  0x99   : > { %14563 = shalt.err (!%p14560_p0)
}
  0x9a   : > { %s14564_s19 = scalar_lea.vmem %s15191_s28, 36864  ;;  %s14898_s18 = smov [#allocation18]  }
  0x9b   : > { %p14565_p3 = scmp.ne.s32.totalorder %s15191_s28, %s14564_s19  ;;  %s14568_s20 = sshll.u32 %s14898_s18, 4  ;;  %s14569_s20 = int_to_ptr.vmem [resolvable:$false] %s14568_s20 }
  0x9c   : > { %s14570_s25 = scalar_lea.vmem %s14569_s20, 73728  ;;  %p14571_p8 = scmp.lt.s32.totalorder %s15191_s28, %s14569_s20 }
  0x9d   : > { %p14566_p2 = pnand %p14565_p3, %p15034_p4  ;;  %p14572_p7 = scmp.lt.s32.totalorder %s14570_s25, %s14564_s19 }
  0x9f   : > { %p14567_p5 = pneg %p14566_p2  ;;  %p14573_p9 = por %p14572_p7, %p14571_p8 }
  0xa1   : > { %p14574_p12 = pnand %p14573_p9, %p14567_p5 }
  0xa3   : > { %14577 = shalt.err (!%p14574_p12)
}
  0xa4   : > { %s14899_s22 = smov 768   ;;  %s14900_s26 = smov 48  }
  0xa5   : > { %12993 = dma.hbm_to_vmem [thread:$0]  (%p15034_p4), %s15189_s15, 36864, %s15191_s28, %s17614_s23, %s14899_s22, %s14899_s22, %s14900_s26  }
  0xa6   : > { %s15222_s19 = scalar_lea.hbm %s17593_s12, %s12969_s0  ;;  %s695_s20 = scalar_lea.vmem [#allocation21], %s12968_s14 }
  0xa7   : > { %s702_s25 = sshll.u32 %s695_s20, 4  ;;  %s17613_s2 = scalar_lea.sflag [#allocation22], %s15054_s17  ;;  %s15226_s25 = int_to_ptr.vmem [resolvable:$true] %s702_s25 }
  0xa8   : > { %s14578_s4 = scalar_lea.hbm %s15222_s19, 36864  ;;  %s14582_s0 = scalar_lea.hbm %s17593_s12, 442368 }
  0xa9   : > { %p14579_p11 = scmp.ne.s32.totalorder %s15222_s19, %s14578_s4  ;;  %p14583_p1 = scmp.lt.u32.totalorder %s15222_s19, %s17593_s12 }
  0xaa   : > { %p14584_p6 = scmp.lt.u32.totalorder %s14582_s0, %s14578_s4  ;;  %p14586_p3 = scmp.lt.u32.totalorder %s14578_s4, %s15222_s19 }
  0xab   : > { %p14580_p10 = pnand %p14579_p11, %p15034_p4 }
  0xac   : > { %p14585_p0 = por %p14584_p6, %p14583_p1 }
  0xad   : > { %p14581_p13 = pneg %p14580_p10 }
  0xae   : > { %p14587_p2 = por %p14586_p3, %p14585_p0 }
  0xb0   : > { %p14588_p5 = pnand %p14587_p2, %p14581_p13 }
  0xb2   : > { %14591 = shalt.err (!%p14588_p5)
}
  0xb3   : > { %s14592_s14 = scalar_lea.vmem %s15226_s25, 36864  ;;  %s14901_s24 = smov [#allocation21]  }
  0xb4   : > { %p14593_p8 = scmp.ne.s32.totalorder %s15226_s25, %s14592_s14  ;;  %s14596_s18 = sshll.u32 %s14901_s24, 4  ;;  %s14597_s18 = int_to_ptr.vmem [resolvable:$false] %s14596_s18 }
  0xb5   : > { %s14598_s20 = scalar_lea.vmem %s14597_s18, 73728  ;;  %p14599_p12 = scmp.lt.s32.totalorder %s15226_s25, %s14597_s18 }
  0xb6   : > { %p14594_p7 = pnand %p14593_p8, %p15034_p4  ;;  %p14600_p11 = scmp.lt.s32.totalorder %s14598_s20, %s14592_s14 }
  0xb8   : > { %p14595_p9 = pneg %p14594_p7  ;;  %p14601_p10 = por %p14600_p11, %p14599_p12 }
  0xba   : > { %p14602_p1 = pnand %p14601_p10, %p14595_p9 }
  0xbc   : > { %14605 = shalt.err (!%p14602_p1)
}
  0xbd   : > { %s17615_s4 = smov 192   ;;  %s14903_s28 = smov 12  }
  0xbe   : > { %12995 = dma.hbm_to_vmem [thread:$0]  (%p15034_p4), %s15222_s19, 36864, %s15226_s25, %s17613_s2, %s17615_s4, %s17615_s4, %s14903_s28  }
  0xbf   : > { %s17637_s1 = sld [smem:[#allocation41_spill]]  ;;  %s480_s26 = scalar_lea.vmem [#allocation4], %s15051_s16 }
  0xc0   : > { %s488_s14 = sshll.u32 %s480_s26, 4  ;;  %s12954_s24 = smul.u32 1728, %s15045_s29  ;;  %s15262_s14 = int_to_ptr.vmem [resolvable:$true] %s488_s14 }
  0xc1   : > { %s477_s18 = scalar_lea.sflag [#allocation5], %s15045_s29 }
  0xc5   : > { %s15259_s22 = scalar_lea.hbm %s17637_s1, %s15048_s30  ;;  %s14610_s15 = scalar_lea.hbm %s17637_s1, 576 }
  0xc6   : > { %s14606_s20 = scalar_lea.hbm %s15259_s22, 48  ;;  %p14611_p3 = scmp.lt.u32.totalorder %s15259_s22, %s17637_s1 }
  0xc7   : > { %p14607_p13 = scmp.ne.s32.totalorder %s15259_s22, %s14606_s20  ;;  %p14612_p2 = scmp.lt.u32.totalorder %s14610_s15, %s14606_s20 }
  0xc8   : > { %p14614_p8 = scmp.lt.u32.totalorder %s14606_s20, %s15259_s22 }
  0xc9   : > { %p14608_p6 = pnand %p14607_p13, %p15034_p4  ;;  %p14613_p5 = por %p14612_p2, %p14611_p3 }
  0xcb   : > { %p14609_p0 = pneg %p14608_p6  ;;  %p14615_p7 = por %p14614_p8, %p14613_p5 }
  0xcd   : > { %p14616_p9 = pnand %p14615_p7, %p14609_p0 }
  0xcf   : > { %14619 = shalt.err (!%p14616_p9)
}
  0xd0   : > { %s14620_s26 = scalar_lea.vmem %s15262_s14, 48  ;;  %s14904_s19 = smov [#allocation4]  }
  0xd1   : > { %p14621_p12 = scmp.ne.s32.totalorder %s15262_s14, %s14620_s26  ;;  %s14624_s25 = sshll.u32 %s14904_s19, 4  ;;  %s14625_s25 = int_to_ptr.vmem [resolvable:$false] %s14624_s25 }
  0xd2   : > { %s14626_s2 = scalar_lea.vmem %s14625_s25, 96  ;;  %p14627_p1 = scmp.lt.s32.totalorder %s15262_s14, %s14625_s25 }
  0xd3   : > { %p14622_p11 = pnand %p14621_p12, %p15034_p4  ;;  %p14628_p13 = scmp.lt.s32.totalorder %s14626_s2, %s14620_s26 }
  0xd5   : > { %p14623_p10 = pneg %p14622_p11  ;;  %p14629_p6 = por %p14628_p13, %p14627_p1 }
  0xd7   : > { %p14630_p3 = pnand %p14629_p6, %p14623_p10 }
  0xd9   : > { %14633 = shalt.err (!%p14630_p3)
}
  0xda   : > { %12984 = dma.hbm_to_vmem [thread:$0]  (%p15034_p4), %s15259_s22, 48, %s15262_s14, %s477_s18  }
  0xdb   : > { %s12955_s20 = smul.u32 27648, %s14892_s21  ;;  %s518_s15 = scalar_lea.vmem [#allocation8], %s12954_s24 }
  0xdc   : > { %s525_s0 = sshll.u32 %s518_s15, 4  ;;  %s17638_s3 = sld [smem:[#allocation43_spill]]  ;;  %s15295_s0 = int_to_ptr.vmem [resolvable:$true] %s525_s0 }
  0xdd   : > { %s12958_s25 = smul.u32 576, %s15045_s29 }
  0xe2   : > { %s15293_s26 = scalar_lea.hbm %s17638_s3, %s12955_s20  ;;  %s14638_s24 = scalar_lea.hbm %s17638_s3, 331776 }
  0xe3   : > { %s14634_s2 = scalar_lea.hbm %s15293_s26, 27648  ;;  %p14639_p8 = scmp.lt.u32.totalorder %s15293_s26, %s17638_s3 }
  0xe4   : > { %p14635_p0 = scmp.ne.s32.totalorder %s15293_s26, %s14634_s2  ;;  %p14640_p7 = scmp.lt.u32.totalorder %s14638_s24, %s14634_s2 }
  0xe5   : > { %p14642_p12 = scmp.lt.u32.totalorder %s14634_s2, %s15293_s26 }
  0xe6   : > { %p14636_p2 = pnand %p14635_p0, %p15034_p4  ;;  %p14641_p9 = por %p14640_p7, %p14639_p8 }
  0xe8   : > { %p14637_p5 = pneg %p14636_p2  ;;  %p14643_p11 = por %p14642_p12, %p14641_p9 }
  0xea   : > { %p14644_p10 = pnand %p14643_p11, %p14637_p5 }
  0xec   : > { %14647 = shalt.err (!%p14644_p10)
}
  0xed   : > { %s14648_s20 = scalar_lea.vmem %s15295_s0, 27648  ;;  %s14905_s15 = smov [#allocation8]  }
  0xee   : > { %p14649_p1 = scmp.ne.s32.totalorder %s15295_s0, %s14648_s20  ;;  %s14652_s19 = sshll.u32 %s14905_s15, 4  ;;  %s14653_s19 = int_to_ptr.vmem [resolvable:$false] %s14652_s19 }
  0xef   : > { %s14654_s22 = scalar_lea.vmem %s14653_s19, 55296  ;;  %p14655_p3 = scmp.lt.s32.totalorder %s15295_s0, %s14653_s19 }
  0xf0   : > { %p14650_p13 = pnand %p14649_p1, %p15034_p4  ;;  %p14656_p0 = scmp.lt.s32.totalorder %s14654_s22, %s14648_s20 }
  0xf2   : > { %p14651_p6 = pneg %p14650_p13  ;;  %p14657_p2 = por %p14656_p0, %p14655_p3 }
  0xf4   : > { %p14658_p8 = pnand %p14657_p2, %p14651_p6 }
  0xf6   : > { %14661 = shalt.err (!%p14658_p8)
}
  0xf7   : > { %s14906_s2 = smov 576   ;;  %s14907_s14 = smov 36  }
  0xf8   : > { %s17639_s24 = scalar_lea.sflag [#allocation7], %s15054_s17  ;;  %s12959_s18 = smul.u32 9216, %s14892_s21 }
  0xf9   : > { %12986 = dma.hbm_to_vmem [thread:$0]  (%p15034_p4), %s15293_s26, 27648, %s15295_s0, %s17639_s24, %s14906_s2, %s14906_s2, %s14907_s14  }
  0xfa   : > { %s558_s23 = scalar_lea.vmem [#allocation11], %s12958_s25  ;;  %s15327_s22 = scalar_lea.hbm %s17586_s5, %s12959_s18 }
  0xfb   : > { %s565_s15 = sshll.u32 %s558_s23, 4  ;;  %s14662_s4 = scalar_lea.hbm %s15327_s22, 9216  ;;  %s15329_s15 = int_to_ptr.vmem [resolvable:$true] %s565_s15 }
  0xfc   : > { %p14663_p5 = scmp.ne.s32.totalorder %s15327_s22, %s14662_s4  ;;  %s14666_s25 = scalar_lea.hbm %s17586_s5, 110592 }
  0xfd   : > { %p14667_p12 = scmp.lt.u32.totalorder %s15327_s22, %s17586_s5  ;;  %p14668_p11 = scmp.lt.u32.totalorder %s14666_s25, %s14662_s4 }
  0xfe   : > { %p14664_p7 = pnand %p14663_p5, %p15034_p4  ;;  %p14670_p1 = scmp.lt.u32.totalorder %s14662_s4, %s15327_s22 }
  0xff   : > { %p14669_p10 = por %p14668_p11, %p14667_p12 }
 0x100   : > { %p14665_p9 = pneg %p14664_p7 }
 0x101   : > { %p14671_p13 = por %p14670_p1, %p14669_p10 }
 0x103   : > { %p14672_p6 = pnand %p14671_p13, %p14665_p9 }
 0x105   : > { %14675 = shalt.err (!%p14672_p6)
}
 0x106   : > { %s14676_s24 = scalar_lea.vmem %s15329_s15, 9216  ;;  %s14908_s18 = smov [#allocation11]  }
 0x107   : > { %p14677_p3 = scmp.ne.s32.totalorder %s15329_s15, %s14676_s24  ;;  %s14680_s23 = sshll.u32 %s14908_s18, 4  ;;  %s14681_s23 = int_to_ptr.vmem [resolvable:$false] %s14680_s23 }
 0x108   : > { %s14682_s20 = scalar_lea.vmem %s14681_s23, 18432  ;;  %p14683_p8 = scmp.lt.s32.totalorder %s15329_s15, %s14681_s23 }
 0x109   : > { %p14678_p0 = pnand %p14677_p3, %p15034_p4  ;;  %p14684_p5 = scmp.lt.s32.totalorder %s14682_s20, %s14676_s24 }
 0x10b   : > { %p14679_p2 = pneg %p14678_p0  ;;  %p14685_p7 = por %p14684_p5, %p14683_p8 }
 0x10d   : > { %p14686_p12 = pnand %p14685_p7, %p14679_p2 }
 0x10f   : > { %14689 = shalt.err (!%p14686_p12)
}
 0x110   : > { %s17640_s4 = smov 192   ;;  %s17641_s19 = scalar_lea.sflag [#allocation10], %s15054_s17 }
 0x111   : > { %12988 = dma.hbm_to_vmem [thread:$0]  (%p15034_p4), %s15327_s22, 9216, %s15329_s15, %s17641_s19, %s17640_s4, %s17640_s4, %s14903_s28  }
 0x112   : > { %s15361_s25 = scalar_lea.hbm %s17588_s7, %s15048_s30  ;;  %s598_s2 = scalar_lea.vmem [#allocation14], %s15051_s16 }
 0x113   : > { %s606_s14 = sshll.u32 %s598_s2, 4  ;;  %s14690_s24 = scalar_lea.hbm %s15361_s25, 48  ;;  %s607_s14 = int_to_ptr.vmem [resolvable:$true] %s606_s14 }
 0x114   : > { %p14691_p9 = scmp.ne.s32.totalorder %s15361_s25, %s14690_s24  ;;  %s14694_s28 = scalar_lea.hbm %s17588_s7, 576 }
 0x115   : > { %p14695_p1 = scmp.lt.u32.totalorder %s15361_s25, %s17588_s7  ;;  %p14696_p13 = scmp.lt.u32.totalorder %s14694_s28, %s14690_s24 }
 0x116   : > { %p14692_p11 = pnand %p14691_p9, %p15034_p4  ;;  %p14698_p3 = scmp.lt.u32.totalorder %s14690_s24, %s15361_s25 }
 0x117   : > { %p14697_p6 = por %p14696_p13, %p14695_p1 }
 0x118   : > { %p14693_p10 = pneg %p14692_p11 }
 0x119   : > { %p14699_p0 = por %p14698_p3, %p14697_p6 }
 0x11b   : > { %p14700_p2 = pnand %p14699_p0, %p14693_p10 }
 0x11d   : > { %14703 = shalt.err (!%p14700_p2)
}
 0x11e   : > { %s14704_s20 = scalar_lea.vmem %s607_s14, 48  ;;  %s14909_s4 = smov [#allocation14]  }
 0x11f   : > { %p14705_p8 = scmp.ne.s32.totalorder %s607_s14, %s14704_s20  ;;  %s14708_s19 = sshll.u32 %s14909_s4, 4  ;;  %s14709_s19 = int_to_ptr.vmem [resolvable:$false] %s14708_s19 }
 0x120   : > { %s14710_s0 = scalar_lea.vmem %s14709_s19, 96  ;;  %p14711_p12 = scmp.lt.s32.totalorder %s607_s14, %s14709_s19 }
 0x121   : > { %p14706_p5 = pnand %p14705_p8, %p15034_p4  ;;  %p14712_p9 = scmp.lt.s32.totalorder %s14710_s0, %s14704_s20 }
 0x123   : > { %p14707_p7 = pneg %p14706_p5  ;;  %p14713_p11 = por %p14712_p9, %p14711_p12 }
 0x125   : > { %p14714_p1 = pnand %p14713_p11, %p14707_p7 }
 0x127   : > { %14717 = shalt.err (!%p14714_p1)
}
 0x128   : > { %s17642_s26 = scalar_lea.sflag [#allocation13], %s15054_s17  ;;  %s15387_s18 = scalar_lea.hbm %s17590_s9, %s15048_s30 }
 0x129   : > { %12990 = dma.hbm_to_vmem [thread:$0]  (%p15034_p4), %s15361_s25, 48, %s607_s14, %s17642_s26  }
 0x12a   : > { %s636_s23 = scalar_lea.vmem [#allocation17], %s15051_s16  ;;  %s12970_s15 = smul.u32 12, %s15045_s29 }
 0x12b   : > { %s644_s28 = sshll.u32 %s636_s23, 4  ;;  %s14718_s22 = scalar_lea.hbm %s15387_s18, 48  ;;  %s645_s28 = int_to_ptr.vmem [resolvable:$true] %s644_s28 }
 0x12c   : > { %p14719_p10 = scmp.ne.s32.totalorder %s15387_s18, %s14718_s22  ;;  %s14722_s14 = scalar_lea.hbm %s17590_s9, 576 }
 0x12d   : > { %p14723_p3 = scmp.lt.u32.totalorder %s15387_s18, %s17590_s9  ;;  %p14724_p0 = scmp.lt.u32.totalorder %s14722_s14, %s14718_s22 }
 0x12e   : > { %p14720_p13 = pnand %p14719_p10, %p15034_p4  ;;  %p14726_p8 = scmp.lt.u32.totalorder %s14718_s22, %s15387_s18 }
 0x12f   : > { %p14725_p2 = por %p14724_p0, %p14723_p3 }
 0x130   : > { %p14721_p6 = pneg %p14720_p13 }
 0x131   : > { %p14727_p5 = por %p14726_p8, %p14725_p2 }
 0x133   : > { %p14728_p7 = pnand %p14727_p5, %p14721_p6 }
 0x135   : > { %14731 = shalt.err (!%p14728_p7)
}
 0x136   : > { %s14732_s0 = scalar_lea.vmem %s645_s28, 48  ;;  %s14910_s26 = smov [#allocation17]  }
 0x137   : > { %p14733_p12 = scmp.ne.s32.totalorder %s645_s28, %s14732_s0  ;;  %s14736_s2 = sshll.u32 %s14910_s26, 4  ;;  %s14737_s2 = int_to_ptr.vmem [resolvable:$false] %s14736_s2 }
 0x138   : > { %s14738_s24 = scalar_lea.vmem %s14737_s2, 96  ;;  %p14739_p1 = scmp.lt.s32.totalorder %s645_s28, %s14737_s2 }
 0x139   : > { %p14734_p9 = pnand %p14733_p12, %p15034_p4  ;;  %p14740_p10 = scmp.lt.s32.totalorder %s14738_s24, %s14732_s0 }
 0x13b   : > { %p14735_p11 = pneg %p14734_p9  ;;  %p14741_p13 = por %p14740_p10, %p14739_p1 }
 0x13d   : > { %p14742_p0 = pnand %p14741_p13, %p14735_p11 }
 0x13f   : > { %14745 = shalt.err (!%p14742_p0)
}
 0x140   : > { %s17643_s23 = scalar_lea.sflag [#allocation16], %s15054_s17  ;;  %s12971_s22 = smul.u32 192, %s14892_s21 }
 0x141   : > { %12992 = dma.hbm_to_vmem [thread:$0]  (%p15034_p4), %s15387_s18, 48, %s645_s28, %s17643_s23  }
 0x142   : > { %s676_s20 = scalar_lea.vmem [#allocation20], %s12970_s15  ;;  %s682_s19 = scalar_lea.hbm %s17592_s11, %s12971_s22 }
 0x143   : > { %s684_s25 = sshll.u32 %s676_s20, 4  ;;  %s14746_s0 = scalar_lea.hbm %s682_s19, 192  ;;  %s685_s25 = int_to_ptr.vmem [resolvable:$true] %s684_s25 }
 0x144   : > { %p14747_p6 = scmp.ne.s32.totalorder %s682_s19, %s14746_s0  ;;  %s14750_s24 = scalar_lea.hbm %s17592_s11, 2304 }
 0x145   : > { %p14751_p8 = scmp.lt.u32.totalorder %s682_s19, %s17592_s11  ;;  %p14752_p5 = scmp.lt.u32.totalorder %s14750_s24, %s14746_s0 }
 0x146   : > { %p14748_p3 = pnand %p14747_p6, %p15034_p4  ;;  %p14754_p12 = scmp.lt.u32.totalorder %s14746_s0, %s682_s19 }
 0x147   : > { %p14753_p7 = por %p14752_p5, %p14751_p8 }
 0x148   : > { %p14749_p2 = pneg %p14748_p3 }
 0x149   : > { %p14755_p9 = por %p14754_p12, %p14753_p7 }
 0x14b   : > { %p14756_p11 = pnand %p14755_p9, %p14749_p2 }
 0x14d   : > { %14759 = shalt.err (!%p14756_p11)
}
 0x14e   : > { %s14760_s18 = scalar_lea.vmem %s685_s25, 192  ;;  %s14911_s28 = smov [#allocation20]  }
 0x14f   : > { %p14761_p1 = scmp.ne.s32.totalorder %s685_s25, %s14760_s18  ;;  %s14764_s15 = sshll.u32 %s14911_s28, 4  ;;  %s14765_s15 = int_to_ptr.vmem [resolvable:$false] %s14764_s15 }
 0x150   : > { %s14766_s23 = scalar_lea.vmem %s14765_s15, 384  ;;  %p14767_p0 = scmp.lt.s32.totalorder %s685_s25, %s14765_s15 }
 0x151   : > { %p14762_p10 = pnand %p14761_p1, %p15034_p4  ;;  %p14768_p6 = scmp.lt.s32.totalorder %s14766_s23, %s14760_s18 }
 0x153   : > { %p14763_p13 = pneg %p14762_p10  ;;  %p14769_p3 = por %p14768_p6, %p14767_p0 }
 0x155   : > { %p14770_p5 = pnand %p14769_p3, %p14763_p13 }
 0x157   : > { %14773 = shalt.err (!%p14770_p5)
}
 0x158   : > { %s17644_s1 = scalar_lea.sflag [#allocation19], %s15054_s17  ;;  %s15432_s20 = scalar_lea.hbm %s17594_s13, %s15048_s30 }
 0x159   : > { %12994 = dma.hbm_to_vmem [thread:$0]  (%p15034_p4), %s682_s19, 192, %s685_s25, %s17644_s1  }
 0x15a   : > { %s716_s14 = scalar_lea.vmem [#allocation23], %s15051_s16  ;;  %s14774_s0 = scalar_lea.hbm %s15432_s20, 48 }
 0x15b   : > { %s724_s4 = sshll.u32 %s716_s14, 4  ;;  %p14775_p2 = scmp.ne.s32.totalorder %s15432_s20, %s14774_s0  ;;  %s725_s4 = int_to_ptr.vmem [resolvable:$true] %s724_s4 }
 0x15c   : > { %s14778_s25 = scalar_lea.hbm %s17594_s13, 576  ;;  %p14779_p12 = scmp.lt.u32.totalorder %s15432_s20, %s17594_s13 }
 0x15d   : > { %p14776_p8 = pnand %p14775_p2, %p15034_p4  ;;  %p14780_p9 = scmp.lt.u32.totalorder %s14778_s25, %s14774_s0 }
 0x15e   : > { %p14782_p1 = scmp.lt.u32.totalorder %s14774_s0, %s15432_s20 }
 0x15f   : > { %p14777_p7 = pneg %p14776_p8  ;;  %p14781_p11 = por %p14780_p9, %p14779_p12 }
 0x161   : > { %p14783_p10 = por %p14782_p1, %p14781_p11 }
 0x163   : > { %p14784_p13 = pnand %p14783_p10, %p14777_p7 }
 0x165   : > { %14787 = shalt.err (!%p14784_p13)
}
 0x166   : > { %s14788_s18 = scalar_lea.vmem %s725_s4, 48  ;;  %s14912_s28 = smov [#allocation23]  }
 0x167   : > { %p14789_p0 = scmp.ne.s32.totalorder %s725_s4, %s14788_s18  ;;  %s14792_s15 = sshll.u32 %s14912_s28, 4  ;;  %s14793_s15 = int_to_ptr.vmem [resolvable:$false] %s14792_s15 }
 0x168   : > { %s14794_s23 = scalar_lea.vmem %s14793_s15, 96  ;;  %p14795_p5 = scmp.lt.s32.totalorder %s725_s4, %s14793_s15 }
 0x169   : > { %p14790_p6 = pnand %p14789_p0, %p15034_p4  ;;  %p14796_p2 = scmp.lt.s32.totalorder %s14794_s23, %s14788_s18 }
 0x16b   : > { %p14791_p3 = pneg %p14790_p6  ;;  %p14797_p8 = por %p14796_p2, %p14795_p5 }
 0x16d   : > { %p14798_p9 = pnand %p14797_p8, %p14791_p3 }
 0x16f   : > { %14801 = shalt.err (!%p14798_p9)
}
 0x170   : > { %s17645_s1 = scalar_lea.sflag [#allocation22], %s15054_s17  ;;  %s17646_s14 = sld [smem:[#allocation45_spill]] }
 0x171   : > { %12996 = dma.hbm_to_vmem [thread:$0]  (%p15034_p4), %s15432_s20, 48, %s725_s4, %s17645_s1  }
 0x172   : > { %s735_s26 = scalar_lea.vmem [#allocation24], %s15051_s16  ;;  %s732_s25 = scalar_lea.sflag [#allocation25], %s15045_s29 }
 0x173   : > { %s743_s2 = sshll.u32 %s735_s26, 4  ;;  %s744_s2 = int_to_ptr.vmem [resolvable:$true] %s743_s2 }
 0x176   : > { %s15458_s0 = scalar_lea.hbm %s17646_s14, %s15048_s30  ;;  %s14806_s4 = scalar_lea.hbm %s17646_s14, 576 }
 0x177   : > { %s14802_s17 = scalar_lea.hbm %s15458_s0, 48  ;;  %p14807_p1 = scmp.lt.u32.totalorder %s15458_s0, %s17646_s14 }
 0x178   : > { %p14803_p7 = scmp.ne.s32.totalorder %s15458_s0, %s14802_s17  ;;  %p14808_p10 = scmp.lt.u32.totalorder %s14806_s4, %s14802_s17 }
 0x179   : > { %p14810_p0 = scmp.lt.u32.totalorder %s14802_s17, %s15458_s0 }
 0x17a   : > { %p14804_p12 = pnand %p14803_p7, %p15034_p4  ;;  %p14809_p13 = por %p14808_p10, %p14807_p1 }
 0x17c   : > { %p14805_p11 = pneg %p14804_p12  ;;  %p14811_p6 = por %p14810_p0, %p14809_p13 }
 0x17e   : > { %p14812_p3 = pnand %p14811_p6, %p14805_p11 }
 0x180   : > { %14815 = shalt.err (!%p14812_p3)
}
 0x181   : > { %s14816_s29 = scalar_lea.vmem %s744_s2, 48  ;;  %s14913_s16 = smov [#allocation24]  }
 0x182   : > { %p14817_p5 = scmp.ne.s32.totalorder %s744_s2, %s14816_s29  ;;  %s14820_s18 = sshll.u32 %s14913_s16, 4  ;;  %s14821_s18 = int_to_ptr.vmem [resolvable:$false] %s14820_s18 }
 0x183   : > { %s14822_s28 = scalar_lea.vmem %s14821_s18, 96  ;;  %p14823_p9 = scmp.lt.s32.totalorder %s744_s2, %s14821_s18 }
 0x184   : > { %p14818_p2 = pnand %p14817_p5, %p15034_p4  ;;  %p14824_p7 = scmp.lt.s32.totalorder %s14822_s28, %s14816_s29 }
 0x186   : > { %p14819_p8 = pneg %p14818_p2  ;;  %p14825_p12 = por %p14824_p7, %p14823_p9 }
 0x188   : > { %p14826_p1 = pnand %p14825_p12, %p14819_p8 }
 0x18a   : > { %14829 = shalt.err (!%p14826_p1)
}
 0x18b   : > { %12997 = dma.hbm_to_vmem [thread:$0]  (%p15034_p4), %s15458_s0, 48, %s744_s2, %s732_s25  }
 0x18c PF: > { %p11530_p11 = scmp.ge.s32.totalorder %s14892_s21, 1  ;;  %p748_p10 = scmp.lt.s32.totalorder %s14892_s21, 13 }
 0x18e   : > { %p749_p13 = pnand %p11530_p11, %p748_p10 }
 0x18f   : > { %s17647_s15 = sld [smem:[#allocation34_spill]] (!%p749_p13)  ;;  %s17648_s23 = sld [smem:[#allocation39_spill]] (!%p749_p13) }
 0x190   : > { %752 = sbr.rel (%p749_p13) target bundleno = 5636 (0x1604), region = 80 }
 0x195   : > { %s15482_s1 = sand.u32 (!%p749_p13), 1, %s17647_s15   ;;  %p17649_p0 = scmp.ne.s32.totalorder (!%p749_p13), %s17648_s23, 0 }
 0x196   : > { %s15485_s3 = smul.u32 (!%p749_p13), 3, %s15482_s1  ;;  %s755_s22 = scalar_lea.sflag (!%p749_p13), [#allocation5], %s15482_s1 }
 0x198   : > { %s758_s27 = scalar_lea.vmem [#allocation4], %s15485_s3 }
 0x199   : > { %14847 = dma.done.wait (%p17649_p0), %s755_s22, 48  }
 0x19a   : > { %14849 = vsyncadd (%p17649_p0), %s755_s22, 4294967248  ;;  %s17650_s0 = sld [smem:[#allocation36_spill]] }
 0x1a0   : > { %s15494_s21 = sand.u32 1, %s17650_s0  }
 0x1a1   : > { %s764_s26 = scalar_lea.sflag [#allocation7], %s15494_s21 }
 0x1a2   : > { %14851 = dma.done.wait (%p17649_p0), %s764_s26, 27696  }
 0x1a3   : > { %14853 = vsyncadd (%p17649_p0), %s764_s26, 4294939600  ;;  %s12979_s25 = smul.u32 1728, %s15482_s1  ;;  %s782_s20 = scalar_lea.sflag [#allocation10], %s15494_s21 }
 0x1a4   : > { %s12980_s17 = smul.u32 9, %s15482_s1 }
 0x1a5   : > { %s15504_s19 = scalar_lea.vmem [#allocation8], %s12979_s25 }
 0x1a6   : > { %s15507_s4 = scalar_lea.vmem [#allocation9], %s12980_s17 }
 0x1a7   : > { %14855 = dma.done.wait (%p17649_p0), %s782_s20, 9360  }
 0x1a8   : > { %14857 = vsyncadd (%p17649_p0), %s782_s20, 4294957936  ;;  %s12981_s24 = smul.u32 576, %s15482_s1  ;;  %s800_s29 = scalar_lea.sflag [#allocation13], %s15494_s21 }
 0x1aa   : > { %s15514_s30 = scalar_lea.vmem [#allocation11], %s12981_s24 }
 0x1ab   : > { %14859 = dma.done.wait (%p17649_p0), %s800_s29, 96  }
 0x1ac   : > { %14861 = vsyncadd (%p17649_p0), %s800_s29, 4294967200  ;;  %s818_s28 = scalar_lea.sflag [#allocation16], %s15494_s21 }
 0x1ad   : > { %14863 = dma.done.wait (%p17649_p0), %s818_s28, 96  }
 0x1ae   : > { %14865 = vsyncadd (%p17649_p0), %s818_s28, 4294967200  ;;  %s12982_s22 = smul.u32 2304, %s15482_s1  ;;  %s836_s25 = scalar_lea.sflag [#allocation19], %s15494_s21 }
 0x1b0   : > { %s15532_s17 = scalar_lea.vmem [#allocation18], %s12982_s22 }
 0x1b1   : > { %14867 = dma.done.wait (%p17649_p0), %s836_s25, 37056  }
 0x1b2   : > { %14869 = vsyncadd (%p17649_p0), %s836_s25, 4294930240  ;;  %s12983_s20 = smul.u32 12, %s15482_s1  ;;  %s854_s29 = scalar_lea.sflag [#allocation22], %s15494_s21 }
 0x1b3   : > { %s15542_s28 = scalar_lea.vmem [#allocation21], %s12982_s22 }
 0x1b4   : > { %s15539_s24 = scalar_lea.vmem [#allocation20], %s12983_s20 }
 0x1b5   : > { %14871 = dma.done.wait (%p17649_p0), %s854_s29, 36912  }
 0x1b6   : > { %14873 = vsyncadd (%p17649_p0), %s854_s29, 4294930384  ;;  %s872_s25 = scalar_lea.sflag [#allocation25], %s15482_s1  ;;  %s875_s15 = scalar_lea.vmem [#allocation24], %s15485_s3 }
 0x1b7   : > { %14875 = dma.done.wait (%p17649_p0), %s872_s25, 48  }
 0x1b8   : > { %14877 = vsyncadd (%p17649_p0), %s872_s25, 4294967248  ;;  %p11531_p4 = scmp.ne.s32.totalorder %s17650_s0, 0 }
 0x1b9   : > { %s17651_s20 = sld [smem:[#allocation40_spill]] (!%p11531_p4) }
 0x1ba   : > { %986 = sbr.rel (%p11531_p4) target bundleno = 452 (0x1c4), region = 140 }
 0x1bf   : > { %s17652_s16 = smov (!%p11531_p4), %s17651_s20  ;;  %v987_v0 = vld [vmem:[%s17651_s20] sm:$0xff] (!%p11531_p4) }
 0x1c0   : > { %v988_v1 = vld [vmem:[%s17652_s16 + $0x8] sm:$0xff] (!%p11531_p4)  ;;  %v989_v2 = vld [vmem:[%s17652_s16 + $0x10] sm:$0xff] (!%p11531_p4)  ;;  %993 = vst [vmem:[#allocation2] sm:$0xff] (!%p11531_p4), %v987_v0  ;;  %v990_v3 = vld [vmem:[%s17652_s16 + $0x18] sm:$0xff] (!%p11531_p4) }
 0x1c1   : > { %994 = vst [vmem:[#allocation2 + $0x8] sm:$0xff] %v988_v1  ;;  %995 = vst [vmem:[#allocation2 + $0x10] sm:$0xff] %v989_v2  ;;  %v991_v4 = vld [vmem:[%s17652_s16 + $0x20] sm:$0xff]  ;;  %v992_v5 = vld [vmem:[%s17652_s16 + $0x28] sm:$0xff] }
 0x1c2   : > { %996 = vst [vmem:[#allocation2 + $0x18] sm:$0xff] %v990_v3  ;;  %997 = vst [vmem:[#allocation2 + $0x20] sm:$0xff] %v991_v4 }
 0x1c3   : > { %998 = vst [vmem:[#allocation2 + $0x28] sm:$0xff] %v992_v5 }
 0x1c4 PF: > { %v13056_v16 = vld [vmem:[%s15504_s19 + $0x4] ss:$36 sps:$4 sm:$0xff]   ;;  %v13059_v18 = vld [vmem:[%s15504_s19 + $0x4c] ss:$36 sps:$4 sm:$0xff]   ;;  %v13062_v20 = vld [vmem:[%s15504_s19 + $0x94] ss:$36 sps:$4 sm:$0xff]  }
 0x1c5   : > { %v13058_v17 = vld [vmem:[%s15504_s19] ss:$36 sps:$4 sm:$0xff]   ;;  %2490 = vmatprep.subr.bf16.mxu0 %v13056_v16  ;;  %v13061_v19 = vld [vmem:[%s15504_s19 + $0x48] ss:$36 sps:$4 sm:$0xff]   ;;  %v13064_v22 = vld [vmem:[%s15504_s19 + $0x90] ss:$36 sps:$4 sm:$0xff]  }
 0x1c6   : > { %2491 = vmatpush1.bf16.msra.mxu0 %v13058_v17  ;;  %v13080_v21 = vld [vmem:[%s15504_s19 + $0x48c] ss:$36 sps:$4 sm:$0xff]   ;;  %v13086_v24 = vld [vmem:[%s15504_s19 + $0x4d4] ss:$36 sps:$4 sm:$0xff]   ;;  %v13065_v25 = vld [vmem:[%s15504_s19 + $0xdc] ss:$36 sps:$4 sm:$0xff]  }
 0x1c7   : > { %2492 = vmatprep.subr.bf16.mxu0 %v13059_v18  ;;  %v13084_v23 = vld [vmem:[%s15504_s19 + $0x488] ss:$36 sps:$4 sm:$0xff]   ;;  %2619 = vmatprep.subr.bf16.mxu1 %v13080_v21  ;;  %v13090_v26 = vld [vmem:[%s15504_s19 + $0x4d0] ss:$36 sps:$4 sm:$0xff]   ;;  %v13067_v27 = vld [vmem:[%s15504_s19 + $0xd8] ss:$36 sps:$4 sm:$0xff]  }
 0x1c8   : > { %2620 = vmatpush1.bf16.msra.mxu1 %v13084_v23  ;;  %v13068_v28 = vld [vmem:[%s15504_s19 + $0x124] ss:$36 sps:$4 sm:$0xff]   ;;  %v13071_v30 = vld [vmem:[%s15504_s19 + $0x16c] ss:$36 sps:$4 sm:$0xff]   ;;  %v13074_v32 = vld [vmem:[%s15504_s19 + $0x1b4] ss:$36 sps:$4 sm:$0xff]  }
 0x1c9   : > { %v15574_v10 = vld [vmem:[#allocation2 + $0x18] sm:$0xff]  ;;  %v15576_v11 = vld [vmem:[#allocation2 + $0x20] sm:$0xff]  ;;  %2621 = vmatprep.subr.bf16.mxu1 %v13086_v24  ;;  %v13070_v29 = vld [vmem:[%s15504_s19 + $0x120] ss:$36 sps:$4 sm:$0xff]   ;;  %v14914_v17 = vmov 0   ;;  %s17653_s2 = scalar_lea.vmem [#allocation6], %s15485_s3 }
 0x1ca   : > { %v999_v6 = vld [vmem:[#allocation2] sm:$0xff]  ;;  %v15578_v12 = vld [vmem:[#allocation2 + $0x28] sm:$0xff]  ;;  %v1011_v13 = vadd.f32 %v15576_v11, %v15574_v10  ;;  %2493 = vmatpush1.bf16.msra.mxu0 %v13061_v19  ;;  %v13073_v31 = vld [vmem:[%s15504_s19 + $0x168] ss:$36 sps:$4 sm:$0xff]   ;;  %2651 = vmatprep.mubr.bf16.mxu1 %v14914_v17  ;;  %vm14916_vm0 = vmmov 0   ;;  %vm2920_vm1 = vcmask 523264  }
 0x1cb   : > { %v1000_v7 = vld [vmem:[#allocation2 + $0x8] sm:$0xff]  ;;  %v1001_v8 = vld [vmem:[#allocation2 + $0x10] sm:$0xff]  ;;  %2494 = vmatprep.subr.bf16.mxu0 %v13062_v20  ;;  %v13076_v33 = vld [vmem:[%s15504_s19 + $0x1b0] ss:$36 sps:$4 sm:$0xff]   ;;  %vm2999_vm3 = vcmask 64512   ;;  %vm3257_vm4 = vcmask 1048064  }
 0x1cc   : > { %v1007_v9 = vadd.f32 %v1000_v7, %v999_v6  ;;  %v1012_v15 = vadd.f32 %v1011_v13, %v15578_v12  ;;  %2622 = vmatpush1.bf16.msra.mxu1 %v13090_v26  ;;  %v13077_v34 = vld [vmem:[%s15504_s19 + $0x1fc] ss:$36 sps:$4 sm:$0xff]   ;;  %v13082_v36 = vld [vmem:[%s15504_s19 + $0x244] ss:$36 sps:$4 sm:$0xff]   ;;  %v13088_v38 = vld [vmem:[%s15504_s19 + $0x28c] ss:$36 sps:$4 sm:$0xff]   ;;  %v1051_v26 = vlaneseq }
 0x1cd   : > { %v13079_v35 = vld [vmem:[%s15504_s19 + $0x1f8] ss:$36 sps:$4 sm:$0xff]   ;;  %v13085_v37 = vld [vmem:[%s15504_s19 + $0x240] ss:$36 sps:$4 sm:$0xff]   ;;  %v13091_v59 = vld [vmem:[%s15504_s19 + $0x288] ss:$36 sps:$4 sm:$0xff]  }
 0x1ce   : > { %v1008_v14 = vadd.f32 %v1007_v9, %v1001_v8  ;;  %2495 = vmatpush1.bf16.msra.mxu0 %v13064_v22  ;;  %v13092_v60 = vld [vmem:[%s15504_s19 + $0x51c] ss:$36 sps:$4 sm:$0xff]   ;;  %v13094_v61 = vld [vmem:[%s15504_s19 + $0x2d4] ss:$36 sps:$4 sm:$0xff]   ;;  %v13098_v0 = vld [vmem:[%s15504_s19 + $0x564] ss:$36 sps:$4 sm:$0xff]  }
 0x1cf   : > { %2496 = vmatprep.subr.bf16.mxu0 %v13065_v25  ;;  %v13096_v62 = vld [vmem:[%s15504_s19 + $0x518] ss:$36 sps:$4 sm:$0xff]   ;;  %2623 = vmatprep.subr.bf16.mxu1 %v13092_v60  ;;  %v13097_v63 = vld [vmem:[%s15504_s19 + $0x2d0] ss:$36 sps:$4 sm:$0xff]   ;;  %v13102_v2 = vld [vmem:[%s15504_s19 + $0x560] ss:$36 sps:$4 sm:$0xff]  }
 0x1d0   : > { %1009 = vadd.xlane.f32.xlu0 %v1008_v14  ;;  %2624 = vmatpush1.bf16.msra.mxu1 %v13096_v62  ;;  %v13100_v1 = vld [vmem:[%s15504_s19 + $0x31c] ss:$36 sps:$4 sm:$0xff]   ;;  %v13104_v4 = vld [vmem:[%s15504_s19 + $0x5ac] ss:$36 sps:$4 sm:$0xff]   ;;  %v13106_v5 = vld [vmem:[%s15504_s19 + $0x364] ss:$36 sps:$4 sm:$0xff]  }
 0x1d1   : > { %2625 = vmatprep.subr.bf16.mxu1 %v13098_v0  ;;  %v13103_v3 = vld [vmem:[%s15504_s19 + $0x318] ss:$36 sps:$4 sm:$0xff]   ;;  %v13112_v9 = vld [vmem:[%s15504_s19 + $0x3ac] ss:$36 sps:$4 sm:$0xff]   ;;  %v13122_v16 = vld [vmem:[%s15504_s19 + $0x684] ss:$36 sps:$4 sm:$0xff]  }
 0x1d2   : > { %2497 = vmatpush1.bf16.msra.mxu0 %v13067_v27  ;;  %v13118_v13 = vld [vmem:[%s15504_s19 + $0x3f4] ss:$36 sps:$4 sm:$0xff]   ;;  %v13124_v18 = vld [vmem:[%s15504_s19 + $0x43c] ss:$36 sps:$4 sm:$0xff]   ;;  %v13133_v22 = vld [vmem:[%s15504_s19 + $0x484] ss:$36 sps:$4 sm:$0xff]  }
 0x1d3   : > { %2498 = vmatprep.subr.bf16.mxu0 %v13068_v28  ;;  %v13120_v14 = vld [vmem:[%s15504_s19 + $0x638] ss:$36 sps:$4 sm:$0xff]   ;;  %v13126_v19 = vld [vmem:[%s15504_s19 + $0x680] ss:$36 sps:$4 sm:$0xff]   ;;  %s17657_s18 = scalar_lea.vmem [#allocation17], %s15485_s3  ;;  %s17661_s26 = scalar_lea.vmem [#allocation23], %s15485_s3 }
 0x1d4   : > { %1013 = vadd.xlane.f32.xlu0 %v1012_v15  ;;  %2626 = vmatpush1.bf16.msra.mxu1 %v13102_v2  ;;  %v13121_v15 = vld [vmem:[%s15504_s19 + $0x3f0] ss:$36 sps:$4 sm:$0xff]   ;;  %v13127_v20 = vld [vmem:[%s15504_s19 + $0x438] ss:$36 sps:$4 sm:$0xff]  }
 0x1d5   : > { %2627 = vmatprep.subr.bf16.mxu1 %v13104_v4  ;;  %v13130_v21 = vld [vmem:[%s15504_s19 + $0x1c] ss:$36 sps:$4 sm:$0xff]  }
 0x1d6   : > { %2499 = vmatpush1.bf16.msra.mxu0 %v13070_v29  ;;  %v13134_v4 = vld [vmem:[%s15504_s19 + $0x60] ss:$36 sps:$4 sm:$0xff]  }
 0x1d7   : > { %2500 = vmatprep.subr.bf16.mxu0 %v13071_v30  ;;  %v15662_v30 = vshrl.u32 %v1051_v26, 7 }
 0x1da   : > { %2501 = vmatpush1.bf16.msra.mxu0 %v13073_v31  ;;  %v1005_v31 = vld [vmem:[%s758_s27] sm:$0x7]  ;;  %s14918_s27 = smov 64  }
 0x1db   : > { %2502 = vmatprep.subr.bf16.mxu0 %v13074_v32  ;;  %v15667_v32 = vsub.s32 1, %v15662_v30 }
 0x1de   : > { %2503 = vmatpush1.bf16.msra.mxu0 %v13076_v33  ;;  %v15670_v33 = vsub.s32 2, %v15662_v30 }
 0x1df   : > { %2504 = vmatprep.subr.bf16.mxu0 %v13077_v34  ;;  %v15673_v34 = vsub.s32 0, %v15662_v30 }
 0x1e2   : > { %2505 = vmatpush1.bf16.msra.mxu0 %v13079_v35 }
 0x1e3   : > { %2506 = vmatprep.subr.bf16.mxu0 %v13082_v36  ;;  %v1006_v36 = vld [vmem:[%s17653_s2] sm:$0x7] }
 0x1e6   : > { %2507 = vmatpush1.bf16.msra.mxu0 %v13085_v37 }
 0x1e7   : > { %2508 = vmatprep.subr.bf16.mxu0 %v13088_v38  ;;  %v1058_v38 = vrot.slane %v1005_v31, %v15667_v32 }
 0x1ea   : > { %2509 = vmatpush1.bf16.msra.mxu0 %v13091_v59 }
 0x1eb   : > { %2510 = vmatprep.subr.bf16.mxu0 %v13094_v61 }
 0x1ee   : > { %2511 = vmatpush1.bf16.msra.mxu0 %v13097_v63 }
 0x1ef   : > { %2512 = vmatprep.subr.bf16.mxu0 %v13100_v1 }
 0x1f2   : > { %2513 = vmatpush1.bf16.msra.mxu0 %v13103_v3 }
 0x1f3   : > { %2514 = vmatprep.subr.bf16.mxu0 %v13106_v5  ;;  %v13139_v5 = vld [vmem:[%s15504_s19 + $0x4cc] ss:$36 sps:$4 sm:$0xff]  }
 0x25d   : > { %v1010_v39 = vpop.xlane.xlu0 %1009 }
 0x25e   : > { %v1016_v40 = vmul.f32 0.0026041667, %v1010_v39 }
 0x260   : > { %v15606_v41 = vsub.f32 %v999_v6, %v1016_v40  ;;  %v15608_v42 = vsub.f32 %v1000_v7, %v1016_v40  ;;  %v15610_v43 = vsub.f32 %v1001_v8, %v1016_v40  ;;  %v13108_v6 = vld [vmem:[%s15504_s19 + $0x5a8] ss:$36 sps:$4 sm:$0xff]   ;;  %v13109_v7 = vld [vmem:[%s15504_s19 + $0x360] ss:$36 sps:$4 sm:$0xff]   ;;  %v13110_v8 = vld [vmem:[%s15504_s19 + $0x5f4] ss:$36 sps:$4 sm:$0xff]   ;;  %v1062_v40 = vrot.slane %v1005_v31, %v15670_v33 }
 0x261   : > { %v1014_v44 = vpop.xlane.xlu0 %1013  ;;  %2628 = vmatpush1.bf16.msra.mxu1 %v13108_v6  ;;  %2515 = vmatpush1.bf16.msra.mxu0 %v13109_v7  ;;  %v13137_v6 = vld [vmem:[%s15504_s19 + $0x4c8] ss:$36 sps:$4 sm:$0xff]  }
 0x262   : > { %v1017_v45 = vmul.f32 0.0026041667, %v1014_v44  ;;  %v1024_v46 = vmul.f32 %v15606_v41, %v15606_v41  ;;  %v1025_v47 = vmul.f32 %v15608_v42, %v15608_v42  ;;  %v1026_v48 = vmul.f32 %v15610_v43, %v15610_v43  ;;  %2629 = vmatprep.subr.bf16.mxu1 %v13110_v8  ;;  %2516 = vmatprep.subr.bf16.mxu0 %v13112_v9  ;;  %v13142_v7 = vld [vmem:[%s15504_s19 + $0xac] ss:$36 sps:$4 sm:$0xff]   ;;  %v13145_v8 = vld [vmem:[%s15504_s19 + $0x514] ss:$36 sps:$4 sm:$0xff]  }
 0x263   : > { %v13140_v9 = vld [vmem:[%s15504_s19 + $0xa8] ss:$36 sps:$4 sm:$0xff]  }
 0x264   : > { %v15619_v49 = vsub.f32 %v15574_v10, %v1017_v45  ;;  %v15622_v50 = vsub.f32 %v15576_v11, %v1017_v45  ;;  %v15625_v51 = vsub.f32 %v15578_v12, %v1017_v45  ;;  %v1030_v52 = vadd.f32 %v1025_v47, %v1024_v46  ;;  %v13114_v10 = vld [vmem:[%s15504_s19 + $0x5f0] ss:$36 sps:$4 sm:$0xff]   ;;  %v13115_v11 = vld [vmem:[%s15504_s19 + $0x3a8] ss:$36 sps:$4 sm:$0xff]   ;;  %v13116_v12 = vld [vmem:[%s15504_s19 + $0x63c] ss:$36 sps:$4 sm:$0xff]  }
 0x265   : > { %2630 = vmatpush1.bf16.msra.mxu1 %v13114_v10  ;;  %2517 = vmatpush1.bf16.msra.mxu0 %v13115_v11  ;;  %v1054_v45 = vrot.slane %v1005_v31, %v15673_v34  ;;  %v1080_v47 = vrot.slane %v1006_v36, %v15667_v32  ;;  %v13143_v10 = vld [vmem:[%s15504_s19 + $0x510] ss:$36 sps:$4 sm:$0xff]   ;;  %v13175_v31 = vld [vmem:[%s15504_s19 + $0x67c] ss:$36 sps:$4 sm:$0xff]  }
 0x266   : > { %v1031_v53 = vadd.f32 %v1030_v52, %v1026_v48  ;;  %v1027_v54 = vmul.f32 %v15619_v49, %v15619_v49  ;;  %v1028_v55 = vmul.f32 %v15622_v50, %v15622_v50  ;;  %v1029_v56 = vmul.f32 %v15625_v51, %v15625_v51  ;;  %2631 = vmatprep.subr.bf16.mxu1 %v13116_v12  ;;  %v13148_v11 = vld [vmem:[%s15504_s19 + $0xf4] ss:$36 sps:$4 sm:$0xff]   ;;  %v13151_v12 = vld [vmem:[%s15504_s19 + $0x55c] ss:$36 sps:$4 sm:$0xff]  }
 0x267   : > { %2518 = vmatprep.subr.bf16.mxu0 %v13118_v13  ;;  %v1084_v48 = vrot.slane %v1006_v36, %v15670_v33  ;;  %v13146_v13 = vld [vmem:[%s15504_s19 + $0xf0] ss:$36 sps:$4 sm:$0xff]  }
 0x268   : > { %1032 = vadd.xlane.f32.xlu1 %v1031_v53  ;;  %v1034_v57 = vadd.f32 %v1028_v55, %v1027_v54 }
 0x269   : > { %2632 = vmatpush1.bf16.msra.mxu1 %v13120_v14  ;;  %2519 = vmatpush1.bf16.msra.mxu0 %v13121_v15  ;;  %v13149_v14 = vld [vmem:[%s15504_s19 + $0x558] ss:$36 sps:$4 sm:$0xff]  }
 0x26a   : > { %v1035_v58 = vadd.f32 %v1034_v57, %v1029_v56  ;;  %2633 = vmatprep.subr.bf16.mxu1 %v13122_v16  ;;  %2520 = vmatprep.subr.bf16.mxu0 %v13124_v18  ;;  %v13154_v15 = vld [vmem:[%s15504_s19 + $0x13c] ss:$36 sps:$4 sm:$0xff]   ;;  %v13157_v16 = vld [vmem:[%s15504_s19 + $0x5a4] ss:$36 sps:$4 sm:$0xff]  }
 0x26b   : > { %v13152_v18 = vld [vmem:[%s15504_s19 + $0x138] ss:$36 sps:$4 sm:$0xff]  }
 0x26c   : > { %1036 = vadd.xlane.f32.xlu1 %v1035_v58  ;;  %v13128_v58 = vld [vmem:[%s15504_s19 + $0x18] ss:$36 sps:$4 sm:$0xff]  }
 0x26d   : > { %2634 = vmatpush1.bf16.msra.mxu1 %v13126_v19  ;;  %2521 = vmatpush1.bf16.msra.mxu0 %v13127_v20  ;;  %v13155_v19 = vld [vmem:[%s15504_s19 + $0x5a0] ss:$36 sps:$4 sm:$0xff]  }
 0x26e   : > { %2748 = vmatprep.subr.bf16.mxu1 %v13130_v21  ;;  %2533 = vmatprep.subr.bf16.mxu0 %v13133_v22  ;;  %v13160_v20 = vld [vmem:[%s15504_s19 + $0x184] ss:$36 sps:$4 sm:$0xff]   ;;  %v13163_v21 = vld [vmem:[%s15504_s19 + $0x5ec] ss:$36 sps:$4 sm:$0xff]  }
 0x26f   : > { %v13158_v22 = vld [vmem:[%s15504_s19 + $0x180] ss:$36 sps:$4 sm:$0xff]  }
 0x2f5   : > { %v1033_v23 = vpop.xlane.xlu1 %1032 }
 0x2f6   : > { %v1038_v24 = vmul.f32 0.0026041667, %v1033_v23  ;;  %v13161_v23 = vld [vmem:[%s15504_s19 + $0x5e8] ss:$36 sps:$4 sm:$0xff]  }
 0x2f8   : > { %v1040_v25 = vadd.f32 1e-06, %v1038_v24  ;;  %v13166_v24 = vld [vmem:[%s15504_s19 + $0x1cc] ss:$36 sps:$4 sm:$0xff]  }
 0x2f9   : > { %v1037_v27 = vpop.xlane.xlu1 %1036 }
 0x2fa   : > { %14280 = vrsqrt.f32 %v1040_v25  ;;  %v1039_v28 = vmul.f32 0.0026041667, %v1037_v27  ;;  %v13169_v25 = vld [vmem:[%s15504_s19 + $0x634] ss:$36 sps:$4 sm:$0xff]   ;;  %v13164_v27 = vld [vmem:[%s15504_s19 + $0x1c8] ss:$36 sps:$4 sm:$0xff]  }
 0x2fc   : > { %v1041_v29 = vadd.f32 1e-06, %v1039_v28  ;;  %v13167_v28 = vld [vmem:[%s15504_s19 + $0x630] ss:$36 sps:$4 sm:$0xff]  }
 0x2fe   : > { %14282 = vrsqrt.f32 %v1041_v29  ;;  %v13172_v29 = vld [vmem:[%s15504_s19 + $0x214] ss:$36 sps:$4 sm:$0xff]  }
 0x304   : > { %v14281_v35 = vpop.eup %14280 }
 0x305   : > { %v1045_v37 = vmul.f32 %v14281_v35, %v15608_v42  ;;  %v1046_v39 = vmul.f32 %v14281_v35, %v15610_v43  ;;  %v1044_v44 = vmul.f32 %v14281_v35, %v15606_v41  ;;  %v1076_v41 = vrot.slane %v1006_v36, %v15673_v34  ;;  %v13170_v35 = vld [vmem:[%s15504_s19 + $0x210] ss:$36 sps:$4 sm:$0xff]   ;;  %v13173_v36 = vld [vmem:[%s15504_s19 + $0x678] ss:$36 sps:$4 sm:$0xff]  }
 0x307   : > { %v1067_v42 = vmul.f32 %v1058_v38, %v1045_v37  ;;  %v1068_v43 = vmul.f32 %v1062_v40, %v1046_v39  ;;  %v1066_v55 = vmul.f32 %v1054_v45, %v1044_v44  ;;  %v13178_v37 = vld [vmem:[%s15504_s19 + $0x25c] ss:$36 sps:$4 sm:$0xff]   ;;  %v13184_v44 = vld [vmem:[%s15504_s19 + $0x2a4] ss:$36 sps:$4 sm:$0xff]  }
 0x308   : > { %v14283_v46 = vpop.eup %14282  ;;  %v13176_v39 = vld [vmem:[%s15504_s19 + $0x258] ss:$36 sps:$4 sm:$0xff]  }
 0x309   : > { %v1048_v52 = vmul.f32 %v14283_v46, %v15622_v50  ;;  %v1049_v53 = vmul.f32 %v14283_v46, %v15625_v51  ;;  %v1047_v54 = vmul.f32 %v14283_v46, %v15619_v49  ;;  %v1089_v60 = vadd.f32 %v1080_v47, %v1067_v42  ;;  %v13131_v50 = vld [vmem:[%s15504_s19 + $0x480] ss:$36 sps:$4 sm:$0xff]   ;;  %v13187_v46 = vld [vmem:[%s15504_s19 + $0x54] ss:$36 sps:$4 sm:$0xff]   ;;  %v13188_v42 = vld [vmem:[%s15504_s19 + $0x2e8] ss:$36 sps:$4 sm:$0xff]  }
 0x30a   : > { %v1090_v62 = vadd.f32 %v1084_v48, %v1068_v43  ;;  %v1088_v51 = vadd.f32 %v1076_v41, %v1066_v55  ;;  %v13136_v49 = vld [vmem:[%s15504_s19 + $0x64] ss:$36 sps:$4 sm:$0xff]   ;;  %v13196_v43 = vld [vmem:[%s15504_s19 + $0x334] ss:$36 sps:$4 sm:$0xff]  }
 0x30b   : > { %v1070_v56 = vmul.f32 %v1058_v38, %v1048_v52  ;;  %v1071_v57 = vmul.f32 %v1062_v40, %v1049_v53  ;;  %v1069_v59 = vmul.f32 %v1054_v45, %v1047_v54  ;;  %v13181_v38 = vld [vmem:[%s15504_s19 + $0xc] ss:$36 sps:$4 sm:$0xff]   ;;  %v13182_v45 = vld [vmem:[%s15504_s19 + $0x2a0] ss:$36 sps:$4 sm:$0xff]   ;;  %v13191_v53 = vld [vmem:[%s15504_s19 + $0x98] ss:$36 sps:$4 sm:$0xff]  }
 0x30c   : > { %v13179_v40 = vld [vmem:[%s15504_s19 + $0x8] ss:$36 sps:$4 sm:$0xff]   ;;  %v13193_v52 = vld [vmem:[%s15504_s19 + $0x9c] ss:$36 sps:$4 sm:$0xff]   ;;  %v13194_v55 = vld [vmem:[%s15504_s19 + $0x330] ss:$36 sps:$4 sm:$0xff]  }
 0x30d   : > { %v1092_v61 = vadd.f32 %v1080_v47, %v1070_v56  ;;  %v1093_v63 = vadd.f32 %v1084_v48, %v1071_v57  ;;  %v1091_v0 = vadd.f32 %v1076_v41, %v1069_v59  ;;  %v13185_v47 = vld [vmem:[%s15504_s19 + $0x50] ss:$36 sps:$4 sm:$0xff]   ;;  %v13199_v54 = vld [vmem:[%s15504_s19 + $0xe4] ss:$36 sps:$4 sm:$0xff]   ;;  %v13202_v56 = vld [vmem:[%s15504_s19 + $0x37c] ss:$36 sps:$4 sm:$0xff]  }
 0x30e   : > { %v13190_v48 = vld [vmem:[%s15504_s19 + $0x2ec] ss:$36 sps:$4 sm:$0xff]   ;;  %v13197_v41 = vld [vmem:[%s15504_s19 + $0xe0] ss:$36 sps:$4 sm:$0xff]  }
 0x30f   : > { %v15692_v1 = vpack.c.bf16 %v1092_v61, %v1089_v60  ;;  %v15694_v2 = vpack.c.bf16 %v1093_v63, %v1090_v62  ;;  %v15696_v3 = vpack.c.bf16 %v1091_v0, %v1088_v51  ;;  %v13205_v57 = vld [vmem:[%s15504_s19 + $0x12c] ss:$36 sps:$4 sm:$0xff]   ;;  %v13208_v60 = vld [vmem:[%s15504_s19 + $0x3c4] ss:$36 sps:$4 sm:$0xff]   ;;  %v13211_v61 = vld [vmem:[%s15504_s19 + $0x174] ss:$36 sps:$4 sm:$0xff]  }
 0x310   : > { %v13203_v59 = vld [vmem:[%s15504_s19 + $0x128] ss:$36 sps:$4 sm:$0xff]   ;;  %v13209_v62 = vld [vmem:[%s15504_s19 + $0x170] ss:$36 sps:$4 sm:$0xff]   ;;  %v13217_v51 = vld [vmem:[%s15504_s19 + $0x1bc] ss:$36 sps:$4 sm:$0xff]  }
 0x311   : > { %2522 = vmatprep.mubr.bf16.mxu0 %v15692_v1  ;;  %2652 = vmatmul.mubr.bf16.vlgmr.msra.gmra.mrb[0].mxu1 %v15694_v2  ;;  %v13214_v63 = vld [vmem:[%s15504_s19 + $0x40c] ss:$36 sps:$4 sm:$0xff]  }
 0x312   : > { %2749 = vmatpush1.bf16.msra.mxu1 %v13128_v58  ;;  %2523 = vmatmul.mubr.bf16.vlgmr.msra.gmra.mrb[0].mxu0 %v15696_v3  ;;  %v13200_v58 = vld [vmem:[%s15504_s19 + $0x378] ss:$36 sps:$4 sm:$0xff]   ;;  %v13212_v0 = vld [vmem:[%s15504_s19 + $0x408] ss:$36 sps:$4 sm:$0xff]  }
 0x313   : > { %2534 = vmatpush1.bf16.msra.mxu0 %v13131_v50  ;;  %2780 = vmatprep.mubr.bf16.mxu1 %v15692_v1  ;;  %v13206_v50 = vld [vmem:[%s15504_s19 + $0x3c0] ss:$36 sps:$4 sm:$0xff]  }
 0x314   : > { %2750 = vmatprep.subr.bf16.mxu1 %v13136_v49  ;;  %2535 = vmatprep.subr.bf16.mxu0 %v13139_v5  ;;  %v13215_v49 = vld [vmem:[%s15504_s19 + $0x1b8] ss:$36 sps:$4 sm:$0xff]   ;;  %v13223_v5 = vld [vmem:[%s15504_s19 + $0x204] ss:$36 sps:$4 sm:$0xff]  }
 0x315   : > { %2565 = vmatprep.mubr.bf16.mxu0 %v14914_v17 }
 0x316   : > { %2751 = vmatpush1.bf16.msra.mxu1 %v13134_v4  ;;  %v13220_v4 = vld [vmem:[%s15504_s19 + $0x454] ss:$36 sps:$4 sm:$0xff]  }
 0x317   : > { %2536 = vmatpush1.bf16.msra.mxu0 %v13137_v6  ;;  %2752 = vmatprep.subr.bf16.mxu1 %v13142_v7  ;;  %v13218_v6 = vld [vmem:[%s15504_s19 + $0x450] ss:$36 sps:$4 sm:$0xff]   ;;  %v13221_v7 = vld [vmem:[%s15504_s19 + $0x200] ss:$36 sps:$4 sm:$0xff]  }
 0x318   : > { %2537 = vmatprep.subr.bf16.mxu0 %v13145_v8  ;;  %v13226_v8 = vld [vmem:[%s15504_s19 + $0x49c] ss:$36 sps:$4 sm:$0xff]  }
 0x31a   : > { %2753 = vmatpush1.bf16.msra.mxu1 %v13140_v9  ;;  %v13229_v9 = vld [vmem:[%s15504_s19 + $0x24c] ss:$36 sps:$4 sm:$0xff]  }
 0x31b   : > { %2538 = vmatpush1.bf16.msra.mxu0 %v13143_v10  ;;  %2754 = vmatprep.subr.bf16.mxu1 %v13148_v11  ;;  %v13224_v10 = vld [vmem:[%s15504_s19 + $0x498] ss:$36 sps:$4 sm:$0xff]   ;;  %v13227_v11 = vld [vmem:[%s15504_s19 + $0x248] ss:$36 sps:$4 sm:$0xff]  }
 0x31c   : > { %2539 = vmatprep.subr.bf16.mxu0 %v13151_v12  ;;  %v13232_v12 = vld [vmem:[%s15504_s19 + $0x4e4] ss:$36 sps:$4 sm:$0xff]  }
 0x31e   : > { %2755 = vmatpush1.bf16.msra.mxu1 %v13146_v13  ;;  %v13230_v13 = vld [vmem:[%s15504_s19 + $0x4e0] ss:$36 sps:$4 sm:$0xff]  }
 0x31f   : > { %2540 = vmatpush1.bf16.msra.mxu0 %v13149_v14  ;;  %2756 = vmatprep.subr.bf16.mxu1 %v13154_v15  ;;  %v13235_v14 = vld [vmem:[%s15504_s19 + $0x294] ss:$36 sps:$4 sm:$0xff]  }
 0x320   : > { %2541 = vmatprep.subr.bf16.mxu0 %v13157_v16  ;;  %v13233_v15 = vld [vmem:[%s15504_s19 + $0x290] ss:$36 sps:$4 sm:$0xff]  }
 0x321   : > { %v13238_v16 = vld [vmem:[%s15504_s19 + $0x52c] ss:$36 sps:$4 sm:$0xff]  }
 0x322   : > { %2757 = vmatpush1.bf16.msra.mxu1 %v13152_v18  ;;  %v13236_v18 = vld [vmem:[%s15504_s19 + $0x528] ss:$36 sps:$4 sm:$0xff]  }
 0x323   : > { %2542 = vmatpush1.bf16.msra.mxu0 %v13155_v19  ;;  %2758 = vmatprep.subr.bf16.mxu1 %v13160_v20  ;;  %v13241_v19 = vld [vmem:[%s15504_s19 + $0x2dc] ss:$36 sps:$4 sm:$0xff]  }
 0x324   : > { %2543 = vmatprep.subr.bf16.mxu0 %v13163_v21  ;;  %v13239_v20 = vld [vmem:[%s15504_s19 + $0x2d8] ss:$36 sps:$4 sm:$0xff]  }
 0x325   : > { %v13244_v21 = vld [vmem:[%s15504_s19 + $0x574] ss:$36 sps:$4 sm:$0xff]  }
 0x326   : > { %2759 = vmatpush1.bf16.msra.mxu1 %v13158_v22  ;;  %v13242_v22 = vld [vmem:[%s15504_s19 + $0x570] ss:$36 sps:$4 sm:$0xff]  }
 0x327   : > { %2544 = vmatpush1.bf16.msra.mxu0 %v13161_v23  ;;  %2760 = vmatprep.subr.bf16.mxu1 %v13166_v24  ;;  %v13247_v23 = vld [vmem:[%s15504_s19 + $0x324] ss:$36 sps:$4 sm:$0xff]  }
 0x328   : > { %2545 = vmatprep.subr.bf16.mxu0 %v13169_v25  ;;  %v13245_v24 = vld [vmem:[%s15504_s19 + $0x320] ss:$36 sps:$4 sm:$0xff]  }
 0x329   : > { %v13250_v25 = vld [vmem:[%s15504_s19 + $0x5bc] ss:$36 sps:$4 sm:$0xff]  }
 0x32a   : > { %2761 = vmatpush1.bf16.msra.mxu1 %v13164_v27  ;;  %v13248_v27 = vld [vmem:[%s15504_s19 + $0x5b8] ss:$36 sps:$4 sm:$0xff]  }
 0x32b   : > { %2546 = vmatpush1.bf16.msra.mxu0 %v13167_v28  ;;  %2762 = vmatprep.subr.bf16.mxu1 %v13172_v29  ;;  %v13253_v28 = vld [vmem:[%s15504_s19 + $0x36c] ss:$36 sps:$4 sm:$0xff]  }
 0x32c   : > { %2547 = vmatprep.subr.bf16.mxu0 %v13175_v31  ;;  %v13251_v29 = vld [vmem:[%s15504_s19 + $0x368] ss:$36 sps:$4 sm:$0xff]  }
 0x32d   : > { %v13256_v31 = vld [vmem:[%s15504_s19 + $0x604] ss:$36 sps:$4 sm:$0xff]  }
 0x32e   : > { %2763 = vmatpush1.bf16.msra.mxu1 %v13170_v35  ;;  %v13254_v35 = vld [vmem:[%s15504_s19 + $0x600] ss:$36 sps:$4 sm:$0xff]  }
 0x32f   : > { %2548 = vmatpush1.bf16.msra.mxu0 %v13173_v36  ;;  %2764 = vmatprep.subr.bf16.mxu1 %v13178_v37  ;;  %v13259_v36 = vld [vmem:[%s15504_s19 + $0x3b4] ss:$36 sps:$4 sm:$0xff]  }
 0x330   : > { %2576 = vmatprep.subr.bf16.mxu0 %v13181_v38  ;;  %v13257_v37 = vld [vmem:[%s15504_s19 + $0x3b0] ss:$36 sps:$4 sm:$0xff]  }
 0x331   : > { %v13262_v38 = vld [vmem:[%s15504_s19 + $0x64c] ss:$36 sps:$4 sm:$0xff]  }
 0x332   : > { %2566 = vmatmul.mubr.bf16.vlgmr.msra.gmra.mrb[0].mxu0 %v15694_v2  ;;  %2765 = vmatpush1.bf16.msra.mxu1 %v13176_v39  ;;  %v13265_v39 = vld [vmem:[%s15504_s19 + $0x3fc] ss:$36 sps:$4 sm:$0xff]  }
 0x333   : > { %2577 = vmatpush1.bf16.msra.mxu0 %v13179_v40  ;;  %2608 = vmatprep.mubr.bf16.mxu0 %v15692_v1  ;;  %v13260_v40 = vld [vmem:[%s15504_s19 + $0x648] ss:$36 sps:$4 sm:$0xff]  }
 0x334   : > { %2766 = vmatprep.subr.bf16.mxu1 %v13184_v44  ;;  %2578 = vmatprep.subr.bf16.mxu0 %v13187_v46  ;;  %v13263_v44 = vld [vmem:[%s15504_s19 + $0x3f8] ss:$36 sps:$4 sm:$0xff]   ;;  %v13271_v46 = vld [vmem:[%s15504_s19 + $0x444] ss:$36 sps:$4 sm:$0xff]  }
 0x336   : > { %2767 = vmatpush1.bf16.msra.mxu1 %v13182_v45  ;;  %v13268_v45 = vld [vmem:[%s15504_s19 + $0x694] ss:$36 sps:$4 sm:$0xff]  }
 0x337   : > { %2579 = vmatpush1.bf16.msra.mxu0 %v13185_v47  ;;  %2768 = vmatprep.subr.bf16.mxu1 %v13190_v48  ;;  %v13266_v47 = vld [vmem:[%s15504_s19 + $0x690] ss:$36 sps:$4 sm:$0xff]   ;;  %v13269_v48 = vld [vmem:[%s15504_s19 + $0x440] ss:$36 sps:$4 sm:$0xff]  }
 0x338   : > { %2580 = vmatprep.subr.bf16.mxu0 %v13193_v52  ;;  %v13274_v52 = vld [vmem:[%s15504_s19 + $0x14] ss:$36 sps:$4 sm:$0xff]  }
 0x33a   : > { %2769 = vmatpush1.bf16.msra.mxu1 %v13188_v42  ;;  %v13275_v42 = vld [vmem:[%s15504_s19 + $0x4a0] ss:$36 sps:$4 sm:$0xff]  }
 0x33b   : > { %2581 = vmatpush1.bf16.msra.mxu0 %v13191_v53  ;;  %2770 = vmatprep.subr.bf16.mxu1 %v13196_v43  ;;  %v14915_v53 = vmov 0.0   ;;  %v13272_v43 = vld [vmem:[%s15504_s19 + $0x10] ss:$36 sps:$4 sm:$0xff]  }
 0x33c   : > { %2582 = vmatprep.subr.bf16.mxu0 %v13199_v54  ;;  %v13278_v54 = vld [vmem:[%s15504_s19 + $0x5c] ss:$36 sps:$4 sm:$0xff]  }
 0x33e   : > { %2771 = vmatpush1.bf16.msra.mxu1 %v13194_v55  ;;  %v13279_v55 = vld [vmem:[%s15504_s19 + $0x4e8] ss:$36 sps:$4 sm:$0xff]  }
 0x33f   : > { %2583 = vmatpush1.bf16.msra.mxu0 %v13197_v41  ;;  %2772 = vmatprep.subr.bf16.mxu1 %v13202_v56  ;;  %v13276_v41 = vld [vmem:[%s15504_s19 + $0x58] ss:$36 sps:$4 sm:$0xff]   ;;  %v13282_v56 = vld [vmem:[%s15504_s19 + $0xa4] ss:$36 sps:$4 sm:$0xff]  }
 0x340   : > { %2584 = vmatprep.subr.bf16.mxu0 %v13205_v57  ;;  %v13283_v57 = vld [vmem:[%s15504_s19 + $0x530] ss:$36 sps:$4 sm:$0xff]  }
 0x342   : > { %2773 = vmatpush1.bf16.msra.mxu1 %v13200_v58  ;;  %v13280_v58 = vld [vmem:[%s15504_s19 + $0xa0] ss:$36 sps:$4 sm:$0xff]  }
 0x343   : > { %2585 = vmatpush1.bf16.msra.mxu0 %v13203_v59  ;;  %2774 = vmatprep.subr.bf16.mxu1 %v13208_v60  ;;  %v13286_v59 = vld [vmem:[%s15504_s19 + $0xec] ss:$36 sps:$4 sm:$0xff]   ;;  %v13287_v60 = vld [vmem:[%s15504_s19 + $0x578] ss:$36 sps:$4 sm:$0xff]  }
 0x344   : > { %2586 = vmatprep.subr.bf16.mxu0 %v13211_v61  ;;  %v13284_v61 = vld [vmem:[%s15504_s19 + $0xe8] ss:$36 sps:$4 sm:$0xff]  }
 0x346   : > { %2775 = vmatpush1.bf16.msra.mxu1 %v13206_v50  ;;  %v13290_v50 = vld [vmem:[%s15504_s19 + $0x134] ss:$36 sps:$4 sm:$0xff]  }
 0x347   : > { %2587 = vmatpush1.bf16.msra.mxu0 %v13209_v62  ;;  %2776 = vmatprep.subr.bf16.mxu1 %v13214_v63  ;;  %v13291_v62 = vld [vmem:[%s15504_s19 + $0x5c0] ss:$36 sps:$4 sm:$0xff]   ;;  %v13288_v63 = vld [vmem:[%s15504_s19 + $0x130] ss:$36 sps:$4 sm:$0xff]  }
 0x348   : > { %2588 = vmatprep.subr.bf16.mxu0 %v13217_v51  ;;  %v13294_v51 = vld [vmem:[%s15504_s19 + $0x17c] ss:$36 sps:$4 sm:$0xff]  }
 0x34a   : > { %2777 = vmatpush1.bf16.msra.mxu1 %v13212_v0  ;;  %v13295_v0 = vld [vmem:[%s15504_s19 + $0x608] ss:$36 sps:$4 sm:$0xff]  }
 0x34b   : > { %2589 = vmatpush1.bf16.msra.mxu0 %v13215_v49  ;;  %2778 = vmatprep.subr.bf16.mxu1 %v13220_v4  ;;  %v13292_v49 = vld [vmem:[%s15504_s19 + $0x178] ss:$36 sps:$4 sm:$0xff]   ;;  %v13298_v4 = vld [vmem:[%s15504_s19 + $0x1c4] ss:$36 sps:$4 sm:$0xff]  }
 0x34c   : > { %2590 = vmatprep.subr.bf16.mxu0 %v13223_v5  ;;  %v13299_v5 = vld [vmem:[%s15504_s19 + $0x650] ss:$36 sps:$4 sm:$0xff]  }
 0x34e   : > { %2779 = vmatpush1.bf16.msra.mxu1 %v13218_v6  ;;  %v13296_v6 = vld [vmem:[%s15504_s19 + $0x1c0] ss:$36 sps:$4 sm:$0xff]  }
 0x34f   : > { %2591 = vmatpush1.bf16.msra.mxu0 %v13221_v7  ;;  %2791 = vmatprep.subr.bf16.mxu1 %v13226_v8  ;;  %v13302_v7 = vld [vmem:[%s15504_s19 + $0x20c] ss:$36 sps:$4 sm:$0xff]   ;;  %v13303_v8 = vld [vmem:[%s15504_s19 + $0x698] ss:$36 sps:$4 sm:$0xff]  }
 0x350   : > { %2592 = vmatprep.subr.bf16.mxu0 %v13229_v9  ;;  %v13300_v9 = vld [vmem:[%s15504_s19 + $0x208] ss:$36 sps:$4 sm:$0xff]  }
 0x351   : > { %2781 = vmatmul.mubr.bf16.vlgmr.msra.gmra.mrb[4].mxu1 %v15696_v3 }
 0x352   : > { %2792 = vmatpush1.bf16.msra.mxu1 %v13224_v10  ;;  %2823 = vmatprep.mubr.bf16.mxu1 %v14914_v17  ;;  %v13306_v10 = vld [vmem:[%s15504_s19 + $0x254] ss:$36 sps:$4 sm:$0xff]  }
 0x353   : > { %2593 = vmatpush1.bf16.msra.mxu0 %v13227_v11  ;;  %2793 = vmatprep.subr.bf16.mxu1 %v13232_v12  ;;  %v13304_v11 = vld [vmem:[%s15504_s19 + $0x250] ss:$36 sps:$4 sm:$0xff]   ;;  %v13309_v12 = vld [vmem:[%s15504_s19 + $0x29c] ss:$36 sps:$4 sm:$0xff]  }
 0x354   : > { %2594 = vmatprep.subr.bf16.mxu0 %v13235_v14  ;;  %v13312_v14 = vld [vmem:[%s15504_s19 + $0x2e4] ss:$36 sps:$4 sm:$0xff]  }
 0x356   : > { %2794 = vmatpush1.bf16.msra.mxu1 %v13230_v13  ;;  %v13307_v13 = vld [vmem:[%s15504_s19 + $0x298] ss:$36 sps:$4 sm:$0xff]  }
 0x357   : > { %2595 = vmatpush1.bf16.msra.mxu0 %v13233_v15  ;;  %2795 = vmatprep.subr.bf16.mxu1 %v13238_v16  ;;  %v13310_v15 = vld [vmem:[%s15504_s19 + $0x2e0] ss:$36 sps:$4 sm:$0xff]   ;;  %v13315_v16 = vld [vmem:[%s15504_s19 + $0x32c] ss:$36 sps:$4 sm:$0xff]  }
 0x358   : > { %2596 = vmatprep.subr.bf16.mxu0 %v13241_v19  ;;  %v13318_v19 = vld [vmem:[%s15504_s19 + $0x374] ss:$36 sps:$4 sm:$0xff]  }
 0x35a   : > { %2796 = vmatpush1.bf16.msra.mxu1 %v13236_v18  ;;  %v13313_v18 = vld [vmem:[%s15504_s19 + $0x328] ss:$36 sps:$4 sm:$0xff]  }
 0x35b   : > { %2597 = vmatpush1.bf16.msra.mxu0 %v13239_v20  ;;  %2797 = vmatprep.subr.bf16.mxu1 %v13244_v21  ;;  %v13316_v20 = vld [vmem:[%s15504_s19 + $0x370] ss:$36 sps:$4 sm:$0xff]   ;;  %v13321_v21 = vld [vmem:[%s15504_s19 + $0x3bc] ss:$36 sps:$4 sm:$0xff]  }
 0x35c   : > { %2598 = vmatprep.subr.bf16.mxu0 %v13247_v23  ;;  %v13324_v23 = vld [vmem:[%s15504_s19 + $0x404] ss:$36 sps:$4 sm:$0xff]  }
 0x35e   : > { %2798 = vmatpush1.bf16.msra.mxu1 %v13242_v22  ;;  %v13319_v22 = vld [vmem:[%s15504_s19 + $0x3b8] ss:$36 sps:$4 sm:$0xff]  }
 0x35f   : > { %2599 = vmatpush1.bf16.msra.mxu0 %v13245_v24  ;;  %2799 = vmatprep.subr.bf16.mxu1 %v13250_v25  ;;  %v13322_v24 = vld [vmem:[%s15504_s19 + $0x400] ss:$36 sps:$4 sm:$0xff]   ;;  %v13327_v25 = vld [vmem:[%s15504_s19 + $0x44c] ss:$36 sps:$4 sm:$0xff]  }
 0x360   : > { %2600 = vmatprep.subr.bf16.mxu0 %v13253_v28  ;;  %v13330_v28 = vld [vmem:[%s15504_s19 + $0x494] ss:$36 sps:$4 sm:$0xff]  }
 0x362   : > { %2800 = vmatpush1.bf16.msra.mxu1 %v13248_v27  ;;  %v13325_v27 = vld [vmem:[%s15504_s19 + $0x448] ss:$36 sps:$4 sm:$0xff]  }
 0x363   : > { %2601 = vmatpush1.bf16.msra.mxu0 %v13251_v29  ;;  %2801 = vmatprep.subr.bf16.mxu1 %v13256_v31  ;;  %v13328_v29 = vld [vmem:[%s15504_s19 + $0x490] ss:$36 sps:$4 sm:$0xff]   ;;  %v13333_v31 = vld [vmem:[%s15504_s19 + $0x4dc] ss:$36 sps:$4 sm:$0xff]  }
 0x364   : > { %2602 = vmatprep.subr.bf16.mxu0 %v13259_v36  ;;  %v13336_v36 = vld [vmem:[%s15504_s19 + $0x524] ss:$36 sps:$4 sm:$0xff]  }
 0x366   : > { %2802 = vmatpush1.bf16.msra.mxu1 %v13254_v35  ;;  %v13331_v35 = vld [vmem:[%s15504_s19 + $0x4d8] ss:$36 sps:$4 sm:$0xff]  }
 0x367   : > { %2603 = vmatpush1.bf16.msra.mxu0 %v13257_v37  ;;  %2803 = vmatprep.subr.bf16.mxu1 %v13262_v38  ;;  %v13334_v37 = vld [vmem:[%s15504_s19 + $0x520] ss:$36 sps:$4 sm:$0xff]   ;;  %v13339_v38 = vld [vmem:[%s15504_s19 + $0x56c] ss:$36 sps:$4 sm:$0xff]  }
 0x368   : > { %2604 = vmatprep.subr.bf16.mxu0 %v13265_v39  ;;  %v13337_v39 = vld [vmem:[%s15504_s19 + $0x568] ss:$36 sps:$4 sm:$0xff]  }
 0x36a   : > { %2804 = vmatpush1.bf16.msra.mxu1 %v13260_v40  ;;  %v13342_v40 = vld [vmem:[%s15504_s19 + $0x5b4] ss:$36 sps:$4 sm:$0xff]  }
 0x36b   : > { %2605 = vmatpush1.bf16.msra.mxu0 %v13263_v44  ;;  %2805 = vmatprep.subr.bf16.mxu1 %v13268_v45  ;;  %v13340_v44 = vld [vmem:[%s15504_s19 + $0x5b0] ss:$36 sps:$4 sm:$0xff]   ;;  %v13345_v45 = vld [vmem:[%s15504_s19 + $0x5fc] ss:$36 sps:$4 sm:$0xff]  }
 0x36c   : > { %2606 = vmatprep.subr.bf16.mxu0 %v13271_v46  ;;  %v13343_v46 = vld [vmem:[%s15504_s19 + $0x5f8] ss:$36 sps:$4 sm:$0xff]  }
 0x36e   : > { %2806 = vmatpush1.bf16.msra.mxu1 %v13266_v47  ;;  %v13348_v47 = vld [vmem:[%s15504_s19 + $0x644] ss:$36 sps:$4 sm:$0xff]  }
 0x36f   : > { %2607 = vmatpush1.bf16.msra.mxu0 %v13269_v48  ;;  %12678 = vmatprep.subr.bf16.mxu1 %v14915_v53  ;;  %v13346_v48 = vld [vmem:[%s15504_s19 + $0x640] ss:$36 sps:$4 sm:$0xff]  }
 0x370   : > { %2662 = vmatprep.subr.bf16.mxu0 %v13274_v52  ;;  %v13351_v52 = vld [vmem:[%s15504_s19 + $0x68c] ss:$36 sps:$4 sm:$0xff]  }
 0x371   : > { %2824 = vmatmul.mubr.bf16.vlgmr.msra.gmra.mrb[4].mxu1 %v15694_v2 }
 0x372   : > { %2609 = vmatmul.mubr.bf16.vlgmr.msra.gmra.mrb[4].mxu0 %v15696_v3  ;;  %12679 = vmatpush3.bf16.msra.mxu1 %v13275_v42  ;;  %v13349_v42 = vld [vmem:[%s15504_s19 + $0x688] ss:$36 sps:$4 sm:$0xff]  }
 0x373   : > { %2663 = vmatpush1.bf16.msra.mxu0 %v13272_v43  ;;  %2694 = vmatprep.mubr.bf16.mxu0 %v15692_v1  ;;  %v13352_v43 = vld [vmem:[%s15504_s19 + $0x260] ss:$36 sps:$4 sm:$0xff]  }
 0x374   : > { %12680 = vmatprep.subr.bf16.mxu1 %v14915_v53  ;;  %2664 = vmatprep.subr.bf16.mxu0 %v13278_v54  ;;  %v13353_v54 = vld [vmem:[%s15504_s19 + $0x20] ss:$36 sps:$4 sm:$0xff]  }
 0x375   : > { %12694 = vmatprep.mubr.msk.bf16.mxu1 %vm14916_vm0, %v14915_v53 }
 0x376   : > { %12681 = vmatpush3.bf16.msra.mxu1 %v13279_v55  ;;  %v13354_v55 = vld [vmem:[%s15504_s19 + $0x2a8] ss:$36 sps:$4 sm:$0xff]  }
 0x377   : > { %2665 = vmatpush1.bf16.msra.mxu0 %v13276_v41  ;;  %12682 = vmatprep.subr.bf16.mxu1 %v14915_v53  ;;  %v13355_v41 = vld [vmem:[%s15504_s19 + $0x68] ss:$36 sps:$4 sm:$0xff]  }
 0x378   : > { %2666 = vmatprep.subr.bf16.mxu0 %v13282_v56  ;;  %v13356_v56 = vld [vmem:[%s15504_s19 + $0x2f0] ss:$36 sps:$4 sm:$0xff]  }
 0x37a   : > { %12683 = vmatpush3.bf16.msra.mxu1 %v13283_v57  ;;  %v13357_v57 = vld [vmem:[%s15504_s19 + $0xb0] ss:$36 sps:$4 sm:$0xff]  }
 0x37b   : > { %2667 = vmatpush1.bf16.msra.mxu0 %v13280_v58  ;;  %12684 = vmatprep.subr.bf16.mxu1 %v14915_v53  ;;  %v13358_v58 = vld [vmem:[%s15504_s19 + $0x338] ss:$36 sps:$4 sm:$0xff]  }
 0x37c   : > { %2668 = vmatprep.subr.bf16.mxu0 %v13286_v59  ;;  %v13359_v59 = vld [vmem:[%s15504_s19 + $0xf8] ss:$36 sps:$4 sm:$0xff]  }
 0x37e   : > { %12685 = vmatpush3.bf16.msra.mxu1 %v13287_v60  ;;  %v13360_v60 = vld [vmem:[%s15504_s19 + $0x380] ss:$36 sps:$4 sm:$0xff]  }
 0x37f   : > { %2669 = vmatpush1.bf16.msra.mxu0 %v13284_v61  ;;  %12686 = vmatprep.subr.bf16.mxu1 %v14915_v53  ;;  %v13363_v61 = vld [vmem:[%s15504_s19 + $0x188] ss:$36 sps:$4 sm:$0xff]  }
 0x380   : > { %2670 = vmatprep.subr.bf16.mxu0 %v13290_v50 }
 0x382   : > { %12687 = vmatpush3.bf16.msra.mxu1 %v13291_v62  ;;  %v13364_v62 = vld [vmem:[%s15504_s19 + $0x410] ss:$36 sps:$4 sm:$0xff]  }
 0x383   : > { %2671 = vmatpush1.bf16.msra.mxu0 %v13288_v63  ;;  %12688 = vmatprep.subr.bf16.mxu1 %v14915_v53 }
 0x384   : > { %2672 = vmatprep.subr.bf16.mxu0 %v13294_v51 }
 0x386   : > { %12689 = vmatpush3.bf16.msra.mxu1 %v13295_v0 }
 0x387   : > { %2673 = vmatpush1.bf16.msra.mxu0 %v13292_v49  ;;  %12690 = vmatprep.subr.bf16.mxu1 %v14915_v53  ;;  %v13365_v49 = vld [vmem:[%s15504_s19 + $0x1d0] ss:$36 sps:$4 sm:$0xff]  }
 0x388   : > { %2674 = vmatprep.subr.bf16.mxu0 %v13298_v4  ;;  %v13366_v4 = vld [vmem:[%s15504_s19 + $0x458] ss:$36 sps:$4 sm:$0xff]  }
 0x38a   : > { %12691 = vmatpush3.bf16.msra.mxu1 %v13299_v5  ;;  %v13367_v5 = vld [vmem:[%s15504_s19 + $0x218] ss:$36 sps:$4 sm:$0xff]  }
 0x38b   : > { %2675 = vmatpush1.bf16.msra.mxu0 %v13296_v6  ;;  %12692 = vmatprep.subr.bf16.mxu1 %v14915_v53  ;;  %v1337_v6 = vld [vmem:[%s15507_s4] sm:$0xff] }
 0x38c   : > { %2676 = vmatprep.subr.bf16.mxu0 %v13302_v7 }
 0x38e   : > { %12693 = vmatpush3.bf16.msra.mxu1 %v13303_v8  ;;  %v1344_v8 = vrot.slane %v1337_v6, %v15673_v34 }
 0x38f   : > { %2677 = vmatpush1.bf16.msra.mxu0 %v13300_v9  ;;  %12743 = vmatprep.subr.mxu1 %v14915_v53 }
 0x390   : > { %2678 = vmatprep.subr.bf16.mxu0 %v13306_v10  ;;  %v15900_v10 = vrot.slane %v1337_v6, %v15667_v32 }
 0x391   : > { %12695 = vmatmul.mubr.bf16.vlgmr.msra.gmra.mrb[8].mxu1 %v15694_v2 }
 0x392   : > { %12745 = vmatprep.mubr.msk.f32.mxu1 %vm14916_vm0, %v14915_v53 }
 0x393   : > { %2679 = vmatpush1.bf16.msra.mxu0 %v13304_v11 }
 0x394   : > { %2680 = vmatprep.subr.bf16.mxu0 %v13309_v12 }
 0x397   : > { %2681 = vmatpush1.bf16.msra.mxu0 %v13307_v13 }
 0x398   : > { %2682 = vmatprep.subr.bf16.mxu0 %v13312_v14 }
 0x39b   : > { %2683 = vmatpush1.bf16.msra.mxu0 %v13310_v15  ;;  %v1367_v15 = vsub.s32 6, %v15662_v30 }
 0x39c   : > { %2684 = vmatprep.subr.bf16.mxu0 %v13315_v16  ;;  %v1352_v16 = vrot.slane %v1337_v6, %v15670_v33 }
 0x39f   : > { %2685 = vmatpush1.bf16.msra.mxu0 %v13313_v18  ;;  %v17618_v18 = vsub.s32 7, %v15662_v30 }
 0x3a0   : > { %2686 = vmatprep.subr.bf16.mxu0 %v13318_v19 }
 0x3a3   : > { %2687 = vmatpush1.bf16.msra.mxu0 %v13316_v20 }
 0x3a4   : > { %2688 = vmatprep.subr.bf16.mxu0 %v13321_v21  ;;  %v1368_v21 = vrot.slane %v1337_v6, %v1367_v15 }
 0x3a7   : > { %2689 = vmatpush1.bf16.msra.mxu0 %v13319_v22 }
 0x3a8   : > { %2690 = vmatprep.subr.bf16.mxu0 %v13324_v23 }
 0x3ab   : > { %2691 = vmatpush1.bf16.msra.mxu0 %v13322_v24 }
 0x3ac   : > { %2692 = vmatprep.subr.bf16.mxu0 %v13327_v25  ;;  %v15920_v25 = vrot.slane %v1337_v6, %v17618_v18 }
 0x3af   : > { %2693 = vmatpush1.bf16.msra.mxu0 %v13325_v27 }
 0x3b0   : > { %2705 = vmatprep.subr.bf16.mxu0 %v13330_v28 }
 0x3b2   : > { %2695 = vmatmul.mubr.bf16.vlgmr.msra.gmra.mrb[8].mxu0 %v15696_v3 }
 0x3b3   : > { %2706 = vmatpush1.bf16.msra.mxu0 %v13328_v29  ;;  %2737 = vmatprep.mubr.bf16.mxu0 %v14914_v17 }
 0x3b4   : > { %2707 = vmatprep.subr.bf16.mxu0 %v13333_v31 }
 0x3b7   : > { %2708 = vmatpush1.bf16.msra.mxu0 %v13331_v35 }
 0x3b8   : > { %2709 = vmatprep.subr.bf16.mxu0 %v13336_v36 }
 0x3bb   : > { %2710 = vmatpush1.bf16.msra.mxu0 %v13334_v37 }
 0x3bc   : > { %2711 = vmatprep.subr.bf16.mxu0 %v13339_v38 }
 0x3bf   : > { %2712 = vmatpush1.bf16.msra.mxu0 %v13337_v39 }
 0x3c0   : > { %2713 = vmatprep.subr.bf16.mxu0 %v13342_v40 }
 0x3c3   : > { %2714 = vmatpush1.bf16.msra.mxu0 %v13340_v44 }
 0x3c4   : > { %2715 = vmatprep.subr.bf16.mxu0 %v13345_v45 }
 0x3c7   : > { %2716 = vmatpush1.bf16.msra.mxu0 %v13343_v46 }
 0x3c8   : > { %2717 = vmatprep.subr.bf16.mxu0 %v13348_v47 }
 0x3cb   : > { %2718 = vmatpush1.bf16.msra.mxu0 %v13346_v48 }
 0x3cc   : > { %2719 = vmatprep.subr.bf16.mxu0 %v13351_v52 }
 0x3cf   : > { %2720 = vmatpush1.bf16.msra.mxu0 %v13349_v42 }
 0x3d0   : > { %12436 = vmatprep.subr.bf16.mxu0 %v13352_v43 }
 0x3d2   : > { %2738 = vmatmul.mubr.bf16.vlgmr.msra.gmra.mrb[8].mxu0 %v15694_v2  ;;  %v13361_v2 = vld [vmem:[%s15504_s19 + $0x140] ss:$36 sps:$4 sm:$0xff]  }
 0x3d3   : > { %12437 = vmatpush3.bf16.msra.mxu0 %v13353_v54  ;;  %2866 = vmatprep.mubr.bf16.mxu0 %v15692_v1  ;;  %v13362_v1 = vld [vmem:[%s15504_s19 + $0x3c8] ss:$36 sps:$4 sm:$0xff]   ;;  %s17654_s19 = scalar_lea.vmem [#allocation12], %s15485_s3 }
 0x3d4   : > { %12438 = vmatprep.subr.bf16.mxu0 %v13354_v55 }
 0x3d7   : > { %12439 = vmatpush3.bf16.msra.mxu0 %v13355_v41  ;;  %v1359_v41 = vsub.s32 4, %v15662_v30 }
 0x3d8   : > { %12440 = vmatprep.subr.bf16.mxu0 %v13356_v56  ;;  %v17619_v56 = vsub.s32 5, %v15662_v30 }
 0x3db   : > { %12441 = vmatpush3.bf16.msra.mxu0 %v13357_v57 }
 0x3dc   : > { %12442 = vmatprep.subr.bf16.mxu0 %v13358_v58  ;;  %v15948_v58 = vrot.slane %v1337_v6, %v1359_v41 }
 0x3df   : > { %12443 = vmatpush3.bf16.msra.mxu0 %v13359_v59 }
 0x3e0   : > { %12444 = vmatprep.subr.bf16.mxu0 %v13360_v60  ;;  %v15954_v60 = vrot.slane %v1337_v6, %v17619_v56 }
 0x3e3   : > { %12445 = vmatpush3.bf16.msra.mxu0 %v13361_v2 }
 0x3e4   : > { %v2653_v50 = vpop.f32.mrb[0].mxu1  ;;  %12446 = vmatprep.subr.bf16.mxu0 %v13362_v1 }
 0x3e5   : > { %v2655_v63 = vpop.f32.mrb[1].mxu1 }
 0x3e6   : > { %v2657_v51 = vpop.f32.mrb[2].mxu1 }
 0x3e7   : > { %12447 = vmatpush3.bf16.msra.mxu0 %v13363_v61  ;;  %v2659_v0 = vpop.f32.mrb[3].mxu1 }
 0x3e8   : > { %12448 = vmatprep.subr.bf16.mxu0 %v13364_v62 }
 0x3eb   : > { %12449 = vmatpush3.bf16.msra.mxu0 %v13365_v49 }
 0x3ec   : > { %12450 = vmatprep.subr.bf16.mxu0 %v13366_v4 }
 0x3ef   : > { %12451 = vmatpush3.bf16.msra.mxu0 %v13367_v5 }
 0x3f0   : > { %12698 = vmatprep.subr.mxu0 %v14915_v53 }
 0x3f2   : > { %2867 = vmatmul.mubr.bf16.vlgmr.msra.gmra.mrb[12].mxu0 %v15696_v3  ;;  %v15908_v3 = vsub.s32 3, %v15662_v30 }
 0x3f3   : > { %12700 = vmatprep.mubr.msk.f32.mxu0 %vm14916_vm0, %v14915_v53 }
 0x3f4   : > { %v1356_v19 = vrot.slane %v1337_v6, %v15908_v3 }
 0x405   : > { %v2567_v7 = vpop.f32.mrb[0].mxu0 }
 0x406   : > { %v15897_v9 = vpop.f32.mrb[1].mxu0  ;;  %v12838_v48 = vadd.f32 %v2567_v7, %v1344_v8 }
 0x407   : > { %v2571_v11 = vpop.f32.mrb[2].mxu0 }
 0x408   : > { %v15902_v12 = vadd.f32 %v2571_v11, %v1344_v8  ;;  %v2573_v13 = vpop.f32.mrb[3].mxu0 }
 0x409   : > { %v15905_v14 = vadd.f32 %v2573_v13, %v15900_v10  ;;  %v2917_v13 = vand.u32 127, %v1051_v26 }
 0x40b   : > { %vm2918_vm2 = vcmp.lt.s32.totalorder %v2917_v13, 5 }
 0x444   : > { %v2825_v20 = vpop.f32.mrb[4].mxu1 }
 0x445   : > { %v2610_v22 = vpop.f32.mrb[4].mxu0  ;;  %v15916_v23 = vpop.f32.mrb[5].mxu1  ;;  %v15935_v52 = vadd.f32 %v2825_v20, %v1368_v21 }
 0x446   : > { %v2611_v24 = vadd.f32 %v2610_v22, %v1352_v16  ;;  %v2612_v27 = vpop.f32.mrb[5].mxu0  ;;  %v2829_v28 = vpop.f32.mrb[6].mxu1 }
 0x447   : > { %v2613_v29 = vadd.f32 %v2612_v27, %v1356_v19  ;;  %v15922_v31 = vadd.f32 %v2829_v28, %v1368_v21  ;;  %v2614_v35 = vpop.f32.mrb[6].mxu0  ;;  %v2831_v36 = vpop.f32.mrb[7].mxu1 }
 0x448   : > { %v15924_v37 = vadd.f32 %v2653_v50, %v2611_v24  ;;  %v2615_v38 = vadd.f32 %v2614_v35, %v1352_v16  ;;  %v15927_v39 = vadd.f32 %v2831_v36, %v15920_v25  ;;  %v2616_v40 = vpop.f32.mrb[7].mxu0 }
 0x449   : > { %v2656_v44 = vadd.f32 %v2655_v63, %v2613_v29  ;;  %v2617_v45 = vadd.f32 %v2616_v40, %v1356_v19  ;;  %v11532_v63 = vld [vmem:[%s15507_s4 + $0x8] ss:$0 sm:$0xff]  ;;  %v14917_v19 = vmov -1e+30   ;;  %s17655_s4 = scalar_lea.vmem [#allocation14], %s15485_s3 }
 0x44a   : > { %v15929_v46 = vadd.f32 %v2657_v51, %v2615_v38  ;;  %v15970_v20 = vsel %vm2918_vm2, 0.0, %v14917_v19 }
 0x44b   : > { %v15931_v47 = vadd.f32 %v2659_v0, %v2617_v45  ;;  %12699 = vmatpush3.xpose.msk.msra.mxu0 %vm2920_vm1, %v2656_v44 }
 0x44c   : > { %12703 = vmatprep.subr.mxu0 %v14915_v53 }
 0x44e   : > { %12701 = vmatmul.mubr.msk.f32.vlgmr.msra.gmra.mrb[16].mxu0 %vm2920_vm1, %v12838_v48 }
 0x44f   : > { %12704 = vmatpush3.msra.mxu0 %v15935_v52  ;;  %12705 = vmatprep.mubr.msk.f32.mxu0 %vm14916_vm0, %v14915_v53 }
 0x450   : > { %12708 = vmatprep.subr.mxu0 %v14915_v53 }
 0x464   : > { %v2909_v42 = vpop.f32.mrb[8].mxu1 }
 0x465   : > { %v12696_v43 = vpop.f32.mrb[9].mxu1 }
 0x466   : > { %v2912_v54 = vpop.f32.mrb[10].mxu1 }
 0x467   : > { %v12697_v55 = vpop.f32.mrb[11].mxu1 }
 0x4a5   : > { %v15944_v57 = vpop.f32.mrb[8].mxu0 }
 0x4a6   : > { %v15950_v59 = vpop.f32.mrb[9].mxu0  ;;  %v12850_v19 = vadd.f32 %v15944_v57, %v15948_v58 }
 0x4a7   : > { %v2743_v2 = vpop.f32.mrb[10].mxu0 }
 0x4a8   : > { %v15957_v1 = vadd.f32 %v2743_v2, %v15948_v58  ;;  %v2745_v61 = vpop.f32.mrb[11].mxu0 }
 0x4a9   : > { %v15960_v50 = vadd.f32 %v2745_v61, %v15954_v60 }
 0x4c5   : > { %v12452_v62 = vpop.f32.mrb[12].mxu0 }
 0x4c6   : > { %v12453_v51 = vpop.f32.mrb[13].mxu0 }
 0x4c7   : > { %v12454_v0 = vadd.f32 %v12453_v51, %v12452_v62  ;;  %v12455_v49 = vpop.f32.mrb[14].mxu0 }
 0x4c8   : > { %v12456_v4 = vpop.f32.mrb[15].mxu0 }
 0x4c9   : > { %v2869_v5 = vadd.f32 %v12454_v0, %v11532_v63  ;;  %v12457_v7 = vadd.f32 %v12456_v4, %v12455_v49 }
 0x4cb   : > { %v15963_v8 = vadd.f32 %v2909_v42, %v2869_v5  ;;  %v2872_v6 = vadd.f32 %v12457_v7, %v11532_v63  ;;  %v12839_v5 = vadd.f32 %v15897_v9, %v15900_v10  ;;  %v12855_v9 = vadd.f32 %v15916_v23, %v15920_v25 }
 0x4cd   : > { %12744 = vmatpush3.msra.mxu1 %v15963_v8  ;;  %v15966_v11 = vadd.f32 %v2912_v54, %v2872_v6 }
 0x4ce   : > { %12753 = vmatprep.subr.mxu1 %v14915_v53 }
 0x521   : > { %v2993_v16 = vpop.f32.mrb[16].mxu0 }
 0x522   : > { %v2997_v21 = vmul.f32 0.125, %v2993_v16  ;;  %v12702_v22 = vpop.f32.mrb[17].mxu0 }
 0x524   : > { %v2998_v24 = vadd.f32 %v2997_v21, %v15970_v20 }
 0x526   : > { %v3000_v27 = vsel %vm2999_vm3, %v2998_v24, -inf }
 0x527   : > { %3001 = vmax.xlane.f32.xlu0 %v3000_v27 }
 0x53d   : > { %3087 = vrot.lane.b32.xlu0 %v2656_v44, %s14918_s27 }
 0x5b4   : > { %v3002_v28 = vpop.xlane.xlu0 %3001 }
 0x5b5   : > { %v3003_v29 = vsub.f32 %v2998_v24, %v3002_v28 }
 0x5b7   : > { %v3004_v35 = vmul.f32 1.442695, %v3003_v29 }
 0x5b8   : > { %v3088_v42 = vpop.permute.xlu0 %3087 }
 0x5b9   : > { %14284 = vpow2.f32 %v3004_v35 }
 0x5c3   : > { %v14285_v26 = vpop.eup %14284 }
 0x5c4   : > { %v3006_v36 = vsel %vm2999_vm3, %v14285_v26, 0.0 }
 0x5c5   : > { %3007 = vadd.xlane.f32.xlu1 %v3006_v36 }
 0x5d6   : > { %3085 = vrot.lane.b32.xlu1 %v12838_v48, %s14918_s27 }
 0x652   : > { %v3008_v38 = vpop.xlane.xlu1 %3007 }
 0x653   : > { %14286 = vrcp.f32 %v3008_v38 }
 0x656   : > { %v3086_v44 = vpop.permute.xlu1 %3085 }
 0x65d   : > { %v14287_v40 = vpop.eup %14286 }
 0x65e   : > { %v3010_v45 = vmul.f32 %v14287_v40, %v14285_v26 }
 0x660   : > { %12706 = vmatmul.mubr.msk.f32.vlgmr.msra.gmra.mrb[18].mxu0 %vm2999_vm3, %v3010_v45 }
 0x661   : > { %12709 = vmatpush3.xpose.msk.msra.mxu0 %vm2920_vm1, %v3088_v42  ;;  %12710 = vmatprep.mubr.msk.f32.mxu0 %vm14916_vm0, %v14915_v53 }
 0x662   : > { %12713 = vmatprep.subr.mxu0 %v14915_v53 }
 0x664   : > { %12711 = vmatmul.mubr.msk.f32.vlgmr.msra.gmra.mrb[20].mxu0 %vm2920_vm1, %v3086_v44 }
 0x665   : > { %12715 = vmatprep.mubr.msk.f32.mxu0 %vm14916_vm0, %v14915_v53 }
 0x733   : > { %v3080_v48 = vpop.f32.mrb[18].mxu0 }
 0x734   : > { %3084 = vst.msk [vmem:[#allocation3] sm:$0xff] %vm2920_vm1, %v3080_v48  ;;  %v12707_v43 = vpop.f32.mrb[19].mxu0 }
 0x737   : > { %v3159_v54 = vpop.f32.mrb[20].mxu0 }
 0x738   : > { %v3163_v55 = vmul.f32 0.125, %v3159_v54  ;;  %v12712_v2 = vpop.f32.mrb[21].mxu0 }
 0x739   : > { %v12851_v2 = vadd.f32 %v15950_v59, %v15954_v60 }
 0x73a   : > { %v3164_v61 = vadd.f32 %v3163_v55, %v15970_v20 }
 0x73c   : > { %v3165_v62 = vsel %vm2999_vm3, %v3164_v61, -inf }
 0x73d   : > { %3166 = vmax.xlane.f32.xlu1 %v3165_v62 }
 0x7ca   : > { %v3167_v63 = vpop.xlane.xlu1 %3166 }
 0x7cb   : > { %v3168_v51 = vsub.f32 %v3164_v61, %v3167_v63 }
 0x7cd   : > { %v3169_v0 = vmul.f32 1.442695, %v3168_v51 }
 0x7cf   : > { %14288 = vpow2.f32 %v3169_v0 }
 0x7d9   : > { %v14289_v49 = vpop.eup %14288 }
 0x7da   : > { %v3171_v4 = vsel %vm2999_vm3, %v14289_v49, 0.0 }
 0x7db   : > { %3172 = vadd.xlane.f32.xlu0 %v3171_v4 }
 0x7f1   : > { %3177 = vrot.lane.b32.xlu0 %v15935_v52, %s14918_s27 }
 0x7f5   : > { %3422 = vrot.lane.b32.xlu0 %v12839_v5, %s14918_s27 }
 0x868   : > { %v3173_v7 = vpop.xlane.xlu0 %3172 }
 0x869   : > { %14290 = vrcp.f32 %v3173_v7 }
 0x86c   : > { %v3178_v6 = vpop.permute.xlu0 %3177 }
 0x86d   : > { %12714 = vmatpush3.msra.mxu0 %v3178_v6 }
 0x86e   : > { %12718 = vmatprep.subr.mxu0 %v14915_v53 }
 0x870   : > { %v3423_v40 = vpop.permute.xlu0 %3422 }
 0x873   : > { %v14291_v13 = vpop.eup %14290 }
 0x874   : > { %v3175_v16 = vmul.f32 %v14291_v13, %v14289_v49 }
 0x876   : > { %12716 = vmatmul.mubr.msk.f32.vlgmr.msra.gmra.mrb[22].mxu0 %vm2999_vm3, %v3175_v16 }
 0x877   : > { %12719 = vmatpush3.xpose.msk.msra.mxu0 %vm2920_vm1, %v12850_v19  ;;  %12720 = vmatprep.mubr.msk.f32.mxu0 %vm14916_vm0, %v14915_v53 }
 0x878   : > { %12723 = vmatprep.subr.mxu0 %v14915_v53 }
 0x87a   : > { %12721 = vmatmul.mubr.msk.f32.vlgmr.msra.gmra.mrb[24].mxu0 %vm2920_vm1, %v12839_v5 }
 0x87b   : > { %12724 = vmatpush3.msra.mxu0 %v12855_v9  ;;  %12725 = vmatprep.mubr.msk.f32.mxu0 %vm14916_vm0, %v14915_v53 }
 0x87c   : > { %12728 = vmatprep.subr.mxu0 %v14915_v53 }
 0x949   : > { %v16008_v10 = vpop.f32.mrb[22].mxu0 }
 0x94a   : > { %v12717_v52 = vpop.f32.mrb[23].mxu0 }
 0x94d   : > { %v3331_v57 = vpop.f32.mrb[24].mxu0 }
 0x94e   : > { %v3335_v58 = vmul.f32 0.125, %v3331_v57  ;;  %v12722_v21 = vpop.f32.mrb[25].mxu0 }
 0x950   : > { %v3336_v22 = vadd.f32 %v3335_v58, %v15970_v20 }
 0x952   : > { %v3337_v24 = vsel %vm2999_vm3, %v3336_v22, -inf }
 0x953   : > { %3338 = vmax.xlane.f32.xlu1 %v3337_v24 }
 0x9e0   : > { %v3339_v23 = vpop.xlane.xlu1 %3338 }
 0x9e1   : > { %v3340_v25 = vsub.f32 %v3336_v22, %v3339_v23 }
 0x9e3   : > { %v3341_v27 = vmul.f32 1.442695, %v3340_v25 }
 0x9e5   : > { %14292 = vpow2.f32 %v3341_v27 }
 0x9ef   : > { %v14293_v28 = vpop.eup %14292 }
 0x9f0   : > { %v3343_v29 = vsel %vm2999_vm3, %v14293_v28, 0.0 }
 0x9f1   : > { %3344 = vadd.xlane.f32.xlu1 %v3343_v29 }
 0xa02   : > { %3424 = vrot.lane.b32.xlu1 %v12850_v19, %s14918_s27 }
 0xa7e   : > { %v3345_v35 = vpop.xlane.xlu1 %3344 }
 0xa7f   : > { %14294 = vrcp.f32 %v3345_v35 }
 0xa82   : > { %v3425_v38 = vpop.permute.xlu1 %3424 }
 0xa89   : > { %v14295_v26 = vpop.eup %14294 }
 0xa8a   : > { %v3347_v36 = vmul.f32 %v14295_v26, %v14293_v28 }
 0xa8c   : > { %12726 = vmatmul.mubr.msk.f32.vlgmr.msra.gmra.mrb[26].mxu0 %vm2999_vm3, %v3347_v36 }
 0xa8d   : > { %12729 = vmatpush3.xpose.msk.msra.mxu0 %vm2920_vm1, %v3425_v38  ;;  %12730 = vmatprep.mubr.msk.f32.mxu0 %vm14916_vm0, %v14915_v53 }
 0xa8e   : > { %12733 = vmatprep.subr.mxu0 %v14915_v53 }
 0xa90   : > { %12731 = vmatmul.mubr.msk.f32.vlgmr.msra.gmra.mrb[28].mxu0 %vm2920_vm1, %v3423_v40 }
 0xa91   : > { %12735 = vmatprep.mubr.msk.f32.mxu0 %vm14916_vm0, %v14915_v53 }
 0xb5f   : > { %v3417_v45 = vpop.f32.mrb[26].mxu0 }
 0xb60   : > { %3421 = vst.msk [vmem:[#allocation3 + $0x8] sm:$0xff] %vm2920_vm1, %v3417_v45  ;;  %v12727_v42 = vpop.f32.mrb[27].mxu0 }
 0xb63   : > { %v3496_v44 = vpop.f32.mrb[28].mxu0 }
 0xb64   : > { %v3500_v48 = vmul.f32 0.125, %v3496_v44  ;;  %v12732_v43 = vpop.f32.mrb[29].mxu0 }
 0xb66   : > { %v3501_v54 = vadd.f32 %v3500_v48, %v15970_v20 }
 0xb68   : > { %v3502_v55 = vsel %vm2999_vm3, %v3501_v54, -inf }
 0xb69   : > { %3503 = vmax.xlane.f32.xlu1 %v3502_v55 }
 0xb7a   : > { %3760 = vrot.lane.b32.xlu1 %v12851_v2, %s14918_s27 }
 0xb7e   : > { %3758 = vrot.lane.b32.xlu1 %v15924_v37, %s14918_s27 }
 0xb82   : > { %4094 = vrot.lane.b32.xlu1 %v15902_v12, %s14918_s27 }
 0xb86   : > { %4430 = vrot.lane.b32.xlu1 %v15905_v14, %s14918_s27 }
 0xb8a   : > { %4766 = vrot.lane.b32.xlu1 %v15929_v46, %s14918_s27 }
 0xbf6   : > { %v3504_v61 = vpop.xlane.xlu1 %3503 }
 0xbf7   : > { %v3505_v62 = vsub.f32 %v3501_v54, %v3504_v61 }
 0xbf9   : > { %v3506_v63 = vmul.f32 1.442695, %v3505_v62 }
 0xbfa   : > { %v3761_v5 = vpop.permute.xlu1 %3760 }
 0xbfb   : > { %14296 = vpow2.f32 %v3506_v63 }
 0xbfe   : > { %v3759_v7 = vpop.permute.xlu1 %3758 }
 0xc05   : > { %v14297_v51 = vpop.eup %14296 }
 0xc06   : > { %v3508_v59 = vsel %vm2999_vm3, %v14297_v51, 0.0 }
 0xc07   : > { %3509 = vadd.xlane.f32.xlu0 %v3508_v59 }
 0xc1d   : > { %3514 = vrot.lane.b32.xlu0 %v12855_v9, %s14918_s27 }
 0xc21   : > { %4096 = vrot.lane.b32.xlu0 %v15931_v47, %s14918_s27 }
 0xc25   : > { %4432 = vrot.lane.b32.xlu0 %v15957_v1, %s14918_s27 }
 0xc29   : > { %4768 = vrot.lane.b32.xlu0 %v15960_v50, %s14918_s27 }
 0xc94   : > { %v3510_v60 = vpop.xlane.xlu0 %3509 }
 0xc95   : > { %14298 = vrcp.f32 %v3510_v60 }
 0xc98   : > { %v3515_v0 = vpop.permute.xlu0 %3514 }
 0xc99   : > { %12734 = vmatpush3.msra.mxu0 %v3515_v0 }
 0xc9a   : > { %12738 = vmatprep.subr.mxu0 %v14915_v53 }
 0xc9c   : > { %v4097_v6 = vpop.permute.xlu0 %4096 }
 0xc9f   : > { %v14299_v49 = vpop.eup %14298 }
 0xca0   : > { %v3512_v4 = vmul.f32 %v14299_v49, %v14297_v51 }
 0xca2   : > { %12736 = vmatmul.mubr.msk.f32.vlgmr.msra.gmra.mrb[30].mxu0 %vm2999_vm3, %v3512_v4 }
 0xca3   : > { %12739 = vmatpush3.xpose.msk.msra.mxu0 %vm2920_vm1, %v12851_v2  ;;  %12740 = vmatprep.mubr.msk.f32.mxu0 %vm14916_vm0, %v14915_v53 }
 0xca4   : > { %12748 = vmatprep.subr.mxu0 %v14915_v53 }
 0xca6   : > { %12741 = vmatmul.mubr.msk.f32.vlgmr.msra.gmra.mrb[32].mxu0 %vm2920_vm1, %v15924_v37  ;;  %v4095_v37 = vpop.permute.xlu1 %4094 }
 0xca7   : > { %12749 = vmatpush3.xpose.msk.msra.mxu0 %vm2920_vm1, %v3761_v5  ;;  %12750 = vmatprep.mubr.msk.f32.mxu0 %vm14916_vm0, %v14915_v53 }
 0xca8   : > { %12758 = vmatprep.subr.mxu0 %v14915_v53 }
 0xcaa   : > { %12751 = vmatmul.mubr.msk.f32.vlgmr.msra.gmra.mrb[34].mxu0 %vm2920_vm1, %v3759_v7 }
 0xcab   : > { %12759 = vmatpush3.xpose.msk.msra.mxu0 %vm2920_vm1, %v15931_v47  ;;  %12760 = vmatprep.mubr.msk.f32.mxu0 %vm14916_vm0, %v14915_v53  ;;  %v4433_v47 = vpop.permute.xlu0 %4432 }
 0xcac   : > { %12768 = vmatprep.subr.mxu0 %v14915_v53 }
 0xcae   : > { %12761 = vmatmul.mubr.msk.f32.vlgmr.msra.gmra.mrb[36].mxu0 %vm2920_vm1, %v15902_v12  ;;  %v4431_v12 = vpop.permute.xlu1 %4430 }
 0xcaf   : > { %12769 = vmatpush3.xpose.msk.msra.mxu0 %vm2920_vm1, %v4097_v6  ;;  %12770 = vmatprep.mubr.msk.f32.mxu0 %vm14916_vm0, %v14915_v53 }
 0xcb0   : > { %12778 = vmatprep.subr.mxu0 %v14915_v53 }
 0xcb2   : > { %12771 = vmatmul.mubr.msk.f32.vlgmr.msra.gmra.mrb[38].mxu0 %vm2920_vm1, %v4095_v37 }
 0xcb3   : > { %12779 = vmatpush3.xpose.msk.msra.mxu0 %vm2920_vm1, %v15957_v1  ;;  %12780 = vmatprep.mubr.msk.f32.mxu0 %vm14916_vm0, %v14915_v53  ;;  %v4769_v1 = vpop.permute.xlu0 %4768 }
 0xcb4   : > { %12788 = vmatprep.subr.mxu0 %v14915_v53 }
 0xcb6   : > { %12781 = vmatmul.mubr.msk.f32.vlgmr.msra.gmra.mrb[40].mxu0 %vm2920_vm1, %v15905_v14  ;;  %v4767_v14 = vpop.permute.xlu1 %4766 }
 0xcb7   : > { %12789 = vmatpush3.xpose.msk.msra.mxu0 %vm2920_vm1, %v4433_v47  ;;  %12790 = vmatprep.mubr.msk.f32.mxu0 %vm14916_vm0, %v14915_v53 }
 0xcb8   : > { %12798 = vmatprep.subr.mxu0 %v14915_v53 }
 0xcba   : > { %12791 = vmatmul.mubr.msk.f32.vlgmr.msra.gmra.mrb[42].mxu0 %vm2920_vm1, %v4431_v12 }
 0xcbb   : > { %12799 = vmatpush3.xpose.msk.msra.mxu0 %vm2920_vm1, %v15960_v50  ;;  %12800 = vmatprep.mubr.msk.f32.mxu0 %vm14916_vm0, %v14915_v53 }
 0xcbc   : > { %12808 = vmatprep.subr.mxu0 %v14915_v53 }
 0xcbe   : > { %12801 = vmatmul.mubr.msk.f32.vlgmr.msra.gmra.mrb[44].mxu0 %vm2920_vm1, %v15929_v46 }
 0xcbf   : > { %12809 = vmatpush3.xpose.msk.msra.mxu0 %vm2920_vm1, %v4769_v1  ;;  %12810 = vmatprep.mubr.msk.f32.mxu0 %vm14916_vm0, %v14915_v53 }
 0xcc2   : > { %12811 = vmatmul.mubr.msk.f32.vlgmr.msra.gmra.mrb[46].mxu0 %vm2920_vm1, %v4767_v14 }
 0xd75   : > { %v16092_v13 = vpop.f32.mrb[30].mxu0 }
 0xd76   : > { %v12737_v50 = vpop.f32.mrb[31].mxu0 }
 0xd79   : > { %v3667_v16 = vpop.f32.mrb[32].mxu0 }
 0xd7a   : > { %v3671_v19 = vmul.f32 0.125, %v3667_v16  ;;  %v12742_v9 = vpop.f32.mrb[33].mxu0 }
 0xd7c   : > { %v3672_v52 = vadd.f32 %v3671_v19, %v15970_v20 }
 0xd7d   : > { %v3832_v57 = vpop.f32.mrb[34].mxu0 }
 0xd7e   : > { %v3836_v58 = vmul.f32 0.125, %v3832_v57  ;;  %v12752_v21 = vpop.f32.mrb[35].mxu0  ;;  %v3673_v46 = vsel %vm2999_vm3, %v3672_v52, -inf }
 0xd7f   : > { %3674 = vmax.xlane.f32.xlu0 %v3673_v46 }
 0xd80   : > { %v3837_v22 = vadd.f32 %v3836_v58, %v15970_v20 }
 0xd81   : > { %v4003_v24 = vpop.f32.mrb[36].mxu0 }
 0xd82   : > { %v4007_v23 = vmul.f32 0.125, %v4003_v24  ;;  %v12762_v25 = vpop.f32.mrb[37].mxu0  ;;  %v3838_v27 = vsel %vm2999_vm3, %v3837_v22, -inf }
 0xd83   : > { %3839 = vmax.xlane.f32.xlu1 %v3838_v27 }
 0xd84   : > { %v4008_v28 = vadd.f32 %v4007_v23, %v15970_v20 }
 0xd85   : > { %v4168_v29 = vpop.f32.mrb[38].mxu0 }
 0xd86   : > { %v4172_v35 = vmul.f32 0.125, %v4168_v29  ;;  %v12772_v26 = vpop.f32.mrb[39].mxu0  ;;  %v4009_v36 = vsel %vm2999_vm3, %v4008_v28, -inf }
 0xd87   : > { %4010 = vmax.xlane.f32.xlu0 %v4009_v36 }
 0xd88   : > { %v4173_v38 = vadd.f32 %v4172_v35, %v15970_v20 }
 0xd89   : > { %v4339_v40 = vpop.f32.mrb[40].mxu0 }
 0xd8a   : > { %v4343_v45 = vmul.f32 0.125, %v4339_v40  ;;  %v12782_v42 = vpop.f32.mrb[41].mxu0  ;;  %v4174_v44 = vsel %vm2999_vm3, %v4173_v38, -inf }
 0xd8b   : > { %4175 = vmax.xlane.f32.xlu0 %v4174_v44 }
 0xd8c   : > { %v4344_v48 = vadd.f32 %v4343_v45, %v15970_v20 }
 0xd8d   : > { %v4504_v43 = vpop.f32.mrb[42].mxu0 }
 0xd8e   : > { %v4508_v54 = vmul.f32 0.125, %v4504_v43  ;;  %v12792_v55 = vpop.f32.mrb[43].mxu0  ;;  %v4345_v2 = vsel %vm2999_vm3, %v4344_v48, -inf }
 0xd8f   : > { %4346 = vmax.xlane.f32.xlu0 %v4345_v2 }
 0xd90   : > { %v4509_v61 = vadd.f32 %v4508_v54, %v15970_v20 }
 0xd91   : > { %v4675_v62 = vpop.f32.mrb[44].mxu0 }
 0xd92   : > { %v4679_v63 = vmul.f32 0.125, %v4675_v62  ;;  %v12802_v51 = vpop.f32.mrb[45].mxu0  ;;  %v4510_v59 = vsel %vm2999_vm3, %v4509_v61, -inf }
 0xd93   : > { %4511 = vmax.xlane.f32.xlu1 %v4510_v59 }
 0xd94   : > { %v16107_v60 = vadd.f32 %v4679_v63, %v15970_v20 }
 0xd95   : > { %v4840_v0 = vpop.f32.mrb[46].mxu0 }
 0xd96   : > { %v4844_v49 = vmul.f32 0.125, %v4840_v0  ;;  %v12812_v4 = vpop.f32.mrb[47].mxu0  ;;  %v4681_v5 = vsel %vm2999_vm3, %v16107_v60, -inf }
 0xd97   : > { %4682 = vmax.xlane.f32.xlu0 %v4681_v5 }
 0xd98   : > { %v4845_v7 = vadd.f32 %v4844_v49, %v15970_v20 }
 0xd9a   : > { %v4846_v6 = vsel %vm2999_vm3, %v4845_v7, -inf }
 0xd9b   : > { %4847 = vmax.xlane.f32.xlu1 %v4846_v6 }
 0xe0c   : > { %v3675_v37 = vpop.xlane.xlu0 %3674 }
 0xe0d   : > { %v3676_v47 = vsub.f32 %v3672_v52, %v3675_v37 }
 0xe0f   : > { %v3677_v12 = vmul.f32 1.442695, %v3676_v47 }
 0xe10   : > { %v3840_v1 = vpop.xlane.xlu1 %3839 }
 0xe11   : > { %14300 = vpow2.f32 %v3677_v12  ;;  %v3841_v14 = vsub.f32 %v3837_v22, %v3840_v1 }
 0xe13   : > { %v3842_v50 = vmul.f32 1.442695, %v3841_v14 }
 0xe14   : > { %v4011_v16 = vpop.xlane.xlu0 %4010 }
 0xe15   : > { %14302 = vpow2.f32 %v3842_v50  ;;  %v4012_v19 = vsub.f32 %v4008_v28, %v4011_v16 }
 0xe17   : > { %v4013_v9 = vmul.f32 1.442695, %v4012_v19 }
 0xe18   : > { %v4176_v57 = vpop.xlane.xlu0 %4175 }
 0xe19   : > { %14304 = vpow2.f32 %v4013_v9  ;;  %v4177_v58 = vsub.f32 %v4173_v38, %v4176_v57 }
 0xe1b   : > { %v14301_v21 = vpop.eup %14300  ;;  %v4178_v46 = vmul.f32 1.442695, %v4177_v58 }
 0xe1c   : > { %v4347_v20 = vpop.xlane.xlu0 %4346  ;;  %v3679_v24 = vsel %vm2999_vm3, %v14301_v21, 0.0 }
 0xe1d   : > { %14306 = vpow2.f32 %v4178_v46  ;;  %v4348_v23 = vsub.f32 %v4344_v48, %v4347_v20  ;;  %3680 = vadd.xlane.f32.xlu0 %v3679_v24 }
 0xe1f   : > { %v14303_v52 = vpop.eup %14302  ;;  %v4349_v25 = vmul.f32 1.442695, %v4348_v23 }
 0xe20   : > { %v3844_v22 = vsel %vm2999_vm3, %v14303_v52, 0.0  ;;  %v4512_v38 = vpop.xlane.xlu1 %4511 }
 0xe21   : > { %14308 = vpow2.f32 %v4349_v25  ;;  %3845 = vadd.xlane.f32.xlu1 %v3844_v22  ;;  %v4513_v40 = vsub.f32 %v4509_v61, %v4512_v38  ;;  %v13368_v25 = vld [vmem:[%s15514_s30] ss:$12 sps:$4 sm:$0xff]   ;;  %v13370_v22 = vld [vmem:[%s15514_s30 + $0x4] ss:$12 sps:$4 sm:$0xff]  }
 0xe22   : > { %5445 = vmatprep.subr.bf16.mxu0 %v13370_v22  ;;  %v13374_v38 = vld [vmem:[%s15514_s30 + $0x30] ss:$12 sps:$4 sm:$0xff]   ;;  %v13429_v22 = vld [vmem:[%s15514_s30 + $0x16c] ss:$12 sps:$4 sm:$0xff]  }
 0xe23   : > { %v14305_v27 = vpop.eup %14304  ;;  %v4514_v42 = vmul.f32 1.442695, %v4513_v40  ;;  %5446 = vmatpush1.bf16.msra.mxu0 %v13368_v25  ;;  %v13396_v40 = vld [vmem:[%s15514_s30 + $0x8] ss:$12 sps:$4 sm:$0xff]   ;;  %v13426_v25 = vld [vmem:[%s15514_s30 + $0x98] ss:$12 sps:$4 sm:$0xff]  }
 0xe24   : > { %v4015_v28 = vsel %vm2999_vm3, %v14305_v27, 0.0 }
 0xe25   : > { %4016 = vadd.xlane.f32.xlu0 %v4015_v28  ;;  %14310 = vpow2.f32 %v4514_v42  ;;  %v13371_v28 = vld [vmem:[%s15514_s30 + $0x18] ss:$12 sps:$4 sm:$0xff]   ;;  %v13400_v42 = vld [vmem:[%s15514_s30 + $0xe0] ss:$12 sps:$4 sm:$0xff]  }
 0xe27   : > { %v16116_v29 = vpop.eup %14306 }
 0xe28   : > { %v4180_v35 = vsel %vm2999_vm3, %v16116_v29, 0.0  ;;  %v4848_v45 = vpop.xlane.xlu1 %4847 }
 0xe29   : > { %4181 = vadd.xlane.f32.xlu1 %v4180_v35  ;;  %v4849_v44 = vsub.f32 %v4845_v7, %v4848_v45  ;;  %v13376_v35 = vld [vmem:[%s15514_s30 + $0x34] ss:$12 sps:$4 sm:$0xff]   ;;  %v13379_v45 = vld [vmem:[%s15514_s30 + $0x4c] ss:$12 sps:$4 sm:$0xff]  }
 0xe2b   : > { %v16120_v26 = vpop.eup %14308  ;;  %v4850_v48 = vmul.f32 1.442695, %v4849_v44  ;;  %v13401_v44 = vld [vmem:[%s15514_s30 + $0x20] ss:$12 sps:$4 sm:$0xff]  }
 0xe2c   : > { %v4351_v36 = vsel %vm2999_vm3, %v16120_v26, 0.0 }
 0xe2d   : > { %4352 = vadd.xlane.f32.xlu0 %v4351_v36  ;;  %14312 = vpow2.f32 %v4850_v48  ;;  %v13395_v36 = vld [vmem:[%s15514_s30 + $0xc8] ss:$12 sps:$4 sm:$0xff]   ;;  %v13405_v48 = vld [vmem:[%s15514_s30 + $0xf8] ss:$12 sps:$4 sm:$0xff]  }
 0xe2f   : > { %v16128_v43 = vpop.eup %14310 }
 0xe30   : > { %v4516_v54 = vsel %vm2999_vm3, %v16128_v43, 0.0 }
 0xe37   : > { %v16132_v55 = vpop.eup %14312 }
 0xe38   : > { %v4852_v2 = vsel %vm2999_vm3, %v16132_v55, 0.0 }
 0xe3a   : > { %4186 = vrot.lane.b32.xlu1 %v15922_v31, %s14918_s27 }
 0xe43   : > { %3850 = vrot.lane.b32.xlu0 %v15963_v8, %s14918_s27  ;;  %v4683_v8 = vpop.xlane.xlu0 %4682 }
 0xe44   : > { %v4684_v61 = vsub.f32 %v16107_v60, %v4683_v8  ;;  %v13406_v8 = vld [vmem:[%s15514_s30 + $0x38] ss:$12 sps:$4 sm:$0xff]  }
 0xe46   : > { %v4685_v62 = vmul.f32 1.442695, %v4684_v61  ;;  %v13410_v61 = vld [vmem:[%s15514_s30 + $0x110] ss:$12 sps:$4 sm:$0xff]  }
 0xe48   : > { %14314 = vpow2.f32 %v4685_v62  ;;  %v13380_v62 = vld [vmem:[%s15514_s30 + $0x60] ss:$12 sps:$4 sm:$0xff]  }
 0xe52   : > { %v16143_v63 = vpop.eup %14314 }
 0xe53   : > { %v4687_v51 = vsel %vm2999_vm3, %v16143_v63, 0.0 }
 0xe5e   : > { %4517 = vadd.xlane.f32.xlu1 %v4516_v54 }
 0xe62   : > { %4853 = vadd.xlane.f32.xlu0 %v4852_v2 }
 0xe6f   : > { %4522 = vrot.lane.b32.xlu1 %v15927_v39, %s14918_s27 }
 0xe78   : > { %4858 = vrot.lane.b32.xlu0 %v15966_v11, %s14918_s27 }
 0xe7c   : > { %3254 = vrot.lane.b32.xlu0 %v16008_v10, %s14918_s27 }
 0xe93   : > { %4688 = vadd.xlane.f32.xlu1 %v4687_v51  ;;  %v13385_v51 = vld [vmem:[%s15514_s30 + $0x7c] ss:$12 sps:$4 sm:$0xff]  }
 0xea4   : > { %3591 = vrot.lane.b32.xlu1 %v16092_v13, %s14918_s27 }
 0xeaa   : > { %v3681_v59 = vpop.xlane.xlu0 %3680 }
 0xeab   : > { %14316 = vrcp.f32 %v3681_v59 }
 0xeae   : > { %v3846_v0 = vpop.xlane.xlu1 %3845 }
 0xeaf   : > { %14318 = vrcp.f32 %v3846_v0  ;;  %v13411_v0 = vld [vmem:[%s15514_s30 + $0x50] ss:$12 sps:$4 sm:$0xff]  }
 0xeb2   : > { %v4017_v49 = vpop.xlane.xlu0 %4016 }
 0xeb3   : > { %14320 = vrcp.f32 %v4017_v49  ;;  %v13415_v49 = vld [vmem:[%s15514_s30 + $0x128] ss:$12 sps:$4 sm:$0xff]  }
 0xeb5   : > { %v14317_v4 = vpop.eup %14316 }
 0xeb6   : > { %v3683_v10 = vmul.f32 %v14317_v4, %v14301_v21  ;;  %v4182_v60 = vpop.xlane.xlu1 %4181  ;;  %v13383_v4 = vld [vmem:[%s15514_s30 + $0x78] ss:$12 sps:$4 sm:$0xff]  }
 0xeb7   : > { %14322 = vrcp.f32 %v4182_v60  ;;  %v13388_v60 = vld [vmem:[%s15514_s30 + $0x94] ss:$12 sps:$4 sm:$0xff]  }
 0xeb8   : > { %12746 = vmatmul.mubr.msk.f32.vlgmr.msra.gmra.mrb[12].mxu1 %vm2999_vm3, %v3683_v10 }
 0xeb9   : > { %12755 = vmatprep.mubr.msk.f32.mxu1 %vm14916_vm0, %v14915_v53  ;;  %v14319_v7 = vpop.eup %14318 }
 0xeba   : > { %v4353_v5 = vpop.xlane.xlu0 %4352  ;;  %v3848_v6 = vmul.f32 %v14319_v7, %v14303_v52  ;;  %v4187_v1 = vpop.permute.xlu1 %4186  ;;  %v13416_v7 = vld [vmem:[%s15514_s30 + $0x68] ss:$12 sps:$4 sm:$0xff]  }
 0xebb   : > { %14324 = vrcp.f32 %v4353_v5 }
 0xebd   : > { %v14321_v37 = vpop.eup %14320 }
 0xebe   : > { %v3851_v13 = vpop.permute.xlu0 %3850  ;;  %v4019_v47 = vmul.f32 %v14321_v37, %v14305_v27  ;;  %v13373_v27 = vld [vmem:[%s15514_s30 + $0x1c] ss:$12 sps:$4 sm:$0xff]   ;;  %v13391_v37 = vld [vmem:[%s15514_s30 + $0xac] ss:$12 sps:$4 sm:$0xff]  }
 0xebf   : > { %12754 = vmatpush3.msra.mxu1 %v3851_v13  ;;  %5447 = vmatprep.subr.bf16.mxu0 %v13373_v27  ;;  %v13427_v27 = vld [vmem:[%s15514_s30 + $0x168] ss:$12 sps:$4 sm:$0xff]  }
 0xec0   : > { %12756 = vmatmul.mubr.msk.f32.vlgmr.msra.gmra.mrb[14].mxu1 %vm2999_vm3, %v3848_v6  ;;  %12763 = vmatprep.subr.mxu1 %v14915_v53  ;;  %v13386_v6 = vld [vmem:[%s15514_s30 + $0x90] ss:$12 sps:$4 sm:$0xff]  }
 0xec1   : > { %12764 = vmatpush3.msra.mxu1 %v15922_v31  ;;  %12765 = vmatprep.mubr.msk.f32.mxu1 %vm14916_vm0, %v14915_v53  ;;  %v14323_v12 = vpop.eup %14322 }
 0xec2   : > { %12773 = vmatprep.subr.mxu1 %v14915_v53  ;;  %v4184_v14 = vmul.f32 %v14323_v12, %v16116_v29  ;;  %5448 = vmatpush1.bf16.msra.mxu0 %v13371_v28  ;;  %v13389_v12 = vld [vmem:[%s15514_s30 + $0xa8] ss:$12 sps:$4 sm:$0xff]   ;;  %v13430_v28 = vld [vmem:[%s15514_s30 + $0x170] ss:$12 sps:$4 sm:$0xff]  }
 0xec3   : > { %5449 = vmatprep.subr.bf16.mxu0 %v13376_v35 }
 0xec4   : > { %12766 = vmatmul.mubr.msk.f32.vlgmr.msra.gmra.mrb[16].mxu1 %vm2999_vm3, %v4019_v47 }
 0xec5   : > { %12774 = vmatpush3.msra.mxu1 %v4187_v1  ;;  %12775 = vmatprep.mubr.msk.f32.mxu1 %vm14916_vm0, %v14915_v53  ;;  %v14325_v50 = vpop.eup %14324  ;;  %v13394_v1 = vld [vmem:[%s15514_s30 + $0xc4] ss:$12 sps:$4 sm:$0xff]  }
 0xec6   : > { %12783 = vmatprep.subr.mxu1 %v14915_v53  ;;  %v4355_v31 = vmul.f32 %v14325_v50, %v16120_v26  ;;  %5450 = vmatpush1.bf16.msra.mxu0 %v13374_v38  ;;  %v13399_v50 = vld [vmem:[%s15514_s30 + $0xdc] ss:$12 sps:$4 sm:$0xff]  }
 0xec7   : > { %5451 = vmatprep.subr.bf16.mxu0 %v13379_v45 }
 0xec8   : > { %12776 = vmatmul.mubr.msk.f32.vlgmr.msra.gmra.mrb[18].mxu1 %vm2999_vm3, %v4184_v14  ;;  %v13392_v14 = vld [vmem:[%s15514_s30 + $0xc0] ss:$12 sps:$4 sm:$0xff]  }
 0xec9   : > { %12784 = vmatpush3.msra.mxu1 %v15927_v39  ;;  %12785 = vmatprep.mubr.msk.f32.mxu1 %vm14916_vm0, %v14915_v53 }
 0xeca   : > { %12793 = vmatprep.subr.mxu1 %v14915_v53 }
 0xecc   : > { %12786 = vmatmul.mubr.msk.f32.vlgmr.msra.gmra.mrb[20].mxu1 %vm2999_vm3, %v4355_v31  ;;  %v13397_v31 = vld [vmem:[%s15514_s30 + $0xd8] ss:$12 sps:$4 sm:$0xff]  }
 0xecd   : > { %12795 = vmatprep.mubr.msk.f32.mxu1 %vm14916_vm0, %v14915_v53 }
 0xeeb   : > { %v4518_v16 = vpop.xlane.xlu1 %4517 }
 0xeec   : > { %14326 = vrcp.f32 %v4518_v16  ;;  %v13404_v16 = vld [vmem:[%s15514_s30 + $0xf4] ss:$12 sps:$4 sm:$0xff]  }
 0xeef   : > { %v4854_v19 = vpop.xlane.xlu0 %4853  ;;  %v4523_v9 = vpop.permute.xlu1 %4522 }
 0xef0   : > { %12794 = vmatpush3.msra.mxu1 %v4523_v9  ;;  %v13409_v9 = vld [vmem:[%s15514_s30 + $0x10c] ss:$12 sps:$4 sm:$0xff]  }
 0xef1   : > { %12803 = vmatprep.subr.mxu1 %v14915_v53 }
 0xef3   : > { %v4859_v39 = vpop.permute.xlu0 %4858 }
 0xef6   : > { %v14327_v57 = vpop.eup %14326 }
 0xef7   : > { %v4520_v58 = vmul.f32 %v14327_v57, %v16128_v43  ;;  %v3255_v21 = vpop.permute.xlu0 %3254  ;;  %v13377_v43 = vld [vmem:[%s15514_s30 + $0x48] ss:$12 sps:$4 sm:$0xff]   ;;  %v13414_v57 = vld [vmem:[%s15514_s30 + $0x124] ss:$12 sps:$4 sm:$0xff]  }
 0xef8   : > { %3258 = vst.msk [vmem:[#allocation3] sm:$0xff] %vm3257_vm4, %v3255_v21  ;;  %5452 = vmatpush1.bf16.msra.mxu0 %v13377_v43  ;;  %v13417_v21 = vld [vmem:[%s15514_s30 + $0x138] ss:$12 sps:$4 sm:$0xff]  }
 0xef9   : > { %12796 = vmatmul.mubr.msk.f32.vlgmr.msra.gmra.mrb[22].mxu1 %vm2999_vm3, %v4520_v58  ;;  %v13412_v58 = vld [vmem:[%s15514_s30 + $0x120] ss:$12 sps:$4 sm:$0xff]  }
 0xefa   : > { %12804 = vmatpush3.msra.mxu1 %v15966_v11  ;;  %12805 = vmatprep.mubr.msk.f32.mxu1 %vm14916_vm0, %v14915_v53 }
 0xefb   : > { %12813 = vmatprep.subr.mxu1 %v14915_v53 }
 0xf20   : > { %v4689_v46 = vpop.xlane.xlu1 %4688 }
 0xf21   : > { %14328 = vrcp.f32 %v4689_v46  ;;  %v13419_v46 = vld [vmem:[%s15514_s30 + $0x13c] ss:$12 sps:$4 sm:$0xff]  }
 0xf22   : > { %14330 = vrcp.f32 %v4854_v19  ;;  %v13402_v19 = vld [vmem:[%s15514_s30 + $0xf0] ss:$12 sps:$4 sm:$0xff]  }
 0xf24   : > { %v3592_v20 = vpop.permute.xlu1 %3591 }
 0xf25   : > { %3594 = vst.msk [vmem:[#allocation3 + $0x8] sm:$0xff] %vm3257_vm4, %v3592_v20  ;;  %v13420_v20 = vld [vmem:[%s15514_s30 + $0x140] ss:$12 sps:$4 sm:$0xff]  }
 0xf2b   : > { %v14329_v24 = vpop.eup %14328 }
 0xf2c   : > { %v4691_v23 = vmul.f32 %v14329_v24, %v16143_v63  ;;  %v14331_v11 = vpop.eup %14330  ;;  %v13421_v24 = vld [vmem:[%s15514_s30 + $0x80] ss:$12 sps:$4 sm:$0xff]  }
 0xf2d   : > { %v4856_v52 = vmul.f32 %v14331_v11, %v16132_v55  ;;  %v13382_v55 = vld [vmem:[%s15514_s30 + $0x64] ss:$12 sps:$4 sm:$0xff]   ;;  %v13424_v11 = vld [vmem:[%s15514_s30 + $0x154] ss:$12 sps:$4 sm:$0xff]  }
 0xf2e   : > { %12806 = vmatmul.mubr.msk.f32.vlgmr.msra.gmra.mrb[24].mxu1 %vm2999_vm3, %v4691_v23  ;;  %5453 = vmatprep.subr.bf16.mxu0 %v13382_v55  ;;  %v13422_v23 = vld [vmem:[%s15514_s30 + $0x150] ss:$12 sps:$4 sm:$0xff]  }
 0xf2f   : > { %12814 = vmatpush3.msra.mxu1 %v4859_v39  ;;  %12815 = vmatprep.mubr.msk.f32.mxu1 %vm14916_vm0, %v14915_v53  ;;  %v13407_v39 = vld [vmem:[%s15514_s30 + $0x108] ss:$12 sps:$4 sm:$0xff]  }
 0xf30   : > { %12515 = vmatprep.subr.bf16.mxu1 %v13395_v36  ;;  %5454 = vmatpush1.bf16.msra.mxu0 %v13380_v62  ;;  %v13434_v36 = vld [vmem:[%s15514_s30 + $0x184] ss:$12 sps:$4 sm:$0xff]   ;;  %v13432_v62 = vld [vmem:[%s15514_s30 + $0x180] ss:$12 sps:$4 sm:$0xff]  }
 0xf31   : > { %5455 = vmatprep.subr.bf16.mxu0 %v13385_v51 }
 0xf32   : > { %12816 = vmatmul.mubr.msk.f32.vlgmr.msra.gmra.mrb[26].mxu1 %vm2999_vm3, %v4856_v52  ;;  %v13425_v52 = vld [vmem:[%s15514_s30 + $0x158] ss:$12 sps:$4 sm:$0xff]  }
 0xf33   : > { %12516 = vmatpush3.bf16.msra.mxu1 %v13396_v40 }
 0xf34   : > { %12517 = vmatprep.subr.bf16.mxu1 %v13400_v42  ;;  %5456 = vmatpush1.bf16.msra.mxu0 %v13383_v4  ;;  %v13442_v4 = vld [vmem:[%s15514_s30 + $0x1b4] ss:$12 sps:$4 sm:$0xff]  }
 0xf35   : > { %5457 = vmatprep.subr.bf16.mxu0 %v13388_v60  ;;  %v13443_v60 = vld [vmem:[%s15514_s30 + $0x1b8] ss:$12 sps:$4 sm:$0xff]  }
 0xf37   : > { %12518 = vmatpush3.bf16.msra.mxu1 %v13401_v44 }
 0xf38   : > { %12519 = vmatprep.subr.bf16.mxu1 %v13405_v48  ;;  %5458 = vmatpush1.bf16.msra.mxu0 %v13386_v6  ;;  %v13447_v6 = vld [vmem:[%s15514_s30 + $0x1d0] ss:$12 sps:$4 sm:$0xff]  }
 0xf39   : > { %5459 = vmatprep.subr.bf16.mxu0 %v13391_v37  ;;  %v13448_v37 = vld [vmem:[%s15514_s30 + $0x1e0] ss:$12 sps:$4 sm:$0xff]  }
 0xf3b   : > { %12520 = vmatpush3.bf16.msra.mxu1 %v13406_v8  ;;  %v4939_v8 = vld [vmem:[#allocation3] sm:$0xff] }
 0xf3c   : > { %12521 = vmatprep.subr.bf16.mxu1 %v13410_v61  ;;  %5460 = vmatpush1.bf16.msra.mxu0 %v13389_v12  ;;  %v13454_v12 = vld [vmem:[%s15514_s30 + $0x1fc] ss:$12 sps:$4 sm:$0xff]  }
 0xf3d   : > { %5461 = vmatprep.subr.bf16.mxu0 %v13394_v1  ;;  %v13452_v1 = vld [vmem:[%s15514_s30 + $0x1f8] ss:$12 sps:$4 sm:$0xff]  }
 0xf3f   : > { %12522 = vmatpush3.bf16.msra.mxu1 %v13411_v0  ;;  %v13436_v0 = vld [vmem:[%s15514_s30 + $0x198] ss:$12 sps:$4 sm:$0xff]  }
 0xf40   : > { %12523 = vmatprep.subr.bf16.mxu1 %v13415_v49  ;;  %5462 = vmatpush1.bf16.msra.mxu0 %v13392_v14  ;;  %v13439_v49 = vld [vmem:[%s15514_s30 + $0x1a0] ss:$12 sps:$4 sm:$0xff]  }
 0xf41   : > { %5463 = vmatprep.subr.bf16.mxu0 %v13399_v50  ;;  %v13455_v14 = vld [vmem:[%s15514_s30 + $0x200] ss:$12 sps:$4 sm:$0xff]  }
 0xf42   : > { %v13458_v50 = vld [vmem:[%s15514_s30 + $0x214] ss:$12 sps:$4 sm:$0xff]  }
 0xf43   : > { %12524 = vmatpush3.bf16.msra.mxu1 %v13416_v7  ;;  %v13444_v7 = vld [vmem:[%s15514_s30 + $0x1c8] ss:$12 sps:$4 sm:$0xff]  }
 0xf44   : > { %5464 = vmatpush1.bf16.msra.mxu0 %v13397_v31  ;;  %12525 = vmatprep.subr.bf16.mxu1 %v13420_v20  ;;  %v13456_v31 = vld [vmem:[%s15514_s30 + $0x210] ss:$12 sps:$4 sm:$0xff]  }
 0xf45   : > { %5465 = vmatprep.subr.bf16.mxu0 %v13404_v16  ;;  %v13459_v16 = vld [vmem:[%s15514_s30 + $0x218] ss:$12 sps:$4 sm:$0xff]  }
 0xf47   : > { %12526 = vmatpush3.bf16.msra.mxu1 %v13421_v24 }
 0xf48   : > { %5466 = vmatpush1.bf16.msra.mxu0 %v13402_v19  ;;  %12527 = vmatprep.subr.bf16.mxu1 %v13425_v52  ;;  %v13462_v19 = vld [vmem:[%s15514_s30 + $0x22c] ss:$12 sps:$4 sm:$0xff]  }
 0xf49   : > { %5467 = vmatprep.subr.bf16.mxu0 %v13409_v9  ;;  %v13460_v9 = vld [vmem:[%s15514_s30 + $0x228] ss:$12 sps:$4 sm:$0xff]  }
 0xf4b   : > { %12528 = vmatpush3.bf16.msra.mxu1 %v13426_v25 }
 0xf4c   : > { %5468 = vmatpush1.bf16.msra.mxu0 %v13407_v39  ;;  %12529 = vmatprep.subr.bf16.mxu1 %v13430_v28  ;;  %v13463_v39 = vld [vmem:[%s15514_s30 + $0x230] ss:$12 sps:$4 sm:$0xff]  }
 0xf4d   : > { %5469 = vmatprep.subr.bf16.mxu0 %v13414_v57 }
 0xf50   : > { %5470 = vmatpush1.bf16.msra.mxu0 %v13412_v58 }
 0xf51   : > { %5471 = vmatprep.subr.bf16.mxu0 %v13419_v46 }
 0xf54   : > { %5472 = vmatpush1.bf16.msra.mxu0 %v13417_v21 }
 0xf55   : > { %5473 = vmatprep.subr.bf16.mxu0 %v13424_v11 }
 0xf58   : > { %5474 = vmatpush1.bf16.msra.mxu0 %v13422_v23 }
 0xf59   : > { %5475 = vmatprep.subr.bf16.mxu0 %v13429_v22 }
 0xf5c   : > { %5476 = vmatpush1.bf16.msra.mxu0 %v13427_v27  ;;  %v5613_v27 = vld [vmem:[%s17655_s4] sm:$0x7] }
 0xf5d   : > { %5488 = vmatprep.subr.bf16.mxu0 %v13434_v36 }
 0xf8b   : > { %v3753_v29 = vpop.f32.mrb[12].mxu1 }
 0xf8c   : > { %3757 = vst.msk [vmem:[#allocation3 + $0x10] sm:$0xff] %vm2920_vm1, %v3753_v29  ;;  %v12747_v26 = vpop.f32.mrb[13].mxu1  ;;  %v13431_v29 = vld [vmem:[%s15514_s30 + $0xb0] ss:$12 sps:$4 sm:$0xff]  }
 0xf8d   : > { %12530 = vmatpush3.bf16.msra.mxu1 %v13431_v29 }
 0xf8e   : > { %12818 = vmatprep.subr.bf16.mxu1 %v14915_v53 }
 0xf93   : > { %v3922_v54 = vpop.f32.mrb[14].mxu1 }
 0xf94   : > { %3927 = vrot.lane.b32.xlu0 %v3922_v54, %s14918_s27  ;;  %v12757_v2 = vpop.f32.mrb[15].mxu1  ;;  %v4940_v54 = vld [vmem:[#allocation3 + $0x8] sm:$0xff] }
 0xf97   : > { %v4089_v63 = vpop.f32.mrb[16].mxu1 }
 0xf98   : > { %4093 = vst.msk [vmem:[#allocation3 + $0x18] sm:$0xff] %vm2920_vm1, %v4089_v63  ;;  %v12767_v59 = vpop.f32.mrb[17].mxu1  ;;  %v13435_v63 = vld [vmem:[%s15514_s30 + $0x188] ss:$12 sps:$4 sm:$0xff]  }
 0xf99   : > { %v13438_v59 = vld [vmem:[%s15514_s30 + $0x19c] ss:$12 sps:$4 sm:$0xff]  }
 0xf9b   : > { %v16211_v10 = vpop.f32.mrb[18].mxu1 }
 0xf9c   : > { %v12777_v5 = vpop.f32.mrb[19].mxu1 }
 0xf9d   : > { %v13446_v5 = vld [vmem:[%s15514_s30 + $0x1cc] ss:$12 sps:$4 sm:$0xff]  }
 0xf9f   : > { %v4425_v13 = vpop.f32.mrb[20].mxu1 }
 0xfa0   : > { %4429 = vst.msk [vmem:[#allocation3 + $0x20] sm:$0xff] %vm2920_vm1, %v4425_v13  ;;  %v12787_v47 = vpop.f32.mrb[21].mxu1  ;;  %v13450_v13 = vld [vmem:[%s15514_s30 + $0x1e4] ss:$12 sps:$4 sm:$0xff]  }
 0xfa1   : > { %v13451_v47 = vld [vmem:[%s15514_s30 + $0x1e8] ss:$12 sps:$4 sm:$0xff]  }
 0xfcc   : > { %v4594_v35 = vpop.f32.mrb[22].mxu1 }
 0xfcd   : > { %4599 = vrot.lane.b32.xlu1 %v4594_v35, %s14918_s27  ;;  %v12797_v26 = vpop.f32.mrb[23].mxu1  ;;  %v5618_v35 = vrot.slane %v5613_v27, %v15673_v34 }
 0xfd1   : > { %4263 = vrot.lane.b32.xlu1 %v16211_v10, %s14918_s27  ;;  %v13440_v10 = vld [vmem:[%s15514_s30 + $0x1b0] ss:$12 sps:$4 sm:$0xff]   ;;  %s17656_s30 = scalar_lea.vmem [#allocation15], %s15485_s3  ;;  %s17662_s3 = sld [smem:[#allocation36_spill]] }
 0xfd7   : > { %p12433_p6 = scmp.ne.s32.totalorder %s17662_s3, 11 }
0x1001   : > { %v4761_v38 = vpop.f32.mrb[24].mxu1 }
0x1002   : > { %4765 = vst.msk [vmem:[#allocation3 + $0x28] sm:$0xff] %vm2920_vm1, %v4761_v38  ;;  %v12807_v40 = vpop.f32.mrb[25].mxu1 }
0x1003   : > { %v5626_v40 = vrot.slane %v5613_v27, %v15670_v33 }
0x1005   : > { %v4930_v45 = vpop.f32.mrb[26].mxu1 }
0x1006   : > { %v3928_v42 = vpop.permute.xlu0 %3927  ;;  %4935 = vrot.lane.b32.xlu1 %v4930_v45, %s14918_s27  ;;  %v12817_v44 = vpop.f32.mrb[27].mxu1  ;;  %v5622_v45 = vrot.slane %v5613_v27, %v15667_v32  ;;  %v13476_v27 = vld [vmem:[%s15532_s17 + $0xc0] ss:$48 sps:$4 sm:$0xff]  }
0x1007   : > { %3930 = vst.msk [vmem:[#allocation3 + $0x10] sm:$0xff] %vm3257_vm4, %v3928_v42 }
0x100e   : > { %v4941_v58 = vld [vmem:[#allocation3 + $0x10] sm:$0xff] }
0x103f   : > { %v4600_v48 = vpop.permute.xlu1 %4599 }
0x1040   : > { %4602 = vst.msk [vmem:[#allocation3 + $0x20] sm:$0xff] %vm3257_vm4, %v4600_v48 }
0x1043   : > { %v4264_v43 = vpop.permute.xlu1 %4263 }
0x1044   : > { %4266 = vst.msk [vmem:[#allocation3 + $0x18] sm:$0xff] %vm3257_vm4, %v4264_v43 }
0x1047   : > { %v4943_v55 = vld [vmem:[#allocation3 + $0x20] sm:$0xff] }
0x1048   : > { %v4946_v2 = vpack.c.bf16 %v4943_v55, %v4940_v54 }
0x104a   : > { %5477 = vmatprep.mubr.bf16.mxu0 %v4946_v2  ;;  %5563 = vmatprep.mubr.bf16.mxu1 %v4946_v2 }
0x104b   : > { %v4942_v61 = vld [vmem:[#allocation3 + $0x18] sm:$0xff] }
0x104c   : > { %v4945_v51 = vpack.c.bf16 %v4942_v61, %v4939_v8 }
0x104e   : > { %5478 = vmatmul.mubr.bf16.vlgmr.msra.gmra.mrb[48].mxu0 %v4945_v51  ;;  %5564 = vmatmul.mubr.bf16.vlgmr.msra.gmra.mrb[28].mxu1 %v4945_v51 }
0x104f   : > { %5489 = vmatpush1.bf16.msra.mxu0 %v13432_v62  ;;  %12819 = vmatpush3.bf16.msra.mxu1 %v13435_v63 }
0x1050   : > { %5490 = vmatprep.subr.bf16.mxu0 %v13438_v59  ;;  %12820 = vmatprep.subr.bf16.mxu1 %v14915_v53 }
0x1051   : > { %5520 = vmatprep.mubr.bf16.mxu0 %v14914_v17  ;;  %12834 = vmatprep.mubr.msk.bf16.mxu1 %vm14916_vm0, %v14915_v53 }
0x1053   : > { %5491 = vmatpush1.bf16.msra.mxu0 %v13436_v0  ;;  %12821 = vmatpush3.bf16.msra.mxu1 %v13439_v49 }
0x1054   : > { %5492 = vmatprep.subr.bf16.mxu0 %v13442_v4  ;;  %12822 = vmatprep.subr.bf16.mxu1 %v14915_v53 }
0x1057   : > { %5493 = vmatpush1.bf16.msra.mxu0 %v13440_v10  ;;  %12823 = vmatpush3.bf16.msra.mxu1 %v13443_v60  ;;  %v14432_v10 = vld [vmem:[#allocation2] sm:$0xff] }
0x1058   : > { %5494 = vmatprep.subr.bf16.mxu0 %v13446_v5  ;;  %12824 = vmatprep.subr.bf16.mxu1 %v14915_v53 }
0x105b   : > { %5495 = vmatpush1.bf16.msra.mxu0 %v13444_v7  ;;  %12825 = vmatpush3.bf16.msra.mxu1 %v13447_v6  ;;  %v14433_v7 = vld [vmem:[#allocation2 + $0x8] sm:$0xff] }
0x105c   : > { %5496 = vmatprep.subr.bf16.mxu0 %v13450_v13  ;;  %12826 = vmatprep.subr.bf16.mxu1 %v14915_v53 }
0x105f   : > { %5497 = vmatpush1.bf16.msra.mxu0 %v13448_v37  ;;  %12827 = vmatpush3.bf16.msra.mxu1 %v13451_v47  ;;  %v14434_v47 = vld [vmem:[#allocation2 + $0x18] sm:$0xff] }
0x1060   : > { %5498 = vmatprep.subr.bf16.mxu0 %v13454_v12  ;;  %12828 = vmatprep.subr.bf16.mxu1 %v14915_v53 }
0x1063   : > { %5499 = vmatpush1.bf16.msra.mxu0 %v13452_v1  ;;  %12829 = vmatpush3.bf16.msra.mxu1 %v13455_v14  ;;  %v14435_v1 = vld [vmem:[#allocation2 + $0x10] sm:$0xff] }
0x1064   : > { %5500 = vmatprep.subr.bf16.mxu0 %v13458_v50  ;;  %12830 = vmatprep.subr.bf16.mxu1 %v14915_v53  ;;  %v14436_v50 = vld [vmem:[#allocation2 + $0x20] sm:$0xff] }
0x1067   : > { %5501 = vmatpush1.bf16.msra.mxu0 %v13456_v31  ;;  %12831 = vmatpush3.bf16.msra.mxu1 %v13459_v16 }
0x1068   : > { %5502 = vmatprep.subr.bf16.mxu0 %v13462_v19  ;;  %12832 = vmatprep.subr.bf16.mxu1 %v14915_v53  ;;  %v5044_v53 = vld [vmem:[%s17654_s19] sm:$0x7]  ;;  %v14437_v19 = vld [vmem:[#allocation2 + $0x28] sm:$0xff] }
0x1069   : > { %v5057_v22 = vrot.slane %v5044_v53, %v15670_v33  ;;  %v5049_v28 = vrot.slane %v5044_v53, %v15673_v34  ;;  %v5053_v29 = vrot.slane %v5044_v53, %v15667_v32  ;;  %v13478_v53 = vld [vmem:[%s15532_s17 + $0xc4] ss:$48 sps:$4 sm:$0xff]  }
0x106b   : > { %5503 = vmatpush1.bf16.msra.mxu0 %v13460_v9  ;;  %12833 = vmatpush3.bf16.msra.mxu1 %v13463_v39 }
0x1078   : > { %v4936_v57 = vpop.permute.xlu1 %4935 }
0x1079   : > { %4938 = vst.msk [vmem:[#allocation3 + $0x28] sm:$0xff] %vm3257_vm4, %v4936_v57 }
0x1080   : > { %v4944_v21 = vld [vmem:[#allocation3 + $0x28] sm:$0xff] }
0x1081   : > { %v4947_v46 = vpack.c.bf16 %v4944_v21, %v4941_v58  ;;  %v13464_v21 = vld [vmem:[%s15532_s17] ss:$48 sps:$4 sm:$0xff]  }
0x1083   : > { %5521 = vmatmul.mubr.bf16.vlgmr.msra.gmra.mrb[48].mxu0 %v4947_v46  ;;  %12835 = vmatmul.mubr.bf16.vlgmr.msra.gmra.mrb[32].mxu1 %v4947_v46  ;;  %v13466_v46 = vld [vmem:[%s15532_s17 + $0x4] ss:$48 sps:$4 sm:$0xff]  }
0x1084   : > { %7525 = vmatprep.subr.bf16.mxu1 %v13466_v46 }
0x1085   : > { %7526 = vmatpush1.bf16.msra.mxu1 %v13464_v21 }
0x1121   : > { %v12531_v20 = vpop.f32.mrb[28].mxu1 }
0x1122   : > { %v12532_v24 = vpop.f32.mrb[29].mxu1 }
0x1123   : > { %v12533_v23 = vadd.f32 %v12532_v24, %v12531_v20  ;;  %v12534_v11 = vpop.f32.mrb[30].mxu1  ;;  %v13467_v20 = vld [vmem:[%s15532_s17 + $0x8] ss:$48 sps:$4 sm:$0xff]   ;;  %v13469_v24 = vld [vmem:[%s15532_s17 + $0xc] ss:$48 sps:$4 sm:$0xff]  }
0x1124   : > { %v12535_v52 = vpop.f32.mrb[31].mxu1  ;;  %7611 = vmatprep.subr.bf16.mxu0 %v13469_v24 }
0x1125   : > { %v12536_v25 = vadd.f32 %v12535_v52, %v12534_v11  ;;  %v5566_v26 = vadd.f32 %v12533_v23, %v5057_v22  ;;  %v13472_v23 = vld [vmem:[%s15532_s17 + $0x64] ss:$48 sps:$4 sm:$0xff]   ;;  %v13475_v11 = vld [vmem:[%s15532_s17 + $0x6c] ss:$48 sps:$4 sm:$0xff]   ;;  %v13470_v52 = vld [vmem:[%s15532_s17 + $0x60] ss:$48 sps:$4 sm:$0xff]   ;;  %7612 = vmatpush1.bf16.msra.mxu0 %v13467_v20 }
0x1126   : > { %7527 = vmatprep.subr.bf16.mxu1 %v13472_v23  ;;  %7613 = vmatprep.subr.bf16.mxu0 %v13475_v11 }
0x1127   : > { %v5569_v54 = vadd.f32 %v12536_v25, %v5057_v22  ;;  %v13473_v25 = vld [vmem:[%s15532_s17 + $0x68] ss:$48 sps:$4 sm:$0xff]   ;;  %v13481_v22 = vld [vmem:[%s15532_s17 + $0xcc] ss:$48 sps:$4 sm:$0xff]   ;;  %7528 = vmatpush1.bf16.msra.mxu1 %v13470_v52 }
0x1128   : > { %7529 = vmatprep.subr.bf16.mxu1 %v13478_v53 }
0x1129   : > { %7614 = vmatpush1.bf16.msra.mxu0 %v13473_v25 }
0x112a   : > { %7615 = vmatprep.subr.bf16.mxu0 %v13481_v22 }
0x112b   : > { %7530 = vmatpush1.bf16.msra.mxu1 %v13476_v27 }
0x1156   : > { %v5522_v36 = vpop.f32.mrb[48].mxu0  ;;  %v5606_v38 = vpop.f32.mrb[32].mxu1 }
0x1157   : > { %v12858_v42 = vadd.f32 %v5522_v36, %v5049_v28  ;;  %v5607_v44 = vadd.f32 %v5606_v38, %v5566_v26  ;;  %v5524_v48 = vpop.f32.mrb[49].mxu0  ;;  %v12836_v43 = vpop.f32.mrb[33].mxu1  ;;  %v13482_v26 = vld [vmem:[%s15532_s17 + $0x120] ss:$48 sps:$4 sm:$0xff]   ;;  %v13485_v36 = vld [vmem:[%s15532_s17 + $0x128] ss:$48 sps:$4 sm:$0xff]  }
0x1158   : > { %v12859_v55 = vadd.f32 %v5524_v48, %v5053_v29  ;;  %v5526_v2 = vpop.f32.mrb[50].mxu0  ;;  %v5609_v8 = vpop.f32.mrb[34].mxu1  ;;  %v13490_v38 = vld [vmem:[%s15532_s17 + $0x184] ss:$48 sps:$4 sm:$0xff]   ;;  %v13499_v48 = vld [vmem:[%s15532_s17 + $0x1ec] ss:$48 sps:$4 sm:$0xff]  }
0x1159   : > { %v5630_v61 = vmul.f32 %v12858_v42, %v5618_v35  ;;  %v12860_v62 = vadd.f32 %v5526_v2, %v5049_v28  ;;  %v5610_v63 = vadd.f32 %v5609_v8, %v5569_v54  ;;  %v5528_v51 = vpop.f32.mrb[51].mxu0  ;;  %v12837_v59 = vpop.f32.mrb[35].mxu1  ;;  %v5632_v0 = vmul.f32 %v5626_v40, %v5607_v44  ;;  %v13479_v28 = vld [vmem:[%s15532_s17 + $0xc8] ss:$48 sps:$4 sm:$0xff]   ;;  %v13496_v44 = vld [vmem:[%s15532_s17 + $0x1e4] ss:$48 sps:$4 sm:$0xff]  }
0x115a   : > { %v5631_v49 = vmul.f32 %v12859_v55, %v5622_v45  ;;  %v12861_v4 = vadd.f32 %v5528_v51, %v5053_v29  ;;  %v13484_v29 = vld [vmem:[%s15532_s17 + $0x124] ss:$48 sps:$4 sm:$0xff]   ;;  %7616 = vmatpush1.bf16.msra.mxu0 %v13479_v28  ;;  %v13491_v42 = vld [vmem:[%s15532_s17 + $0x188] ss:$48 sps:$4 sm:$0xff]   ;;  %v13494_v43 = vld [vmem:[%s15532_s17 + $0x1e0] ss:$48 sps:$4 sm:$0xff]  }
0x115b   : > { %v16295_v60 = vadd.f32 %v14432_v10, %v5630_v61  ;;  %v5633_v5 = vmul.f32 %v12860_v62, %v5618_v35  ;;  %v5635_v13 = vmul.f32 %v5626_v40, %v5610_v63  ;;  %v16301_v14 = vadd.f32 %v14435_v1, %v5632_v0  ;;  %v13487_v35 = vld [vmem:[%s15532_s17 + $0x12c] ss:$48 sps:$4 sm:$0xff]   ;;  %7531 = vmatprep.subr.bf16.mxu1 %v13484_v29  ;;  %v13497_v54 = vld [vmem:[%s15532_s17 + $0x1e8] ss:$48 sps:$4 sm:$0xff]   ;;  %v13502_v55 = vld [vmem:[%s15532_s17 + $0x244] ss:$48 sps:$4 sm:$0xff]  }
0x115c   : > { %v16297_v6 = vadd.f32 %v14433_v7, %v5631_v49  ;;  %v5634_v37 = vmul.f32 %v12861_v4, %v5622_v45  ;;  %7617 = vmatprep.subr.bf16.mxu0 %v13487_v35  ;;  %v13493_v40 = vld [vmem:[%s15532_s17 + $0x18c] ss:$48 sps:$4 sm:$0xff]   ;;  %7532 = vmatpush1.bf16.msra.mxu1 %v13482_v26  ;;  %v13488_v45 = vld [vmem:[%s15532_s17 + $0x180] ss:$48 sps:$4 sm:$0xff]   ;;  %v13503_v61 = vld [vmem:[%s15532_s17 + $0x248] ss:$48 sps:$4 sm:$0xff]  }
0x115d   : > { %v16299_v12 = vadd.f32 %v14434_v47, %v5633_v5  ;;  %v16307_v9 = vadd.f32 %v14437_v19, %v5635_v13  ;;  %7533 = vmatprep.subr.bf16.mxu1 %v13490_v38  ;;  %v13505_v2 = vld [vmem:[%s15532_s17 + $0x24c] ss:$48 sps:$4 sm:$0xff]   ;;  %v13500_v8 = vld [vmem:[%s15532_s17 + $0x240] ss:$48 sps:$4 sm:$0xff]   ;;  %v13508_v62 = vld [vmem:[%s15532_s17 + $0x2a4] ss:$48 sps:$4 sm:$0xff]  }
0x115e   : > { %v16303_v31 = vadd.f32 %v14436_v50, %v5634_v37  ;;  %v5644_v16 = vadd.f32 %v16297_v6, %v16295_v60  ;;  %7618 = vmatpush1.bf16.msra.mxu0 %v13485_v36  ;;  %v13511_v63 = vld [vmem:[%s15532_s17 + $0x2ac] ss:$48 sps:$4 sm:$0xff]   ;;  %v13506_v51 = vld [vmem:[%s15532_s17 + $0x2a0] ss:$48 sps:$4 sm:$0xff]   ;;  %v13509_v59 = vld [vmem:[%s15532_s17 + $0x2a8] ss:$48 sps:$4 sm:$0xff]  }
0x115f   : > { %7619 = vmatprep.subr.bf16.mxu0 %v13493_v40  ;;  %v13514_v0 = vld [vmem:[%s15532_s17 + $0x304] ss:$48 sps:$4 sm:$0xff]   ;;  %v13517_v49 = vld [vmem:[%s15532_s17 + $0x30c] ss:$48 sps:$4 sm:$0xff]   ;;  %v13512_v4 = vld [vmem:[%s15532_s17 + $0x300] ss:$48 sps:$4 sm:$0xff]  }
0x1160   : > { %v5645_v39 = vadd.f32 %v5644_v16, %v16301_v14  ;;  %v5648_v57 = vadd.f32 %v16303_v31, %v16299_v12  ;;  %7534 = vmatpush1.bf16.msra.mxu1 %v13488_v45  ;;  %v13515_v10 = vld [vmem:[%s15532_s17 + $0x308] ss:$48 sps:$4 sm:$0xff]   ;;  %v13520_v5 = vld [vmem:[%s15532_s17 + $0x364] ss:$48 sps:$4 sm:$0xff]   ;;  %v13523_v7 = vld [vmem:[%s15532_s17 + $0x36c] ss:$48 sps:$4 sm:$0xff]  }
0x1161   : > { %7535 = vmatprep.subr.bf16.mxu1 %v13496_v44  ;;  %v13518_v13 = vld [vmem:[%s15532_s17 + $0x360] ss:$48 sps:$4 sm:$0xff]   ;;  %v13521_v37 = vld [vmem:[%s15532_s17 + $0x368] ss:$48 sps:$4 sm:$0xff]   ;;  %v13526_v29 = vld [vmem:[%s15532_s17 + $0x3c4] ss:$48 sps:$4 sm:$0xff]  }
0x1162   : > { %5646 = vadd.xlane.f32.xlu0 %v5645_v39  ;;  %v5649_v58 = vadd.f32 %v5648_v57, %v16307_v9  ;;  %7620 = vmatpush1.bf16.msra.mxu0 %v13491_v42  ;;  %v13529_v35 = vld [vmem:[%s15532_s17 + $0x3cc] ss:$48 sps:$4 sm:$0xff]   ;;  %v13524_v26 = vld [vmem:[%s15532_s17 + $0x3c0] ss:$48 sps:$4 sm:$0xff]   ;;  %v13527_v36 = vld [vmem:[%s15532_s17 + $0x3c8] ss:$48 sps:$4 sm:$0xff]  }
0x1163   : > { %7621 = vmatprep.subr.bf16.mxu0 %v13499_v48  ;;  %v13532_v38 = vld [vmem:[%s15532_s17 + $0x424] ss:$48 sps:$4 sm:$0xff]   ;;  %v13535_v40 = vld [vmem:[%s15532_s17 + $0x42c] ss:$48 sps:$4 sm:$0xff]   ;;  %v13530_v45 = vld [vmem:[%s15532_s17 + $0x420] ss:$48 sps:$4 sm:$0xff]  }
0x1164   : > { %5650 = vadd.xlane.f32.xlu1 %v5649_v58  ;;  %7536 = vmatpush1.bf16.msra.mxu1 %v13494_v43  ;;  %v13533_v42 = vld [vmem:[%s15532_s17 + $0x428] ss:$48 sps:$4 sm:$0xff]   ;;  %v13536_v44 = vld [vmem:[%s15532_s17 + $0x480] ss:$48 sps:$4 sm:$0xff]   ;;  %v13538_v48 = vld [vmem:[%s15532_s17 + $0x484] ss:$48 sps:$4 sm:$0xff]  }
0x1165   : > { %7537 = vmatprep.subr.bf16.mxu1 %v13502_v55  ;;  %v13539_v43 = vld [vmem:[%s15532_s17 + $0x488] ss:$48 sps:$4 sm:$0xff]   ;;  %v13544_v55 = vld [vmem:[%s15532_s17 + $0x4e4] ss:$48 sps:$4 sm:$0xff]  }
0x1166   : > { %7622 = vmatpush1.bf16.msra.mxu0 %v13497_v54  ;;  %v13541_v54 = vld [vmem:[%s15532_s17 + $0x48c] ss:$48 sps:$4 sm:$0xff]  }
0x1167   : > { %7623 = vmatprep.subr.bf16.mxu0 %v13505_v2  ;;  %v13547_v2 = vld [vmem:[%s15532_s17 + $0x4ec] ss:$48 sps:$4 sm:$0xff]  }
0x1168   : > { %7538 = vmatpush1.bf16.msra.mxu1 %v13500_v8  ;;  %v13542_v8 = vld [vmem:[%s15532_s17 + $0x4e0] ss:$48 sps:$4 sm:$0xff]  }
0x1169   : > { %7539 = vmatprep.subr.bf16.mxu1 %v13508_v62  ;;  %v13550_v62 = vld [vmem:[%s15532_s17 + $0x544] ss:$48 sps:$4 sm:$0xff]  }
0x116a   : > { %7624 = vmatpush1.bf16.msra.mxu0 %v13503_v61  ;;  %v13545_v61 = vld [vmem:[%s15532_s17 + $0x4e8] ss:$48 sps:$4 sm:$0xff]  }
0x116b   : > { %7625 = vmatprep.subr.bf16.mxu0 %v13511_v63  ;;  %v13553_v63 = vld [vmem:[%s15532_s17 + $0x54c] ss:$48 sps:$4 sm:$0xff]  }
0x116c   : > { %7540 = vmatpush1.bf16.msra.mxu1 %v13506_v51  ;;  %v13548_v51 = vld [vmem:[%s15532_s17 + $0x540] ss:$48 sps:$4 sm:$0xff]  }
0x116d   : > { %7541 = vmatprep.subr.bf16.mxu1 %v13514_v0  ;;  %v13556_v0 = vld [vmem:[%s15532_s17 + $0x5a4] ss:$48 sps:$4 sm:$0xff]  }
0x116e   : > { %7626 = vmatpush1.bf16.msra.mxu0 %v13509_v59  ;;  %v13551_v59 = vld [vmem:[%s15532_s17 + $0x548] ss:$48 sps:$4 sm:$0xff]  }
0x116f   : > { %7627 = vmatprep.subr.bf16.mxu0 %v13517_v49  ;;  %v13559_v49 = vld [vmem:[%s15532_s17 + $0x5ac] ss:$48 sps:$4 sm:$0xff]  }
0x1170   : > { %7542 = vmatpush1.bf16.msra.mxu1 %v13512_v4  ;;  %v13554_v4 = vld [vmem:[%s15532_s17 + $0x5a0] ss:$48 sps:$4 sm:$0xff]  }
0x1171   : > { %7543 = vmatprep.subr.bf16.mxu1 %v13520_v5  ;;  %v13562_v5 = vld [vmem:[%s15532_s17 + $0x604] ss:$48 sps:$4 sm:$0xff]  }
0x1172   : > { %7628 = vmatpush1.bf16.msra.mxu0 %v13515_v10  ;;  %v13557_v10 = vld [vmem:[%s15532_s17 + $0x5a8] ss:$48 sps:$4 sm:$0xff]  }
0x1173   : > { %7629 = vmatprep.subr.bf16.mxu0 %v13523_v7  ;;  %v13565_v7 = vld [vmem:[%s15532_s17 + $0x60c] ss:$48 sps:$4 sm:$0xff]  }
0x1174   : > { %7544 = vmatpush1.bf16.msra.mxu1 %v13518_v13 }
0x1175   : > { %7545 = vmatprep.subr.bf16.mxu1 %v13526_v29 }
0x1176   : > { %7630 = vmatpush1.bf16.msra.mxu0 %v13521_v37 }
0x1177   : > { %7631 = vmatprep.subr.bf16.mxu0 %v13529_v35 }
0x1178   : > { %7546 = vmatpush1.bf16.msra.mxu1 %v13524_v26 }
0x1179   : > { %7547 = vmatprep.subr.bf16.mxu1 %v13532_v38 }
0x117a   : > { %7632 = vmatpush1.bf16.msra.mxu0 %v13527_v36 }
0x117b   : > { %7633 = vmatprep.subr.bf16.mxu0 %v13535_v40 }
0x117c   : > { %7548 = vmatpush1.bf16.msra.mxu1 %v13530_v45 }
0x117d   : > { %7549 = vmatprep.subr.bf16.mxu1 %v13538_v48  ;;  %v13560_v48 = vld [vmem:[%s15532_s17 + $0x600] ss:$48 sps:$4 sm:$0xff]  }
0x117e   : > { %7634 = vmatpush1.bf16.msra.mxu0 %v13533_v42 }
0x117f   : > { %7635 = vmatprep.subr.bf16.mxu0 %v13541_v54  ;;  %v13568_v54 = vld [vmem:[%s15532_s17 + $0x664] ss:$48 sps:$4 sm:$0xff]  }
0x1180   : > { %7550 = vmatpush1.bf16.msra.mxu1 %v13536_v44 }
0x1181   : > { %7551 = vmatprep.subr.bf16.mxu1 %v13544_v55  ;;  %v13571_v55 = vld [vmem:[%s15532_s17 + $0x66c] ss:$48 sps:$4 sm:$0xff]  }
0x1182   : > { %7636 = vmatpush1.bf16.msra.mxu0 %v13539_v43  ;;  %v13563_v43 = vld [vmem:[%s15532_s17 + $0x608] ss:$48 sps:$4 sm:$0xff]  }
0x1183   : > { %7637 = vmatprep.subr.bf16.mxu0 %v13547_v2  ;;  %v13569_v2 = vld [vmem:[%s15532_s17 + $0x668] ss:$48 sps:$4 sm:$0xff]  }
0x1184   : > { %7552 = vmatpush1.bf16.msra.mxu1 %v13542_v8  ;;  %v13574_v8 = vld [vmem:[%s15532_s17 + $0x6c4] ss:$48 sps:$4 sm:$0xff]  }
0x1185   : > { %7553 = vmatprep.subr.bf16.mxu1 %v13550_v62  ;;  %v13572_v62 = vld [vmem:[%s15532_s17 + $0x6c0] ss:$48 sps:$4 sm:$0xff]  }
0x1186   : > { %7638 = vmatpush1.bf16.msra.mxu0 %v13545_v61  ;;  %v13577_v61 = vld [vmem:[%s15532_s17 + $0x6cc] ss:$48 sps:$4 sm:$0xff]  }
0x1187   : > { %7639 = vmatprep.subr.bf16.mxu0 %v13553_v63  ;;  %v13575_v63 = vld [vmem:[%s15532_s17 + $0x6c8] ss:$48 sps:$4 sm:$0xff]  }
0x1188   : > { %7554 = vmatpush1.bf16.msra.mxu1 %v13548_v51  ;;  %v13580_v51 = vld [vmem:[%s15532_s17 + $0x724] ss:$48 sps:$4 sm:$0xff]  }
0x1189   : > { %7555 = vmatprep.subr.bf16.mxu1 %v13556_v0  ;;  %v13578_v0 = vld [vmem:[%s15532_s17 + $0x720] ss:$48 sps:$4 sm:$0xff]  }
0x118a   : > { %7640 = vmatpush1.bf16.msra.mxu0 %v13551_v59  ;;  %v13583_v59 = vld [vmem:[%s15532_s17 + $0x72c] ss:$48 sps:$4 sm:$0xff]  }
0x118b   : > { %7641 = vmatprep.subr.bf16.mxu0 %v13559_v49  ;;  %v13581_v49 = vld [vmem:[%s15532_s17 + $0x728] ss:$48 sps:$4 sm:$0xff]  }
0x118c   : > { %7556 = vmatpush1.bf16.msra.mxu1 %v13554_v4  ;;  %v13586_v4 = vld [vmem:[%s15532_s17 + $0x784] ss:$48 sps:$4 sm:$0xff]  }
0x118d   : > { %7568 = vmatprep.subr.bf16.mxu1 %v13562_v5  ;;  %v13584_v5 = vld [vmem:[%s15532_s17 + $0x780] ss:$48 sps:$4 sm:$0xff]  }
0x118e   : > { %7642 = vmatpush1.bf16.msra.mxu0 %v13557_v10  ;;  %v13589_v10 = vld [vmem:[%s15532_s17 + $0x78c] ss:$48 sps:$4 sm:$0xff]  }
0x118f   : > { %7654 = vmatprep.subr.bf16.mxu0 %v13565_v7  ;;  %v13587_v7 = vld [vmem:[%s15532_s17 + $0x788] ss:$48 sps:$4 sm:$0xff]  }
0x11ef   : > { %v5647_v47 = vpop.xlane.xlu0 %5646 }
0x11f0   : > { %v5652_v1 = vmul.f32 0.0026041667, %v5647_v47 }
0x11f1   : > { %v5651_v50 = vpop.xlane.xlu1 %5650 }
0x11f2   : > { %v16354_v16 = vsub.f32 %v16295_v60, %v5652_v1  ;;  %v16357_v19 = vsub.f32 %v16297_v6, %v5652_v1  ;;  %v5653_v39 = vmul.f32 0.0026041667, %v5651_v50  ;;  %v16360_v57 = vsub.f32 %v16301_v14, %v5652_v1 }
0x11f4   : > { %v16363_v58 = vsub.f32 %v16299_v12, %v5653_v39  ;;  %v16366_v21 = vsub.f32 %v16303_v31, %v5653_v39  ;;  %v5660_v46 = vmul.f32 %v16354_v16, %v16354_v16  ;;  %v5661_v20 = vmul.f32 %v16357_v19, %v16357_v19 }
0x11f5   : > { %v16377_v11 = vsub.f32 %v16307_v9, %v5653_v39  ;;  %v5662_v52 = vmul.f32 %v16360_v57, %v16360_v57 }
0x11f6   : > { %v5663_v24 = vmul.f32 %v16363_v58, %v16363_v58  ;;  %v5664_v23 = vmul.f32 %v16366_v21, %v16366_v21  ;;  %v5666_v25 = vadd.f32 %v5661_v20, %v5660_v46  ;;  %v16411_v46 = vld [vmem:[%s17656_s30] sm:$0x7] }
0x11f7   : > { %v5665_v27 = vmul.f32 %v16377_v11, %v16377_v11 }
0x11f8   : > { %v5667_v53 = vadd.f32 %v5666_v25, %v5662_v52  ;;  %v5670_v22 = vadd.f32 %v5664_v23, %v5663_v24  ;;  %v16417_v24 = vld [vmem:[%s17657_s18] sm:$0x7]  ;;  %v5694_v52 = vrot.slane %v16411_v46, %v15667_v32 }
0x11fa   : > { %5668 = vadd.xlane.f32.xlu0 %v5667_v53  ;;  %v5671_v28 = vadd.f32 %v5670_v22, %v5665_v27  ;;  %v5690_v53 = vrot.slane %v16411_v46, %v15673_v34  ;;  %v5716_v27 = vrot.slane %v16417_v24, %v15667_v32 }
0x11fe   : > { %5672 = vadd.xlane.f32.xlu0 %v5671_v28 }
0x1287   : > { %v5669_v13 = vpop.xlane.xlu0 %5668 }
0x1288   : > { %v5674_v37 = vmul.f32 0.0026041667, %v5669_v13  ;;  %v13592_v13 = vld [vmem:[%s15532_s17 + $0x7e4] ss:$48 sps:$4 sm:$0xff]  }
0x128a   : > { %v5676_v47 = vadd.f32 1e-06, %v5674_v37  ;;  %v13595_v37 = vld [vmem:[%s15532_s17 + $0x7ec] ss:$48 sps:$4 sm:$0xff]  }
0x128b   : > { %v5673_v1 = vpop.xlane.xlu0 %5672 }
0x128c   : > { %14332 = vrsqrt.f32 %v5676_v47  ;;  %v5675_v50 = vmul.f32 0.0026041667, %v5673_v1  ;;  %v13590_v47 = vld [vmem:[%s15532_s17 + $0x7e0] ss:$48 sps:$4 sm:$0xff]   ;;  %v13593_v1 = vld [vmem:[%s15532_s17 + $0x7e8] ss:$48 sps:$4 sm:$0xff]  }
0x128e   : > { %v5677_v39 = vadd.f32 1e-06, %v5675_v50  ;;  %v13598_v50 = vld [vmem:[%s15532_s17 + $0x844] ss:$48 sps:$4 sm:$0xff]  }
0x1290   : > { %14334 = vrsqrt.f32 %v5677_v39  ;;  %v13601_v39 = vld [vmem:[%s15532_s17 + $0x84c] ss:$48 sps:$4 sm:$0xff]  }
0x1296   : > { %v16413_v20 = vpop.eup %14332 }
0x1297   : > { %v5681_v23 = vmul.f32 %v16413_v20, %v16357_v19  ;;  %v5680_v25 = vmul.f32 %v16413_v20, %v16354_v16  ;;  %v5712_v19 = vrot.slane %v16417_v24, %v15673_v34 }
0x1299   : > { %v5703_v29 = vmul.f32 %v5694_v52, %v5681_v23  ;;  %v5702_v35 = vmul.f32 %v5690_v53, %v5680_v25  ;;  %v5698_v25 = vrot.slane %v16411_v46, %v15670_v33  ;;  %v13602_v46 = vld [vmem:[%s15532_s17 + $0x8a0] ss:$48 sps:$4 sm:$0xff]  }
0x129a   : > { %v16427_v22 = vpop.eup %14334 }
0x129b   : > { %v5684_v28 = vmul.f32 %v16427_v22, %v16366_v21  ;;  %v5683_v16 = vmul.f32 %v16427_v22, %v16363_v58  ;;  %v5725_v38 = vadd.f32 %v5716_v27, %v5703_v29  ;;  %v5724_v45 = vadd.f32 %v5712_v19, %v5702_v35  ;;  %v13566_v58 = vld [vmem:[%s15532_s17 + $0x660] ss:$48 sps:$4 sm:$0xff]   ;;  %v13613_v35 = vld [vmem:[%s15532_s17 + $0x1c] ss:$48 sps:$4 sm:$0xff]  }
0x129c   : > { %v5685_v23 = vmul.f32 %v16427_v22, %v16377_v11 }
0x129d   : > { %v5706_v26 = vmul.f32 %v5694_v52, %v5684_v28  ;;  %v5705_v36 = vmul.f32 %v5690_v53, %v5683_v16  ;;  %v5682_v52 = vmul.f32 %v16413_v20, %v16360_v57  ;;  %v13596_v53 = vld [vmem:[%s15532_s17 + $0x840] ss:$48 sps:$4 sm:$0xff]   ;;  %v13607_v28 = vld [vmem:[%s15532_s17 + $0x8ac] ss:$48 sps:$4 sm:$0xff]   ;;  %v5720_v57 = vrot.slane %v16417_v24, %v15670_v33  ;;  %v13605_v20 = vld [vmem:[%s15532_s17 + $0x8a8] ss:$48 sps:$4 sm:$0xff]  }
0x129e   : > { %v5707_v11 = vmul.f32 %v5698_v25, %v5685_v23  ;;  %v13610_v16 = vld [vmem:[%s15532_s17 + $0x14] ss:$48 sps:$4 sm:$0xff]   ;;  %v13653_v23 = vld [vmem:[%s15532_s17 + $0x2b8] ss:$48 sps:$4 sm:$0xff]  }
0x129f   : > { %v5728_v40 = vadd.f32 %v5716_v27, %v5706_v26  ;;  %v5727_v42 = vadd.f32 %v5712_v19, %v5705_v36  ;;  %v13599_v27 = vld [vmem:[%s15532_s17 + $0x848] ss:$48 sps:$4 sm:$0xff]   ;;  %v13604_v19 = vld [vmem:[%s15532_s17 + $0x8a4] ss:$48 sps:$4 sm:$0xff]   ;;  %v5704_v22 = vmul.f32 %v5698_v25, %v5682_v52  ;;  %v13608_v36 = vld [vmem:[%s15532_s17 + $0x10] ss:$48 sps:$4 sm:$0xff]  }
0x12a0   : > { %v5729_v29 = vadd.f32 %v5720_v57, %v5707_v11  ;;  %v13658_v52 = vld [vmem:[%s15532_s17 + $0x314] ss:$48 sps:$4 sm:$0xff]   ;;  %v13661_v25 = vld [vmem:[%s15532_s17 + $0x31c] ss:$48 sps:$4 sm:$0xff]   ;;  %v13662_v11 = vld [vmem:[%s15532_s17 + $0x370] ss:$48 sps:$4 sm:$0xff]  }
0x12a1   : > { %v16437_v44 = vpack.c.bf16 %v5728_v40, %v5725_v38  ;;  %v16441_v21 = vpack.c.bf16 %v5727_v42, %v5724_v45  ;;  %v5726_v26 = vadd.f32 %v5720_v57, %v5704_v22  ;;  %v13611_v38 = vld [vmem:[%s15532_s17 + $0x18] ss:$48 sps:$4 sm:$0xff]   ;;  %v13616_v40 = vld [vmem:[%s15532_s17 + $0x74] ss:$48 sps:$4 sm:$0xff]   ;;  %v13619_v45 = vld [vmem:[%s15532_s17 + $0x7c] ss:$48 sps:$4 sm:$0xff]  }
0x12a2   : > { %v13614_v42 = vld [vmem:[%s15532_s17 + $0x70] ss:$48 sps:$4 sm:$0xff]   ;;  %v13665_v22 = vld [vmem:[%s15532_s17 + $0x378] ss:$48 sps:$4 sm:$0xff]   ;;  %v13670_v57 = vld [vmem:[%s15532_s17 + $0x3d4] ss:$48 sps:$4 sm:$0xff]  }
0x12a3   : > { %7557 = vmatprep.mubr.bf16.mxu1 %v16437_v44  ;;  %7643 = vmatprep.mubr.bf16.mxu0 %v16437_v44  ;;  %v16488_v24 = vpack.c.bf16 %v5729_v29, %v5726_v26  ;;  %v13671_v29 = vld [vmem:[%s15532_s17 + $0x3d8] ss:$48 sps:$4 sm:$0xff]   ;;  %v13674_v26 = vld [vmem:[%s15532_s17 + $0x430] ss:$48 sps:$4 sm:$0xff]  }
0x12a4   : > { %7558 = vmatmul.mubr.bf16.vlgmr.msra.gmra.mrb[36].mxu1 %v16441_v21  ;;  %7644 = vmatmul.mubr.bf16.vlgmr.msra.gmra.mrb[52].mxu0 %v16441_v21 }
0x12a5   : > { %7569 = vmatpush1.bf16.msra.mxu1 %v13560_v48  ;;  %7655 = vmatpush1.bf16.msra.mxu0 %v13563_v43  ;;  %v13617_v48 = vld [vmem:[%s15532_s17 + $0x78] ss:$48 sps:$4 sm:$0xff]   ;;  %v13622_v43 = vld [vmem:[%s15532_s17 + $0xd4] ss:$48 sps:$4 sm:$0xff]  }
0x12a6   : > { %7570 = vmatprep.subr.bf16.mxu1 %v13568_v54  ;;  %7656 = vmatprep.subr.bf16.mxu0 %v13571_v55  ;;  %v13625_v54 = vld [vmem:[%s15532_s17 + $0xdc] ss:$48 sps:$4 sm:$0xff]   ;;  %v13620_v55 = vld [vmem:[%s15532_s17 + $0xd0] ss:$48 sps:$4 sm:$0xff]  }
0x12a7   : > { %7600 = vmatprep.mubr.bf16.mxu1 %v14914_v17  ;;  %7686 = vmatprep.mubr.bf16.mxu0 %v14914_v17 }
0x12a9   : > { %7571 = vmatpush1.bf16.msra.mxu1 %v13566_v58  ;;  %7657 = vmatpush1.bf16.msra.mxu0 %v13569_v2  ;;  %v13623_v58 = vld [vmem:[%s15532_s17 + $0xd8] ss:$48 sps:$4 sm:$0xff]   ;;  %v13628_v2 = vld [vmem:[%s15532_s17 + $0x134] ss:$48 sps:$4 sm:$0xff]  }
0x12aa   : > { %7572 = vmatprep.subr.bf16.mxu1 %v13574_v8  ;;  %7658 = vmatprep.subr.bf16.mxu0 %v13577_v61  ;;  %v13631_v8 = vld [vmem:[%s15532_s17 + $0x13c] ss:$48 sps:$4 sm:$0xff]   ;;  %v13626_v61 = vld [vmem:[%s15532_s17 + $0x130] ss:$48 sps:$4 sm:$0xff]  }
0x12ad   : > { %7573 = vmatpush1.bf16.msra.mxu1 %v13572_v62  ;;  %7659 = vmatpush1.bf16.msra.mxu0 %v13575_v63  ;;  %v13629_v62 = vld [vmem:[%s15532_s17 + $0x138] ss:$48 sps:$4 sm:$0xff]   ;;  %v13634_v63 = vld [vmem:[%s15532_s17 + $0x194] ss:$48 sps:$4 sm:$0xff]  }
0x12ae   : > { %7574 = vmatprep.subr.bf16.mxu1 %v13580_v51  ;;  %7660 = vmatprep.subr.bf16.mxu0 %v13583_v59  ;;  %v13637_v51 = vld [vmem:[%s15532_s17 + $0x19c] ss:$48 sps:$4 sm:$0xff]   ;;  %v13632_v59 = vld [vmem:[%s15532_s17 + $0x190] ss:$48 sps:$4 sm:$0xff]  }
0x12b1   : > { %7575 = vmatpush1.bf16.msra.mxu1 %v13578_v0  ;;  %7661 = vmatpush1.bf16.msra.mxu0 %v13581_v49  ;;  %v13635_v0 = vld [vmem:[%s15532_s17 + $0x198] ss:$48 sps:$4 sm:$0xff]   ;;  %v13640_v49 = vld [vmem:[%s15532_s17 + $0x1f4] ss:$48 sps:$4 sm:$0xff]  }
0x12b2   : > { %7576 = vmatprep.subr.bf16.mxu1 %v13586_v4  ;;  %7662 = vmatprep.subr.bf16.mxu0 %v13589_v10  ;;  %v13643_v4 = vld [vmem:[%s15532_s17 + $0x1fc] ss:$48 sps:$4 sm:$0xff]   ;;  %v13638_v10 = vld [vmem:[%s15532_s17 + $0x1f0] ss:$48 sps:$4 sm:$0xff]  }
0x12b5   : > { %7577 = vmatpush1.bf16.msra.mxu1 %v13584_v5  ;;  %7663 = vmatpush1.bf16.msra.mxu0 %v13587_v7  ;;  %v13641_v5 = vld [vmem:[%s15532_s17 + $0x1f8] ss:$48 sps:$4 sm:$0xff]   ;;  %v13646_v7 = vld [vmem:[%s15532_s17 + $0x254] ss:$48 sps:$4 sm:$0xff]  }
0x12b6   : > { %7578 = vmatprep.subr.bf16.mxu1 %v13592_v13  ;;  %7664 = vmatprep.subr.bf16.mxu0 %v13595_v37  ;;  %v13649_v13 = vld [vmem:[%s15532_s17 + $0x25c] ss:$48 sps:$4 sm:$0xff]   ;;  %v13644_v37 = vld [vmem:[%s15532_s17 + $0x250] ss:$48 sps:$4 sm:$0xff]  }
0x12b9   : > { %7579 = vmatpush1.bf16.msra.mxu1 %v13590_v47  ;;  %7665 = vmatpush1.bf16.msra.mxu0 %v13593_v1  ;;  %v13647_v47 = vld [vmem:[%s15532_s17 + $0x258] ss:$48 sps:$4 sm:$0xff]   ;;  %v13652_v1 = vld [vmem:[%s15532_s17 + $0x2b4] ss:$48 sps:$4 sm:$0xff]  }
0x12ba   : > { %7580 = vmatprep.subr.bf16.mxu1 %v13598_v50  ;;  %7666 = vmatprep.subr.bf16.mxu0 %v13601_v39  ;;  %v13655_v50 = vld [vmem:[%s15532_s17 + $0x2bc] ss:$48 sps:$4 sm:$0xff]   ;;  %v13650_v39 = vld [vmem:[%s15532_s17 + $0x2b0] ss:$48 sps:$4 sm:$0xff]  }
0x12bd   : > { %7581 = vmatpush1.bf16.msra.mxu1 %v13596_v53  ;;  %7667 = vmatpush1.bf16.msra.mxu0 %v13599_v27  ;;  %v13656_v53 = vld [vmem:[%s15532_s17 + $0x310] ss:$48 sps:$4 sm:$0xff]   ;;  %v13659_v27 = vld [vmem:[%s15532_s17 + $0x318] ss:$48 sps:$4 sm:$0xff]  }
0x12be   : > { %7582 = vmatprep.subr.bf16.mxu1 %v13604_v19  ;;  %7668 = vmatprep.subr.bf16.mxu0 %v13607_v28  ;;  %v13664_v19 = vld [vmem:[%s15532_s17 + $0x374] ss:$48 sps:$4 sm:$0xff]   ;;  %v13667_v28 = vld [vmem:[%s15532_s17 + $0x37c] ss:$48 sps:$4 sm:$0xff]  }
0x12c1   : > { %7583 = vmatpush1.bf16.msra.mxu1 %v13602_v46  ;;  %7669 = vmatpush1.bf16.msra.mxu0 %v13605_v20  ;;  %v13673_v46 = vld [vmem:[%s15532_s17 + $0x3dc] ss:$48 sps:$4 sm:$0xff]   ;;  %v13668_v20 = vld [vmem:[%s15532_s17 + $0x3d0] ss:$48 sps:$4 sm:$0xff]  }
0x12c2   : > { %7697 = vmatprep.subr.bf16.mxu1 %v13610_v16  ;;  %7783 = vmatprep.subr.bf16.mxu0 %v13613_v35  ;;  %v13676_v16 = vld [vmem:[%s15532_s17 + $0x434] ss:$48 sps:$4 sm:$0xff]   ;;  %v13679_v35 = vld [vmem:[%s15532_s17 + $0x43c] ss:$48 sps:$4 sm:$0xff]  }
0x12c4   : > { %7601 = vmatmul.mubr.bf16.vlgmr.msra.gmra.mrb[36].mxu1 %v16488_v24  ;;  %7687 = vmatmul.mubr.bf16.vlgmr.msra.gmra.mrb[52].mxu0 %v16488_v24 }
0x12c5   : > { %7698 = vmatpush1.bf16.msra.mxu1 %v13608_v36  ;;  %7729 = vmatprep.mubr.bf16.mxu1 %v16437_v44  ;;  %v13677_v36 = vld [vmem:[%s15532_s17 + $0x438] ss:$48 sps:$4 sm:$0xff]  }
0x12c6   : > { %7784 = vmatpush1.bf16.msra.mxu0 %v13611_v38  ;;  %7815 = vmatprep.mubr.bf16.mxu0 %v16437_v44  ;;  %v13682_v38 = vld [vmem:[%s15532_s17 + $0x494] ss:$48 sps:$4 sm:$0xff]  }
0x12c7   : > { %7699 = vmatprep.subr.bf16.mxu1 %v13616_v40  ;;  %7785 = vmatprep.subr.bf16.mxu0 %v13619_v45  ;;  %v13685_v40 = vld [vmem:[%s15532_s17 + $0x49c] ss:$48 sps:$4 sm:$0xff]   ;;  %v13680_v45 = vld [vmem:[%s15532_s17 + $0x490] ss:$48 sps:$4 sm:$0xff]  }
0x12c9   : > { %7700 = vmatpush1.bf16.msra.mxu1 %v13614_v42  ;;  %v13683_v42 = vld [vmem:[%s15532_s17 + $0x498] ss:$48 sps:$4 sm:$0xff]  }
0x12ca   : > { %7786 = vmatpush1.bf16.msra.mxu0 %v13617_v48  ;;  %7701 = vmatprep.subr.bf16.mxu1 %v13622_v43  ;;  %v13688_v48 = vld [vmem:[%s15532_s17 + $0x4f4] ss:$48 sps:$4 sm:$0xff]   ;;  %v13691_v43 = vld [vmem:[%s15532_s17 + $0x4fc] ss:$48 sps:$4 sm:$0xff]  }
0x12cb   : > { %7787 = vmatprep.subr.bf16.mxu0 %v13625_v54  ;;  %v13686_v54 = vld [vmem:[%s15532_s17 + $0x4f0] ss:$48 sps:$4 sm:$0xff]  }
0x12cd   : > { %7702 = vmatpush1.bf16.msra.mxu1 %v13620_v55  ;;  %v13689_v55 = vld [vmem:[%s15532_s17 + $0x4f8] ss:$48 sps:$4 sm:$0xff]  }
0x12ce   : > { %7788 = vmatpush1.bf16.msra.mxu0 %v13623_v58  ;;  %7703 = vmatprep.subr.bf16.mxu1 %v13628_v2  ;;  %v13694_v58 = vld [vmem:[%s15532_s17 + $0x554] ss:$48 sps:$4 sm:$0xff]   ;;  %v13697_v2 = vld [vmem:[%s15532_s17 + $0x55c] ss:$48 sps:$4 sm:$0xff]  }
0x12cf   : > { %7789 = vmatprep.subr.bf16.mxu0 %v13631_v8  ;;  %v13692_v8 = vld [vmem:[%s15532_s17 + $0x550] ss:$48 sps:$4 sm:$0xff]  }
0x12d1   : > { %7704 = vmatpush1.bf16.msra.mxu1 %v13626_v61  ;;  %v13695_v61 = vld [vmem:[%s15532_s17 + $0x558] ss:$48 sps:$4 sm:$0xff]  }
0x12d2   : > { %7790 = vmatpush1.bf16.msra.mxu0 %v13629_v62  ;;  %7705 = vmatprep.subr.bf16.mxu1 %v13634_v63  ;;  %v13700_v62 = vld [vmem:[%s15532_s17 + $0x5b4] ss:$48 sps:$4 sm:$0xff]   ;;  %v13703_v63 = vld [vmem:[%s15532_s17 + $0x5bc] ss:$48 sps:$4 sm:$0xff]  }
0x12d3   : > { %7791 = vmatprep.subr.bf16.mxu0 %v13637_v51  ;;  %v13698_v51 = vld [vmem:[%s15532_s17 + $0x5b0] ss:$48 sps:$4 sm:$0xff]  }
0x12d5   : > { %7706 = vmatpush1.bf16.msra.mxu1 %v13632_v59  ;;  %v13701_v59 = vld [vmem:[%s15532_s17 + $0x5b8] ss:$48 sps:$4 sm:$0xff]  }
0x12d6   : > { %7792 = vmatpush1.bf16.msra.mxu0 %v13635_v0  ;;  %7707 = vmatprep.subr.bf16.mxu1 %v13640_v49  ;;  %v13706_v0 = vld [vmem:[%s15532_s17 + $0x614] ss:$48 sps:$4 sm:$0xff]   ;;  %v13709_v49 = vld [vmem:[%s15532_s17 + $0x61c] ss:$48 sps:$4 sm:$0xff]  }
0x12d7   : > { %7793 = vmatprep.subr.bf16.mxu0 %v13643_v4  ;;  %v13704_v4 = vld [vmem:[%s15532_s17 + $0x610] ss:$48 sps:$4 sm:$0xff]  }
0x12d9   : > { %7708 = vmatpush1.bf16.msra.mxu1 %v13638_v10  ;;  %v13707_v10 = vld [vmem:[%s15532_s17 + $0x618] ss:$48 sps:$4 sm:$0xff]  }
0x12da   : > { %7794 = vmatpush1.bf16.msra.mxu0 %v13641_v5  ;;  %7709 = vmatprep.subr.bf16.mxu1 %v13646_v7  ;;  %v13712_v5 = vld [vmem:[%s15532_s17 + $0x674] ss:$48 sps:$4 sm:$0xff]   ;;  %v13715_v7 = vld [vmem:[%s15532_s17 + $0x67c] ss:$48 sps:$4 sm:$0xff]  }
0x12db   : > { %7795 = vmatprep.subr.bf16.mxu0 %v13649_v13  ;;  %v13710_v13 = vld [vmem:[%s15532_s17 + $0x670] ss:$48 sps:$4 sm:$0xff]  }
0x12dd   : > { %7710 = vmatpush1.bf16.msra.mxu1 %v13644_v37  ;;  %v13713_v37 = vld [vmem:[%s15532_s17 + $0x678] ss:$48 sps:$4 sm:$0xff]  }
0x12de   : > { %7796 = vmatpush1.bf16.msra.mxu0 %v13647_v47  ;;  %7711 = vmatprep.subr.bf16.mxu1 %v13652_v1  ;;  %v13718_v47 = vld [vmem:[%s15532_s17 + $0x6d4] ss:$48 sps:$4 sm:$0xff]   ;;  %v13721_v1 = vld [vmem:[%s15532_s17 + $0x6dc] ss:$48 sps:$4 sm:$0xff]  }
0x12df   : > { %7797 = vmatprep.subr.bf16.mxu0 %v13655_v50  ;;  %v13716_v50 = vld [vmem:[%s15532_s17 + $0x6d0] ss:$48 sps:$4 sm:$0xff]  }
0x12e1   : > { %7712 = vmatpush1.bf16.msra.mxu1 %v13650_v39  ;;  %v13719_v39 = vld [vmem:[%s15532_s17 + $0x6d8] ss:$48 sps:$4 sm:$0xff]  }
0x12e2   : > { %7798 = vmatpush1.bf16.msra.mxu0 %v13653_v23  ;;  %7713 = vmatprep.subr.bf16.mxu1 %v13658_v52  ;;  %v13724_v23 = vld [vmem:[%s15532_s17 + $0x734] ss:$48 sps:$4 sm:$0xff]   ;;  %v13727_v52 = vld [vmem:[%s15532_s17 + $0x73c] ss:$48 sps:$4 sm:$0xff]  }
0x12e3   : > { %7799 = vmatprep.subr.bf16.mxu0 %v13661_v25  ;;  %v13722_v25 = vld [vmem:[%s15532_s17 + $0x730] ss:$48 sps:$4 sm:$0xff]  }
0x12e5   : > { %7714 = vmatpush1.bf16.msra.mxu1 %v13656_v53  ;;  %v13725_v53 = vld [vmem:[%s15532_s17 + $0x738] ss:$48 sps:$4 sm:$0xff]  }
0x12e6   : > { %7800 = vmatpush1.bf16.msra.mxu0 %v13659_v27  ;;  %7715 = vmatprep.subr.bf16.mxu1 %v13664_v19  ;;  %v13730_v27 = vld [vmem:[%s15532_s17 + $0x794] ss:$48 sps:$4 sm:$0xff]   ;;  %v13733_v19 = vld [vmem:[%s15532_s17 + $0x79c] ss:$48 sps:$4 sm:$0xff]  }
0x12e7   : > { %7801 = vmatprep.subr.bf16.mxu0 %v13667_v28  ;;  %v13728_v28 = vld [vmem:[%s15532_s17 + $0x790] ss:$48 sps:$4 sm:$0xff]  }
0x12e9   : > { %7716 = vmatpush1.bf16.msra.mxu1 %v13662_v11  ;;  %v13731_v11 = vld [vmem:[%s15532_s17 + $0x798] ss:$48 sps:$4 sm:$0xff]  }
0x12ea   : > { %7802 = vmatpush1.bf16.msra.mxu0 %v13665_v22  ;;  %7717 = vmatprep.subr.bf16.mxu1 %v13670_v57  ;;  %v13736_v22 = vld [vmem:[%s15532_s17 + $0x7f4] ss:$48 sps:$4 sm:$0xff]   ;;  %v13739_v57 = vld [vmem:[%s15532_s17 + $0x7fc] ss:$48 sps:$4 sm:$0xff]  }
0x12eb   : > { %7803 = vmatprep.subr.bf16.mxu0 %v13673_v46  ;;  %v13734_v46 = vld [vmem:[%s15532_s17 + $0x7f0] ss:$48 sps:$4 sm:$0xff]  }
0x12ed   : > { %7718 = vmatpush1.bf16.msra.mxu1 %v13668_v20  ;;  %v13737_v20 = vld [vmem:[%s15532_s17 + $0x7f8] ss:$48 sps:$4 sm:$0xff]  }
0x12ee   : > { %7804 = vmatpush1.bf16.msra.mxu0 %v13671_v29  ;;  %7719 = vmatprep.subr.bf16.mxu1 %v13676_v16  ;;  %v13742_v29 = vld [vmem:[%s15532_s17 + $0x854] ss:$48 sps:$4 sm:$0xff]   ;;  %v13745_v16 = vld [vmem:[%s15532_s17 + $0x85c] ss:$48 sps:$4 sm:$0xff]  }
0x12ef   : > { %7805 = vmatprep.subr.bf16.mxu0 %v13679_v35  ;;  %v13740_v35 = vld [vmem:[%s15532_s17 + $0x850] ss:$48 sps:$4 sm:$0xff]  }
0x12f1   : > { %7720 = vmatpush1.bf16.msra.mxu1 %v13674_v26  ;;  %v13743_v26 = vld [vmem:[%s15532_s17 + $0x858] ss:$48 sps:$4 sm:$0xff]  }
0x12f2   : > { %7806 = vmatpush1.bf16.msra.mxu0 %v13677_v36  ;;  %7721 = vmatprep.subr.bf16.mxu1 %v13682_v38  ;;  %v13748_v36 = vld [vmem:[%s15532_s17 + $0x8b4] ss:$48 sps:$4 sm:$0xff]   ;;  %v13751_v38 = vld [vmem:[%s15532_s17 + $0x8bc] ss:$48 sps:$4 sm:$0xff]  }
0x12f3   : > { %7807 = vmatprep.subr.bf16.mxu0 %v13685_v40  ;;  %v13746_v40 = vld [vmem:[%s15532_s17 + $0x8b0] ss:$48 sps:$4 sm:$0xff]  }
0x12f5   : > { %7722 = vmatpush1.bf16.msra.mxu1 %v13680_v45  ;;  %v13749_v45 = vld [vmem:[%s15532_s17 + $0x8b8] ss:$48 sps:$4 sm:$0xff]  }
0x12f6   : > { %7808 = vmatpush1.bf16.msra.mxu0 %v13683_v42  ;;  %7723 = vmatprep.subr.bf16.mxu1 %v13688_v48  ;;  %v13754_v42 = vld [vmem:[%s15532_s17 + $0x24] ss:$48 sps:$4 sm:$0xff]   ;;  %v13757_v48 = vld [vmem:[%s15532_s17 + $0x2c] ss:$48 sps:$4 sm:$0xff]  }
0x12f7   : > { %7809 = vmatprep.subr.bf16.mxu0 %v13691_v43  ;;  %v13752_v43 = vld [vmem:[%s15532_s17 + $0x20] ss:$48 sps:$4 sm:$0xff]  }
0x12f9   : > { %7724 = vmatpush1.bf16.msra.mxu1 %v13686_v54  ;;  %v13755_v54 = vld [vmem:[%s15532_s17 + $0x28] ss:$48 sps:$4 sm:$0xff]  }
0x12fa   : > { %7810 = vmatpush1.bf16.msra.mxu0 %v13689_v55  ;;  %7725 = vmatprep.subr.bf16.mxu1 %v13694_v58  ;;  %v13760_v55 = vld [vmem:[%s15532_s17 + $0x84] ss:$48 sps:$4 sm:$0xff]   ;;  %v13763_v58 = vld [vmem:[%s15532_s17 + $0x8c] ss:$48 sps:$4 sm:$0xff]  }
0x12fb   : > { %7811 = vmatprep.subr.bf16.mxu0 %v13697_v2  ;;  %v13758_v2 = vld [vmem:[%s15532_s17 + $0x80] ss:$48 sps:$4 sm:$0xff]  }
0x12fd   : > { %7726 = vmatpush1.bf16.msra.mxu1 %v13692_v8  ;;  %v13761_v8 = vld [vmem:[%s15532_s17 + $0x88] ss:$48 sps:$4 sm:$0xff]  }
0x12fe   : > { %7812 = vmatpush1.bf16.msra.mxu0 %v13695_v61  ;;  %7727 = vmatprep.subr.bf16.mxu1 %v13700_v62  ;;  %v13766_v61 = vld [vmem:[%s15532_s17 + $0xe4] ss:$48 sps:$4 sm:$0xff]   ;;  %v13769_v62 = vld [vmem:[%s15532_s17 + $0xec] ss:$48 sps:$4 sm:$0xff]  }
0x12ff   : > { %7813 = vmatprep.subr.bf16.mxu0 %v13703_v63  ;;  %v13764_v63 = vld [vmem:[%s15532_s17 + $0xe0] ss:$48 sps:$4 sm:$0xff]  }
0x1301   : > { %7728 = vmatpush1.bf16.msra.mxu1 %v13698_v51  ;;  %v13767_v51 = vld [vmem:[%s15532_s17 + $0xe8] ss:$48 sps:$4 sm:$0xff]  }
0x1302   : > { %7814 = vmatpush1.bf16.msra.mxu0 %v13701_v59  ;;  %7740 = vmatprep.subr.bf16.mxu1 %v13706_v0  ;;  %v13772_v59 = vld [vmem:[%s15532_s17 + $0x144] ss:$48 sps:$4 sm:$0xff]   ;;  %v13775_v0 = vld [vmem:[%s15532_s17 + $0x14c] ss:$48 sps:$4 sm:$0xff]  }
0x1303   : > { %7826 = vmatprep.subr.bf16.mxu0 %v13709_v49  ;;  %v13773_v49 = vld [vmem:[%s15532_s17 + $0x148] ss:$48 sps:$4 sm:$0xff]  }
0x1304   : > { %7730 = vmatmul.mubr.bf16.vlgmr.msra.gmra.mrb[40].mxu1 %v16441_v21 }
0x1305   : > { %7816 = vmatmul.mubr.bf16.vlgmr.msra.gmra.mrb[56].mxu0 %v16441_v21  ;;  %7741 = vmatpush1.bf16.msra.mxu1 %v13704_v4  ;;  %v13778_v4 = vld [vmem:[%s15532_s17 + $0x1a4] ss:$48 sps:$4 sm:$0xff]  }
0x1306   : > { %7827 = vmatpush1.bf16.msra.mxu0 %v13707_v10  ;;  %7742 = vmatprep.subr.bf16.mxu1 %v13712_v5  ;;  %v13781_v10 = vld [vmem:[%s15532_s17 + $0x1ac] ss:$48 sps:$4 sm:$0xff]   ;;  %v13776_v5 = vld [vmem:[%s15532_s17 + $0x1a0] ss:$48 sps:$4 sm:$0xff]  }
0x1307   : > { %7828 = vmatprep.subr.bf16.mxu0 %v13715_v7  ;;  %7772 = vmatprep.mubr.bf16.mxu1 %v14914_v17  ;;  %v13779_v7 = vld [vmem:[%s15532_s17 + $0x1a8] ss:$48 sps:$4 sm:$0xff]  }
0x1308   : > { %7858 = vmatprep.mubr.bf16.mxu0 %v14914_v17 }
0x1309   : > { %7743 = vmatpush1.bf16.msra.mxu1 %v13710_v13  ;;  %v13784_v13 = vld [vmem:[%s15532_s17 + $0x204] ss:$48 sps:$4 sm:$0xff]  }
0x130a   : > { %7829 = vmatpush1.bf16.msra.mxu0 %v13713_v37  ;;  %7744 = vmatprep.subr.bf16.mxu1 %v13718_v47  ;;  %v13787_v37 = vld [vmem:[%s15532_s17 + $0x20c] ss:$48 sps:$4 sm:$0xff]   ;;  %v13782_v47 = vld [vmem:[%s15532_s17 + $0x200] ss:$48 sps:$4 sm:$0xff]  }
0x130b   : > { %7830 = vmatprep.subr.bf16.mxu0 %v13721_v1  ;;  %v13785_v1 = vld [vmem:[%s15532_s17 + $0x208] ss:$48 sps:$4 sm:$0xff]  }
0x130d   : > { %7745 = vmatpush1.bf16.msra.mxu1 %v13716_v50  ;;  %v13790_v50 = vld [vmem:[%s15532_s17 + $0x264] ss:$48 sps:$4 sm:$0xff]  }
0x130e   : > { %7831 = vmatpush1.bf16.msra.mxu0 %v13719_v39  ;;  %7746 = vmatprep.subr.bf16.mxu1 %v13724_v23  ;;  %v13793_v39 = vld [vmem:[%s15532_s17 + $0x26c] ss:$48 sps:$4 sm:$0xff]   ;;  %v13788_v23 = vld [vmem:[%s15532_s17 + $0x260] ss:$48 sps:$4 sm:$0xff]  }
0x130f   : > { %7832 = vmatprep.subr.bf16.mxu0 %v13727_v52  ;;  %v13791_v52 = vld [vmem:[%s15532_s17 + $0x268] ss:$48 sps:$4 sm:$0xff]  }
0x1311   : > { %7747 = vmatpush1.bf16.msra.mxu1 %v13722_v25  ;;  %v13796_v25 = vld [vmem:[%s15532_s17 + $0x2c4] ss:$48 sps:$4 sm:$0xff]  }
0x1312   : > { %7833 = vmatpush1.bf16.msra.mxu0 %v13725_v53  ;;  %7748 = vmatprep.subr.bf16.mxu1 %v13730_v27  ;;  %v13799_v53 = vld [vmem:[%s15532_s17 + $0x2cc] ss:$48 sps:$4 sm:$0xff]   ;;  %v13794_v27 = vld [vmem:[%s15532_s17 + $0x2c0] ss:$48 sps:$4 sm:$0xff]  }
0x1313   : > { %7834 = vmatprep.subr.bf16.mxu0 %v13733_v19  ;;  %v13797_v19 = vld [vmem:[%s15532_s17 + $0x2c8] ss:$48 sps:$4 sm:$0xff]  }
0x1315   : > { %7749 = vmatpush1.bf16.msra.mxu1 %v13728_v28  ;;  %v13802_v28 = vld [vmem:[%s15532_s17 + $0x324] ss:$48 sps:$4 sm:$0xff]  }
0x1316   : > { %7835 = vmatpush1.bf16.msra.mxu0 %v13731_v11  ;;  %7750 = vmatprep.subr.bf16.mxu1 %v13736_v22  ;;  %v13805_v11 = vld [vmem:[%s15532_s17 + $0x32c] ss:$48 sps:$4 sm:$0xff]   ;;  %v13800_v22 = vld [vmem:[%s15532_s17 + $0x320] ss:$48 sps:$4 sm:$0xff]  }
0x1317   : > { %7836 = vmatprep.subr.bf16.mxu0 %v13739_v57  ;;  %v13803_v57 = vld [vmem:[%s15532_s17 + $0x328] ss:$48 sps:$4 sm:$0xff]  }
0x1319   : > { %7751 = vmatpush1.bf16.msra.mxu1 %v13734_v46  ;;  %v13808_v46 = vld [vmem:[%s15532_s17 + $0x384] ss:$48 sps:$4 sm:$0xff]  }
0x131a   : > { %7837 = vmatpush1.bf16.msra.mxu0 %v13737_v20  ;;  %7752 = vmatprep.subr.bf16.mxu1 %v13742_v29  ;;  %v13811_v20 = vld [vmem:[%s15532_s17 + $0x38c] ss:$48 sps:$4 sm:$0xff]   ;;  %v13806_v29 = vld [vmem:[%s15532_s17 + $0x380] ss:$48 sps:$4 sm:$0xff]  }
0x131b   : > { %7838 = vmatprep.subr.bf16.mxu0 %v13745_v16  ;;  %v13809_v16 = vld [vmem:[%s15532_s17 + $0x388] ss:$48 sps:$4 sm:$0xff]  }
0x131d   : > { %7753 = vmatpush1.bf16.msra.mxu1 %v13740_v35  ;;  %v13814_v35 = vld [vmem:[%s15532_s17 + $0x3e4] ss:$48 sps:$4 sm:$0xff]  }
0x131e   : > { %7839 = vmatpush1.bf16.msra.mxu0 %v13743_v26  ;;  %7754 = vmatprep.subr.bf16.mxu1 %v13748_v36  ;;  %v13817_v26 = vld [vmem:[%s15532_s17 + $0x3ec] ss:$48 sps:$4 sm:$0xff]   ;;  %v13812_v36 = vld [vmem:[%s15532_s17 + $0x3e0] ss:$48 sps:$4 sm:$0xff]  }
0x131f   : > { %7840 = vmatprep.subr.bf16.mxu0 %v13751_v38  ;;  %v13815_v38 = vld [vmem:[%s15532_s17 + $0x3e8] ss:$48 sps:$4 sm:$0xff]  }
0x1321   : > { %7755 = vmatpush1.bf16.msra.mxu1 %v13746_v40  ;;  %v13820_v40 = vld [vmem:[%s15532_s17 + $0x444] ss:$48 sps:$4 sm:$0xff]  }
0x1322   : > { %7841 = vmatpush1.bf16.msra.mxu0 %v13749_v45  ;;  %7869 = vmatprep.subr.bf16.mxu1 %v13754_v42  ;;  %v13823_v45 = vld [vmem:[%s15532_s17 + $0x44c] ss:$48 sps:$4 sm:$0xff]   ;;  %v13818_v42 = vld [vmem:[%s15532_s17 + $0x440] ss:$48 sps:$4 sm:$0xff]  }
0x1323   : > { %7955 = vmatprep.subr.bf16.mxu0 %v13757_v48  ;;  %v13821_v48 = vld [vmem:[%s15532_s17 + $0x448] ss:$48 sps:$4 sm:$0xff]  }
0x1324   : > { %7773 = vmatmul.mubr.bf16.vlgmr.msra.gmra.mrb[40].mxu1 %v16488_v24 }
0x1325   : > { %7859 = vmatmul.mubr.bf16.vlgmr.msra.gmra.mrb[56].mxu0 %v16488_v24  ;;  %7870 = vmatpush1.bf16.msra.mxu1 %v13752_v43  ;;  %v13826_v43 = vld [vmem:[%s15532_s17 + $0x4a4] ss:$48 sps:$4 sm:$0xff]  }
0x1326   : > { %7901 = vmatprep.mubr.bf16.mxu1 %v16437_v44  ;;  %7956 = vmatpush1.bf16.msra.mxu0 %v13755_v54  ;;  %v13829_v54 = vld [vmem:[%s15532_s17 + $0x4ac] ss:$48 sps:$4 sm:$0xff]  }
0x1327   : > { %7987 = vmatprep.mubr.bf16.mxu0 %v16437_v44  ;;  %7871 = vmatprep.subr.bf16.mxu1 %v13760_v55  ;;  %v13770_v44 = vld [vmem:[%s15532_s17 + $0x140] ss:$48 sps:$4 sm:$0xff]  }
0x1328   : > { %7957 = vmatprep.subr.bf16.mxu0 %v13763_v58  ;;  %v13824_v55 = vld [vmem:[%s15532_s17 + $0x4a0] ss:$48 sps:$4 sm:$0xff]   ;;  %v13827_v58 = vld [vmem:[%s15532_s17 + $0x4a8] ss:$48 sps:$4 sm:$0xff]  }
0x1329   : > { %7872 = vmatpush1.bf16.msra.mxu1 %v13758_v2  ;;  %v13832_v2 = vld [vmem:[%s15532_s17 + $0x504] ss:$48 sps:$4 sm:$0xff]  }
0x132a   : > { %7958 = vmatpush1.bf16.msra.mxu0 %v13761_v8  ;;  %7873 = vmatprep.subr.bf16.mxu1 %v13766_v61  ;;  %v13835_v8 = vld [vmem:[%s15532_s17 + $0x50c] ss:$48 sps:$4 sm:$0xff]   ;;  %v13830_v61 = vld [vmem:[%s15532_s17 + $0x500] ss:$48 sps:$4 sm:$0xff]  }
0x132b   : > { %7959 = vmatprep.subr.bf16.mxu0 %v13769_v62  ;;  %v13833_v62 = vld [vmem:[%s15532_s17 + $0x508] ss:$48 sps:$4 sm:$0xff]  }
0x132d   : > { %7874 = vmatpush1.bf16.msra.mxu1 %v13764_v63  ;;  %v13838_v63 = vld [vmem:[%s15532_s17 + $0x564] ss:$48 sps:$4 sm:$0xff]  }
0x132e   : > { %7960 = vmatpush1.bf16.msra.mxu0 %v13767_v51  ;;  %7875 = vmatprep.subr.bf16.mxu1 %v13772_v59  ;;  %v13841_v51 = vld [vmem:[%s15532_s17 + $0x56c] ss:$48 sps:$4 sm:$0xff]   ;;  %v13836_v59 = vld [vmem:[%s15532_s17 + $0x560] ss:$48 sps:$4 sm:$0xff]  }
0x132f   : > { %7961 = vmatprep.subr.bf16.mxu0 %v13775_v0  ;;  %v13839_v0 = vld [vmem:[%s15532_s17 + $0x568] ss:$48 sps:$4 sm:$0xff]  }
0x1331   : > { %7876 = vmatpush1.bf16.msra.mxu1 %v13770_v44  ;;  %v13844_v44 = vld [vmem:[%s15532_s17 + $0x5c4] ss:$48 sps:$4 sm:$0xff]  }
0x1332   : > { %7962 = vmatpush1.bf16.msra.mxu0 %v13773_v49  ;;  %7877 = vmatprep.subr.bf16.mxu1 %v13778_v4  ;;  %v13847_v49 = vld [vmem:[%s15532_s17 + $0x5cc] ss:$48 sps:$4 sm:$0xff]   ;;  %v13842_v4 = vld [vmem:[%s15532_s17 + $0x5c0] ss:$48 sps:$4 sm:$0xff]  }
0x1333   : > { %7963 = vmatprep.subr.bf16.mxu0 %v13781_v10  ;;  %v13845_v10 = vld [vmem:[%s15532_s17 + $0x5c8] ss:$48 sps:$4 sm:$0xff]  }
0x1335   : > { %7878 = vmatpush1.bf16.msra.mxu1 %v13776_v5  ;;  %v13850_v5 = vld [vmem:[%s15532_s17 + $0x624] ss:$48 sps:$4 sm:$0xff]  }
0x1336   : > { %7964 = vmatpush1.bf16.msra.mxu0 %v13779_v7  ;;  %7879 = vmatprep.subr.bf16.mxu1 %v13784_v13  ;;  %v13853_v7 = vld [vmem:[%s15532_s17 + $0x62c] ss:$48 sps:$4 sm:$0xff]   ;;  %v13848_v13 = vld [vmem:[%s15532_s17 + $0x620] ss:$48 sps:$4 sm:$0xff]  }
0x1337   : > { %7965 = vmatprep.subr.bf16.mxu0 %v13787_v37  ;;  %v13851_v37 = vld [vmem:[%s15532_s17 + $0x628] ss:$48 sps:$4 sm:$0xff]  }
0x1339   : > { %7880 = vmatpush1.bf16.msra.mxu1 %v13782_v47  ;;  %v13856_v47 = vld [vmem:[%s15532_s17 + $0x684] ss:$48 sps:$4 sm:$0xff]  }
0x133a   : > { %7966 = vmatpush1.bf16.msra.mxu0 %v13785_v1  ;;  %7881 = vmatprep.subr.bf16.mxu1 %v13790_v50  ;;  %v13859_v1 = vld [vmem:[%s15532_s17 + $0x68c] ss:$48 sps:$4 sm:$0xff]   ;;  %v13854_v50 = vld [vmem:[%s15532_s17 + $0x680] ss:$48 sps:$4 sm:$0xff]  }
0x133b   : > { %7967 = vmatprep.subr.bf16.mxu0 %v13793_v39  ;;  %v13857_v39 = vld [vmem:[%s15532_s17 + $0x688] ss:$48 sps:$4 sm:$0xff]  }
0x133d   : > { %7882 = vmatpush1.bf16.msra.mxu1 %v13788_v23  ;;  %v13862_v23 = vld [vmem:[%s15532_s17 + $0x6e4] ss:$48 sps:$4 sm:$0xff]  }
0x133e   : > { %7968 = vmatpush1.bf16.msra.mxu0 %v13791_v52  ;;  %7883 = vmatprep.subr.bf16.mxu1 %v13796_v25  ;;  %v13865_v52 = vld [vmem:[%s15532_s17 + $0x6ec] ss:$48 sps:$4 sm:$0xff]   ;;  %v13863_v25 = vld [vmem:[%s15532_s17 + $0x6e8] ss:$48 sps:$4 sm:$0xff]  }
0x133f   : > { %7969 = vmatprep.subr.bf16.mxu0 %v13799_v53  ;;  %v13868_v53 = vld [vmem:[%s15532_s17 + $0x744] ss:$48 sps:$4 sm:$0xff]  }
0x1341   : > { %7884 = vmatpush1.bf16.msra.mxu1 %v13794_v27  ;;  %v13871_v27 = vld [vmem:[%s15532_s17 + $0x74c] ss:$48 sps:$4 sm:$0xff]  }
0x1342   : > { %7970 = vmatpush1.bf16.msra.mxu0 %v13797_v19  ;;  %7885 = vmatprep.subr.bf16.mxu1 %v13802_v28  ;;  %v13866_v19 = vld [vmem:[%s15532_s17 + $0x740] ss:$48 sps:$4 sm:$0xff]   ;;  %v13869_v28 = vld [vmem:[%s15532_s17 + $0x748] ss:$48 sps:$4 sm:$0xff]  }
0x1343   : > { %7971 = vmatprep.subr.bf16.mxu0 %v13805_v11  ;;  %v13877_v11 = vld [vmem:[%s15532_s17 + $0x7ac] ss:$48 sps:$4 sm:$0xff]  }
0x1345   : > { %7886 = vmatpush1.bf16.msra.mxu1 %v13800_v22  ;;  %v13872_v22 = vld [vmem:[%s15532_s17 + $0x7a0] ss:$48 sps:$4 sm:$0xff]  }
0x1346   : > { %7972 = vmatpush1.bf16.msra.mxu0 %v13803_v57  ;;  %7887 = vmatprep.subr.bf16.mxu1 %v13808_v46  ;;  %v13875_v57 = vld [vmem:[%s15532_s17 + $0x7a8] ss:$48 sps:$4 sm:$0xff]   ;;  %v13880_v46 = vld [vmem:[%s15532_s17 + $0x804] ss:$48 sps:$4 sm:$0xff]  }
0x1347   : > { %7973 = vmatprep.subr.bf16.mxu0 %v13811_v20  ;;  %v13883_v20 = vld [vmem:[%s15532_s17 + $0x80c] ss:$48 sps:$4 sm:$0xff]  }
0x1349   : > { %7888 = vmatpush1.bf16.msra.mxu1 %v13806_v29  ;;  %v13878_v29 = vld [vmem:[%s15532_s17 + $0x800] ss:$48 sps:$4 sm:$0xff]  }
0x134a   : > { %7974 = vmatpush1.bf16.msra.mxu0 %v13809_v16  ;;  %7889 = vmatprep.subr.bf16.mxu1 %v13814_v35  ;;  %v13881_v16 = vld [vmem:[%s15532_s17 + $0x808] ss:$48 sps:$4 sm:$0xff]   ;;  %v13886_v35 = vld [vmem:[%s15532_s17 + $0x864] ss:$48 sps:$4 sm:$0xff]  }
0x134b   : > { %7975 = vmatprep.subr.bf16.mxu0 %v13817_v26  ;;  %v13889_v26 = vld [vmem:[%s15532_s17 + $0x86c] ss:$48 sps:$4 sm:$0xff]  }
0x134d   : > { %7890 = vmatpush1.bf16.msra.mxu1 %v13812_v36  ;;  %v13884_v36 = vld [vmem:[%s15532_s17 + $0x860] ss:$48 sps:$4 sm:$0xff]  }
0x134e   : > { %7976 = vmatpush1.bf16.msra.mxu0 %v13815_v38  ;;  %7891 = vmatprep.subr.bf16.mxu1 %v13820_v40  ;;  %v13887_v38 = vld [vmem:[%s15532_s17 + $0x868] ss:$48 sps:$4 sm:$0xff]   ;;  %v13892_v40 = vld [vmem:[%s15532_s17 + $0x8c4] ss:$48 sps:$4 sm:$0xff]  }
0x134f   : > { %7977 = vmatprep.subr.bf16.mxu0 %v13823_v45  ;;  %v13895_v45 = vld [vmem:[%s15532_s17 + $0x8cc] ss:$48 sps:$4 sm:$0xff]  }
0x1351   : > { %7892 = vmatpush1.bf16.msra.mxu1 %v13818_v42  ;;  %v13890_v42 = vld [vmem:[%s15532_s17 + $0x8c0] ss:$48 sps:$4 sm:$0xff]  }
0x1352   : > { %7978 = vmatpush1.bf16.msra.mxu0 %v13821_v48  ;;  %7893 = vmatprep.subr.bf16.mxu1 %v13826_v43  ;;  %v13893_v48 = vld [vmem:[%s15532_s17 + $0x8c8] ss:$48 sps:$4 sm:$0xff]  }
0x1353   : > { %7979 = vmatprep.subr.bf16.mxu0 %v13829_v54  ;;  %v13898_v43 = vld [vmem:[%s15542_s28 + $0x4] ss:$12 sps:$4 sm:$0xff]   ;;  %v13923_v54 = vld [vmem:[%s15542_s28 + $0xc8] ss:$12 sps:$4 sm:$0xff]  }
0x1355   : > { %7894 = vmatpush1.bf16.msra.mxu1 %v13824_v55  ;;  %v13896_v55 = vld [vmem:[%s15542_s28] ss:$12 sps:$4 sm:$0xff]  }
0x1356   : > { %7980 = vmatpush1.bf16.msra.mxu0 %v13827_v58  ;;  %7895 = vmatprep.subr.bf16.mxu1 %v13832_v2  ;;  %v13901_v58 = vld [vmem:[%s15542_s28 + $0x1c] ss:$12 sps:$4 sm:$0xff]  }
0x1357   : > { %7981 = vmatprep.subr.bf16.mxu0 %v13835_v8  ;;  %v13924_v2 = vld [vmem:[%s15542_s28 + $0x8] ss:$12 sps:$4 sm:$0xff]   ;;  %v13928_v8 = vld [vmem:[%s15542_s28 + $0xe0] ss:$12 sps:$4 sm:$0xff]  }
0x1359   : > { %7896 = vmatpush1.bf16.msra.mxu1 %v13830_v61  ;;  %v13899_v61 = vld [vmem:[%s15542_s28 + $0x18] ss:$12 sps:$4 sm:$0xff]  }
0x135a   : > { %7982 = vmatpush1.bf16.msra.mxu0 %v13833_v62  ;;  %7897 = vmatprep.subr.bf16.mxu1 %v13838_v63  ;;  %v13904_v62 = vld [vmem:[%s15542_s28 + $0x34] ss:$12 sps:$4 sm:$0xff]  }
0x135b   : > { %7983 = vmatprep.subr.bf16.mxu0 %v13841_v51  ;;  %v13929_v63 = vld [vmem:[%s15542_s28 + $0x20] ss:$12 sps:$4 sm:$0xff]   ;;  %v13933_v51 = vld [vmem:[%s15542_s28 + $0xf8] ss:$12 sps:$4 sm:$0xff]  }
0x135d   : > { %7898 = vmatpush1.bf16.msra.mxu1 %v13836_v59  ;;  %v13902_v59 = vld [vmem:[%s15542_s28 + $0x30] ss:$12 sps:$4 sm:$0xff]  }
0x135e   : > { %7984 = vmatpush1.bf16.msra.mxu0 %v13839_v0  ;;  %7899 = vmatprep.subr.bf16.mxu1 %v13844_v44  ;;  %v13907_v0 = vld [vmem:[%s15542_s28 + $0x4c] ss:$12 sps:$4 sm:$0xff]   ;;  %v13938_v44 = vld [vmem:[%s15542_s28 + $0x110] ss:$12 sps:$4 sm:$0xff]  }
0x135f   : > { %7985 = vmatprep.subr.bf16.mxu0 %v13847_v49  ;;  %v13905_v49 = vld [vmem:[%s15542_s28 + $0x48] ss:$12 sps:$4 sm:$0xff]  }
0x1361   : > { %7900 = vmatpush1.bf16.msra.mxu1 %v13842_v4  ;;  %v13910_v4 = vld [vmem:[%s15542_s28 + $0x64] ss:$12 sps:$4 sm:$0xff]  }
0x1362   : > { %7986 = vmatpush1.bf16.msra.mxu0 %v13845_v10  ;;  %7912 = vmatprep.subr.bf16.mxu1 %v13850_v5  ;;  %v13939_v10 = vld [vmem:[%s15542_s28 + $0x50] ss:$12 sps:$4 sm:$0xff]   ;;  %v13943_v5 = vld [vmem:[%s15542_s28 + $0x128] ss:$12 sps:$4 sm:$0xff]  }
0x1363   : > { %7998 = vmatprep.subr.bf16.mxu0 %v13853_v7  ;;  %v16716_v7 = vld [vmem:[%s15539_s24] sm:$0xff] }
0x1364   : > { %7902 = vmatmul.mubr.bf16.vlgmr.msra.gmra.mrb[44].mxu1 %v16441_v21 }
0x1365   : > { %7988 = vmatmul.mubr.bf16.vlgmr.msra.gmra.mrb[60].mxu0 %v16441_v21  ;;  %7913 = vmatpush1.bf16.msra.mxu1 %v13848_v13  ;;  %v13860_v21 = vld [vmem:[%s15532_s17 + $0x6e0] ss:$48 sps:$4 sm:$0xff]   ;;  %v13908_v13 = vld [vmem:[%s15542_s28 + $0x60] ss:$12 sps:$4 sm:$0xff]  }
0x1366   : > { %7999 = vmatpush1.bf16.msra.mxu0 %v13851_v37  ;;  %7914 = vmatprep.subr.bf16.mxu1 %v13856_v47  ;;  %v13913_v37 = vld [vmem:[%s15542_s28 + $0x7c] ss:$12 sps:$4 sm:$0xff]  }
0x1367   : > { %8000 = vmatprep.subr.bf16.mxu0 %v13859_v1  ;;  %7944 = vmatprep.mubr.bf16.mxu1 %v14914_v17  ;;  %v13944_v47 = vld [vmem:[%s15542_s28 + $0x68] ss:$12 sps:$4 sm:$0xff]   ;;  %v13948_v1 = vld [vmem:[%s15542_s28 + $0x140] ss:$12 sps:$4 sm:$0xff]  }
0x1368   : > { %8030 = vmatprep.mubr.bf16.mxu0 %v14914_v17  ;;  %v13874_v17 = vld [vmem:[%s15532_s17 + $0x7a4] ss:$48 sps:$4 sm:$0xff]  }
0x1369   : > { %7915 = vmatpush1.bf16.msra.mxu1 %v13854_v50  ;;  %v6028_v50 = vrot.slane %v16716_v7, %v15673_v34 }
0x136a   : > { %8001 = vmatpush1.bf16.msra.mxu0 %v13857_v39  ;;  %7916 = vmatprep.subr.bf16.mxu1 %v13862_v23  ;;  %v16726_v39 = vrot.slane %v16716_v7, %v15670_v33  ;;  %v16730_v23 = vrot.slane %v16716_v7, %v15667_v32 }
0x136b   : > { %8002 = vmatprep.subr.bf16.mxu0 %v13865_v52  ;;  %v16734_v52 = vrot.slane %v16716_v7, %v15908_v3 }
0x136d   : > { %7917 = vmatpush1.bf16.msra.mxu1 %v13860_v21  ;;  %v13911_v21 = vld [vmem:[%s15542_s28 + $0x78] ss:$12 sps:$4 sm:$0xff]  }
0x136e   : > { %8003 = vmatpush1.bf16.msra.mxu0 %v13863_v25  ;;  %7918 = vmatprep.subr.bf16.mxu1 %v13868_v53  ;;  %v13916_v25 = vld [vmem:[%s15542_s28 + $0x94] ss:$12 sps:$4 sm:$0xff]  }
0x136f   : > { %8004 = vmatprep.subr.bf16.mxu0 %v13871_v27  ;;  %v13949_v53 = vld [vmem:[%s15542_s28 + $0x80] ss:$12 sps:$4 sm:$0xff]  }
0x1371   : > { %7919 = vmatpush1.bf16.msra.mxu1 %v13866_v19 }
0x1372   : > { %8005 = vmatpush1.bf16.msra.mxu0 %v13869_v28  ;;  %7920 = vmatprep.subr.bf16.mxu1 %v13874_v17  ;;  %v13953_v28 = vld [vmem:[%s15542_s28 + $0x158] ss:$12 sps:$4 sm:$0xff]  }
0x1373   : > { %8006 = vmatprep.subr.bf16.mxu0 %v13877_v11 }
0x1375   : > { %7921 = vmatpush1.bf16.msra.mxu1 %v13872_v22 }
0x1376   : > { %8007 = vmatpush1.bf16.msra.mxu0 %v13875_v57  ;;  %7922 = vmatprep.subr.bf16.mxu1 %v13880_v46 }
0x1377   : > { %8008 = vmatprep.subr.bf16.mxu0 %v13883_v20 }
0x1379   : > { %7923 = vmatpush1.bf16.msra.mxu1 %v13878_v29 }
0x137a   : > { %8009 = vmatpush1.bf16.msra.mxu0 %v13881_v16  ;;  %7924 = vmatprep.subr.bf16.mxu1 %v13886_v35  ;;  %v13914_v35 = vld [vmem:[%s15542_s28 + $0x90] ss:$12 sps:$4 sm:$0xff]  }
0x137b   : > { %8010 = vmatprep.subr.bf16.mxu0 %v13889_v26  ;;  %v13919_v26 = vld [vmem:[%s15542_s28 + $0xac] ss:$12 sps:$4 sm:$0xff]  }
0x137d   : > { %7925 = vmatpush1.bf16.msra.mxu1 %v13884_v36 }
0x137e   : > { %8011 = vmatpush1.bf16.msra.mxu0 %v13887_v38  ;;  %7926 = vmatprep.subr.bf16.mxu1 %v13892_v40  ;;  %v13954_v40 = vld [vmem:[%s15542_s28 + $0x98] ss:$12 sps:$4 sm:$0xff]  }
0x137f   : > { %8012 = vmatprep.subr.bf16.mxu0 %v13895_v45 }
0x1381   : > { %7927 = vmatpush1.bf16.msra.mxu1 %v13890_v42 }
0x1382   : > { %8013 = vmatpush1.bf16.msra.mxu0 %v13893_v48  ;;  %10638 = vmatprep.subr.bf16.mxu1 %v13898_v43  ;;  %v13958_v48 = vld [vmem:[%s15542_s28 + $0x170] ss:$12 sps:$4 sm:$0xff]  }
0x1383   : > { %12546 = vmatprep.subr.bf16.mxu0 %v13923_v54 }
0x1384   : > { %7945 = vmatmul.mubr.bf16.vlgmr.msra.gmra.mrb[44].mxu1 %v16488_v24 }
0x1385   : > { %8031 = vmatmul.mubr.bf16.vlgmr.msra.gmra.mrb[60].mxu0 %v16488_v24  ;;  %10639 = vmatpush1.bf16.msra.mxu1 %v13896_v55  ;;  %v13934_v24 = vld [vmem:[%s15542_s28 + $0x38] ss:$12 sps:$4 sm:$0xff]  }
0x1386   : > { %10640 = vmatprep.subr.bf16.mxu1 %v13901_v58  ;;  %12547 = vmatpush3.bf16.msra.mxu0 %v13924_v2  ;;  %v17616_v58 = vmov -1.0  }
0x1387   : > { %12548 = vmatprep.subr.bf16.mxu0 %v13928_v8 }
0x1389   : > { %10641 = vmatpush1.bf16.msra.mxu1 %v13899_v61  ;;  %v13917_v61 = vld [vmem:[%s15542_s28 + $0xa8] ss:$12 sps:$4 sm:$0xff]  }
0x138a   : > { %10642 = vmatprep.subr.bf16.mxu1 %v13904_v62  ;;  %12549 = vmatpush3.bf16.msra.mxu0 %v13929_v63 }
0x138b   : > { %12550 = vmatprep.subr.bf16.mxu0 %v13933_v51 }
0x138d   : > { %10643 = vmatpush1.bf16.msra.mxu1 %v13902_v59 }
0x138e   : > { %10644 = vmatprep.subr.bf16.mxu1 %v13907_v0  ;;  %12551 = vmatpush3.bf16.msra.mxu0 %v13934_v24  ;;  %v13922_v0 = vld [vmem:[%s15542_s28 + $0xc4] ss:$12 sps:$4 sm:$0xff]  }
0x138f   : > { %12552 = vmatprep.subr.bf16.mxu0 %v13938_v44  ;;  %v13959_v24 = vld [vmem:[%s15542_s28 + $0xb0] ss:$12 sps:$4 sm:$0xff]  }
0x1391   : > { %10645 = vmatpush1.bf16.msra.mxu1 %v13905_v49 }
0x1392   : > { %10646 = vmatprep.subr.bf16.mxu1 %v13910_v4  ;;  %12553 = vmatpush3.bf16.msra.mxu0 %v13939_v10  ;;  %v13963_v4 = vld [vmem:[%s15542_s28 + $0x248] ss:$12 sps:$4 sm:$0xff]  }
0x1393   : > { %12554 = vmatprep.subr.bf16.mxu0 %v13943_v5 }
0x1395   : > { %10647 = vmatpush1.bf16.msra.mxu1 %v13908_v13 }
0x1396   : > { %10648 = vmatprep.subr.bf16.mxu1 %v13913_v37  ;;  %12555 = vmatpush3.bf16.msra.mxu0 %v13944_v47  ;;  %v13920_v47 = vld [vmem:[%s15542_s28 + $0xc0] ss:$12 sps:$4 sm:$0xff]  }
0x1397   : > { %v7602_v27 = vpop.f32.mrb[36].mxu1  ;;  %v7688_v19 = vpop.f32.mrb[52].mxu0  ;;  %12556 = vmatprep.subr.bf16.mxu0 %v13948_v1 }
0x1398   : > { %v16740_v17 = vadd.f32 %v7602_v27, %v6028_v50  ;;  %v16743_v11 = vadd.f32 %v7688_v19, %v16726_v39  ;;  %v7604_v22 = vpop.f32.mrb[37].mxu1  ;;  %v7690_v57 = vpop.f32.mrb[53].mxu0 }
0x1399   : > { %v16746_v46 = vadd.f32 %v7604_v22, %v16730_v23  ;;  %v16749_v20 = vadd.f32 %v7690_v57, %v16734_v52  ;;  %v7606_v29 = vpop.f32.mrb[38].mxu1  ;;  %v7692_v16 = vpop.f32.mrb[54].mxu0  ;;  %10649 = vmatpush1.bf16.msra.mxu1 %v13911_v21 }
0x139a   : > { %v8065_v36 = vmul.f32 0.70710677, %v16740_v17  ;;  %v8067_v38 = vmul.f32 0.70710677, %v16743_v11  ;;  %10650 = vmatprep.subr.bf16.mxu1 %v13916_v25  ;;  %12557 = vmatpush3.bf16.msra.mxu0 %v13949_v53  ;;  %v16759_v43 = vadd.f32 %v7606_v29, %v6028_v50  ;;  %v7608_v54 = vpop.f32.mrb[39].mxu1  ;;  %v7694_v55 = vpop.f32.mrb[55].mxu0  ;;  %v16787_v25 = vadd.f32 %v7692_v16, %v16726_v39 }
0x139b   : > { %v8066_v45 = vmul.f32 0.70710677, %v16746_v46  ;;  %v8068_v42 = vmul.f32 0.70710677, %v16749_v20  ;;  %12558 = vmatprep.subr.bf16.mxu0 %v13953_v28  ;;  %v13927_v53 = vld [vmem:[%s15542_s28 + $0xdc] ss:$12 sps:$4 sm:$0xff]   ;;  %v16798_v16 = vadd.f32 %v7608_v54, %v16730_v23 }
0x139c   : > { %vm8089_vm5 = vcmp.ge.f32.partialorder %v8065_v36, 0.0  ;;  %vm8091_vm6 = vcmp.ge.f32.partialorder %v8067_v38, 0.0  ;;  %v8077_v13 = vmul.f32 0.70710677, %v16759_v43  ;;  %v13925_v28 = vld [vmem:[%s15542_s28 + $0xd8] ss:$12 sps:$4 sm:$0xff]  }
0x139d   : > { %v16762_v2 = vsel %vm8089_vm5, 1.0, %v17616_v58  ;;  %v16765_v8 = vsel %vm8091_vm6, 1.0, %v17616_v58  ;;  %vm8090_vm7 = vcmp.ge.f32.partialorder %v8066_v45, 0.0  ;;  %vm8092_vm8 = vcmp.ge.f32.partialorder %v8068_v42, 0.0  ;;  %10651 = vmatpush1.bf16.msra.mxu1 %v13914_v35  ;;  %v13932_v29 = vld [vmem:[%s15542_s28 + $0xf4] ss:$12 sps:$4 sm:$0xff]  }
0x139e   : > { %v8137_v62 = vmul.f32 %v16762_v2, %v8065_v36  ;;  %v8139_v63 = vmul.f32 %v16765_v8, %v8067_v38  ;;  %v16771_v51 = vsel %vm8090_vm7, 1.0, %v17616_v58  ;;  %v16774_v59 = vsel %vm8092_vm8, 1.0, %v17616_v58  ;;  %10652 = vmatprep.subr.bf16.mxu1 %v13919_v26  ;;  %12559 = vmatpush3.bf16.msra.mxu0 %v13954_v40  ;;  %v13930_v40 = vld [vmem:[%s15542_s28 + $0xf0] ss:$12 sps:$4 sm:$0xff]  }
0x139f   : > { %v8138_v44 = vmul.f32 %v16771_v51, %v8066_v45  ;;  %v16780_v49 = vmul.f32 %v16774_v59, %v8068_v42  ;;  %12560 = vmatprep.subr.bf16.mxu0 %v13958_v48  ;;  %vm8101_vm9 = vcmp.ge.f32.partialorder %v8077_v13, 0.0  ;;  %v8079_v39 = vmul.f32 0.70710677, %v16787_v25 }
0x13a0   : > { %v8161_v10 = vmul.f32 0.3275911, %v8137_v62  ;;  %v8163_v5 = vmul.f32 0.3275911, %v8139_v63  ;;  %v16791_v19 = vsel %vm8101_vm9, 1.0, %v17616_v58  ;;  %v16801_v35 = vadd.f32 %v7694_v55, %v16734_v52 }
0x13a1   : > { %v8162_v37 = vmul.f32 0.3275911, %v8138_v44  ;;  %10653 = vmatpush1.bf16.msra.mxu1 %v13917_v61  ;;  %v8164_v21 = vmul.f32 0.3275911, %v16780_v49  ;;  %v8149_v57 = vmul.f32 %v16791_v19, %v8077_v13  ;;  %vm8103_vm10 = vcmp.ge.f32.partialorder %v8079_v39, 0.0 }
0x13a2   : > { %v8185_v1 = vadd.f32 1.0, %v8161_v10  ;;  %v8187_v50 = vadd.f32 1.0, %v8163_v5  ;;  %10654 = vmatprep.subr.bf16.mxu1 %v13922_v0  ;;  %12561 = vmatpush3.bf16.msra.mxu0 %v13959_v24  ;;  %v16804_v36 = vsel %vm8103_vm10, 1.0, %v17616_v58  ;;  %v8078_v38 = vmul.f32 0.70710677, %v16798_v16 }
0x13a3   : > { %12568 = vmatprep.subr.bf16.mxu0 %v13963_v4  ;;  %v8186_v27 = vadd.f32 1.0, %v8162_v37  ;;  %v8188_v22 = vadd.f32 1.0, %v8164_v21  ;;  %v8173_v26 = vmul.f32 0.3275911, %v8149_v57  ;;  %v8473_v45 = vmul.f32 %v8137_v62, %v8137_v62  ;;  %v13937_v52 = vld [vmem:[%s15542_s28 + $0x10c] ss:$12 sps:$4 sm:$0xff]  }
0x13a4   : > { %14336 = vrcp.f32 %v8185_v1  ;;  %v8151_v23 = vmul.f32 %v16804_v36, %v8079_v39  ;;  %v8475_v48 = vmul.f32 %v8139_v63, %v8139_v63  ;;  %vm8102_vm11 = vcmp.ge.f32.partialorder %v8078_v38, 0.0  ;;  %v13935_v0 = vld [vmem:[%s15542_s28 + $0x108] ss:$12 sps:$4 sm:$0xff]   ;;  %v13942_v63 = vld [vmem:[%s15542_s28 + $0x124] ss:$12 sps:$4 sm:$0xff]  }
0x13a5   : > { %14338 = vrcp.f32 %v8187_v50  ;;  %10655 = vmatpush1.bf16.msra.mxu1 %v13920_v47  ;;  %v8197_v42 = vadd.f32 1.0, %v8173_v26  ;;  %v8080_v54 = vmul.f32 0.70710677, %v16801_v35  ;;  %v16812_v61 = vsel %vm8102_vm11, 1.0, %v17616_v58  ;;  %v13947_v39 = vld [vmem:[%s15542_s28 + $0x13c] ss:$12 sps:$4 sm:$0xff]  }
0x13a6   : > { %10656 = vmatprep.subr.bf16.mxu1 %v13927_v53  ;;  %14340 = vrcp.f32 %v8186_v27  ;;  %v8175_v55 = vmul.f32 0.3275911, %v8151_v23  ;;  %v8497_v24 = vsub.f32 0.0, %v8473_v45  ;;  %v8150_v10 = vmul.f32 %v16812_v61, %v8078_v38 }
0x13a7   : > { %14342 = vrcp.f32 %v8188_v22  ;;  %vm8104_vm12 = vcmp.ge.f32.partialorder %v8080_v54, 0.0  ;;  %v8499_v37 = vsub.f32 0.0, %v8475_v48  ;;  %v8474_v47 = vmul.f32 %v8138_v44, %v8138_v44  ;;  %v13940_v22 = vld [vmem:[%s15542_s28 + $0x120] ss:$12 sps:$4 sm:$0xff]  }
0x13a8   : > { %14344 = vrcp.f32 %v8197_v42  ;;  %v8199_v4 = vadd.f32 1.0, %v8175_v55  ;;  %v16823_v1 = vsel %vm8104_vm12, 1.0, %v17616_v58  ;;  %v8485_v21 = vmul.f32 %v8149_v57, %v8149_v57  ;;  %v13950_v58 = vld [vmem:[%s15542_s28 + $0x150] ss:$12 sps:$4 sm:$0xff]  }
0x13a9   : > { %10657 = vmatpush1.bf16.msra.mxu1 %v13925_v28  ;;  %v8174_v53 = vmul.f32 0.3275911, %v8150_v10  ;;  %v16827_v28 = vmul.f32 %v16823_v1, %v8080_v54  ;;  %v8521_v26 = vmul.f32 1.442695, %v8497_v24  ;;  %v8498_v45 = vsub.f32 0.0, %v8474_v47 }
0x13aa   : > { %10658 = vmatprep.subr.bf16.mxu1 %v13932_v29  ;;  %14346 = vrcp.f32 %v8199_v4  ;;  %v8525_v54 = vmul.f32 1.442695, %v8499_v37  ;;  %v8509_v55 = vsub.f32 0.0, %v8485_v21  ;;  %v13952_v37 = vld [vmem:[%s15542_s28 + $0x154] ss:$12 sps:$4 sm:$0xff]  }
0x13ab   : > { %v8198_v38 = vadd.f32 1.0, %v8174_v53  ;;  %v8176_v42 = vmul.f32 0.3275911, %v16827_v28  ;;  %v8487_v53 = vmul.f32 %v8151_v23, %v8151_v23 }
0x13ad   : > { %10659 = vmatpush1.bf16.msra.mxu1 %v13930_v40  ;;  %14348 = vrcp.f32 %v8198_v38 }
0x13ae   : > { %v16815_v62 = vpop.eup %14336  ;;  %10660 = vmatprep.subr.bf16.mxu1 %v13937_v52  ;;  %14350 = vpow2.f32 %v8521_v26 }
0x13af   : > { %v16819_v5 = vpop.eup %14338  ;;  %v8257_v13 = vmul.f32 1.0614054, %v16815_v62  ;;  %14352 = vpow2.f32 %v8525_v54 }
0x13b0   : > { %v8259_v50 = vmul.f32 1.0614054, %v16819_v5  ;;  %v16831_v29 = vpop.eup %14340 }
0x13b1   : > { %v8281_v27 = vadd.f32 -1.4531521, %v8257_v13  ;;  %10661 = vmatpush1.bf16.msra.mxu1 %v13935_v0  ;;  %v8258_v57 = vmul.f32 1.0614054, %v16831_v29  ;;  %v16836_v52 = vpop.eup %14342  ;;  %v13945_v0 = vld [vmem:[%s15542_s28 + $0x138] ss:$12 sps:$4 sm:$0xff]   ;;  %v8476_v13 = vmul.f32 %v16780_v49, %v16780_v49 }
0x13b2   : > { %v8283_v44 = vadd.f32 -1.4531521, %v8259_v50  ;;  %10662 = vmatprep.subr.bf16.mxu1 %v13942_v63  ;;  %v8260_v63 = vmul.f32 1.0614054, %v16836_v52  ;;  %v16843_v47 = vpop.eup %14344  ;;  %v8523_v49 = vmul.f32 1.442695, %v8498_v45 }
0x13b3   : > { %v8305_v40 = vmul.f32 %v16815_v62, %v8281_v27  ;;  %v8282_v4 = vadd.f32 -1.4531521, %v8258_v57  ;;  %v8200_v27 = vadd.f32 1.0, %v8176_v42 }
0x13b4   : > { %v8307_v48 = vmul.f32 %v16819_v5, %v8283_v44  ;;  %v8284_v38 = vadd.f32 -1.4531521, %v8260_v63  ;;  %v8486_v63 = vmul.f32 %v8150_v10, %v8150_v10 }
0x13b5   : > { %v8329_v24 = vadd.f32 1.4214138, %v8305_v40  ;;  %10663 = vmatpush1.bf16.msra.mxu1 %v13940_v22  ;;  %v8306_v44 = vmul.f32 %v16831_v29, %v8282_v4  ;;  %v8269_v40 = vmul.f32 1.0614054, %v16843_v47  ;;  %v8545_v22 = vmul.f32 1.442695, %v8509_v55 }
0x13b6   : > { %v8331_v50 = vadd.f32 1.4214138, %v8307_v48  ;;  %10664 = vmatprep.subr.bf16.mxu1 %v13947_v39  ;;  %v8308_v39 = vmul.f32 %v16836_v52, %v8284_v38  ;;  %v16852_v48 = vpop.eup %14346  ;;  %v8511_v4 = vsub.f32 0.0, %v8487_v53  ;;  %14354 = vrcp.f32 %v8200_v27 }
0x13b7   : > { %v8353_v21 = vmul.f32 %v16815_v62, %v8329_v24  ;;  %v8330_v23 = vadd.f32 1.4214138, %v8306_v44  ;;  %v8293_v42 = vadd.f32 -1.4531521, %v8269_v40  ;;  %v13955_v44 = vld [vmem:[%s15542_s28 + $0x168] ss:$12 sps:$4 sm:$0xff]   ;;  %14356 = vpow2.f32 %v8523_v49 }
0x13b8   : > { %v8355_v57 = vmul.f32 %v16819_v5, %v8331_v50  ;;  %v13957_v50 = vld [vmem:[%s15542_s28 + $0x16c] ss:$12 sps:$4 sm:$0xff]   ;;  %v8332_v55 = vadd.f32 1.4214138, %v8308_v39  ;;  %v8271_v40 = vmul.f32 1.0614054, %v16852_v48  ;;  %14358 = vpow2.f32 %v8545_v22 }
0x13b9   : > { %v8377_v26 = vadd.f32 -0.28449672, %v8353_v21  ;;  %10665 = vmatpush1.bf16.msra.mxu1 %v13945_v0  ;;  %v8354_v54 = vmul.f32 %v16831_v29, %v8330_v23  ;;  %v8317_v21 = vmul.f32 %v16843_v47, %v8293_v42  ;;  %v8500_v0 = vsub.f32 0.0, %v8476_v13 }
0x13ba   : > { %v8379_v24 = vadd.f32 -0.28449672, %v8355_v57  ;;  %10666 = vmatprep.subr.bf16.mxu1 %v13952_v37  ;;  %v13962_v57 = vld [vmem:[%s15542_s28 + $0x184] ss:$12 sps:$4 sm:$0xff]   ;;  %v8356_v27 = vmul.f32 %v16836_v52, %v8332_v55  ;;  %v8295_v39 = vadd.f32 -1.4531521, %v8271_v40 }
0x13bb   : > { %v8401_v45 = vmul.f32 %v16815_v62, %v8377_v26  ;;  %v8378_v10 = vadd.f32 -0.28449672, %v8354_v54  ;;  %v8341_v37 = vadd.f32 1.4214138, %v8317_v21  ;;  %v16863_v26 = vpop.eup %14348  ;;  %v8549_v42 = vmul.f32 1.442695, %v8511_v4 }
0x13bc   : > { %v8403_v38 = vmul.f32 %v16819_v5, %v8379_v24  ;;  %v8510_v18 = vsub.f32 0.0, %v8486_v63  ;;  %v8380_v54 = vadd.f32 -0.28449672, %v8356_v27  ;;  %v8527_v56 = vmul.f32 1.442695, %v8500_v0 }
0x13bd   : > { %v8425_v53 = vadd.f32 0.2548296, %v8401_v45  ;;  %10667 = vmatpush1.bf16.msra.mxu1 %v13950_v58  ;;  %v8402_v13 = vmul.f32 %v16831_v29, %v8378_v10  ;;  %v8365_v49 = vmul.f32 %v16843_v47, %v8341_v37  ;;  %v14351_v45 = vpop.eup %14350  ;;  %v8319_v55 = vmul.f32 %v16852_v48, %v8295_v39 }
0x13be   : > { %v8427_v23 = vadd.f32 0.2548296, %v8403_v38  ;;  %10668 = vmatprep.subr.bf16.mxu1 %v13957_v50  ;;  %v8270_v58 = vmul.f32 1.0614054, %v16863_v26  ;;  %v8488_v4 = vmul.f32 %v16827_v28, %v16827_v28  ;;  %14360 = vpow2.f32 %v8549_v42 }
0x13bf   : > { %v8449_v24 = vmul.f32 %v16815_v62, %v8425_v53  ;;  %v8389_v38 = vadd.f32 -0.28449672, %v8365_v49  ;;  %v14353_v62 = vpop.eup %14352  ;;  %v8426_v50 = vadd.f32 0.2548296, %v8402_v13  ;;  %v8343_v40 = vadd.f32 1.4214138, %v8319_v55 }
0x13c0   : > { %v8451_v22 = vmul.f32 %v16819_v5, %v8427_v23  ;;  %v8294_v53 = vadd.f32 -1.4531521, %v8270_v58  ;;  %v8547_v0 = vmul.f32 1.442695, %v8510_v18  ;;  %v16874_v10 = vpop.eup %14354  ;;  %v8404_v27 = vmul.f32 %v16836_v52, %v8380_v54 }
0x13c1   : > { %v8569_v21 = vmul.f32 %v14351_v45, %v8449_v24  ;;  %10669 = vmatpush1.bf16.msra.mxu1 %v13955_v44  ;;  %v8413_v63 = vmul.f32 %v16843_v47, %v8389_v38  ;;  %14362 = vpow2.f32 %v8527_v56  ;;  %v8367_v5 = vmul.f32 %v16852_v48, %v8343_v40  ;;  %v14357_v24 = vpop.eup %14356 }
0x13c2   : > { %10681 = vmatprep.subr.bf16.mxu1 %v13962_v57  ;;  %v8318_v37 = vmul.f32 %v16863_v26, %v8294_v53  ;;  %v8571_v44 = vmul.f32 %v14353_v62, %v8451_v22  ;;  %v8512_v39 = vsub.f32 0.0, %v8488_v4  ;;  %v8450_v57 = vmul.f32 %v16831_v29, %v8426_v50  ;;  %v14359_v45 = vpop.eup %14358 }
0x13c3   : > { %v8593_v28 = vsub.f32 1.0, %v8569_v21  ;;  %v8437_v23 = vadd.f32 0.2548296, %v8413_v63  ;;  %v8391_v13 = vadd.f32 -0.28449672, %v8367_v5  ;;  %14364 = vpow2.f32 %v8547_v0 }
0x13c4   : > { %v8342_v49 = vadd.f32 1.4214138, %v8318_v37  ;;  %v8272_v18 = vmul.f32 1.0614054, %v16874_v10  ;;  %v8428_v56 = vadd.f32 0.2548296, %v8404_v27  ;;  %v8570_v29 = vmul.f32 %v14357_v24, %v8450_v57 }
0x13c5   : > { %v8461_v42 = vmul.f32 %v16843_v47, %v8437_v23  ;;  %v8415_v54 = vmul.f32 %v16852_v48, %v8391_v13  ;;  %v8617_v21 = vmul.f32 %v8593_v28, %v16762_v2  ;;  %v8595_v22 = vsub.f32 1.0, %v8571_v44 }
0x13c6   : > { %v8366_v55 = vmul.f32 %v16863_v26, %v8342_v49  ;;  %v8296_v58 = vadd.f32 -1.4531521, %v8272_v18  ;;  %v8551_v4 = vmul.f32 1.442695, %v8512_v39  ;;  %v8452_v47 = vmul.f32 %v16836_v52, %v8428_v56 }
0x13c7   : > { %v8581_v38 = vmul.f32 %v14359_v45, %v8461_v42  ;;  %v8439_v62 = vadd.f32 0.2548296, %v8415_v54  ;;  %v8641_v37 = vadd.f32 1.0, %v8617_v21  ;;  %v8619_v2 = vmul.f32 %v8595_v22, %v16765_v8 }
0x13c8   : > { %v8390_v50 = vadd.f32 -0.28449672, %v8366_v55  ;;  %v8320_v40 = vmul.f32 %v16874_v10, %v8296_v58  ;;  %v14361_v5 = vpop.eup %14360  ;;  %14366 = vpow2.f32 %v8551_v4  ;;  %v8594_v23 = vsub.f32 1.0, %v8570_v29 }
0x13c9   : > { %v8605_v53 = vsub.f32 1.0, %v8581_v38  ;;  %v8463_v63 = vmul.f32 %v16852_v48, %v8439_v62  ;;  %v8041_v52 = vmul.f32 0.5, %v16740_v17  ;;  %v8053_v48 = vmul.f32 0.5, %v16759_v43 }
0x13ca   : > { %v8414_v0 = vmul.f32 %v16863_v26, %v8390_v50  ;;  %v8344_v27 = vadd.f32 1.4214138, %v8320_v40  ;;  %v8618_v55 = vmul.f32 %v8594_v23, %v16771_v51  ;;  %v8043_v17 = vmul.f32 0.5, %v16743_v11  ;;  %v13960_v23 = vld [vmem:[%s15542_s28 + $0x180] ss:$12 sps:$4 sm:$0xff]  }
0x13cb   : > { %v8629_v28 = vmul.f32 %v8605_v53, %v16791_v19  ;;  %v14363_v44 = vpop.eup %14362  ;;  %v8583_v39 = vmul.f32 %v14361_v5, %v8463_v63  ;;  %v8665_v56 = vmul.f32 %v8641_v37, %v8041_v52  ;;  %v8643_v19 = vadd.f32 1.0, %v8619_v2 }
0x13cc   : > { %v8438_v24 = vadd.f32 0.2548296, %v8414_v0  ;;  %v8368_v57 = vmul.f32 %v16874_v10, %v8344_v27  ;;  %v8572_v49 = vmul.f32 %v14363_v44, %v8452_v47  ;;  %v8055_v38 = vmul.f32 0.5, %v16787_v25 }
0x13cd   : > { %v8653_v13 = vadd.f32 1.0, %v8629_v28  ;;  %v8607_v18 = vsub.f32 1.0, %v8583_v39  ;;  %v14365_v8 = vpop.eup %14364  ;;  %v8667_v50 = vmul.f32 %v8643_v19, %v8043_v17  ;;  %v8642_v40 = vadd.f32 1.0, %v8618_v55  ;;  %v13964_v39 = vld [vmem:[%s15542_s28 + $0x188] ss:$12 sps:$4 sm:$0xff]  }
0x13ce   : > { %v8462_v42 = vmul.f32 %v16863_v26, %v8438_v24  ;;  %v8392_v45 = vadd.f32 -0.28449672, %v8368_v57  ;;  %v8596_v4 = vsub.f32 1.0, %v8572_v49  ;;  %v8042_v11 = vmul.f32 0.5, %v16746_v46  ;;  %v13967_v24 = vld [vmem:[%s15542_s28 + $0x19c] ss:$12 sps:$4 sm:$0xff]  }
0x13cf   : > { %v8677_v54 = vmul.f32 %v8653_v13, %v8053_v48  ;;  %v8631_v58 = vmul.f32 %v8607_v18, %v16804_v36  ;;  %v8054_v25 = vmul.f32 0.5, %v16798_v16  ;;  %v13968_v46 = vld [vmem:[%s15542_s28 + $0x260] ss:$12 sps:$4 sm:$0xff]   ;;  %v8044_v16 = vmul.f32 0.5, %v16749_v20  ;;  %v13965_v48 = vld [vmem:[%s15542_s28 + $0x198] ss:$12 sps:$4 sm:$0xff]  }
0x13d0   : > { %v8582_v21 = vmul.f32 %v14365_v8, %v8462_v42  ;;  %v8416_v22 = vmul.f32 %v16874_v10, %v8392_v45  ;;  %v8620_v63 = vmul.f32 %v8596_v4, %v16774_v59  ;;  %v8666_v37 = vmul.f32 %v8642_v40, %v8042_v11  ;;  %v13969_v20 = vld [vmem:[%s15542_s28 + $0x1a0] ss:$12 sps:$4 sm:$0xff]   ;;  %v13973_v49 = vld [vmem:[%s15542_s28 + $0x278] ss:$12 sps:$4 sm:$0xff]   ;;  %v13970_v18 = vld [vmem:[%s15542_s28 + $0x1b0] ss:$12 sps:$4 sm:$0xff]  }
0x13d1   : > { %v8689_v43 = vpack.c.bf16 %v8677_v54, %v8665_v56  ;;  %v8655_v29 = vadd.f32 1.0, %v8631_v58  ;;  %v8056_v59 = vmul.f32 0.5, %v16801_v35  ;;  %v13972_v13 = vld [vmem:[%s15542_s28 + $0x1b4] ss:$12 sps:$4 sm:$0xff]   ;;  %v13974_v42 = vld [vmem:[%s15542_s28 + $0x1b8] ss:$12 sps:$4 sm:$0xff]   ;;  %v16942_v40 = vrot.slane %v16716_v7, %v1367_v15 }
0x13d2   : > { %v8606_v26 = vsub.f32 1.0, %v8582_v21  ;;  %v8440_v62 = vadd.f32 0.2548296, %v8416_v22  ;;  %v14367_v47 = vpop.eup %14366  ;;  %v13977_v45 = vld [vmem:[%s15542_s28 + $0x1cc] ss:$12 sps:$4 sm:$0xff]  }
0x13d3   : > { %v8679_v53 = vmul.f32 %v8655_v29, %v8055_v38  ;;  %v13978_v8 = vld [vmem:[%s15542_s28 + $0x290] ss:$12 sps:$4 sm:$0xff]   ;;  %v13975_v56 = vld [vmem:[%s15542_s28 + $0x1c8] ss:$12 sps:$4 sm:$0xff]   ;;  %v13980_v58 = vld [vmem:[%s15542_s28 + $0x1e0] ss:$12 sps:$4 sm:$0xff]  }
0x13d4   : > { %v8630_v51 = vmul.f32 %v8606_v26, %v16812_v61  ;;  %v8464_v36 = vmul.f32 %v16874_v10, %v8440_v62  ;;  %v8644_v61 = vadd.f32 1.0, %v8620_v63  ;;  %v13979_v19 = vld [vmem:[%s15542_s28 + $0x1d0] ss:$12 sps:$4 sm:$0xff]   ;;  %v13983_v55 = vld [vmem:[%s15542_s28 + $0x2a8] ss:$12 sps:$4 sm:$0xff]   ;;  %v6044_v26 = vrot.slane %v16716_v7, %v1359_v41 }
0x13d5   : > { %v16905_v0 = vpack.c.bf16 %v8679_v53, %v8667_v50  ;;  %v13982_v54 = vld [vmem:[%s15542_s28 + $0x1e4] ss:$12 sps:$4 sm:$0xff]   ;;  %v13984_v21 = vld [vmem:[%s15542_s28 + $0x1e8] ss:$12 sps:$4 sm:$0xff]   ;;  %v13988_v17 = vld [vmem:[%s15542_s28 + $0x2c0] ss:$12 sps:$4 sm:$0xff]  }
0x13d6   : > { %v8654_v27 = vadd.f32 1.0, %v8630_v51  ;;  %v8584_v5 = vmul.f32 %v14367_v47, %v8464_v36  ;;  %v13987_v22 = vld [vmem:[%s15542_s28 + $0x1fc] ss:$12 sps:$4 sm:$0xff]   ;;  %v13989_v38 = vld [vmem:[%s15542_s28 + $0x200] ss:$12 sps:$4 sm:$0xff]   ;;  %v17658_v53 = vsub.s32 5, %v15662_v30 }
0x13d7   : > { %v13992_v4 = vld [vmem:[%s15542_s28 + $0x214] ss:$12 sps:$4 sm:$0xff]   ;;  %v13993_v29 = vld [vmem:[%s15542_s28 + $0x2d8] ss:$12 sps:$4 sm:$0xff]   ;;  %v13990_v62 = vld [vmem:[%s15542_s28 + $0x210] ss:$12 sps:$4 sm:$0xff]  }
0x13d8   : > { %v8678_v2 = vmul.f32 %v8654_v27, %v8054_v25  ;;  %v8608_v28 = vsub.f32 1.0, %v8584_v5  ;;  %v13994_v50 = vld [vmem:[%s15542_s28 + $0x218] ss:$12 sps:$4 sm:$0xff]   ;;  %v16947_v51 = vrot.slane %v16716_v7, %v17658_v53  ;;  %v13998_v41 = vld [vmem:[%s15542_s28 + $0x2f0] ss:$12 sps:$4 sm:$0xff]   ;;  %v17659_v47 = vsub.s32 7, %v15662_v30 }
0x13d9   : > { %v13997_v36 = vld [vmem:[%s15542_s28 + $0x22c] ss:$12 sps:$4 sm:$0xff]   ;;  %v13995_v63 = vld [vmem:[%s15542_s28 + $0x228] ss:$12 sps:$4 sm:$0xff]  }
0x13da   : > { %v8632_v44 = vmul.f32 %v8608_v28, %v16823_v1  ;;  %v8690_v10 = vpack.c.bf16 %v8678_v2, %v8666_v37  ;;  %v8668_v1 = vmul.f32 %v8644_v61, %v8044_v16  ;;  %v16954_v11 = vrot.slane %v16716_v7, %v17659_v47  ;;  %v13999_v37 = vld [vmem:[%s15542_s28 + $0x230] ss:$12 sps:$4 sm:$0xff]   ;;  %v14000_v16 = vld [vmem:[%s15542_s28 + $0x240] ss:$12 sps:$4 sm:$0xff]   ;;  %v14038_v47 = vld [vmem:[%s15542_s28 + $0x338] ss:$12 sps:$4 sm:$0xff]  }
0x13db   : > { %v14002_v2 = vld [vmem:[%s15542_s28 + $0x244] ss:$12 sps:$4 sm:$0xff]  }
0x13dc   : > { %v8656_v57 = vadd.f32 1.0, %v8632_v44  ;;  %10670 = vmatprep.mubr.bf16.mxu1 %v8690_v10  ;;  %10928 = vmatprep.mubr.bf16.mxu0 %v8690_v10 }
0x13dd   : > { %10671 = vmatmul.mubr.bf16.vlgmr.msra.gmra.mrb[48].mxu1 %v8689_v43  ;;  %10929 = vmatmul.mubr.bf16.vlgmr.msra.gmra.mrb[64].mxu0 %v8689_v43  ;;  %v13985_v43 = vld [vmem:[%s15542_s28 + $0x1f8] ss:$12 sps:$4 sm:$0xff]  }
0x13de   : > { %v8680_v52 = vmul.f32 %v8656_v57, %v8056_v59  ;;  %10682 = vmatpush1.bf16.msra.mxu1 %v13960_v23  ;;  %12569 = vmatpush3.bf16.msra.mxu0 %v13964_v39 }
0x13df   : > { %10683 = vmatprep.subr.bf16.mxu1 %v13967_v24  ;;  %12570 = vmatprep.subr.bf16.mxu0 %v13968_v46  ;;  %v14027_v46 = vld [vmem:[%s15542_s28 + $0x3c8] ss:$12 sps:$4 sm:$0xff]  }
0x13e0   : > { %v8692_v35 = vpack.c.bf16 %v8680_v52, %v8668_v1  ;;  %v14005_v1 = vld [vmem:[%s15542_s28 + $0x25c] ss:$12 sps:$4 sm:$0xff]  }
0x13e2   : > { %10713 = vmatprep.mubr.bf16.mxu1 %v8692_v35  ;;  %10969 = vmatprep.mubr.bf16.mxu0 %v8692_v35  ;;  %v17660_v35 = vmov -1.0  }
0x13e3   : > { %10684 = vmatpush1.bf16.msra.mxu1 %v13965_v48  ;;  %12571 = vmatpush3.bf16.msra.mxu0 %v13969_v20  ;;  %v14028_v20 = vld [vmem:[%s15542_s28 + $0x308] ss:$12 sps:$4 sm:$0xff]  }
0x13e4   : > { %10685 = vmatprep.subr.bf16.mxu1 %v13972_v13  ;;  %12572 = vmatprep.subr.bf16.mxu0 %v13973_v49 }
0x13e7   : > { %10686 = vmatpush1.bf16.msra.mxu1 %v13970_v18  ;;  %12573 = vmatpush3.bf16.msra.mxu0 %v13974_v42 }
0x13e8   : > { %10687 = vmatprep.subr.bf16.mxu1 %v13977_v45  ;;  %12574 = vmatprep.subr.bf16.mxu0 %v13978_v8  ;;  %v14032_v8 = vld [vmem:[%s15542_s28 + $0x3e0] ss:$12 sps:$4 sm:$0xff]  }
0x13eb   : > { %10688 = vmatpush1.bf16.msra.mxu1 %v13975_v56  ;;  %12575 = vmatpush3.bf16.msra.mxu0 %v13979_v19 }
0x13ec   : > { %10689 = vmatprep.subr.bf16.mxu1 %v13982_v54  ;;  %12576 = vmatprep.subr.bf16.mxu0 %v13983_v55  ;;  %v14003_v55 = vld [vmem:[%s15542_s28 + $0x258] ss:$12 sps:$4 sm:$0xff]  }
0x13ef   : > { %10690 = vmatpush1.bf16.msra.mxu1 %v13980_v58  ;;  %12577 = vmatpush3.bf16.msra.mxu0 %v13984_v21 }
0x13f0   : > { %10691 = vmatprep.subr.bf16.mxu1 %v13987_v22  ;;  %12578 = vmatprep.subr.bf16.mxu0 %v13988_v17  ;;  %v14008_v22 = vld [vmem:[%s15542_s28 + $0x274] ss:$12 sps:$4 sm:$0xff]  }
0x13f3   : > { %10692 = vmatpush1.bf16.msra.mxu1 %v13985_v43  ;;  %12579 = vmatpush3.bf16.msra.mxu0 %v13989_v38  ;;  %v14033_v38 = vld [vmem:[%s15542_s28 + $0x320] ss:$12 sps:$4 sm:$0xff]  }
0x13f4   : > { %10693 = vmatprep.subr.bf16.mxu1 %v13992_v4  ;;  %12580 = vmatprep.subr.bf16.mxu0 %v13993_v29 }
0x13f7   : > { %v7774_v25 = vpop.f32.mrb[40].mxu1  ;;  %10694 = vmatpush1.bf16.msra.mxu1 %v13990_v62  ;;  %12581 = vmatpush3.bf16.msra.mxu0 %v13994_v50  ;;  %v14037_v62 = vld [vmem:[%s15542_s28 + $0x3f8] ss:$12 sps:$4 sm:$0xff]  }
0x13f8   : > { %v16957_v27 = vadd.f32 %v7774_v25, %v6044_v26  ;;  %v7860_v15 = vpop.f32.mrb[56].mxu0  ;;  %v7776_v5 = vpop.f32.mrb[41].mxu1  ;;  %10695 = vmatprep.subr.bf16.mxu1 %v13997_v36  ;;  %12582 = vmatprep.subr.bf16.mxu0 %v13998_v41  ;;  %v14006_v36 = vld [vmem:[%s15542_s28 + $0x270] ss:$12 sps:$4 sm:$0xff]  }
0x13f9   : > { %v16962_v28 = vadd.f32 %v7860_v15, %v16942_v40  ;;  %v16965_v30 = vadd.f32 %v7776_v5, %v16947_v51  ;;  %v7862_v7 = vpop.f32.mrb[57].mxu0  ;;  %v7778_v61 = vpop.f32.mrb[42].mxu1  ;;  %v14011_v5 = vld [vmem:[%s15542_s28 + $0x28c] ss:$12 sps:$4 sm:$0xff]  }
0x13fa   : > { %v8069_v44 = vmul.f32 0.70710677, %v16957_v27  ;;  %v16969_v10 = vadd.f32 %v7862_v7, %v16954_v11  ;;  %v16971_v23 = vadd.f32 %v7778_v61, %v6044_v26  ;;  %v7864_v39 = vpop.f32.mrb[58].mxu0  ;;  %v7780_v24 = vpop.f32.mrb[43].mxu1 }
0x13fb   : > { %v8071_v59 = vmul.f32 0.70710677, %v16962_v28  ;;  %v8070_v57 = vmul.f32 0.70710677, %v16965_v30  ;;  %v7866_v48 = vpop.f32.mrb[59].mxu0  ;;  %10696 = vmatpush1.bf16.msra.mxu1 %v13995_v63  ;;  %12583 = vmatpush3.bf16.msra.mxu0 %v13999_v37  ;;  %v17016_v63 = vadd.f32 %v7864_v39, %v16942_v40  ;;  %v17019_v15 = vadd.f32 %v7780_v24, %v16947_v51 }
0x13fc   : > { %vm8093_vm13 = vcmp.ge.f32.partialorder %v8069_v44, 0.0  ;;  %v8072_v52 = vmul.f32 0.70710677, %v16969_v10  ;;  %v8081_v49 = vmul.f32 0.70710677, %v16971_v23  ;;  %10697 = vmatprep.subr.bf16.mxu1 %v14002_v2  ;;  %12590 = vmatprep.subr.bf16.mxu0 %v14027_v46  ;;  %v17024_v61 = vadd.f32 %v7866_v48, %v16954_v11 }
0x13fd   : > { %v16981_v13 = vsel %vm8093_vm13, 1.0, %v17660_v35  ;;  %vm8095_vm14 = vcmp.ge.f32.partialorder %v8071_v59, 0.0  ;;  %vm8094_vm15 = vcmp.ge.f32.partialorder %v8070_v57, 0.0  ;;  %v14042_v37 = vld [vmem:[%s15542_s28 + $0x410] ss:$12 sps:$4 sm:$0xff]  }
0x13fe   : > { %v8141_v18 = vmul.f32 %v16981_v13, %v8069_v44  ;;  %v16986_v42 = vsel %vm8095_vm14, 1.0, %v17660_v35  ;;  %v16989_v45 = vsel %vm8094_vm15, 1.0, %v17660_v35  ;;  %vm8096_vm0 = vcmp.ge.f32.partialorder %v8072_v52, 0.0  ;;  %10970 = vmatmul.mubr.bf16.vlgmr.msra.gmra.mrb[68].mxu0 %v16905_v0  ;;  %v14009_v46 = vld [vmem:[%s15542_s28 + $0x288] ss:$12 sps:$4 sm:$0xff]  }
0x13ff   : > { %v8143_v56 = vmul.f32 %v16986_v42, %v8071_v59  ;;  %v16994_v19 = vmul.f32 %v16989_v45, %v8070_v57  ;;  %v16997_v54 = vsel %vm8096_vm0, 1.0, %v17660_v35  ;;  %vm8105_vm1 = vcmp.ge.f32.partialorder %v8081_v49, 0.0  ;;  %10698 = vmatpush1.bf16.msra.mxu1 %v14000_v16  ;;  %12591 = vmatpush3.bf16.msra.mxu0 %v14028_v20  ;;  %v14014_v16 = vld [vmem:[%s15542_s28 + $0x2a4] ss:$12 sps:$4 sm:$0xff]   ;;  %v14047_v11 = vld [vmem:[%s15542_s28 + $0x428] ss:$12 sps:$4 sm:$0xff]  }
0x1400   : > { %v8165_v58 = vmul.f32 0.3275911, %v8141_v18  ;;  %v17002_v21 = vmul.f32 %v16997_v54, %v8072_v52  ;;  %10699 = vmatprep.subr.bf16.mxu1 %v14005_v1  ;;  %v17009_v26 = vsel %vm8105_vm1, 1.0, %v17660_v35  ;;  %12592 = vmatprep.subr.bf16.mxu0 %v14032_v8  ;;  %v8477_v2 = vmul.f32 %v8141_v18, %v8141_v18  ;;  %v14043_v24 = vld [vmem:[%s15542_s28 + $0x350] ss:$12 sps:$4 sm:$0xff]  }
0x1401   : > { %v8167_v17 = vmul.f32 0.3275911, %v8143_v56  ;;  %v8166_v43 = vmul.f32 0.3275911, %v16994_v19  ;;  %v8153_v41 = vmul.f32 %v17009_v26, %v8081_v49  ;;  %v8083_v44 = vmul.f32 0.70710677, %v17016_v63 }
0x1402   : > { %v8189_v4 = vadd.f32 1.0, %v8165_v58  ;;  %v8168_v29 = vmul.f32 0.3275911, %v17002_v21  ;;  %v8479_v40 = vmul.f32 %v8143_v56, %v8143_v56  ;;  %v8082_v51 = vmul.f32 0.70710677, %v17019_v15 }
0x1403   : > { %v8191_v50 = vadd.f32 1.0, %v8167_v17  ;;  %v8190_v53 = vadd.f32 1.0, %v8166_v43  ;;  %10700 = vmatpush1.bf16.msra.mxu1 %v14003_v55  ;;  %12593 = vmatpush3.bf16.msra.mxu0 %v14033_v38  ;;  %v8177_v7 = vmul.f32 0.3275911, %v8153_v41  ;;  %vm8107_vm2 = vcmp.ge.f32.partialorder %v8083_v44, 0.0 }
0x1404   : > { %14368 = vrcp.f32 %v8189_v4  ;;  %v8192_v25 = vadd.f32 1.0, %v8168_v29  ;;  %10701 = vmatprep.subr.bf16.mxu1 %v14008_v22  ;;  %12594 = vmatprep.subr.bf16.mxu0 %v14037_v62  ;;  %v8084_v59 = vmul.f32 0.70710677, %v17024_v61  ;;  %v8501_v57 = vsub.f32 0.0, %v8477_v2  ;;  %v14012_v8 = vld [vmem:[%s15542_s28 + $0x2a0] ss:$12 sps:$4 sm:$0xff]  }
0x1405   : > { %14370 = vrcp.f32 %v8191_v50  ;;  %v8201_v39 = vadd.f32 1.0, %v8177_v7  ;;  %v17034_v1 = vsel %vm8107_vm2, 1.0, %v17660_v35  ;;  %vm8106_vm3 = vcmp.ge.f32.partialorder %v8082_v51, 0.0  ;;  %v14048_v56 = vld [vmem:[%s15542_s28 + $0x368] ss:$12 sps:$4 sm:$0xff]  }
0x1406   : > { %14372 = vrcp.f32 %v8190_v53  ;;  %v17037_v52 = vmul.f32 %v17034_v1, %v8083_v44  ;;  %v17040_v48 = vsel %vm8106_vm3, 1.0, %v17660_v35  ;;  %vm8108_vm4 = vcmp.ge.f32.partialorder %v8084_v59, 0.0  ;;  %v14017_v43 = vld [vmem:[%s15542_s28 + $0x2bc] ss:$12 sps:$4 sm:$0xff]   ;;  %v14052_v38 = vld [vmem:[%s15542_s28 + $0x440] ss:$12 sps:$4 sm:$0xff]  }
0x1407   : > { %10702 = vmatpush1.bf16.msra.mxu1 %v14006_v36  ;;  %12595 = vmatpush3.bf16.msra.mxu0 %v14038_v47  ;;  %14374 = vrcp.f32 %v8192_v25  ;;  %v8503_v20 = vsub.f32 0.0, %v8479_v40  ;;  %v17043_v49 = vmul.f32 %v17040_v48, %v8082_v51  ;;  %v17046_v18 = vsel %vm8108_vm4, 1.0, %v17660_v35  ;;  %v14015_v53 = vld [vmem:[%s15542_s28 + $0x2b8] ss:$12 sps:$4 sm:$0xff]   ;;  %v14053_v36 = vld [vmem:[%s15542_s28 + $0x380] ss:$12 sps:$4 sm:$0xff]  }
0x1408   : > { %10703 = vmatprep.subr.bf16.mxu1 %v14011_v5  ;;  %12596 = vmatprep.subr.bf16.mxu0 %v14042_v37  ;;  %14376 = vrcp.f32 %v8201_v39  ;;  %v8478_v58 = vmul.f32 %v16994_v19, %v16994_v19  ;;  %v8179_v22 = vmul.f32 0.3275911, %v17037_v52  ;;  %v17056_v17 = vmul.f32 %v17046_v18, %v8084_v59  ;;  %v14020_v37 = vld [vmem:[%s15542_s28 + $0x2d4] ss:$12 sps:$4 sm:$0xff]   ;;  %v14057_v51 = vld [vmem:[%s15542_s28 + $0x458] ss:$12 sps:$4 sm:$0xff]  }
0x1409   : > { %v8529_v62 = vmul.f32 1.442695, %v8501_v57  ;;  %v8178_v50 = vmul.f32 0.3275911, %v17043_v49  ;;  %v8489_v47 = vmul.f32 %v8153_v41, %v8153_v41  ;;  %v8533_v7 = vmul.f32 1.442695, %v8503_v20 }
0x140a   : > { %v8203_v25 = vadd.f32 1.0, %v8179_v22  ;;  %v8180_v5 = vmul.f32 0.3275911, %v17056_v17  ;;  %v8480_v44 = vmul.f32 %v17002_v21, %v17002_v21  ;;  %v8502_v41 = vsub.f32 0.0, %v8478_v58  ;;  %v14018_v21 = vld [vmem:[%s15542_s28 + $0x2d0] ss:$12 sps:$4 sm:$0xff]  }
0x140b   : > { %10704 = vmatpush1.bf16.msra.mxu1 %v14009_v46  ;;  %12597 = vmatpush3.bf16.msra.mxu0 %v14043_v24  ;;  %v8202_v46 = vadd.f32 1.0, %v8178_v50  ;;  %v8513_v20 = vsub.f32 0.0, %v8489_v47  ;;  %v14062_v58 = vld [vmem:[%s15542_s28 + $0x470] ss:$12 sps:$4 sm:$0xff]  }
0x140c   : > { %10705 = vmatprep.subr.bf16.mxu1 %v14014_v16  ;;  %12598 = vmatprep.subr.bf16.mxu0 %v14047_v11  ;;  %14378 = vrcp.f32 %v8203_v25  ;;  %v8204_v39 = vadd.f32 1.0, %v8180_v5 }
0x140d   : > { %14380 = vrcp.f32 %v8202_v46  ;;  %v8491_v46 = vmul.f32 %v17037_v52, %v17037_v52  ;;  %v14067_v52 = vld [vmem:[%s15542_s28 + $0x548] ss:$12 sps:$4 sm:$0xff]  }
0x140e   : > { %v17050_v55 = vpop.eup %14368  ;;  %14382 = vpow2.f32 %v8529_v62  ;;  %v8531_v62 = vmul.f32 1.442695, %v8502_v41 }
0x140f   : > { %v17060_v4 = vpop.eup %14370  ;;  %v8261_v29 = vmul.f32 1.0614054, %v17050_v55  ;;  %10706 = vmatpush1.bf16.msra.mxu1 %v14012_v8  ;;  %12599 = vmatpush3.bf16.msra.mxu0 %v14048_v56  ;;  %v14023_v8 = vld [vmem:[%s15542_s28 + $0x2ec] ss:$12 sps:$4 sm:$0xff]   ;;  %14384 = vpow2.f32 %v8533_v7  ;;  %v14021_v7 = vld [vmem:[%s15542_s28 + $0x2e8] ss:$12 sps:$4 sm:$0xff]  }
0x1410   : > { %v8263_v19 = vmul.f32 1.0614054, %v17060_v4  ;;  %v17071_v16 = vpop.eup %14372  ;;  %10707 = vmatprep.subr.bf16.mxu1 %v14017_v43  ;;  %12600 = vmatprep.subr.bf16.mxu0 %v14052_v38  ;;  %v14058_v56 = vld [vmem:[%s15542_s28 + $0x398] ss:$12 sps:$4 sm:$0xff]   ;;  %14386 = vrcp.f32 %v8204_v39 }
0x1411   : > { %v8285_v2 = vadd.f32 -1.4531521, %v8261_v29  ;;  %v8262_v59 = vmul.f32 1.0614054, %v17071_v16  ;;  %v17077_v11 = vpop.eup %14374  ;;  %14388 = vpow2.f32 %v8531_v62  ;;  %v14031_v62 = vld [vmem:[%s15542_s28 + $0x31c] ss:$12 sps:$4 sm:$0xff]  }
0x1412   : > { %v8287_v40 = vadd.f32 -1.4531521, %v8263_v19  ;;  %v8264_v38 = vmul.f32 1.0614054, %v17077_v11  ;;  %v17084_v29 = vpop.eup %14376  ;;  %v8504_v19 = vsub.f32 0.0, %v8480_v44  ;;  %v8490_v44 = vmul.f32 %v17043_v49, %v17043_v49 }
0x1413   : > { %v8309_v24 = vmul.f32 %v17050_v55, %v8285_v2  ;;  %v8286_v43 = vadd.f32 -1.4531521, %v8262_v59  ;;  %10708 = vmatpush1.bf16.msra.mxu1 %v14015_v53  ;;  %12601 = vmatpush3.bf16.msra.mxu0 %v14053_v36  ;;  %v8273_v2 = vmul.f32 1.0614054, %v17084_v29  ;;  %v8553_v36 = vmul.f32 1.442695, %v8513_v20 }
0x1414   : > { %v8311_v57 = vmul.f32 %v17060_v4, %v8287_v40  ;;  %10709 = vmatprep.subr.bf16.mxu1 %v14020_v37  ;;  %12602 = vmatprep.subr.bf16.mxu0 %v14057_v51  ;;  %v8288_v5 = vadd.f32 -1.4531521, %v8264_v38  ;;  %v14026_v37 = vld [vmem:[%s15542_s28 + $0x304] ss:$12 sps:$4 sm:$0xff]  }
0x1415   : > { %v8333_v22 = vadd.f32 1.4214138, %v8309_v24  ;;  %v8310_v25 = vmul.f32 %v17071_v16, %v8286_v43  ;;  %v14063_v40 = vld [vmem:[%s15542_s28 + $0x3b0] ss:$12 sps:$4 sm:$0xff]   ;;  %v8297_v24 = vadd.f32 -1.4531521, %v8273_v2  ;;  %14390 = vpow2.f32 %v8553_v36 }
0x1416   : > { %v8335_v50 = vadd.f32 1.4214138, %v8311_v57  ;;  %v8312_v51 = vmul.f32 %v17077_v11, %v8288_v5  ;;  %v8535_v57 = vmul.f32 1.442695, %v8504_v19  ;;  %v17102_v38 = vpop.eup %14378 }
0x1417   : > { %v8357_v47 = vmul.f32 %v17050_v55, %v8333_v22  ;;  %v8334_v39 = vadd.f32 1.4214138, %v8310_v25  ;;  %10710 = vmatpush1.bf16.msra.mxu1 %v14018_v21  ;;  %12603 = vmatpush3.bf16.msra.mxu0 %v14058_v56  ;;  %v8321_v43 = vmul.f32 %v17084_v29, %v8297_v24  ;;  %v8515_v56 = vsub.f32 0.0, %v8491_v46  ;;  %v17107_v19 = vpop.eup %14380 }
0x1418   : > { %v8359_v53 = vmul.f32 %v17060_v4, %v8335_v50  ;;  %10711 = vmatprep.subr.bf16.mxu1 %v14023_v8  ;;  %12604 = vmatprep.subr.bf16.mxu0 %v14062_v58  ;;  %v8336_v22 = vadd.f32 1.4214138, %v8312_v51  ;;  %v8514_v50 = vsub.f32 0.0, %v8490_v44  ;;  %v14383_v2 = vpop.eup %14382  ;;  %v8274_v36 = vmul.f32 1.0614054, %v17107_v19 }
0x1419   : > { %v8381_v41 = vadd.f32 -0.28449672, %v8357_v47  ;;  %v8358_v49 = vmul.f32 %v17071_v16, %v8334_v39  ;;  %v14024_v47 = vld [vmem:[%s15542_s28 + $0x300] ss:$12 sps:$4 sm:$0xff]   ;;  %v8345_v5 = vadd.f32 1.4214138, %v8321_v43  ;;  %v8492_v46 = vmul.f32 %v17056_v17, %v17056_v17  ;;  %v14385_v44 = vpop.eup %14384 }
0x141a   : > { %v8383_v59 = vadd.f32 -0.28449672, %v8359_v53  ;;  %v8360_v25 = vmul.f32 %v17077_v11, %v8336_v22  ;;  %v8298_v22 = vadd.f32 -1.4531521, %v8274_v36  ;;  %v8555_v43 = vmul.f32 1.442695, %v8514_v50 }
0x141b   : > { %v8405_v20 = vmul.f32 %v17050_v55, %v8381_v41  ;;  %v8382_v58 = vadd.f32 -0.28449672, %v8358_v49  ;;  %10712 = vmatpush1.bf16.msra.mxu1 %v14021_v7  ;;  %12605 = vmatpush3.bf16.msra.mxu0 %v14063_v40  ;;  %v8275_v41 = vmul.f32 1.0614054, %v17102_v38  ;;  %v8369_v7 = vmul.f32 %v17084_v29, %v8345_v5  ;;  %v14029_v40 = vld [vmem:[%s15542_s28 + $0x318] ss:$12 sps:$4 sm:$0xff]  }
0x141c   : > { %v8407_v21 = vmul.f32 %v17060_v4, %v8383_v59  ;;  %10724 = vmatprep.subr.bf16.mxu1 %v14026_v37  ;;  %12612 = vmatprep.subr.bf16.mxu0 %v14067_v52  ;;  %v8384_v24 = vadd.f32 -0.28449672, %v8360_v25  ;;  %v17118_v59 = vpop.eup %14386  ;;  %v8557_v49 = vmul.f32 1.442695, %v8515_v56  ;;  %v14036_v25 = vld [vmem:[%s15542_s28 + $0x334] ss:$12 sps:$4 sm:$0xff]   ;;  %14392 = vpow2.f32 %v8535_v57 }
0x141d   : > { %v8429_v8 = vadd.f32 0.2548296, %v8405_v20  ;;  %v8406_v51 = vmul.f32 %v17071_v16, %v8382_v58  ;;  %v8299_v20 = vadd.f32 -1.4531521, %v8275_v41  ;;  %v8393_v52 = vadd.f32 -0.28449672, %v8369_v7 }
0x141e   : > { %v8431_v53 = vadd.f32 0.2548296, %v8407_v21  ;;  %10714 = vmatmul.mubr.bf16.vlgmr.msra.gmra.mrb[48].mxu1 %v16905_v0  ;;  %v8276_v58 = vmul.f32 1.0614054, %v17118_v59  ;;  %v8516_v5 = vsub.f32 0.0, %v8492_v46  ;;  %14394 = vpow2.f32 %v8557_v49 }
0x141f   : > { %v8453_v39 = vmul.f32 %v17050_v55, %v8429_v8  ;;  %v8430_v37 = vadd.f32 0.2548296, %v8406_v51  ;;  %10725 = vmatpush1.bf16.msra.mxu1 %v14024_v47  ;;  %v8408_v55 = vmul.f32 %v17077_v11, %v8384_v24  ;;  %v8323_v21 = vmul.f32 %v17102_v38, %v8299_v20  ;;  %v14034_v51 = vld [vmem:[%s15542_s28 + $0x330] ss:$12 sps:$4 sm:$0xff]   ;;  %v14041_v46 = vld [vmem:[%s15542_s28 + $0x34c] ss:$12 sps:$4 sm:$0xff]  }
0x1420   : > { %v8322_v8 = vmul.f32 %v17107_v19, %v8298_v22  ;;  %10726 = vmatprep.subr.bf16.mxu1 %v14031_v62  ;;  %v8455_v56 = vmul.f32 %v17060_v4, %v8431_v53  ;;  %v8417_v0 = vmul.f32 %v17084_v29, %v8393_v52  ;;  %14396 = vpow2.f32 %v8555_v43  ;;  %v14039_v43 = vld [vmem:[%s15542_s28 + $0x348] ss:$12 sps:$4 sm:$0xff]  }
0x1421   : > { %v8573_v17 = vmul.f32 %v14383_v2, %v8453_v39  ;;  %v14389_v2 = vpop.eup %14388  ;;  %v8454_v50 = vmul.f32 %v17071_v16, %v8430_v37  ;;  %v8347_v47 = vadd.f32 1.4214138, %v8323_v21  ;;  %v8432_v24 = vadd.f32 0.2548296, %v8408_v55 }
0x1422   : > { %v8346_v41 = vadd.f32 1.4214138, %v8322_v8  ;;  %v8441_v39 = vadd.f32 0.2548296, %v8417_v0  ;;  %v14391_v62 = vpop.eup %14390  ;;  %v8300_v53 = vadd.f32 -1.4531521, %v8276_v58  ;;  %v8575_v7 = vmul.f32 %v14385_v44, %v8455_v56 }
0x1423   : > { %v8597_v36 = vsub.f32 1.0, %v8573_v17  ;;  %10727 = vmatpush1.bf16.msra.mxu1 %v14029_v40  ;;  %v8371_v4 = vmul.f32 %v17102_v38, %v8347_v47  ;;  %v8559_v20 = vmul.f32 1.442695, %v8516_v5  ;;  %v8574_v49 = vmul.f32 %v14389_v2, %v8454_v50  ;;  %v14044_v47 = vld [vmem:[%s15542_s28 + $0x360] ss:$12 sps:$4 sm:$0xff]  }
0x1424   : > { %v8370_v57 = vmul.f32 %v17107_v19, %v8346_v41  ;;  %10728 = vmatprep.subr.bf16.mxu1 %v14036_v25  ;;  %v8465_v16 = vmul.f32 %v17084_v29, %v8441_v39  ;;  %v8324_v40 = vmul.f32 %v17118_v59, %v8300_v53  ;;  %v8456_v55 = vmul.f32 %v17077_v11, %v8432_v24  ;;  %v14046_v29 = vld [vmem:[%s15542_s28 + $0x364] ss:$12 sps:$4 sm:$0xff]   ;;  %v14051_v24 = vld [vmem:[%s15542_s28 + $0x37c] ss:$12 sps:$4 sm:$0xff]  }
0x1425   : > { %v8395_v22 = vadd.f32 -0.28449672, %v8371_v4  ;;  %v8621_v37 = vmul.f32 %v8597_v36, %v16981_v13  ;;  %v8599_v58 = vsub.f32 1.0, %v8575_v7  ;;  %14398 = vpow2.f32 %v8559_v20 }
0x1426   : > { %v8394_v17 = vadd.f32 -0.28449672, %v8370_v57  ;;  %v8585_v52 = vmul.f32 %v14391_v62, %v8465_v16  ;;  %v8348_v8 = vadd.f32 1.4214138, %v8324_v40  ;;  %v8598_v56 = vsub.f32 1.0, %v8574_v49  ;;  %v14393_v2 = vpop.eup %14392 }
0x1427   : > { %10729 = vmatpush1.bf16.msra.mxu1 %v14034_v51  ;;  %v8419_v21 = vmul.f32 %v17102_v38, %v8395_v22  ;;  %v8645_v50 = vadd.f32 1.0, %v8621_v37  ;;  %v8576_v36 = vmul.f32 %v14393_v2, %v8456_v55  ;;  %v8045_v57 = vmul.f32 0.5, %v16957_v27  ;;  %v14049_v22 = vld [vmem:[%s15542_s28 + $0x378] ss:$12 sps:$4 sm:$0xff]  }
0x1428   : > { %v8418_v44 = vmul.f32 %v17107_v19, %v8394_v17  ;;  %10730 = vmatprep.subr.bf16.mxu1 %v14041_v46  ;;  %v8609_v25 = vsub.f32 1.0, %v8585_v52  ;;  %v8372_v5 = vmul.f32 %v17118_v59, %v8348_v8  ;;  %v14395_v41 = vpop.eup %14394  ;;  %v8623_v53 = vmul.f32 %v8599_v58, %v16986_v42  ;;  %v14056_v17 = vld [vmem:[%s15542_s28 + $0x394] ss:$12 sps:$4 sm:$0xff]  }
0x1429   : > { %v8443_v0 = vadd.f32 0.2548296, %v8419_v21  ;;  %v8622_v7 = vmul.f32 %v8598_v56, %v16989_v45  ;;  %v8600_v40 = vsub.f32 1.0, %v8576_v36  ;;  %v8047_v8 = vmul.f32 0.5, %v16962_v28  ;;  %v14054_v56 = vld [vmem:[%s15542_s28 + $0x390] ss:$12 sps:$4 sm:$0xff]  }
0x142a   : > { %v8442_v13 = vadd.f32 0.2548296, %v8418_v44  ;;  %v8633_v11 = vmul.f32 %v8609_v25, %v17009_v26  ;;  %v8396_v62 = vadd.f32 -0.28449672, %v8372_v5  ;;  %v14397_v4 = vpop.eup %14396  ;;  %v8057_v26 = vmul.f32 0.5, %v16971_v23 }
0x142b   : > { %10731 = vmatpush1.bf16.msra.mxu1 %v14039_v43  ;;  %v8467_v39 = vmul.f32 %v17102_v38, %v8443_v0  ;;  %v8647_v42 = vadd.f32 1.0, %v8623_v53  ;;  %v8646_v43 = vadd.f32 1.0, %v8622_v7  ;;  %v8059_v58 = vmul.f32 0.5, %v17016_v63  ;;  %v14068_v36 = vld [vmem:[%s15542_s28 + $0x488] ss:$12 sps:$4 sm:$0xff]  }
0x142c   : > { %v8466_v51 = vmul.f32 %v17107_v19, %v8442_v13  ;;  %10732 = vmatprep.subr.bf16.mxu1 %v14046_v29  ;;  %v8657_v46 = vadd.f32 1.0, %v8633_v11  ;;  %v8420_v38 = vmul.f32 %v17118_v59, %v8396_v62  ;;  %v8669_v19 = vmul.f32 %v8645_v50, %v8045_v57  ;;  %v14076_v7 = vld [vmem:[%s15542_s28 + $0x3f4] ss:$12 sps:$4 sm:$0xff]  }
0x142d   : > { %v8587_v16 = vmul.f32 %v14395_v41, %v8467_v39  ;;  %v8046_v29 = vmul.f32 0.5, %v16965_v30  ;;  %v8058_v25 = vmul.f32 0.5, %v17019_v15  ;;  %v8624_v0 = vmul.f32 %v8600_v40, %v16997_v54  ;;  %v14059_v15 = vld [vmem:[%s15542_s28 + $0x3a8] ss:$12 sps:$4 sm:$0xff]   ;;  %v14072_v39 = vld [vmem:[%s15542_s28 + $0x560] ss:$12 sps:$4 sm:$0xff]  }
0x142e   : > { %v8586_v20 = vmul.f32 %v14397_v4, %v8466_v51  ;;  %v8681_v49 = vmul.f32 %v8657_v46, %v8057_v26  ;;  %v8444_v52 = vadd.f32 0.2548296, %v8420_v38  ;;  %v8671_v28 = vmul.f32 %v8647_v42, %v8047_v8  ;;  %v14064_v4 = vld [vmem:[%s15542_s28 + $0x3c0] ss:$12 sps:$4 sm:$0xff]   ;;  %v14077_v26 = vld [vmem:[%s15542_s28 + $0x578] ss:$12 sps:$4 sm:$0xff]  }
0x142f   : > { %10733 = vmatpush1.bf16.msra.mxu1 %v14044_v47  ;;  %v8611_v37 = vsub.f32 1.0, %v8587_v16  ;;  %v14399_v44 = vpop.eup %14398  ;;  %v8670_v5 = vmul.f32 %v8646_v43, %v8046_v29  ;;  %v8648_v50 = vadd.f32 1.0, %v8624_v0  ;;  %v14066_v47 = vld [vmem:[%s15542_s28 + $0x3c4] ss:$12 sps:$4 sm:$0xff]   ;;  %v8048_v51 = vmul.f32 0.5, %v16969_v10 }
0x1430   : > { %v8610_v27 = vsub.f32 1.0, %v8586_v20  ;;  %10734 = vmatprep.subr.bf16.mxu1 %v14051_v24  ;;  %v17154_v23 = vpack.c.bf16 %v8681_v49, %v8669_v19  ;;  %v8468_v21 = vmul.f32 %v17118_v59, %v8444_v52  ;;  %v14061_v59 = vld [vmem:[%s15542_s28 + $0x3ac] ss:$12 sps:$4 sm:$0xff]   ;;  %v8060_v62 = vmul.f32 0.5, %v17024_v61  ;;  %v14071_v10 = vld [vmem:[%s15542_s28 + $0x3dc] ss:$12 sps:$4 sm:$0xff]  }
0x1431   : > { %v8635_v45 = vmul.f32 %v8611_v37, %v17034_v1  ;;  %v14073_v61 = vld [vmem:[%s15542_s28 + $0x4a0] ss:$12 sps:$4 sm:$0xff]   ;;  %v14069_v46 = vld [vmem:[%s15542_s28 + $0x3d8] ss:$12 sps:$4 sm:$0xff]   ;;  %v14082_v20 = vld [vmem:[%s15542_s28 + $0x590] ss:$12 sps:$4 sm:$0xff]  }
0x1432   : > { %v8634_v55 = vmul.f32 %v8610_v27, %v17040_v48  ;;  %v8588_v48 = vmul.f32 %v14399_v44, %v8468_v21  ;;  %v14078_v16 = vld [vmem:[%s15542_s28 + $0x4b8] ss:$12 sps:$4 sm:$0xff]   ;;  %v14074_v38 = vld [vmem:[%s15542_s28 + $0x3f0] ss:$12 sps:$4 sm:$0xff]   ;;  %v14088_v37 = vld [vmem:[%s15542_s28 + $0x4e8] ss:$12 sps:$4 sm:$0xff]  }
0x1433   : > { %10735 = vmatpush1.bf16.msra.mxu1 %v14049_v22  ;;  %v8659_v13 = vadd.f32 1.0, %v8635_v45  ;;  %v14081_v19 = vld [vmem:[%s15542_s28 + $0x40c] ss:$12 sps:$4 sm:$0xff]   ;;  %v14083_v49 = vld [vmem:[%s15542_s28 + $0x4d0] ss:$12 sps:$4 sm:$0xff]  }
0x1434   : > { %v8658_v1 = vadd.f32 1.0, %v8634_v55  ;;  %10736 = vmatprep.subr.bf16.mxu1 %v14056_v17  ;;  %v8612_v63 = vsub.f32 1.0, %v8588_v48  ;;  %v14087_v22 = vld [vmem:[%s15542_s28 + $0x5a8] ss:$12 sps:$4 sm:$0xff]   ;;  %v14086_v40 = vld [vmem:[%s15542_s28 + $0x424] ss:$12 sps:$4 sm:$0xff]  }
0x1435   : > { %v8683_v30 = vmul.f32 %v8659_v13, %v8059_v58  ;;  %v14079_v17 = vld [vmem:[%s15542_s28 + $0x408] ss:$12 sps:$4 sm:$0xff]   ;;  %v14092_v27 = vld [vmem:[%s15542_s28 + $0x5c0] ss:$12 sps:$4 sm:$0xff]   ;;  %v14097_v45 = vld [vmem:[%s15542_s28 + $0x5d8] ss:$12 sps:$4 sm:$0xff]  }
0x1436   : > { %v8682_v2 = vmul.f32 %v8658_v1, %v8058_v25  ;;  %v8636_v54 = vmul.f32 %v8612_v63, %v17046_v18  ;;  %v8672_v18 = vmul.f32 %v8648_v50, %v8048_v51  ;;  %v14084_v52 = vld [vmem:[%s15542_s28 + $0x420] ss:$12 sps:$4 sm:$0xff]   ;;  %v14091_v42 = vld [vmem:[%s15542_s28 + $0x43c] ss:$12 sps:$4 sm:$0xff]   ;;  %v14089_v55 = vld [vmem:[%s15542_s28 + $0x438] ss:$12 sps:$4 sm:$0xff]  }
0x1437   : > { %10737 = vmatpush1.bf16.msra.mxu1 %v14054_v56  ;;  %v17167_v11 = vpack.c.bf16 %v8683_v30, %v8671_v28  ;;  %v14093_v43 = vld [vmem:[%s15542_s28 + $0x500] ss:$12 sps:$4 sm:$0xff]   ;;  %v6022_v21 = vld [vmem:[%s15539_s24 + $0x8] sm:$0xf]  ;;  %v14098_v8 = vld [vmem:[%s15542_s28 + $0x518] ss:$12 sps:$4 sm:$0xff]  }
0x1438   : > { %10738 = vmatprep.subr.bf16.mxu1 %v14061_v59  ;;  %v8694_v41 = vpack.c.bf16 %v8682_v2, %v8670_v5  ;;  %v8660_v24 = vadd.f32 1.0, %v8636_v54  ;;  %v14096_v44 = vld [vmem:[%s15542_s28 + $0x454] ss:$12 sps:$4 sm:$0xff]   ;;  %v14102_v29 = vld [vmem:[%s15542_s28 + $0x5f0] ss:$12 sps:$4 sm:$0xff]   ;;  %v6060_v58 = vrot.slane %v6022_v21, %v15673_v34  ;;  %v17207_v56 = vrot.slane %v6022_v21, %v15670_v33  ;;  %s17663_s24 = sld [smem:[#allocation46_spill]] (!%p12433_p6) }
0x1439   : > { %v14094_v25 = vld [vmem:[%s15542_s28 + $0x450] ss:$12 sps:$4 sm:$0xff]   ;;  %v17210_v0 = vrot.slane %v6022_v21, %v15667_v32  ;;  %v14101_v13 = vld [vmem:[%s15542_s28 + $0x46c] ss:$12 sps:$4 sm:$0xff]   ;;  %v17214_v1 = vrot.slane %v6022_v21, %v15908_v3  ;;  %v14131_v2 = vld [vmem:[%s15542_s28 + $0x6c8] ss:$12 sps:$4 sm:$0xff]  }
0x143a   : > { %10756 = vmatprep.mubr.bf16.mxu1 %v8694_v41  ;;  %11010 = vmatprep.mubr.bf16.mxu0 %v8694_v41  ;;  %v8684_v57 = vmul.f32 %v8660_v24, %v8060_v62  ;;  %v14103_v48 = vld [vmem:[%s15542_s28 + $0x530] ss:$12 sps:$4 sm:$0xff]   ;;  %v14099_v63 = vld [vmem:[%s15542_s28 + $0x468] ss:$12 sps:$4 sm:$0xff]   ;;  %v14104_v24 = vld [vmem:[%s15542_s28 + $0x480] ss:$12 sps:$4 sm:$0xff]  }
0x143b   : > { %10739 = vmatpush1.bf16.msra.mxu1 %v14059_v15  ;;  %11011 = vmatmul.mubr.bf16.vlgmr.msra.gmra.mrb[72].mxu0 %v17154_v23  ;;  %v14112_v21 = vld [vmem:[%s15542_s28 + $0x4b4] ss:$12 sps:$4 sm:$0xff]  }
0x143c   : > { %10740 = vmatprep.subr.bf16.mxu1 %v14066_v47  ;;  %12613 = vmatpush3.bf16.msra.mxu0 %v14068_v36  ;;  %v17179_v53 = vpack.c.bf16 %v8684_v57, %v8672_v18  ;;  %v14106_v47 = vld [vmem:[%s15542_s28 + $0x484] ss:$12 sps:$4 sm:$0xff]   ;;  %v14132_v57 = vld [vmem:[%s15542_s28 + $0x608] ss:$12 sps:$4 sm:$0xff]  }
0x143d   : > { %12614 = vmatprep.subr.bf16.mxu0 %v14072_v39 }
0x143e   : > { %11051 = vmatprep.mubr.bf16.mxu0 %v17179_v53 }
0x143f   : > { %10741 = vmatpush1.bf16.msra.mxu1 %v14064_v4 }
0x1440   : > { %10742 = vmatprep.subr.bf16.mxu1 %v14071_v10  ;;  %12615 = vmatpush3.bf16.msra.mxu0 %v14073_v61 }
0x1441   : > { %12616 = vmatprep.subr.bf16.mxu0 %v14077_v26  ;;  %v14136_v26 = vld [vmem:[%s15542_s28 + $0x6e0] ss:$12 sps:$4 sm:$0xff]  }
0x1443   : > { %10743 = vmatpush1.bf16.msra.mxu1 %v14069_v46 }
0x1444   : > { %10744 = vmatprep.subr.bf16.mxu1 %v14076_v7  ;;  %12617 = vmatpush3.bf16.msra.mxu0 %v14078_v16  ;;  %v14109_v16 = vld [vmem:[%s15542_s28 + $0x49c] ss:$12 sps:$4 sm:$0xff]  }
0x1445   : > { %12618 = vmatprep.subr.bf16.mxu0 %v14082_v20 }
0x1447   : > { %10745 = vmatpush1.bf16.msra.mxu1 %v14074_v38 }
0x1448   : > { %10746 = vmatprep.subr.bf16.mxu1 %v14081_v19  ;;  %12619 = vmatpush3.bf16.msra.mxu0 %v14083_v49 }
0x1449   : > { %12620 = vmatprep.subr.bf16.mxu0 %v14087_v22 }
0x144b   : > { %10747 = vmatpush1.bf16.msra.mxu1 %v14079_v17 }
0x144c   : > { %10748 = vmatprep.subr.bf16.mxu1 %v14086_v40  ;;  %12621 = vmatpush3.bf16.msra.mxu0 %v14088_v37  ;;  %v14137_v40 = vld [vmem:[%s15542_s28 + $0x620] ss:$12 sps:$4 sm:$0xff]  }
0x144d   : > { %12622 = vmatprep.subr.bf16.mxu0 %v14092_v27 }
0x144f   : > { %10749 = vmatpush1.bf16.msra.mxu1 %v14084_v52  ;;  %v14141_v52 = vld [vmem:[%s15542_s28 + $0x6f8] ss:$12 sps:$4 sm:$0xff]  }
0x1450   : > { %10750 = vmatprep.subr.bf16.mxu1 %v14091_v42  ;;  %12623 = vmatpush3.bf16.msra.mxu0 %v14093_v43  ;;  %v14107_v42 = vld [vmem:[%s15542_s28 + $0x498] ss:$12 sps:$4 sm:$0xff]  }
0x1451   : > { %12624 = vmatprep.subr.bf16.mxu0 %v14097_v45 }
0x1453   : > { %10751 = vmatpush1.bf16.msra.mxu1 %v14089_v55 }
0x1454   : > { %10752 = vmatprep.subr.bf16.mxu1 %v14096_v44  ;;  %12625 = vmatpush3.bf16.msra.mxu0 %v14098_v8 }
0x1455   : > { %12626 = vmatprep.subr.bf16.mxu0 %v14102_v29  ;;  %v14142_v29 = vld [vmem:[%s15542_s28 + $0x638] ss:$12 sps:$4 sm:$0xff]  }
0x1457   : > { %v7946_v59 = vpop.f32.mrb[44].mxu1  ;;  %10753 = vmatpush1.bf16.msra.mxu1 %v14094_v25  ;;  %v14110_v25 = vld [vmem:[%s15542_s28 + $0x4b0] ss:$12 sps:$4 sm:$0xff]  }
0x1458   : > { %v17217_v28 = vadd.f32 %v7946_v59, %v6060_v58  ;;  %v8032_v5 = vpop.f32.mrb[60].mxu0  ;;  %v7948_v30 = vpop.f32.mrb[45].mxu1  ;;  %10754 = vmatprep.subr.bf16.mxu1 %v14101_v13  ;;  %12627 = vmatpush3.bf16.msra.mxu0 %v14103_v48 }
0x1459   : > { %v17222_v15 = vadd.f32 %v8032_v5, %v17207_v56  ;;  %v17225_v3 = vadd.f32 %v7948_v30, %v17210_v0  ;;  %v8034_v50 = vpop.f32.mrb[61].mxu0  ;;  %v7950_v54 = vpop.f32.mrb[46].mxu1  ;;  %12634 = vmatprep.subr.bf16.mxu0 %v14131_v2  ;;  %v14115_v30 = vld [vmem:[%s15542_s28 + $0x4cc] ss:$12 sps:$4 sm:$0xff]  }
0x145a   : > { %v8073_v41 = vmul.f32 0.70710677, %v17217_v28  ;;  %v17230_v36 = vadd.f32 %v8034_v50, %v17214_v1  ;;  %v17232_v39 = vadd.f32 %v7950_v54, %v6060_v58  ;;  %v8036_v51 = vpop.f32.mrb[62].mxu0  ;;  %v7952_v62 = vpop.f32.mrb[47].mxu1  ;;  %v14146_v58 = vld [vmem:[%s15542_s28 + $0x710] ss:$12 sps:$4 sm:$0xff]  }
0x145b   : > { %v8075_v4 = vmul.f32 0.70710677, %v17222_v15  ;;  %v8074_v18 = vmul.f32 0.70710677, %v17225_v3  ;;  %v8038_v61 = vpop.f32.mrb[63].mxu0  ;;  %10755 = vmatpush1.bf16.msra.mxu1 %v14099_v63  ;;  %11052 = vmatmul.mubr.bf16.vlgmr.msra.gmra.mrb[76].mxu0 %v17167_v11  ;;  %v17280_v59 = vadd.f32 %v8036_v51, %v17207_v56  ;;  %v17283_v5 = vadd.f32 %v7952_v62, %v17210_v0 }
0x145c   : > { %vm8097_vm5 = vcmp.ge.f32.partialorder %v8073_v41, 0.0  ;;  %v8076_v10 = vmul.f32 0.70710677, %v17230_v36  ;;  %v8085_v7 = vmul.f32 0.70710677, %v17232_v39  ;;  %10767 = vmatprep.subr.bf16.mxu1 %v14106_v47  ;;  %12635 = vmatpush3.bf16.msra.mxu0 %v14132_v57  ;;  %v17287_v50 = vadd.f32 %v8038_v61, %v17214_v1 }
0x145d   : > { %v17241_v46 = vsel %vm8097_vm5, 1.0, %v17660_v35  ;;  %vm8099_vm6 = vcmp.ge.f32.partialorder %v8075_v4, 0.0  ;;  %vm8098_vm7 = vcmp.ge.f32.partialorder %v8074_v18, 0.0  ;;  %12636 = vmatprep.subr.bf16.mxu0 %v14136_v26  ;;  %v14147_v54 = vld [vmem:[%s15542_s28 + $0x650] ss:$12 sps:$4 sm:$0xff]  }
0x145e   : > { %v8145_v20 = vmul.f32 %v17241_v46, %v8073_v41  ;;  %v17248_v38 = vsel %vm8099_vm6, 1.0, %v17660_v35  ;;  %v17251_v19 = vsel %vm8098_vm7, 1.0, %v17660_v35  ;;  %vm8100_vm8 = vcmp.ge.f32.partialorder %v8076_v10, 0.0  ;;  %10757 = vmatmul.mubr.bf16.vlgmr.msra.gmra.mrb[48].mxu1 %v17154_v23  ;;  %v14151_v56 = vld [vmem:[%s15542_s28 + $0x728] ss:$12 sps:$4 sm:$0xff]  }
0x145f   : > { %v8147_v49 = vmul.f32 %v17248_v38, %v8075_v4  ;;  %v17255_v22 = vmul.f32 %v17251_v19, %v8074_v18  ;;  %v17258_v17 = vsel %vm8100_vm8, 1.0, %v17660_v35  ;;  %vm8109_vm9 = vcmp.ge.f32.partialorder %v8085_v7, 0.0  ;;  %10768 = vmatpush1.bf16.msra.mxu1 %v14104_v24  ;;  %10799 = vmatprep.mubr.bf16.mxu1 %v17179_v53  ;;  %v14113_v62 = vld [vmem:[%s15542_s28 + $0x4c8] ss:$12 sps:$4 sm:$0xff]   ;;  %v14118_v24 = vld [vmem:[%s15542_s28 + $0x4e4] ss:$12 sps:$4 sm:$0xff]  }
0x1460   : > { %v8169_v37 = vmul.f32 0.3275911, %v8145_v20  ;;  %v17263_v27 = vmul.f32 %v17258_v17, %v8076_v10  ;;  %10769 = vmatprep.subr.bf16.mxu1 %v14109_v16  ;;  %v17273_v44 = vsel %vm8109_vm9, 1.0, %v17660_v35  ;;  %12637 = vmatpush3.bf16.msra.mxu0 %v14137_v40  ;;  %v8481_v2 = vmul.f32 %v8145_v20, %v8145_v20  ;;  %v14152_v57 = vld [vmem:[%s15542_s28 + $0x668] ss:$12 sps:$4 sm:$0xff]  }
0x1461   : > { %v8171_v43 = vmul.f32 0.3275911, %v8147_v49  ;;  %v8170_v45 = vmul.f32 0.3275911, %v17255_v22  ;;  %12638 = vmatprep.subr.bf16.mxu0 %v14141_v52  ;;  %v8157_v13 = vmul.f32 %v17273_v44, %v8085_v7  ;;  %v8087_v47 = vmul.f32 0.70710677, %v17280_v59 }
0x1462   : > { %v8193_v55 = vadd.f32 1.0, %v8169_v37  ;;  %v8172_v23 = vmul.f32 0.3275911, %v17263_v27  ;;  %v8483_v41 = vmul.f32 %v8147_v49, %v8147_v49  ;;  %v8086_v0 = vmul.f32 0.70710677, %v17283_v5 }
0x1463   : > { %v8195_v8 = vadd.f32 1.0, %v8171_v43  ;;  %v8194_v53 = vadd.f32 1.0, %v8170_v45  ;;  %10770 = vmatpush1.bf16.msra.mxu1 %v14107_v42  ;;  %v8181_v63 = vmul.f32 0.3275911, %v8157_v13  ;;  %vm8111_vm10 = vcmp.ge.f32.partialorder %v8087_v47, 0.0 }
0x1464   : > { %14400 = vrcp.f32 %v8193_v55  ;;  %v8196_v48 = vadd.f32 1.0, %v8172_v23  ;;  %10771 = vmatprep.subr.bf16.mxu1 %v14112_v21  ;;  %12639 = vmatpush3.bf16.msra.mxu0 %v14142_v29  ;;  %v8088_v1 = vmul.f32 0.70710677, %v17287_v50  ;;  %v8505_v4 = vsub.f32 0.0, %v8481_v2  ;;  %v14156_v26 = vld [vmem:[%s15542_s28 + $0x740] ss:$12 sps:$4 sm:$0xff]  }
0x1465   : > { %14402 = vrcp.f32 %v8195_v8  ;;  %12640 = vmatprep.subr.bf16.mxu0 %v14146_v58  ;;  %v8205_v51 = vadd.f32 1.0, %v8181_v63  ;;  %v17297_v18 = vsel %vm8111_vm10, 1.0, %v17660_v35  ;;  %vm8110_vm11 = vcmp.ge.f32.partialorder %v8086_v0, 0.0  ;;  %v14116_v49 = vld [vmem:[%s15542_s28 + $0x4e0] ss:$12 sps:$4 sm:$0xff]  }
0x1466   : > { %14404 = vrcp.f32 %v8194_v53  ;;  %v17301_v10 = vmul.f32 %v17297_v18, %v8087_v47  ;;  %v17304_v61 = vsel %vm8110_vm11, 1.0, %v17660_v35  ;;  %vm8112_vm12 = vcmp.ge.f32.partialorder %v8088_v1, 0.0  ;;  %v14121_v40 = vld [vmem:[%s15542_s28 + $0x4fc] ss:$12 sps:$4 sm:$0xff]   ;;  %v14157_v45 = vld [vmem:[%s15542_s28 + $0x680] ss:$12 sps:$4 sm:$0xff]  }
0x1467   : > { %10772 = vmatpush1.bf16.msra.mxu1 %v14110_v25  ;;  %14406 = vrcp.f32 %v8196_v48  ;;  %v8507_v7 = vsub.f32 0.0, %v8483_v41  ;;  %v17308_v16 = vmul.f32 %v17304_v61, %v8086_v0  ;;  %v17311_v20 = vsel %vm8112_vm12, 1.0, %v17660_v35  ;;  %v14161_v55 = vld [vmem:[%s15542_s28 + $0x758] ss:$12 sps:$4 sm:$0xff]   ;;  %v14124_v41 = vld [vmem:[%s15542_s28 + $0x514] ss:$12 sps:$4 sm:$0xff]  }
0x1468   : > { %10773 = vmatprep.subr.bf16.mxu1 %v14115_v30  ;;  %12641 = vmatpush3.bf16.msra.mxu0 %v14147_v54  ;;  %14408 = vrcp.f32 %v8205_v51  ;;  %v8482_v52 = vmul.f32 %v17255_v22, %v17255_v22  ;;  %v8183_v42 = vmul.f32 0.3275911, %v17301_v10  ;;  %v17321_v43 = vmul.f32 %v17311_v20, %v8088_v1  ;;  %v14119_v29 = vld [vmem:[%s15542_s28 + $0x4f8] ss:$12 sps:$4 sm:$0xff]  }
0x1469   : > { %12642 = vmatprep.subr.bf16.mxu0 %v14151_v56  ;;  %v8537_v21 = vmul.f32 1.442695, %v8505_v4  ;;  %v8182_v8 = vmul.f32 0.3275911, %v17308_v16  ;;  %v8493_v22 = vmul.f32 %v8157_v13, %v8157_v13  ;;  %v8541_v30 = vmul.f32 1.442695, %v8507_v7 }
0x146a   : > { %v8207_v58 = vadd.f32 1.0, %v8183_v42  ;;  %v8184_v25 = vmul.f32 0.3275911, %v17321_v43  ;;  %v8484_v2 = vmul.f32 %v17263_v27, %v17263_v27  ;;  %v8506_v56 = vsub.f32 0.0, %v8482_v52  ;;  %v14162_v27 = vld [vmem:[%s15542_s28 + $0x698] ss:$12 sps:$4 sm:$0xff]  }
0x146b   : > { %10774 = vmatpush1.bf16.msra.mxu1 %v14113_v62  ;;  %v8206_v63 = vadd.f32 1.0, %v8182_v8  ;;  %v14122_v62 = vld [vmem:[%s15542_s28 + $0x510] ss:$12 sps:$4 sm:$0xff]   ;;  %v8517_v4 = vsub.f32 0.0, %v8493_v22 }
0x146c   : > { %10775 = vmatprep.subr.bf16.mxu1 %v14118_v24  ;;  %12643 = vmatpush3.bf16.msra.mxu0 %v14152_v57  ;;  %14410 = vrcp.f32 %v8207_v58  ;;  %v8208_v13 = vadd.f32 1.0, %v8184_v25  ;;  %v14127_v57 = vld [vmem:[%s15542_s28 + $0x52c] ss:$12 sps:$4 sm:$0xff]   ;;  %v14167_v22 = vld [vmem:[%s15542_s28 + $0x6b0] ss:$12 sps:$4 sm:$0xff]   ;;  %v8495_v25 = vmul.f32 %v17301_v10, %v17301_v10 }
0x146d   : > { %12644 = vmatprep.subr.bf16.mxu0 %v14156_v26  ;;  %14412 = vrcp.f32 %v8206_v63  ;;  %v14166_v26 = vld [vmem:[%s15542_s28 + $0x770] ss:$12 sps:$4 sm:$0xff]   ;;  %v8561_v58 = vmul.f32 1.442695, %v8517_v4 }
0x146e   : > { %v17315_v37 = vpop.eup %14400  ;;  %14414 = vpow2.f32 %v8537_v21 }
0x146f   : > { %v17325_v23 = vpop.eup %14402  ;;  %v8265_v35 = vmul.f32 1.0614054, %v17315_v37  ;;  %10776 = vmatpush1.bf16.msra.mxu1 %v14116_v49  ;;  %14416 = vpow2.f32 %v8541_v30  ;;  %v14125_v30 = vld [vmem:[%s15542_s28 + $0x528] ss:$12 sps:$4 sm:$0xff]  }
0x1470   : > { %v8267_v53 = vmul.f32 1.0614054, %v17325_v23  ;;  %v17334_v54 = vpop.eup %14404  ;;  %10777 = vmatprep.subr.bf16.mxu1 %v14121_v40  ;;  %12645 = vmatpush3.bf16.msra.mxu0 %v14157_v45  ;;  %v8539_v45 = vmul.f32 1.442695, %v8506_v56  ;;  %14418 = vrcp.f32 %v8208_v13 }
0x1471   : > { %v8289_v48 = vadd.f32 -1.4531521, %v8265_v35  ;;  %v8266_v0 = vmul.f32 1.0614054, %v17334_v54  ;;  %v17341_v1 = vpop.eup %14406  ;;  %12646 = vmatprep.subr.bf16.mxu0 %v14161_v55  ;;  %v8508_v35 = vsub.f32 0.0, %v8484_v2 }
0x1472   : > { %v8291_v47 = vadd.f32 -1.4531521, %v8267_v53  ;;  %v8268_v40 = vmul.f32 1.0614054, %v17341_v1  ;;  %v17347_v52 = vpop.eup %14408  ;;  %v14171_v2 = vld [vmem:[%s15542_s28 + $0x848] ss:$12 sps:$4 sm:$0xff]   ;;  %14420 = vpow2.f32 %v8539_v45 }
0x1473   : > { %v8313_v51 = vmul.f32 %v17315_v37, %v8289_v48  ;;  %v8290_v49 = vadd.f32 -1.4531521, %v8266_v0  ;;  %10778 = vmatpush1.bf16.msra.mxu1 %v14119_v29  ;;  %v8277_v53 = vmul.f32 1.0614054, %v17347_v52  ;;  %v8494_v48 = vmul.f32 %v17308_v16, %v17308_v16  ;;  %v14130_v0 = vld [vmem:[%s15542_s28 + $0x544] ss:$12 sps:$4 sm:$0xff]  }
0x1474   : > { %v8315_v24 = vmul.f32 %v17325_v23, %v8291_v47  ;;  %10779 = vmatprep.subr.bf16.mxu1 %v14124_v41  ;;  %v8292_v8 = vadd.f32 -1.4531521, %v8268_v40  ;;  %12647 = vmatpush3.bf16.msra.mxu0 %v14162_v27  ;;  %14422 = vpow2.f32 %v8561_v58  ;;  %v14135_v40 = vld [vmem:[%s15542_s28 + $0x55c] ss:$12 sps:$4 sm:$0xff]  }
0x1475   : > { %v8337_v7 = vadd.f32 1.4214138, %v8313_v51  ;;  %v8314_v55 = vmul.f32 %v17334_v54, %v8290_v49  ;;  %12648 = vmatprep.subr.bf16.mxu0 %v14166_v26  ;;  %v8301_v13 = vadd.f32 -1.4531521, %v8277_v53  ;;  %v8543_v51 = vmul.f32 1.442695, %v8508_v35 }
0x1476   : > { %v8339_v42 = vadd.f32 1.4214138, %v8315_v24  ;;  %v8316_v56 = vmul.f32 %v17341_v1, %v8292_v8  ;;  %v17365_v4 = vpop.eup %14410  ;;  %v14128_v49 = vld [vmem:[%s15542_s28 + $0x540] ss:$12 sps:$4 sm:$0xff]  }
0x1477   : > { %v8361_v21 = vmul.f32 %v17315_v37, %v8337_v7  ;;  %v8338_v47 = vadd.f32 1.4214138, %v8314_v55  ;;  %10780 = vmatpush1.bf16.msra.mxu1 %v14122_v62  ;;  %v8325_v24 = vmul.f32 %v17347_v52, %v8301_v13  ;;  %v8519_v62 = vsub.f32 0.0, %v8495_v25 }
0x1478   : > { %v8363_v29 = vmul.f32 %v17325_v23, %v8339_v42  ;;  %10781 = vmatprep.subr.bf16.mxu1 %v14127_v57  ;;  %v8340_v27 = vadd.f32 1.4214138, %v8316_v56  ;;  %12649 = vmatpush3.bf16.msra.mxu0 %v14167_v22  ;;  %v8518_v7 = vsub.f32 0.0, %v8494_v48  ;;  %v17370_v57 = vpop.eup %14412  ;;  %v8279_v53 = vmul.f32 1.0614054, %v17365_v4 }
0x1479   : > { %v8385_v63 = vadd.f32 -0.28449672, %v8361_v21  ;;  %v8362_v16 = vmul.f32 %v17334_v54, %v8338_v47  ;;  %12656 = vmatprep.subr.bf16.mxu0 %v14171_v2  ;;  %v8349_v21 = vadd.f32 1.4214138, %v8325_v24  ;;  %v14415_v55 = vpop.eup %14414  ;;  %v8278_v22 = vmul.f32 1.0614054, %v17370_v57 }
0x147a   : > { %v8387_v41 = vadd.f32 -0.28449672, %v8363_v29  ;;  %v8364_v35 = vmul.f32 %v17341_v1, %v8340_v27  ;;  %v8496_v29 = vmul.f32 %v17321_v43, %v17321_v43  ;;  %v14417_v58 = vpop.eup %14416  ;;  %v8303_v56 = vadd.f32 -1.4531521, %v8279_v53 }
0x147b   : > { %v8409_v10 = vmul.f32 %v17315_v37, %v8385_v63  ;;  %v8386_v45 = vadd.f32 -0.28449672, %v8362_v16  ;;  %10782 = vmatpush1.bf16.msra.mxu1 %v14125_v30  ;;  %v8373_v63 = vmul.f32 %v17347_v52, %v8349_v21  ;;  %v14133_v30 = vld [vmem:[%s15542_s28 + $0x558] ss:$12 sps:$4 sm:$0xff]   ;;  %v17381_v47 = vpop.eup %14418  ;;  %v8565_v13 = vmul.f32 1.442695, %v8519_v62 }
0x147c   : > { %v8411_v26 = vmul.f32 %v17325_v23, %v8387_v41  ;;  %10783 = vmatprep.subr.bf16.mxu1 %v14130_v0  ;;  %v8388_v2 = vadd.f32 -0.28449672, %v8364_v35  ;;  %v8302_v41 = vadd.f32 -1.4531521, %v8278_v22  ;;  %v8563_v43 = vmul.f32 1.442695, %v8518_v7  ;;  %v14421_v21 = vpop.eup %14420 }
0x147d   : > { %v8433_v42 = vadd.f32 0.2548296, %v8409_v10  ;;  %v8410_v48 = vmul.f32 %v17334_v54, %v8386_v45  ;;  %v8397_v27 = vadd.f32 -0.28449672, %v8373_v63  ;;  %14424 = vpow2.f32 %v8543_v51 }
0x147e   : > { %v8435_v8 = vadd.f32 0.2548296, %v8411_v26  ;;  %v8412_v0 = vmul.f32 %v17341_v1, %v8388_v2  ;;  %v8326_v24 = vmul.f32 %v17370_v57, %v8302_v41  ;;  %v8280_v26 = vmul.f32 1.0614054, %v17381_v47 }
0x147f   : > { %v8457_v25 = vmul.f32 %v17315_v37, %v8433_v42  ;;  %v8434_v16 = vadd.f32 0.2548296, %v8410_v48  ;;  %10784 = vmatpush1.bf16.msra.mxu1 %v14128_v49  ;;  %v8327_v37 = vmul.f32 %v17365_v4, %v8303_v56  ;;  %v14140_v42 = vld [vmem:[%s15542_s28 + $0x574] ss:$12 sps:$4 sm:$0xff]   ;;  %v8421_v62 = vmul.f32 %v17347_v52, %v8397_v27 }
0x1480   : > { %10785 = vmatprep.subr.bf16.mxu1 %v14135_v40  ;;  %v8459_v45 = vmul.f32 %v17325_v23, %v8435_v8  ;;  %v8520_v35 = vsub.f32 0.0, %v8496_v29  ;;  %14426 = vpow2.f32 %v8565_v13  ;;  %v14423_v40 = vpop.eup %14422  ;;  %v8436_v48 = vadd.f32 0.2548296, %v8412_v0  ;;  %v14145_v29 = vld [vmem:[%s15542_s28 + $0x58c] ss:$12 sps:$4 sm:$0xff]  }
0x1481   : > { %v8577_v10 = vmul.f32 %v14415_v55, %v8457_v25  ;;  %v8458_v7 = vmul.f32 %v17334_v54, %v8434_v16  ;;  %v8351_v49 = vadd.f32 1.4214138, %v8327_v37  ;;  %v8350_v55 = vadd.f32 1.4214138, %v8326_v24  ;;  %v14138_v25 = vld [vmem:[%s15542_s28 + $0x570] ss:$12 sps:$4 sm:$0xff]  }
0x1482   : > { %v8445_v22 = vadd.f32 0.2548296, %v8421_v62  ;;  %14428 = vpow2.f32 %v8563_v43  ;;  %v8304_v8 = vadd.f32 -1.4531521, %v8280_v26  ;;  %v8579_v2 = vmul.f32 %v14417_v58, %v8459_v45  ;;  %v14143_v27 = vld [vmem:[%s15542_s28 + $0x588] ss:$12 sps:$4 sm:$0xff]  }
0x1483   : > { %v8601_v53 = vsub.f32 1.0, %v8577_v10  ;;  %10786 = vmatpush1.bf16.msra.mxu1 %v14133_v30  ;;  %v8375_v23 = vmul.f32 %v17365_v4, %v8351_v49  ;;  %v8374_v51 = vmul.f32 %v17370_v57, %v8350_v55  ;;  %v8567_v63 = vmul.f32 1.442695, %v8520_v35 }
0x1484   : > { %10787 = vmatprep.subr.bf16.mxu1 %v14140_v42  ;;  %v8469_v54 = vmul.f32 %v17347_v52, %v8445_v22  ;;  %v8578_v56 = vmul.f32 %v14421_v21, %v8458_v7  ;;  %v8328_v30 = vmul.f32 %v17381_v47, %v8304_v8  ;;  %v8460_v43 = vmul.f32 %v17341_v1, %v8436_v48  ;;  %v14150_v52 = vld [vmem:[%s15542_s28 + $0x5a4] ss:$12 sps:$4 sm:$0xff]   ;;  %v14148_v7 = vld [vmem:[%s15542_s28 + $0x5a0] ss:$12 sps:$4 sm:$0xff]  }
0x1485   : > { %v8399_v13 = vadd.f32 -0.28449672, %v8375_v23  ;;  %v8398_v41 = vadd.f32 -0.28449672, %v8374_v51  ;;  %v8625_v10 = vmul.f32 %v8601_v53, %v17241_v46  ;;  %v8603_v24 = vsub.f32 1.0, %v8579_v2 }
0x1486   : > { %v8589_v16 = vmul.f32 %v14423_v40, %v8469_v54  ;;  %v8352_v37 = vadd.f32 1.4214138, %v8328_v30  ;;  %14430 = vpow2.f32 %v8567_v63  ;;  %v8602_v42 = vsub.f32 1.0, %v8578_v56  ;;  %v14155_v40 = vld [vmem:[%s15542_s28 + $0x5bc] ss:$12 sps:$4 sm:$0xff]  }
0x1487   : > { %10788 = vmatpush1.bf16.msra.mxu1 %v14138_v25  ;;  %v8423_v0 = vmul.f32 %v17365_v4, %v8399_v13  ;;  %v8422_v58 = vmul.f32 %v17370_v57, %v8398_v41  ;;  %v14425_v35 = vpop.eup %14424  ;;  %v8649_v21 = vadd.f32 1.0, %v8625_v10  ;;  %v8049_v23 = vmul.f32 0.5, %v17217_v28  ;;  %v14153_v56 = vld [vmem:[%s15542_s28 + $0x5b8] ss:$12 sps:$4 sm:$0xff]   ;;  %v14160_v13 = vld [vmem:[%s15542_s28 + $0x5d4] ss:$12 sps:$4 sm:$0xff]  }
0x1488   : > { %10789 = vmatprep.subr.bf16.mxu1 %v14145_v29  ;;  %v8613_v26 = vsub.f32 1.0, %v8589_v16  ;;  %v8376_v62 = vmul.f32 %v17381_v47, %v8352_v37  ;;  %v8580_v55 = vmul.f32 %v14425_v35, %v8460_v43  ;;  %v8627_v51 = vmul.f32 %v8603_v24, %v17248_v38 }
0x1489   : > { %v8447_v45 = vadd.f32 0.2548296, %v8423_v0  ;;  %v8446_v46 = vadd.f32 0.2548296, %v8422_v58  ;;  %v8626_v29 = vmul.f32 %v8602_v42, %v17251_v19  ;;  %v8051_v58 = vmul.f32 0.5, %v17222_v15 }
0x148a   : > { %v8637_v1 = vmul.f32 %v8613_v26, %v17273_v44  ;;  %v14427_v49 = vpop.eup %14426  ;;  %v8400_v25 = vadd.f32 -0.28449672, %v8376_v62  ;;  %v8061_v44 = vmul.f32 0.5, %v17232_v39  ;;  %v8604_v41 = vsub.f32 1.0, %v8580_v55  ;;  %v14158_v26 = vld [vmem:[%s15542_s28 + $0x5d0] ss:$12 sps:$4 sm:$0xff]  }
0x148b   : > { %10790 = vmatpush1.bf16.msra.mxu1 %v14143_v27  ;;  %v8471_v53 = vmul.f32 %v17365_v4, %v8447_v45  ;;  %v8470_v22 = vmul.f32 %v17370_v57, %v8446_v46  ;;  %v8673_v57 = vmul.f32 %v8649_v21, %v8049_v23  ;;  %v8651_v38 = vadd.f32 1.0, %v8627_v51  ;;  %v14176_v55 = vld [vmem:[%s15542_s28 + $0x860] ss:$12 sps:$4 sm:$0xff]   ;;  %v14175_v23 = vld [vmem:[%s15542_s28 + $0x61c] ss:$12 sps:$4 sm:$0xff]  }
0x148c   : > { %10791 = vmatprep.subr.bf16.mxu1 %v14150_v52  ;;  %v14429_v48 = vpop.eup %14428  ;;  %v8661_v8 = vadd.f32 1.0, %v8637_v1  ;;  %v8424_v4 = vmul.f32 %v17381_v47, %v8400_v25  ;;  %v8650_v16 = vadd.f32 1.0, %v8626_v29  ;;  %v8050_v37 = vmul.f32 0.5, %v17225_v3  ;;  %v14170_v1 = vld [vmem:[%s15542_s28 + $0x604] ss:$12 sps:$4 sm:$0xff]  }
0x148d   : > { %v8591_v2 = vmul.f32 %v14427_v49, %v8471_v53  ;;  %v8590_v54 = vmul.f32 %v14429_v48, %v8470_v22  ;;  %v8063_v52 = vmul.f32 0.5, %v17280_v59  ;;  %v8062_v24 = vmul.f32 0.5, %v17283_v5  ;;  %v14163_v5 = vld [vmem:[%s15542_s28 + $0x5e8] ss:$12 sps:$4 sm:$0xff]   ;;  %v14181_v51 = vld [vmem:[%s15542_s28 + $0x878] ss:$12 sps:$4 sm:$0xff]  }
0x148e   : > { %v8685_v63 = vmul.f32 %v8661_v8, %v8061_v44  ;;  %v8448_v10 = vadd.f32 0.2548296, %v8424_v4  ;;  %v8628_v42 = vmul.f32 %v8604_v41, %v17258_v17  ;;  %v8675_v15 = vmul.f32 %v8651_v38, %v8051_v58  ;;  %v14172_v49 = vld [vmem:[%s15542_s28 + $0x788] ss:$12 sps:$4 sm:$0xff]   ;;  %v14173_v44 = vld [vmem:[%s15542_s28 + $0x618] ss:$12 sps:$4 sm:$0xff]  }
0x148f   : > { %10792 = vmatpush1.bf16.msra.mxu1 %v14148_v7  ;;  %v8615_v30 = vsub.f32 1.0, %v8591_v2  ;;  %v8614_v28 = vsub.f32 1.0, %v8590_v54  ;;  %v8674_v46 = vmul.f32 %v8650_v16, %v8050_v37  ;;  %v8052_v53 = vmul.f32 0.5, %v17230_v36  ;;  %v14177_v36 = vld [vmem:[%s15542_s28 + $0x7a0] ss:$12 sps:$4 sm:$0xff]  }
0x1490   : > { %10793 = vmatprep.subr.bf16.mxu1 %v14155_v40  ;;  %v17416_v39 = vpack.c.bf16 %v8685_v63, %v8673_v57  ;;  %v8472_v43 = vmul.f32 %v17381_v47, %v8448_v10  ;;  %v14431_v0 = vpop.eup %14430  ;;  %v14165_v47 = vld [vmem:[%s15542_s28 + $0x5ec] ss:$12 sps:$4 sm:$0xff]   ;;  %v8652_v35 = vadd.f32 1.0, %v8628_v42  ;;  %v8064_v22 = vmul.f32 0.5, %v17287_v50  ;;  %v14180_v8 = vld [vmem:[%s15542_s28 + $0x634] ss:$12 sps:$4 sm:$0xff]  }
0x1491   : > { %v8639_v19 = vmul.f32 %v8615_v30, %v17297_v18  ;;  %v8638_v27 = vmul.f32 %v8614_v28, %v17304_v61  ;;  %v14168_v40 = vld [vmem:[%s15542_s28 + $0x600] ss:$12 sps:$4 sm:$0xff]   ;;  %v14182_v29 = vld [vmem:[%s15542_s28 + $0x7b8] ss:$12 sps:$4 sm:$0xff]   ;;  %v14178_v2 = vld [vmem:[%s15542_s28 + $0x630] ss:$12 sps:$4 sm:$0xff]  }
0x1492   : > { %v8592_v61 = vmul.f32 %v14431_v0, %v8472_v43  ;;  %v14185_v54 = vld [vmem:[%s15542_s28 + $0x64c] ss:$12 sps:$4 sm:$0xff]   ;;  %v14187_v4 = vld [vmem:[%s15542_s28 + $0x7d0] ss:$12 sps:$4 sm:$0xff]   ;;  %v14191_v57 = vld [vmem:[%s15542_s28 + $0x8a8] ss:$12 sps:$4 sm:$0xff]  }
0x1493   : > { %10794 = vmatpush1.bf16.msra.mxu1 %v14153_v56  ;;  %v8663_v45 = vadd.f32 1.0, %v8639_v19  ;;  %v8662_v18 = vadd.f32 1.0, %v8638_v27  ;;  %v14183_v63 = vld [vmem:[%s15542_s28 + $0x648] ss:$12 sps:$4 sm:$0xff]   ;;  %v14190_v56 = vld [vmem:[%s15542_s28 + $0x664] ss:$12 sps:$4 sm:$0xff]  }
0x1494   : > { %10795 = vmatprep.subr.bf16.mxu1 %v14160_v13  ;;  %v8616_v59 = vsub.f32 1.0, %v8592_v61  ;;  %v14192_v13 = vld [vmem:[%s15542_s28 + $0x7e8] ss:$12 sps:$4 sm:$0xff]   ;;  %v14196_v41 = vld [vmem:[%s15542_s28 + $0x8c0] ss:$12 sps:$4 sm:$0xff]  }
0x1495   : > { %v8687_v3 = vmul.f32 %v8663_v45, %v8063_v52  ;;  %v8686_v62 = vmul.f32 %v8662_v18, %v8062_v24  ;;  %v14188_v30 = vld [vmem:[%s15542_s28 + $0x660] ss:$12 sps:$4 sm:$0xff]   ;;  %v14195_v28 = vld [vmem:[%s15542_s28 + $0x67c] ss:$12 sps:$4 sm:$0xff]   ;;  %v14201_v38 = vld [vmem:[%s15542_s28 + $0x8d8] ss:$12 sps:$4 sm:$0xff]  }
0x1496   : > { %v8640_v17 = vmul.f32 %v8616_v59, %v17311_v20  ;;  %v8676_v20 = vmul.f32 %v8652_v35, %v8052_v53  ;;  %v14197_v10 = vld [vmem:[%s15542_s28 + $0x800] ss:$12 sps:$4 sm:$0xff]   ;;  %v14193_v16 = vld [vmem:[%s15542_s28 + $0x678] ss:$12 sps:$4 sm:$0xff]   ;;  %v14206_v52 = vld [vmem:[%s15542_s28 + $0x8f0] ss:$12 sps:$4 sm:$0xff]  }
0x1497   : > { %10796 = vmatpush1.bf16.msra.mxu1 %v14158_v26  ;;  %v17429_v21 = vpack.c.bf16 %v8687_v3, %v8675_v15  ;;  %v8698_v7 = vpack.c.bf16 %v8686_v62, %v8674_v46  ;;  %v14200_v27 = vld [vmem:[%s15542_s28 + $0x694] ss:$12 sps:$4 sm:$0xff]   ;;  %v14202_v0 = vld [vmem:[%s15542_s28 + $0x818] ss:$12 sps:$4 sm:$0xff]   ;;  %v14198_v26 = vld [vmem:[%s15542_s28 + $0x690] ss:$12 sps:$4 sm:$0xff]  }
0x1498   : > { %10797 = vmatprep.subr.bf16.mxu1 %v14165_v47  ;;  %v8664_v25 = vadd.f32 1.0, %v8640_v17  ;;  %v14205_v45 = vld [vmem:[%s15542_s28 + $0x6ac] ss:$12 sps:$4 sm:$0xff]   ;;  %v14207_v18 = vld [vmem:[%s15542_s28 + $0x830] ss:$12 sps:$4 sm:$0xff]  }
0x1499   : > { %11092 = vmatprep.mubr.bf16.mxu0 %v8698_v7  ;;  %v14203_v61 = vld [vmem:[%s15542_s28 + $0x6a8] ss:$12 sps:$4 sm:$0xff]   ;;  %v14210_v47 = vld [vmem:[%s15542_s28 + $0x6c4] ss:$12 sps:$4 sm:$0xff]   ;;  %v14208_v15 = vld [vmem:[%s15542_s28 + $0x6c0] ss:$12 sps:$4 sm:$0xff]  }
0x149a   : > { %11093 = vmatmul.mubr.bf16.vlgmr.msra.gmra.mrb[80].mxu0 %v17416_v39  ;;  %v8688_v48 = vmul.f32 %v8664_v25, %v8064_v22  ;;  %v14213_v46 = vld [vmem:[%s15542_s28 + $0x6dc] ss:$12 sps:$4 sm:$0xff]   ;;  %v14211_v3 = vld [vmem:[%s15542_s28 + $0x6d8] ss:$12 sps:$4 sm:$0xff]   ;;  %v14216_v62 = vld [vmem:[%s15542_s28 + $0x6f4] ss:$12 sps:$4 sm:$0xff]  }
0x149b   : > { %10798 = vmatpush1.bf16.msra.mxu1 %v14163_v5  ;;  %12657 = vmatpush3.bf16.msra.mxu0 %v14172_v49  ;;  %v14214_v59 = vld [vmem:[%s15542_s28 + $0x6f0] ss:$12 sps:$4 sm:$0xff]   ;;  %v14219_v5 = vld [vmem:[%s15542_s28 + $0x70c] ss:$12 sps:$4 sm:$0xff]   ;;  %v14217_v35 = vld [vmem:[%s15542_s28 + $0x708] ss:$12 sps:$4 sm:$0xff]  }
0x149c   : > { %10810 = vmatprep.subr.bf16.mxu1 %v14170_v1  ;;  %12658 = vmatprep.subr.bf16.mxu0 %v14176_v55  ;;  %v17442_v50 = vpack.c.bf16 %v8688_v48, %v8676_v20  ;;  %v14222_v17 = vld [vmem:[%s15542_s28 + $0x724] ss:$12 sps:$4 sm:$0xff]   ;;  %v14220_v1 = vld [vmem:[%s15542_s28 + $0x720] ss:$12 sps:$4 sm:$0xff]   ;;  %v14225_v49 = vld [vmem:[%s15542_s28 + $0x73c] ss:$12 sps:$4 sm:$0xff]  }
0x149d   : > { %v14223_v53 = vld [vmem:[%s15542_s28 + $0x738] ss:$12 sps:$4 sm:$0xff]   ;;  %v14228_v22 = vld [vmem:[%s15542_s28 + $0x754] ss:$12 sps:$4 sm:$0xff]  }
0x149e   : > { %10800 = vmatmul.mubr.bf16.vlgmr.msra.gmra.mrb[48].mxu1 %v17167_v11  ;;  %11133 = vmatprep.mubr.bf16.mxu0 %v17442_v50  ;;  %v14186_v11 = vld [vmem:[%s15542_s28 + $0x890] ss:$12 sps:$4 sm:$0xff]  }
0x149f   : > { %10811 = vmatpush1.bf16.msra.mxu1 %v14168_v40  ;;  %10842 = vmatprep.mubr.bf16.mxu1 %v8698_v7  ;;  %v17483_v7 = vld [vmem:[%s17661_s26] sm:$0x7] }
0x14a0   : > { %10812 = vmatprep.subr.bf16.mxu1 %v14175_v23  ;;  %12659 = vmatpush3.bf16.msra.mxu0 %v14177_v36  ;;  %v9098_v55 = vrot.slane %v17483_v7, %v15670_v33  ;;  %v14226_v36 = vld [vmem:[%s15542_s28 + $0x750] ss:$12 sps:$4 sm:$0xff]  }
0x14a1   : > { %12660 = vmatprep.subr.bf16.mxu0 %v14181_v51 }
0x14a3   : > { %10813 = vmatpush1.bf16.msra.mxu1 %v14173_v44  ;;  %v14231_v44 = vld [vmem:[%s15542_s28 + $0x76c] ss:$12 sps:$4 sm:$0xff]  }
0x14a4   : > { %10814 = vmatprep.subr.bf16.mxu1 %v14180_v8  ;;  %12661 = vmatpush3.bf16.msra.mxu0 %v14182_v29 }
0x14a5   : > { %12662 = vmatprep.subr.bf16.mxu0 %v14186_v11 }
0x14a7   : > { %10815 = vmatpush1.bf16.msra.mxu1 %v14178_v2 }
0x14a8   : > { %10816 = vmatprep.subr.bf16.mxu1 %v14185_v54  ;;  %12663 = vmatpush3.bf16.msra.mxu0 %v14187_v4  ;;  %v14229_v54 = vld [vmem:[%s15542_s28 + $0x768] ss:$12 sps:$4 sm:$0xff]   ;;  %v14234_v4 = vld [vmem:[%s15542_s28 + $0x784] ss:$12 sps:$4 sm:$0xff]  }
0x14a9   : > { %12664 = vmatprep.subr.bf16.mxu0 %v14191_v57  ;;  %v14232_v57 = vld [vmem:[%s15542_s28 + $0x780] ss:$12 sps:$4 sm:$0xff]  }
0x14ab   : > { %10817 = vmatpush1.bf16.msra.mxu1 %v14183_v63  ;;  %v14237_v63 = vld [vmem:[%s15542_s28 + $0x79c] ss:$12 sps:$4 sm:$0xff]  }
0x14ac   : > { %10818 = vmatprep.subr.bf16.mxu1 %v14190_v56  ;;  %12665 = vmatpush3.bf16.msra.mxu0 %v14192_v13  ;;  %v14235_v56 = vld [vmem:[%s15542_s28 + $0x798] ss:$12 sps:$4 sm:$0xff]   ;;  %v14240_v13 = vld [vmem:[%s15542_s28 + $0x7b4] ss:$12 sps:$4 sm:$0xff]  }
0x14ad   : > { %12666 = vmatprep.subr.bf16.mxu0 %v14196_v41  ;;  %v14238_v41 = vld [vmem:[%s15542_s28 + $0x7b0] ss:$12 sps:$4 sm:$0xff]  }
0x14af   : > { %10819 = vmatpush1.bf16.msra.mxu1 %v14188_v30  ;;  %v14243_v30 = vld [vmem:[%s15542_s28 + $0x7cc] ss:$12 sps:$4 sm:$0xff]  }
0x14b0   : > { %10820 = vmatprep.subr.bf16.mxu1 %v14195_v28  ;;  %v12562_v19 = vpop.f32.mrb[64].mxu0  ;;  %12667 = vmatpush3.bf16.msra.mxu0 %v14197_v10  ;;  %v14241_v28 = vld [vmem:[%s15542_s28 + $0x7c8] ss:$12 sps:$4 sm:$0xff]   ;;  %v14244_v10 = vld [vmem:[%s15542_s28 + $0x7e0] ss:$12 sps:$4 sm:$0xff]  }
0x14b1   : > { %v12563_v43 = vpop.f32.mrb[65].mxu0  ;;  %12668 = vmatprep.subr.bf16.mxu0 %v14201_v38  ;;  %v14247_v38 = vld [vmem:[%s15542_s28 + $0x7f8] ss:$12 sps:$4 sm:$0xff]  }
0x14b2   : > { %v12564_v58 = vadd.f32 %v12563_v43, %v12562_v19  ;;  %v12565_v37 = vpop.f32.mrb[66].mxu0  ;;  %v14250_v19 = vld [vmem:[%s15542_s28 + $0x810] ss:$12 sps:$4 sm:$0xff]   ;;  %v14253_v43 = vld [vmem:[%s15542_s28 + $0x828] ss:$12 sps:$4 sm:$0xff]  }
0x14b3   : > { %10821 = vmatpush1.bf16.msra.mxu1 %v14193_v16  ;;  %v12566_v24 = vpop.f32.mrb[67].mxu0  ;;  %v14252_v16 = vld [vmem:[%s15542_s28 + $0x814] ss:$12 sps:$4 sm:$0xff]  }
0x14b4   : > { %v12567_v42 = vadd.f32 %v12566_v24, %v12565_v37  ;;  %10822 = vmatprep.subr.bf16.mxu1 %v14200_v27  ;;  %12669 = vmatpush3.bf16.msra.mxu0 %v14202_v0  ;;  %v10931_v20 = vadd.f32 %v12564_v58, %v9098_v55  ;;  %v14255_v27 = vld [vmem:[%s15542_s28 + $0x82c] ss:$12 sps:$4 sm:$0xff]   ;;  %v14258_v0 = vld [vmem:[%s15542_s28 + $0x844] ss:$12 sps:$4 sm:$0xff]   ;;  %v14261_v37 = vld [vmem:[%s15542_s28 + $0x85c] ss:$12 sps:$4 sm:$0xff]  }
0x14b5   : > { %12670 = vmatprep.subr.bf16.mxu0 %v14206_v52  ;;  %v14256_v58 = vld [vmem:[%s15542_s28 + $0x840] ss:$12 sps:$4 sm:$0xff]   ;;  %v14259_v52 = vld [vmem:[%s15542_s28 + $0x858] ss:$12 sps:$4 sm:$0xff]  }
0x14b6   : > { %v10934_v8 = vadd.f32 %v12567_v42, %v9098_v55  ;;  %v14264_v24 = vld [vmem:[%s15542_s28 + $0x874] ss:$12 sps:$4 sm:$0xff]   ;;  %v14267_v42 = vld [vmem:[%s15542_s28 + $0x88c] ss:$12 sps:$4 sm:$0xff]  }
0x14b7   : > { %10823 = vmatpush1.bf16.msra.mxu1 %v14198_v26  ;;  %v14262_v26 = vld [vmem:[%s15542_s28 + $0x870] ss:$12 sps:$4 sm:$0xff]  }
0x14b8   : > { %10824 = vmatprep.subr.bf16.mxu1 %v14205_v45  ;;  %12671 = vmatpush3.bf16.msra.mxu0 %v14207_v18  ;;  %v14265_v45 = vld [vmem:[%s15542_s28 + $0x888] ss:$12 sps:$4 sm:$0xff]   ;;  %v14270_v18 = vld [vmem:[%s15542_s28 + $0x8a4] ss:$12 sps:$4 sm:$0xff]  }
0x14bb   : > { %10825 = vmatpush1.bf16.msra.mxu1 %v14203_v61  ;;  %11134 = vmatmul.mubr.bf16.vlgmr.msra.gmra.mrb[84].mxu0 %v17429_v21  ;;  %v14268_v61 = vld [vmem:[%s15542_s28 + $0x8a0] ss:$12 sps:$4 sm:$0xff]  }
0x14bc   : > { %10826 = vmatprep.subr.bf16.mxu1 %v14210_v47  ;;  %v14273_v47 = vld [vmem:[%s15542_s28 + $0x8bc] ss:$12 sps:$4 sm:$0xff]  }
0x14bf   : > { %10827 = vmatpush1.bf16.msra.mxu1 %v14208_v15 }
0x14c0   : > { %10828 = vmatprep.subr.bf16.mxu1 %v14213_v46  ;;  %v14271_v46 = vld [vmem:[%s15542_s28 + $0x8b8] ss:$12 sps:$4 sm:$0xff]  }
0x14c3   : > { %10829 = vmatpush1.bf16.msra.mxu1 %v14211_v3 }
0x14c4   : > { %10830 = vmatprep.subr.bf16.mxu1 %v14216_v62 }
0x14c7   : > { %10831 = vmatpush1.bf16.msra.mxu1 %v14214_v59 }
0x14c8   : > { %10832 = vmatprep.subr.bf16.mxu1 %v14219_v5  ;;  %v14276_v5 = vld [vmem:[%s15542_s28 + $0x8d4] ss:$12 sps:$4 sm:$0xff]  }
0x14cb   : > { %10833 = vmatpush1.bf16.msra.mxu1 %v14217_v35 }
0x14cc   : > { %10834 = vmatprep.subr.bf16.mxu1 %v14222_v17 }
0x14cf   : > { %10835 = vmatpush1.bf16.msra.mxu1 %v14220_v1 }
0x14d0   : > { %10836 = vmatprep.subr.bf16.mxu1 %v14225_v49  ;;  %v14274_v49 = vld [vmem:[%s15542_s28 + $0x8d0] ss:$12 sps:$4 sm:$0xff]  }
0x14d1   : > { %v12584_v25 = vpop.f32.mrb[68].mxu0 }
0x14d2   : > { %v12585_v40 = vpop.f32.mrb[69].mxu0 }
0x14d3   : > { %v12586_v48 = vadd.f32 %v12585_v40, %v12584_v25  ;;  %10837 = vmatpush1.bf16.msra.mxu1 %v14223_v53  ;;  %v12587_v23 = vpop.f32.mrb[70].mxu0  ;;  %v14279_v53 = vld [vmem:[%s15542_s28 + $0x8ec] ss:$12 sps:$4 sm:$0xff]  }
0x14d4   : > { %v12588_v51 = vpop.f32.mrb[71].mxu0  ;;  %10838 = vmatprep.subr.bf16.mxu1 %v14228_v22  ;;  %v14277_v22 = vld [vmem:[%s15542_s28 + $0x8e8] ss:$12 sps:$4 sm:$0xff]  }
0x14d5   : > { %v17492_v29 = vadd.f32 %v12586_v48, %v10931_v20  ;;  %v12589_v11 = vadd.f32 %v12588_v51, %v12587_v23 }
0x14d7   : > { %v17494_v2 = vadd.f32 %v12589_v11, %v10934_v8  ;;  %10839 = vmatpush1.bf16.msra.mxu1 %v14226_v36 }
0x14d8   : > { %10840 = vmatprep.subr.bf16.mxu1 %v14231_v44 }
0x14db   : > { %10841 = vmatpush1.bf16.msra.mxu1 %v14229_v54 }
0x14dc   : > { %10853 = vmatprep.subr.bf16.mxu1 %v14234_v4 }
0x14de   : > { %10843 = vmatmul.mubr.bf16.vlgmr.msra.gmra.mrb[48].mxu1 %v17416_v39  ;;  %v14246_v39 = vld [vmem:[%s15542_s28 + $0x7e4] ss:$12 sps:$4 sm:$0xff]  }
0x14df   : > { %10854 = vmatpush1.bf16.msra.mxu1 %v14232_v57  ;;  %10885 = vmatprep.mubr.bf16.mxu1 %v17442_v50  ;;  %v14249_v50 = vld [vmem:[%s15542_s28 + $0x7fc] ss:$12 sps:$4 sm:$0xff]  }
0x14e0   : > { %10855 = vmatprep.subr.bf16.mxu1 %v14237_v63 }
0x14e3   : > { %10856 = vmatpush1.bf16.msra.mxu1 %v14235_v56  ;;  %v11142_v56 = vld [vmem:[%s875_s15] sm:$0x7] }
0x14e4   : > { %10857 = vmatprep.subr.bf16.mxu1 %v14240_v13 }
0x14e7   : > { %10858 = vmatpush1.bf16.msra.mxu1 %v14238_v41 }
0x14e8   : > { %10859 = vmatprep.subr.bf16.mxu1 %v14243_v30  ;;  %v11155_v30 = vrot.slane %v11142_v56, %v15670_v33  ;;  %v11147_v33 = vrot.slane %v11142_v56, %v15673_v34 }
0x14eb   : > { %10860 = vmatpush1.bf16.msra.mxu1 %v14241_v28 }
0x14ec   : > { %10861 = vmatprep.subr.bf16.mxu1 %v14246_v39 }
0x14ef   : > { %10862 = vmatpush1.bf16.msra.mxu1 %v14244_v10 }
0x14f0   : > { %10863 = vmatprep.subr.bf16.mxu1 %v14249_v50 }
0x14f3   : > { %10864 = vmatpush1.bf16.msra.mxu1 %v14247_v38 }
0x14f4   : > { %10865 = vmatprep.subr.bf16.mxu1 %v14252_v16 }
0x14f7   : > { %10866 = vmatpush1.bf16.msra.mxu1 %v14250_v19 }
0x14f8   : > { %10867 = vmatprep.subr.bf16.mxu1 %v14255_v27 }
0x14fb   : > { %10868 = vmatpush1.bf16.msra.mxu1 %v14253_v43 }
0x14fc   : > { %10869 = vmatprep.subr.bf16.mxu1 %v14258_v0  ;;  %v9090_v0 = vrot.slane %v17483_v7, %v15673_v34 }
0x14ff   : > { %10870 = vmatpush1.bf16.msra.mxu1 %v14256_v58  ;;  %v9094_v58 = vrot.slane %v17483_v7, %v15667_v32 }
0x1500   : > { %10871 = vmatprep.subr.bf16.mxu1 %v14261_v37 }
0x1503   : > { %10872 = vmatpush1.bf16.msra.mxu1 %v14259_v52  ;;  %v11151_v52 = vrot.slane %v11142_v56, %v15667_v32 }
0x1504   : > { %10873 = vmatprep.subr.bf16.mxu1 %v14264_v24 }
0x1507   : > { %10874 = vmatpush1.bf16.msra.mxu1 %v14262_v26 }
0x1508   : > { %10875 = vmatprep.subr.bf16.mxu1 %v14267_v42 }
0x150b   : > { %10876 = vmatpush1.bf16.msra.mxu1 %v14265_v45 }
0x150c   : > { %10877 = vmatprep.subr.bf16.mxu1 %v14270_v18 }
0x150e   : > { %v12606_v15 = vpop.f32.mrb[72].mxu0 }
0x150f   : > { %10878 = vmatpush1.bf16.msra.mxu1 %v14268_v61  ;;  %v12607_v3 = vpop.f32.mrb[73].mxu0 }
0x1510   : > { %10879 = vmatprep.subr.bf16.mxu1 %v14273_v47  ;;  %v12608_v62 = vadd.f32 %v12607_v3, %v12606_v15  ;;  %v12609_v59 = vpop.f32.mrb[74].mxu0 }
0x1511   : > { %v12610_v35 = vpop.f32.mrb[75].mxu0 }
0x1512   : > { %v11013_v17 = vadd.f32 %v12608_v62, %v17492_v29  ;;  %v12611_v1 = vadd.f32 %v12610_v35, %v12609_v59 }
0x1513   : > { %10880 = vmatpush1.bf16.msra.mxu1 %v14271_v46 }
0x1514   : > { %v11016_v55 = vadd.f32 %v12611_v1, %v17494_v2  ;;  %10881 = vmatprep.subr.bf16.mxu1 %v14276_v5 }
0x1517   : > { %10882 = vmatpush1.bf16.msra.mxu1 %v14274_v49 }
0x1518   : > { %10883 = vmatprep.subr.bf16.mxu1 %v14279_v53 }
0x151b   : > { %10884 = vmatpush1.bf16.msra.mxu1 %v14277_v22 }
0x151e   : > { %10886 = vmatmul.mubr.bf16.vlgmr.msra.gmra.mrb[48].mxu1 %v17429_v21 }
0x152e   : > { %v12628_v25 = vpop.f32.mrb[76].mxu0 }
0x152f   : > { %v12629_v40 = vpop.f32.mrb[77].mxu0 }
0x1530   : > { %v12630_v20 = vadd.f32 %v12629_v40, %v12628_v25  ;;  %v12631_v48 = vpop.f32.mrb[78].mxu0 }
0x1531   : > { %v12632_v23 = vpop.f32.mrb[79].mxu0 }
0x1532   : > { %v11054_v36 = vadd.f32 %v12630_v20, %v11013_v17  ;;  %v12633_v51 = vadd.f32 %v12632_v23, %v12631_v48 }
0x1534   : > { %v11057_v44 = vadd.f32 %v12633_v51, %v11016_v55 }
0x156d   : > { %v12650_v8 = vpop.f32.mrb[80].mxu0 }
0x156e   : > { %v12651_v29 = vpop.f32.mrb[81].mxu0 }
0x156f   : > { %v12652_v11 = vadd.f32 %v12651_v29, %v12650_v8  ;;  %v12653_v2 = vpop.f32.mrb[82].mxu0 }
0x1570   : > { %v12654_v54 = vpop.f32.mrb[83].mxu0 }
0x1571   : > { %v11095_v4 = vadd.f32 %v12652_v11, %v11054_v36  ;;  %v12655_v57 = vadd.f32 %v12654_v54, %v12653_v2 }
0x1573   : > { %v11098_v63 = vadd.f32 %v12655_v57, %v11057_v44 }
0x158e   : > { %v12672_v21 = vpop.f32.mrb[84].mxu0 }
0x158f   : > { %v12673_v13 = vpop.f32.mrb[85].mxu0 }
0x1590   : > { %v12674_v41 = vadd.f32 %v12673_v13, %v12672_v21  ;;  %v12675_v28 = vpop.f32.mrb[86].mxu0 }
0x1591   : > { %v12676_v39 = vpop.f32.mrb[87].mxu0 }
0x1592   : > { %v11136_v10 = vadd.f32 %v12674_v41, %v11095_v4  ;;  %v12677_v50 = vadd.f32 %v12676_v39, %v12675_v28 }
0x1594   : > { %v11161_v38 = vmul.f32 %v11155_v30, %v11136_v10  ;;  %v11139_v16 = vadd.f32 %v12677_v50, %v11098_v63 }
0x1596   : > { %v11167_v19 = vadd.f32 %v11161_v38, %v16301_v14  ;;  %v11164_v27 = vmul.f32 %v11155_v30, %v11139_v16 }
0x1598   : > { %11173 = vst [vmem:[#allocation2 + $0x10] sm:$0xff] %v11167_v19  ;;  %v11170_v43 = vadd.f32 %v11164_v27, %v16307_v9 }
0x159a   : > { %11176 = vst [vmem:[#allocation2 + $0x28] sm:$0xff] %v11170_v43 }
0x159f   : > { %v11183_v5 = vld [vmem:[#allocation2 + $0x10] sm:$0xff] (!%p12433_p6) }
0x15a0   : > { %11189 = vst [vmem:[%s17663_s24 + $0x10] sm:$0xff] (!%p12433_p6), %v11183_v5 }
0x15f1   : > { %v10887_v37 = vpop.f32.mrb[48].mxu1 }
0x15f2   : > { %v12886_v24 = vadd.f32 %v10887_v37, %v9090_v0  ;;  %v10889_v26 = vpop.f32.mrb[49].mxu1 }
0x15f3   : > { %v12887_v42 = vadd.f32 %v10889_v26, %v9094_v58  ;;  %v10891_v14 = vpop.f32.mrb[50].mxu1 }
0x15f4   : > { %v11159_v45 = vmul.f32 %v12886_v24, %v11147_v33  ;;  %v12888_v18 = vadd.f32 %v10891_v14, %v9090_v0  ;;  %v10893_v61 = vpop.f32.mrb[51].mxu1 }
0x15f5   : > { %v11160_v9 = vmul.f32 %v12887_v42, %v11151_v52  ;;  %v12889_v47 = vadd.f32 %v10893_v61, %v9094_v58  ;;  %11180 = sbr.rel (%p12433_p6) target bundleno = 5636 (0x1604), region = 144 }
0x15f6   : > { %v11165_v15 = vadd.f32 %v11159_v45, %v16295_v60  ;;  %v11162_v46 = vmul.f32 %v12888_v18, %v11147_v33 }
0x15f7   : > { %v11166_v3 = vadd.f32 %v11160_v9, %v16297_v6  ;;  %v11163_v7 = vmul.f32 %v12889_v47, %v11151_v52 }
0x15f8   : > { %11171 = vst [vmem:[#allocation2] sm:$0xff] %v11165_v15  ;;  %v11168_v34 = vadd.f32 %v11162_v46, %v16299_v12  ;;  %v11186_v12 = vld [vmem:[#allocation2 + $0x28] sm:$0xff] (!%p12433_p6) }
0x15f9   : > { %11172 = vst [vmem:[#allocation2 + $0x8] sm:$0xff] %v11166_v3  ;;  %v11169_v32 = vadd.f32 %v11163_v7, %v16303_v31  ;;  %11192 = vst [vmem:[%s17663_s24 + $0x28] sm:$0xff] (!%p12433_p6), %v11186_v12 }
0x15fa   : > { %11174 = vst [vmem:[#allocation2 + $0x18] sm:$0xff] %v11168_v34 }
0x15fb   : > { %11175 = vst [vmem:[#allocation2 + $0x20] sm:$0xff] %v11169_v32 }
0x15ff   : > { %v11181_v62 = vld [vmem:[#allocation2] sm:$0xff] }
0x1600   : > { %v11182_v59 = vld [vmem:[#allocation2 + $0x8] sm:$0xff]  ;;  %11187 = vst [vmem:[%s17663_s24] sm:$0xff] %v11181_v62 }
0x1601   : > { %11188 = vst [vmem:[%s17663_s24 + $0x8] sm:$0xff] %v11182_v59  ;;  %v11184_v60 = vld [vmem:[#allocation2 + $0x18] sm:$0xff] }
0x1602   : > { %v11185_v6 = vld [vmem:[#allocation2 + $0x20] sm:$0xff]  ;;  %11190 = vst [vmem:[%s17663_s24 + $0x18] sm:$0xff] %v11184_v60 }
0x1603   : > { %11191 = vst [vmem:[%s17663_s24 + $0x20] sm:$0xff] %v11185_v6 }
0x1604 PF: > { %s17664_s21 = sld [smem:[#allocation37_spill]]  ;;  %s17665_s18 = sld [smem:[#allocation34_spill]] }
0x1605   : > { %s17666_s19 = sld [smem:[#allocation35_spill]]  ;;  %s17667_s20 = sld [smem:[#allocation38_spill]] }
0x160a   : > { %p46_p3 = scmp.ge.s32.totalorder %s17664_s21, 14  }
0x160c   :  { %48 = sbr.rel (!%p46_p3) target bundleno = 25 (0x19), region = 281 }
0x1613   :  { %11204 = vsyncpa [#allocation5], 1 }
0x1614   :  { %11206 = vsyncpa [#allocation5 + $0x1], 1 }
0x1615   :  { %11207 = vsyncpa [#allocation7], 1 }
0x1616   :  { %11209 = vsyncpa [#allocation7 + $0x1], 1 }
0x1617   :  { %11210 = vsyncpa [#allocation10], 1 }
0x1618   :  { %11212 = vsyncpa [#allocation10 + $0x1], 1 }
0x1619   :  { %11213 = vsyncpa [#allocation13], 1 }
0x161a   :  { %11215 = vsyncpa [#allocation13 + $0x1], 1 }
0x161b   :  { %11216 = vsyncpa [#allocation16], 1 }
0x161c   :  { %11218 = vsyncpa [#allocation16 + $0x1], 1 }
0x161d   :  { %11219 = vsyncpa [#allocation19], 1 }
0x161e   :  { %11221 = vsyncpa [#allocation19 + $0x1], 1 }
0x161f   :  { %11222 = vsyncpa [#allocation22], 1 }
0x1620   :  { %11224 = vsyncpa [#allocation22 + $0x1], 1 }
0x1621   :  { %11225 = vsyncpa [#allocation25], 1 }
0x1622   :  { %11227 = vsyncpa [#allocation25 + $0x1], 1 }

</bundles_post_ra>
